<compile_context>
chip_gen: v7x
topology: tpu7x:2x2x1
jax: 0.10.0
libtpu: 0.0.40
codegen_flags: <defaults>
</compile_context>

<pallas_src>
import functools

import numpy as np
import jax
import jax.numpy as jnp
from jax.experimental import pallas as pl
from jax.experimental.pallas import tpu as pltpu


# --------------------------------------------------------------------------
# helpers
# --------------------------------------------------------------------------

def _round_up(v, m):
    return ((v + m - 1) // m) * m


def _pad_last(a, n):
    """Zero-pad the last axis of `a` up to length n."""
    pad = n - a.shape[-1]
    if pad <= 0:
        return a
    cfg = [(0, 0)] * (a.ndim - 1) + [(0, pad)]
    return jnp.pad(a, cfg)


# --------------------------------------------------------------------------
# Pallas kernels
# --------------------------------------------------------------------------

def _mm_bias_kernel(x_ref, w_ref, b_ref, o_ref):
    """[tm, K]bf16 @ [K, Np]bf16 (f32 accum) + bias."""
    y = jnp.dot(x_ref[...], w_ref[...], preferred_element_type=jnp.float32)
    y = y + b_ref[...]
    o_ref[...] = y.astype(o_ref.dtype)


def _conv_bn_relu_kernel(x_ref, w_ref, a_ref, g_ref, b_ref, o_ref, *, inv_count, eps):
    """Fused conv-matmul + training-mode BatchNorm + ReLU, single block.

    x_ref: [M, K] bf16 patches, w_ref: [K, Np] bf16 weights,
    a_ref: [Np, Np] f32 phase-combine/broadcast matrix
           (identity on valid cols for plain convs; combines the 4 sub-pixel
            phases per channel and broadcasts back for the ConvTranspose),
    g_ref/b_ref: [1, Np] f32 gamma/beta (tiled across phases, zero-padded).
    """
    y = jnp.dot(x_ref[...], w_ref[...], preferred_element_type=jnp.float32)  # [M, Np] f32
    s = jnp.sum(y, axis=0, keepdims=True)                                    # (1, Np)
    q = jnp.sum(y * y, axis=0, keepdims=True)                                # (1, Np)
    # Combine phase groups / broadcast per-channel sums back to full width.
    s = jnp.dot(s, a_ref[...], preferred_element_type=jnp.float32)
    q = jnp.dot(q, a_ref[...], preferred_element_type=jnp.float32)
    mean = s * inv_count
    var = jnp.maximum(q * inv_count - mean * mean, 0.0)   # biased var (PyTorch train-mode norm)
    scale = g_ref[...] * jax.lax.rsqrt(var + eps)
    shift = b_ref[...] - mean * scale
    o_ref[...] = jnp.maximum(y * scale + shift, 0.0).astype(o_ref.dtype)


# --------------------------------------------------------------------------
# Pallas wrappers
# --------------------------------------------------------------------------

def pallas_matmul_bias(x, w, b, out_dtype=jnp.float32):
    """x @ w + b. Output N zero-padded to a multiple of 128 (caller slices)."""
    M, K = x.shape
    N = w.shape[1]
    Np = _round_up(N, 128)
    x = x.astype(jnp.bfloat16)
    w = _pad_last(w, Np).astype(jnp.bfloat16)
    b = _pad_last(b, Np).astype(jnp.float32).reshape(1, Np)
    # Single block for small M; 2 parallel row tiles for large M (v7x megacore).
    tm = M // 2 if (M >= 1024 and M % 16 == 0) else M
    out = pl.pallas_call(
        _mm_bias_kernel,
        out_shape=jax.ShapeDtypeStruct((M, Np), out_dtype),
        grid=(M // tm,),
        in_specs=[
            pl.BlockSpec((tm, K), lambda i: (i, 0)),
            pl.BlockSpec((K, Np), lambda i: (0, 0)),
            pl.BlockSpec((1, Np), lambda i: (0, 0)),
        ],
        out_specs=pl.BlockSpec((tm, Np), lambda i: (i, 0)),
        compiler_params=pltpu.CompilerParams(dimension_semantics=("parallel",)),
    )(x, w, b)
    return out


def pallas_conv_bn_relu(patches, wmat, gamma, beta, phases=1, eps=1e-5,
                        out_dtype=jnp.bfloat16):
    """Fused (im2col conv) + BatchNorm(batch stats) + ReLU as ONE pallas_call.

    patches: [M, K], wmat: [K, N] with N = phases * Cout.
    Returns [M, Np] (lane-padded; caller slices to N).
    """
    M, K = patches.shape
    N = wmat.shape[1]
    cout = N // phases
    Np = _round_up(N, 128)

    x = patches.astype(jnp.bfloat16)
    w = _pad_last(wmat, Np).astype(jnp.bfloat16)

    # Phase-combine / broadcast matrix: A[i, j] = 1 iff i, j are valid columns
    # of the same output channel (i % cout == j % cout).  Identity for phases=1.
    A = np.zeros((Np, Np), np.float32)
    for i in range(N):
        for j in range(N):
            if i % cout == j % cout:
                A[i, j] = 1.0

    g_full = _pad_last(jnp.tile(gamma.astype(jnp.float32), phases), Np).reshape(1, Np)
    b_full = _pad_last(jnp.tile(beta.astype(jnp.float32), phases), Np).reshape(1, Np)
    inv_count = 1.0 / float(phases * M)

    out = pl.pallas_call(
        functools.partial(_conv_bn_relu_kernel, inv_count=inv_count, eps=eps),
        out_shape=jax.ShapeDtypeStruct((M, Np), out_dtype),
        grid=(1,),
        in_specs=[
            pl.BlockSpec((M, K), lambda i: (0, 0)),
            pl.BlockSpec((K, Np), lambda i: (0, 0)),
            pl.BlockSpec((Np, Np), lambda i: (0, 0)),
            pl.BlockSpec((1, Np), lambda i: (0, 0)),
            pl.BlockSpec((1, Np), lambda i: (0, 0)),
        ],
        out_specs=pl.BlockSpec((M, Np), lambda i: (0, 0)),
        compiler_params=pltpu.CompilerParams(dimension_semantics=("arbitrary",)),
    )(x, w, jnp.asarray(A), g_full, b_full)
    return out


# --------------------------------------------------------------------------
# JAX glue: NHWC im2col, layer wrappers, parameter init
# --------------------------------------------------------------------------

def im2col_nhwc(x, kh, kw, stride, pad):
    """x: [B, H, W, C] -> patches [B*Ho*Wo, kh*kw*C] (K ordered kh, kw, c)."""
    # TODO(synk): patch extraction stays in XLA glue (cheap strided slices on
    # NHWC); pulling it in-kernel (9 shifted sub-block matmuls) is a follow-up.
    B, H, W, C = x.shape
    xp = jnp.pad(x, ((0, 0), (pad, pad), (pad, pad), (0, 0)))
    Ho = (H + 2 * pad - kh) // stride + 1
    Wo = (W + 2 * pad - kw) // stride + 1
    cols = []
    for i in range(kh):
        for j in range(kw):
            cols.append(xp[:, i:i + stride * Ho:stride, j:j + stride * Wo:stride, :])
    p = jnp.concatenate(cols, axis=-1)          # [B, Ho, Wo, kh*kw*C]
    return p.reshape(B * Ho * Wo, kh * kw * C), Ho, Wo


def _conv_weight_matrix(w):
    """[Cout, Cin, kh, kw] -> [kh*kw*Cin, Cout], matching im2col K order."""
    Cout, Cin, kh, kw = w.shape
    return w.transpose(2, 3, 1, 0).reshape(kh * kw * Cin, Cout)


def conv_bias(x, w, b, stride=1, pad=1, out_dtype=jnp.float32):
    """Conv2d + bias (no BN/activation), NHWC in/out."""
    B = x.shape[0]
    Cout = w.shape[0]
    patches, Ho, Wo = im2col_nhwc(x, w.shape[2], w.shape[3], stride, pad)
    y = pallas_matmul_bias(patches, _conv_weight_matrix(w), b, out_dtype=out_dtype)
    return y[:, :Cout].reshape(B, Ho, Wo, Cout), patches.shape[0]


def conv_bn_relu(x, w, gamma, beta, stride=1, pad=1):
    """Conv2d + training-mode BatchNorm2d + ReLU (one fused kernel), NHWC in/out.

    The conv bias is omitted: any per-channel constant is exactly cancelled by
    the BatchNorm batch-mean subtraction.
    """
    B = x.shape[0]
    Cout = w.shape[0]
    patches, Ho, Wo = im2col_nhwc(x, w.shape[2], w.shape[3], stride, pad)
    y = pallas_conv_bn_relu(patches, _conv_weight_matrix(w), gamma, beta, phases=1)
    return y[:, :Cout].reshape(B, Ho, Wo, Cout)


# phase r of a k=4, s=2, p=1 ConvTranspose: (3x3-patch offset, kernel tap) pairs
_PHASE_TAPS = (((0, 3), (1, 1)),    # even output rows / cols
               ((1, 2), (2, 0)))    # odd  output rows / cols


def _convt_weight_matrix(w):
    """ConvTranspose2d weight [Cin, Cout, 4, 4] -> combined dense [9*Cin, 4*Cout]
    for a 3x3/pad-1 im2col (sub-pixel / phase-split formulation)."""
    Cin, Cout = w.shape[0], w.shape[1]
    Wc = jnp.zeros((3, 3, Cin, 2, 2, Cout), w.dtype)
    for r, rtaps in enumerate(_PHASE_TAPS):
        for di, kh in rtaps:
            for c, ctaps in enumerate(_PHASE_TAPS):
                for dj, kw in ctaps:
                    Wc = Wc.at[di, dj, :, r, c, :].set(w[:, :, kh, kw])
    return Wc.reshape(9 * Cin, 4 * Cout)


def convt_bn_relu(x, w, gamma, beta):
    """ConvTranspose2d(k=4,s=2,p=1) + BatchNorm2d + ReLU (one fused kernel), NHWC."""
    B, H, W, _ = x.shape
    Cout = w.shape[1]
    patches, _, _ = im2col_nhwc(x, 3, 3, 1, 1)              # [B*H*W, 9*Cin]
    y = pallas_conv_bn_relu(patches, _convt_weight_matrix(w), gamma, beta, phases=4)
    a = y[:, :4 * Cout].reshape(B, H, W, 2, 2, Cout)
    a = a.transpose(0, 1, 3, 2, 4, 5).reshape(B, 2 * H, 2 * W, Cout)   # pixel shuffle
    return a


def adaptive_pool_matrix(in_size, out_size):
    """Row-stochastic matrix reproducing nn.AdaptiveAvgPool2d index arithmetic."""
    P = np.zeros((out_size, in_size), np.float32)
    for i in range(out_size):
        s = (i * in_size) // out_size
        e = -((-(i + 1) * in_size) // out_size)             # ceil((i+1)*in/out)
        P[i, s:e] = 1.0 / (e - s)
    return P


def feature_extractor(encoded, wf, bf):
    """Conv2d 1x1 (Pallas matmul) + AdaptiveAvgPool2d((34,34)) (tiny XLA glue)."""
    B, Hf, Wf, Cin = encoded.shape
    Cout = wf.shape[0]
    fm = encoded.reshape(B * Hf * Wf, Cin)
    y = pallas_matmul_bias(fm, wf.reshape(Cout, Cin).T, bf, out_dtype=jnp.float32)
    f = y[:, :Cout].reshape(B, Hf, Wf, Cout)
    # Separable adaptive pooling: < 0.3 MFLOP total, fused by XLA with the glue.
    Ph = jnp.asarray(adaptive_pool_matrix(Hf, 34))          # (34, Hf)
    Pw = jnp.asarray(adaptive_pool_matrix(Wf, 34))          # (34, Wf)
    f = jnp.einsum('oh,bhwc->bowc', Ph, f)
    f = jnp.einsum('pw,bowc->bopc', Pw, f)
    return jnp.transpose(f, (0, 3, 1, 2))                   # [B, Cout, 34, 34]


def init_params(key, in_channels=4, base=32, out=2):
    ks = jax.random.split(key, 8)

    def wnorm(k, shape):
        fan_in = int(np.prod(shape[1:]))
        return (jax.random.normal(k, shape, jnp.float32) / np.sqrt(fan_in)).astype(jnp.float32)

    p = {}
    p["proj_w"] = wnorm(ks[0], (base, in_channels, 3, 3)); p["proj_b"] = jnp.zeros((base,), jnp.float32)
    p["e1_w"] = wnorm(ks[1], (base, base, 3, 3))
    p["e2_w"] = wnorm(ks[2], (base * 2, base, 3, 3))
    p["e3_w"] = wnorm(ks[3], (base * 4, base * 2, 3, 3))
    # ConvTranspose2d weights: [C_in, C_out, kh, kw]
    p["d1_w"] = wnorm(ks[4], (base * 4, base * 2, 4, 4))
    p["d2_w"] = wnorm(ks[5], (base * 2, base, 4, 4))
    p["d3_w"] = wnorm(ks[6], (out, base, 3, 3));            p["d3_b"] = jnp.zeros((out,), jnp.float32)
    p["f_w"] = wnorm(ks[7], (out, base * 4, 1, 1));         p["f_b"] = jnp.zeros((out,), jnp.float32)
    # Conv biases of BN-fed layers are omitted from the forward math: the BN
    # batch-mean subtraction cancels any per-channel constant exactly.
    for name, c in [("e1", base), ("e2", base * 2), ("e3", base * 4),
                    ("d1", base * 2), ("d2", base)]:
        p[name + "_g"] = jnp.ones((c,), jnp.float32)
        p[name + "_be"] = jnp.zeros((c,), jnp.float32)
    return p


def adaptive_cnn_forward(x, p):
    """x: [B, C, H, W] (or [B, C, H, W, T]). Returns (output [B,2,2H,2W], features [B,2,34,34])."""
    if x.ndim == 5:
        B, C, H, W, T = x.shape
        x = jnp.transpose(x, (0, 1, 4, 2, 3)).reshape(B, C * T, H, W)

    h = jnp.transpose(x, (0, 2, 3, 1)).astype(jnp.bfloat16)          # NCHW -> NHWC bf16

    # ---- input_proj ----
    h, _ = conv_bias(h, p["proj_w"], p["proj_b"], 1, 1, jnp.bfloat16)

    # ---- encoder (fused conv+BN+ReLU kernels) ----
    h = conv_bn_relu(h, p["e1_w"], p["e1_g"], p["e1_be"], 1, 1)
    h = conv_bn_relu(h, p["e2_w"], p["e2_g"], p["e2_be"], 2, 1)
    encoded = conv_bn_relu(h, p["e3_w"], p["e3_g"], p["e3_be"], 1, 1)

    # ---- decoder ----
    h = convt_bn_relu(encoded, p["d1_w"], p["d1_g"], p["d1_be"])
    h = convt_bn_relu(h, p["d2_w"], p["d2_g"], p["d2_be"])
    # d3: conv + tanh.  Matmul in Pallas (2 parallel row tiles for M=2048);
    # tanh applied in XLA after slicing to the 2 valid channels (avoids the
    # 64x-padded in-kernel transcendental and the padded f32 store).
    B2, Hh, Wh, _ = h.shape
    patches, Ho, Wo = im2col_nhwc(h, 3, 3, 1, 1)
    y = pallas_matmul_bias(patches, _conv_weight_matrix(p["d3_w"]), p["d3_b"],
                           out_dtype=jnp.float32)
    out_nhwc = jnp.tanh(y[:, :2]).reshape(B2, Ho, Wo, 2)
    output = jnp.transpose(out_nhwc, (0, 3, 1, 2))                    # NHWC -> NCHW

    # ---- feature_extractor ----
    features = feature_extractor(encoded, p["f_w"], p["f_b"])
    return output, features

    # TODO(synk): whole-model single-kernel fusion (all weights + activations
    # fit in VMEM on every generation) is the next structural step; kept as
    # per-layer kernels here for clarity.


# --------------------------------------------------------------------------

if __name__ == "__main__":
    B, C, H, W = 2, 4, 16, 16
    x = jax.random.normal(jax.random.PRNGKey(0), (B, C, H, W), jnp.float32)
    params = init_params(jax.random.PRNGKey(1), in_channels=C, base=32, out=2)

    forward = jax.jit(adaptive_cnn_forward)
    output, features = forward(x, params)
    jax.block_until_ready((output, features))

    assert output.shape == (B, 2, 2 * H, 2 * W), output.shape
    assert features.shape == (B, 2, 34, 34), features.shape
    assert bool(jnp.all(jnp.isfinite(output))) and bool(jnp.all(jnp.isfinite(features)))
    # TODO(synk): lazy _initialize_layers / .to(device) bookkeeping and BN
    # running-stat updates are host-side module state with no kernel equivalent.
    print("KERNEL_OK")
</pallas_src>

<mosaic_0001>
module attributes {stable_mosaic.version = 11 : i64} {
  func.func @_mm_bias_kernel(%arg0: i32, %arg1: memref<512x36xbf16, #tpu.memory_space<vmem>>, %arg2: memref<36x128xbf16, #tpu.memory_space<vmem>>, %arg3: memref<1x128xf32, #tpu.memory_space<vmem>>, %arg4: memref<512x128xbf16, #tpu.memory_space<vmem>>) attributes {dimension_semantics = [#tpu.dimension_semantics<parallel>], iteration_bounds = array<i64: 1>, scalar_prefetch = 0 : i64, scratch_operands = 0 : i64, tpu.core_type = #tpu.core_type<tc>, window_params = [{transform_indices = @transform_0, window_bounds = array<i64: 512, 36>}, {pipeline_mode = #tpu.pipeline_mode<synchronous>, transform_indices = @transform_1, window_bounds = array<i64: 36, 128>}, {pipeline_mode = #tpu.pipeline_mode<synchronous>, transform_indices = @transform_2, window_bounds = array<i64: 1, 128>}, {transform_indices = @transform_3, window_bounds = array<i64: 512, 128>}]} {
    %c0 = arith.constant 0 : index
    %c0_0 = arith.constant 0 : index
    %0 = vector.load %arg1[%c0, %c0_0] : memref<512x36xbf16, #tpu.memory_space<vmem>>, vector<512x36xbf16>
    %c0_1 = arith.constant 0 : index
    %c0_2 = arith.constant 0 : index
    %1 = vector.load %arg2[%c0_1, %c0_2] : memref<36x128xbf16, #tpu.memory_space<vmem>>, vector<36x128xbf16>
    %cst = arith.constant dense<0.000000e+00> : vector<512x128xf32>
    %2 = tpu.matmul %0, %1, %cst {dimension_numbers = #tpu.dot_dimension_numbers<[1], [0], [0], [1], [0, 0, 1, 1], [], []>} : vector<512x36xbf16>, vector<36x128xbf16>, vector<512x128xf32> -> vector<512x128xf32>
    %c0_3 = arith.constant 0 : index
    %c0_4 = arith.constant 0 : index
    %3 = vector.load %arg3[%c0_3, %c0_4] : memref<1x128xf32, #tpu.memory_space<vmem>>, vector<1x128xf32>
    %4 = vector.broadcast %3 : vector<1x128xf32> to vector<512x128xf32>
    %5 = arith.addf %2, %4 : vector<512x128xf32>
    %6 = arith.truncf %5 : vector<512x128xf32> to vector<512x128xbf16>
    %c0_5 = arith.constant 0 : index
    %c0_6 = arith.constant 0 : index
    %7 = vector.load %arg4[%c0_5, %c0_6] : memref<512x128xbf16, #tpu.memory_space<vmem>>, vector<512x128xbf16>
    tpu.vector_store %arg4[%c0_5, %c0_6], %6 {strides = array<i32>} : memref<512x128xbf16, #tpu.memory_space<vmem>>, vector<512x128xbf16>,
    return
  }
  func.func @transform_0(%arg0: i32) -> (i32, i32) {
    %c0_i32 = arith.constant 0 : i32
    %c0_i32_0 = arith.constant 0 : i32
    return %arg0, %c0_i32 : i32, i32
  }
  func.func @transform_1(%arg0: i32) -> (i32, i32) {
    %c0_i32 = arith.constant 0 : i32
    %c0_i32_0 = arith.constant 0 : i32
    %c0_i32_1 = arith.constant 0 : i32
    return %c0_i32, %c0_i32_0 : i32, i32
  }
  func.func @transform_2(%arg0: i32) -> (i32, i32) {
    %c0_i32 = arith.constant 0 : i32
    %c0_i32_0 = arith.constant 0 : i32
    %c0_i32_1 = arith.constant 0 : i32
    return %c0_i32, %c0_i32_0 : i32, i32
  }
  func.func @transform_3(%arg0: i32) -> (i32, i32) {
    %c0_i32 = arith.constant 0 : i32
    %c0_i32_0 = arith.constant 0 : i32
    return %arg0, %c0_i32 : i32, i32
  }
}

module attributes {stable_mosaic.version = 11 : i64} {
  func.func @_conv_bn_relu_kernel(%arg0: i32, %arg1: memref<512x288xbf16, #tpu.memory_space<vmem>>, %arg2: memref<288x128xbf16, #tpu.memory_space<vmem>>, %arg3: memref<128x128xf32, #tpu.memory_space<vmem>>, %arg4: memref<1x128xf32, #tpu.memory_space<vmem>>, %arg5: memref<1x128xf32, #tpu.memory_space<vmem>>, %arg6: memref<512x128xbf16, #tpu.memory_space<vmem>>) attributes {dimension_semantics = [#tpu.dimension_semantics<arbitrary>], iteration_bounds = array<i64: 1>, scalar_prefetch = 0 : i64, scratch_operands = 0 : i64, tpu.core_type = #tpu.core_type<tc>, window_params = [{pipeline_mode = #tpu.pipeline_mode<synchronous>, transform_indices = @transform_0, window_bounds = array<i64: 512, 288>}, {pipeline_mode = #tpu.pipeline_mode<synchronous>, transform_indices = @transform_1, window_bounds = array<i64: 288, 128>}, {pipeline_mode = #tpu.pipeline_mode<synchronous>, transform_indices = @transform_2, window_bounds = array<i64: 128, 128>}, {pipeline_mode = #tpu.pipeline_mode<synchronous>, transform_indices = @transform_3, window_bounds = array<i64: 1, 128>}, {pipeline_mode = #tpu.pipeline_mode<synchronous>, transform_indices = @transform_4, window_bounds = array<i64: 1, 128>}, {pipeline_mode = #tpu.pipeline_mode<synchronous>, transform_indices = @transform_5, window_bounds = array<i64: 512, 128>}]} {
    %c0 = arith.constant 0 : index
    %c0_0 = arith.constant 0 : index
    %0 = vector.load %arg1[%c0, %c0_0] : memref<512x288xbf16, #tpu.memory_space<vmem>>, vector<512x288xbf16>
    %c0_1 = arith.constant 0 : index
    %c0_2 = arith.constant 0 : index
    %1 = vector.load %arg2[%c0_1, %c0_2] : memref<288x128xbf16, #tpu.memory_space<vmem>>, vector<288x128xbf16>
    %cst = arith.constant dense<0.000000e+00> : vector<512x128xf32>
    %2 = tpu.matmul %0, %1, %cst {dimension_numbers = #tpu.dot_dimension_numbers<[1], [0], [0], [1], [0, 0, 1, 1], [], []>} : vector<512x288xbf16>, vector<288x128xbf16>, vector<512x128xf32> -> vector<512x128xf32>
    %cst_3 = arith.constant dense<0.000000e+00> : vector<128xf32>
    %3 = vector.multi_reduction <add>, %2, %cst_3 [0] : vector<512x128xf32> to vector<128xf32>
    %4 = vector.shape_cast %3 : vector<128xf32> to vector<1x128xf32>
    %5 = arith.mulf %2, %2 : vector<512x128xf32>
    %cst_4 = arith.constant dense<0.000000e+00> : vector<128xf32>
    %6 = vector.multi_reduction <add>, %5, %cst_4 [0] : vector<512x128xf32> to vector<128xf32>
    %7 = vector.shape_cast %6 : vector<128xf32> to vector<1x128xf32>
    %c0_5 = arith.constant 0 : index
    %c0_6 = arith.constant 0 : index
    %8 = vector.load %arg3[%c0_5, %c0_6] : memref<128x128xf32, #tpu.memory_space<vmem>>, vector<128x128xf32>
    %cst_7 = arith.constant dense<0.000000e+00> : vector<1x128xf32>
    %9 = tpu.matmul %4, %8, %cst_7 {dimension_numbers = #tpu.dot_dimension_numbers<[1], [0], [0], [1], [0, 0, 1, 1], [], []>} : vector<1x128xf32>, vector<128x128xf32>, vector<1x128xf32> -> vector<1x128xf32>
    %c0_8 = arith.constant 0 : index
    %c0_9 = arith.constant 0 : index
    %10 = vector.load %arg3[%c0_8, %c0_9] : memref<128x128xf32, #tpu.memory_space<vmem>>, vector<128x128xf32>
    %cst_10 = arith.constant dense<0.000000e+00> : vector<1x128xf32>
    %11 = tpu.matmul %7, %10, %cst_10 {dimension_numbers = #tpu.dot_dimension_numbers<[1], [0], [0], [1], [0, 0, 1, 1], [], []>} : vector<1x128xf32>, vector<128x128xf32>, vector<1x128xf32> -> vector<1x128xf32>
    %cst_11 = arith.constant 0.001953125 : f32
    %12 = vector.broadcast %cst_11 : f32 to vector<1x128xf32>
    %13 = arith.mulf %9, %12 : vector<1x128xf32>
    %cst_12 = arith.constant 0.001953125 : f32
    %14 = vector.broadcast %cst_12 : f32 to vector<1x128xf32>
    %15 = arith.mulf %11, %14 : vector<1x128xf32>
    %16 = arith.mulf %13, %13 : vector<1x128xf32>
    %17 = arith.subf %15, %16 : vector<1x128xf32>
    %cst_13 = arith.constant 0.000000e+00 : f32
    %18 = vector.broadcast %cst_13 : f32 to vector<1x128xf32>
    %19 = arith.maximumf %17, %18 : vector<1x128xf32>
    %c0_14 = arith.constant 0 : index
    %c0_15 = arith.constant 0 : index
    %20 = vector.load %arg4[%c0_14, %c0_15] : memref<1x128xf32, #tpu.memory_space<vmem>>, vector<1x128xf32>
    %cst_16 = arith.constant 9.99999974E-6 : f32
    %21 = vector.broadcast %cst_16 : f32 to vector<1x128xf32>
    %22 = arith.addf %19, %21 : vector<1x128xf32>
    %23 = math.rsqrt %22 : vector<1x128xf32>
    %24 = arith.mulf %20, %23 : vector<1x128xf32>
    %c0_17 = arith.constant 0 : index
    %c0_18 = arith.constant 0 : index
    %25 = vector.load %arg5[%c0_17, %c0_18] : memref<1x128xf32, #tpu.memory_space<vmem>>, vector<1x128xf32>
    %26 = arith.mulf %13, %24 : vector<1x128xf32>
    %27 = arith.subf %25, %26 : vector<1x128xf32>
    %28 = vector.broadcast %24 : vector<1x128xf32> to vector<512x128xf32>
    %29 = arith.mulf %2, %28 : vector<512x128xf32>
    %30 = vector.broadcast %27 : vector<1x128xf32> to vector<512x128xf32>
    %31 = arith.addf %29, %30 : vector<512x128xf32>
    %cst_19 = arith.constant 0.000000e+00 : f32
    %32 = vector.broadcast %cst_19 : f32 to vector<512x128xf32>
    %33 = arith.maximumf %31, %32 : vector<512x128xf32>
    %34 = arith.truncf %33 : vector<512x128xf32> to vector<512x128xbf16>
    %c0_20 = arith.constant 0 : index
    %c0_21 = arith.constant 0 : index
    %35 = vector.load %arg6[%c0_20, %c0_21] : memref<512x128xbf16, #tpu.memory_space<vmem>>, vector<512x128xbf16>
    tpu.vector_store %arg6[%c0_20, %c0_21], %34 {strides = array<i32>} : memref<512x128xbf16, #tpu.memory_space<vmem>>, vector<512x128xbf16>,
    return
  }
  func.func @transform_0(%arg0: i32) -> (i32, i32) {
    %c0_i32 = arith.constant 0 : i32
    %c0_i32_0 = arith.constant 0 : i32
    %c0_i32_1 = arith.constant 0 : i32
    return %c0_i32, %c0_i32_0 : i32, i32
  }
  func.func @transform_1(%arg0: i32) -> (i32, i32) {
    %c0_i32 = arith.constant 0 : i32
    %c0_i32_0 = arith.constant 0 : i32
    %c0_i32_1 = arith.constant 0 : i32
    return %c0_i32, %c0_i32_0 : i32, i32
  }
  func.func @transform_2(%arg0: i32) -> (i32, i32) {
    %c0_i32 = arith.constant 0 : i32
    %c0_i32_0 = arith.constant 0 : i32
    %c0_i32_1 = arith.constant 0 : i32
    return %c0_i32, %c0_i32_0 : i32, i32
  }
  func.func @transform_3(%arg0: i32) -> (i32, i32) {
    %c0_i32 = arith.constant 0 : i32
    %c0_i32_0 = arith.constant 0 : i32
    %c0_i32_1 = arith.constant 0 : i32
    return %c0_i32, %c0_i32_0 : i32, i32
  }
  func.func @transform_4(%arg0: i32) -> (i32, i32) {
    %c0_i32 = arith.constant 0 : i32
    %c0_i32_0 = arith.constant 0 : i32
    %c0_i32_1 = arith.constant 0 : i32
    return %c0_i32, %c0_i32_0 : i32, i32
  }
  func.func @transform_5(%arg0: i32) -> (i32, i32) {
    %c0_i32 = arith.constant 0 : i32
    %c0_i32_0 = arith.constant 0 : i32
    %c0_i32_1 = arith.constant 0 : i32
    return %c0_i32, %c0_i32_0 : i32, i32
  }
}

module attributes {stable_mosaic.version = 11 : i64} {
  func.func @_conv_bn_relu_kernel(%arg0: i32, %arg1: memref<128x288xbf16, #tpu.memory_space<vmem>>, %arg2: memref<288x128xbf16, #tpu.memory_space<vmem>>, %arg3: memref<128x128xf32, #tpu.memory_space<vmem>>, %arg4: memref<1x128xf32, #tpu.memory_space<vmem>>, %arg5: memref<1x128xf32, #tpu.memory_space<vmem>>, %arg6: memref<128x128xbf16, #tpu.memory_space<vmem>>) attributes {dimension_semantics = [#tpu.dimension_semantics<arbitrary>], iteration_bounds = array<i64: 1>, scalar_prefetch = 0 : i64, scratch_operands = 0 : i64, tpu.core_type = #tpu.core_type<tc>, window_params = [{pipeline_mode = #tpu.pipeline_mode<synchronous>, transform_indices = @transform_0, window_bounds = array<i64: 128, 288>}, {pipeline_mode = #tpu.pipeline_mode<synchronous>, transform_indices = @transform_1, window_bounds = array<i64: 288, 128>}, {pipeline_mode = #tpu.pipeline_mode<synchronous>, transform_indices = @transform_2, window_bounds = array<i64: 128, 128>}, {pipeline_mode = #tpu.pipeline_mode<synchronous>, transform_indices = @transform_3, window_bounds = array<i64: 1, 128>}, {pipeline_mode = #tpu.pipeline_mode<synchronous>, transform_indices = @transform_4, window_bounds = array<i64: 1, 128>}, {pipeline_mode = #tpu.pipeline_mode<synchronous>, transform_indices = @transform_5, window_bounds = array<i64: 128, 128>}]} {
    %c0 = arith.constant 0 : index
    %c0_0 = arith.constant 0 : index
    %0 = vector.load %arg1[%c0, %c0_0] : memref<128x288xbf16, #tpu.memory_space<vmem>>, vector<128x288xbf16>
    %c0_1 = arith.constant 0 : index
    %c0_2 = arith.constant 0 : index
    %1 = vector.load %arg2[%c0_1, %c0_2] : memref<288x128xbf16, #tpu.memory_space<vmem>>, vector<288x128xbf16>
    %cst = arith.constant dense<0.000000e+00> : vector<128x128xf32>
    %2 = tpu.matmul %0, %1, %cst {dimension_numbers = #tpu.dot_dimension_numbers<[1], [0], [0], [1], [0, 0, 1, 1], [], []>} : vector<128x288xbf16>, vector<288x128xbf16>, vector<128x128xf32> -> vector<128x128xf32>
    %cst_3 = arith.constant dense<0.000000e+00> : vector<128xf32>
    %3 = vector.multi_reduction <add>, %2, %cst_3 [0] : vector<128x128xf32> to vector<128xf32>
    %4 = vector.shape_cast %3 : vector<128xf32> to vector<1x128xf32>
    %5 = arith.mulf %2, %2 : vector<128x128xf32>
    %cst_4 = arith.constant dense<0.000000e+00> : vector<128xf32>
    %6 = vector.multi_reduction <add>, %5, %cst_4 [0] : vector<128x128xf32> to vector<128xf32>
    %7 = vector.shape_cast %6 : vector<128xf32> to vector<1x128xf32>
    %c0_5 = arith.constant 0 : index
    %c0_6 = arith.constant 0 : index
    %8 = vector.load %arg3[%c0_5, %c0_6] : memref<128x128xf32, #tpu.memory_space<vmem>>, vector<128x128xf32>
    %cst_7 = arith.constant dense<0.000000e+00> : vector<1x128xf32>
    %9 = tpu.matmul %4, %8, %cst_7 {dimension_numbers = #tpu.dot_dimension_numbers<[1], [0], [0], [1], [0, 0, 1, 1], [], []>} : vector<1x128xf32>, vector<128x128xf32>, vector<1x128xf32> -> vector<1x128xf32>
    %c0_8 = arith.constant 0 : index
    %c0_9 = arith.constant 0 : index
    %10 = vector.load %arg3[%c0_8, %c0_9] : memref<128x128xf32, #tpu.memory_space<vmem>>, vector<128x128xf32>
    %cst_10 = arith.constant dense<0.000000e+00> : vector<1x128xf32>
    %11 = tpu.matmul %7, %10, %cst_10 {dimension_numbers = #tpu.dot_dimension_numbers<[1], [0], [0], [1], [0, 0, 1, 1], [], []>} : vector<1x128xf32>, vector<128x128xf32>, vector<1x128xf32> -> vector<1x128xf32>
    %cst_11 = arith.constant 7.812500e-03 : f32
    %12 = vector.broadcast %cst_11 : f32 to vector<1x128xf32>
    %13 = arith.mulf %9, %12 : vector<1x128xf32>
    %cst_12 = arith.constant 7.812500e-03 : f32
    %14 = vector.broadcast %cst_12 : f32 to vector<1x128xf32>
    %15 = arith.mulf %11, %14 : vector<1x128xf32>
    %16 = arith.mulf %13, %13 : vector<1x128xf32>
    %17 = arith.subf %15, %16 : vector<1x128xf32>
    %cst_13 = arith.constant 0.000000e+00 : f32
    %18 = vector.broadcast %cst_13 : f32 to vector<1x128xf32>
    %19 = arith.maximumf %17, %18 : vector<1x128xf32>
    %c0_14 = arith.constant 0 : index
    %c0_15 = arith.constant 0 : index
    %20 = vector.load %arg4[%c0_14, %c0_15] : memref<1x128xf32, #tpu.memory_space<vmem>>, vector<1x128xf32>
    %cst_16 = arith.constant 9.99999974E-6 : f32
    %21 = vector.broadcast %cst_16 : f32 to vector<1x128xf32>
    %22 = arith.addf %19, %21 : vector<1x128xf32>
    %23 = math.rsqrt %22 : vector<1x128xf32>
    %24 = arith.mulf %20, %23 : vector<1x128xf32>
    %c0_17 = arith.constant 0 : index
    %c0_18 = arith.constant 0 : index
    %25 = vector.load %arg5[%c0_17, %c0_18] : memref<1x128xf32, #tpu.memory_space<vmem>>, vector<1x128xf32>
    %26 = arith.mulf %13, %24 : vector<1x128xf32>
    %27 = arith.subf %25, %26 : vector<1x128xf32>
    %28 = vector.broadcast %24 : vector<1x128xf32> to vector<128x128xf32>
    %29 = arith.mulf %2, %28 : vector<128x128xf32>
    %30 = vector.broadcast %27 : vector<1x128xf32> to vector<128x128xf32>
    %31 = arith.addf %29, %30 : vector<128x128xf32>
    %cst_19 = arith.constant 0.000000e+00 : f32
    %32 = vector.broadcast %cst_19 : f32 to vector<128x128xf32>
    %33 = arith.maximumf %31, %32 : vector<128x128xf32>
    %34 = arith.truncf %33 : vector<128x128xf32> to vector<128x128xbf16>
    %c0_20 = arith.constant 0 : index
    %c0_21 = arith.constant 0 : index
    %35 = vector.load %arg6[%c0_20, %c0_21] : memref<128x128xbf16, #tpu.memory_space<vmem>>, vector<128x128xbf16>
    tpu.vector_store %arg6[%c0_20, %c0_21], %34 {strides = array<i32>} : memref<128x128xbf16, #tpu.memory_space<vmem>>, vector<128x128xbf16>,
    return
  }
  func.func @transform_0(%arg0: i32) -> (i32, i32) {
    %c0_i32 = arith.constant 0 : i32
    %c0_i32_0 = arith.constant 0 : i32
    %c0_i32_1 = arith.constant 0 : i32
    return %c0_i32, %c0_i32_0 : i32, i32
  }
  func.func @transform_1(%arg0: i32) -> (i32, i32) {
    %c0_i32 = arith.constant 0 : i32
    %c0_i32_0 = arith.constant 0 : i32
    %c0_i32_1 = arith.constant 0 : i32
    return %c0_i32, %c0_i32_0 : i32, i32
  }
  func.func @transform_2(%arg0: i32) -> (i32, i32) {
    %c0_i32 = arith.constant 0 : i32
    %c0_i32_0 = arith.constant 0 : i32
    %c0_i32_1 = arith.constant 0 : i32
    return %c0_i32, %c0_i32_0 : i32, i32
  }
  func.func @transform_3(%arg0: i32) -> (i32, i32) {
    %c0_i32 = arith.constant 0 : i32
    %c0_i32_0 = arith.constant 0 : i32
    %c0_i32_1 = arith.constant 0 : i32
    return %c0_i32, %c0_i32_0 : i32, i32
  }
  func.func @transform_4(%arg0: i32) -> (i32, i32) {
    %c0_i32 = arith.constant 0 : i32
    %c0_i32_0 = arith.constant 0 : i32
    %c0_i32_1 = arith.constant 0 : i32
    return %c0_i32, %c0_i32_0 : i32, i32
  }
  func.func @transform_5(%arg0: i32) -> (i32, i32) {
    %c0_i32 = arith.constant 0 : i32
    %c0_i32_0 = arith.constant 0 : i32
    %c0_i32_1 = arith.constant 0 : i32
    return %c0_i32, %c0_i32_0 : i32, i32
  }
}

module attributes {stable_mosaic.version = 11 : i64} {
  func.func @_conv_bn_relu_kernel(%arg0: i32, %arg1: memref<128x576xbf16, #tpu.memory_space<vmem>>, %arg2: memref<576x128xbf16, #tpu.memory_space<vmem>>, %arg3: memref<128x128xf32, #tpu.memory_space<vmem>>, %arg4: memref<1x128xf32, #tpu.memory_space<vmem>>, %arg5: memref<1x128xf32, #tpu.memory_space<vmem>>, %arg6: memref<128x128xbf16, #tpu.memory_space<vmem>>) attributes {dimension_semantics = [#tpu.dimension_semantics<arbitrary>], iteration_bounds = array<i64: 1>, scalar_prefetch = 0 : i64, scratch_operands = 0 : i64, tpu.core_type = #tpu.core_type<tc>, window_params = [{pipeline_mode = #tpu.pipeline_mode<synchronous>, transform_indices = @transform_0, window_bounds = array<i64: 128, 576>}, {pipeline_mode = #tpu.pipeline_mode<synchronous>, transform_indices = @transform_1, window_bounds = array<i64: 576, 128>}, {pipeline_mode = #tpu.pipeline_mode<synchronous>, transform_indices = @transform_2, window_bounds = array<i64: 128, 128>}, {pipeline_mode = #tpu.pipeline_mode<synchronous>, transform_indices = @transform_3, window_bounds = array<i64: 1, 128>}, {pipeline_mode = #tpu.pipeline_mode<synchronous>, transform_indices = @transform_4, window_bounds = array<i64: 1, 128>}, {pipeline_mode = #tpu.pipeline_mode<synchronous>, transform_indices = @transform_5, window_bounds = array<i64: 128, 128>}]} {
    %c0 = arith.constant 0 : index
    %c0_0 = arith.constant 0 : index
    %0 = vector.load %arg1[%c0, %c0_0] : memref<128x576xbf16, #tpu.memory_space<vmem>>, vector<128x576xbf16>
    %c0_1 = arith.constant 0 : index
    %c0_2 = arith.constant 0 : index
    %1 = vector.load %arg2[%c0_1, %c0_2] : memref<576x128xbf16, #tpu.memory_space<vmem>>, vector<576x128xbf16>
    %cst = arith.constant dense<0.000000e+00> : vector<128x128xf32>
    %2 = tpu.matmul %0, %1, %cst {dimension_numbers = #tpu.dot_dimension_numbers<[1], [0], [0], [1], [0, 0, 1, 1], [], []>} : vector<128x576xbf16>, vector<576x128xbf16>, vector<128x128xf32> -> vector<128x128xf32>
    %cst_3 = arith.constant dense<0.000000e+00> : vector<128xf32>
    %3 = vector.multi_reduction <add>, %2, %cst_3 [0] : vector<128x128xf32> to vector<128xf32>
    %4 = vector.shape_cast %3 : vector<128xf32> to vector<1x128xf32>
    %5 = arith.mulf %2, %2 : vector<128x128xf32>
    %cst_4 = arith.constant dense<0.000000e+00> : vector<128xf32>
    %6 = vector.multi_reduction <add>, %5, %cst_4 [0] : vector<128x128xf32> to vector<128xf32>
    %7 = vector.shape_cast %6 : vector<128xf32> to vector<1x128xf32>
    %c0_5 = arith.constant 0 : index
    %c0_6 = arith.constant 0 : index
    %8 = vector.load %arg3[%c0_5, %c0_6] : memref<128x128xf32, #tpu.memory_space<vmem>>, vector<128x128xf32>
    %cst_7 = arith.constant dense<0.000000e+00> : vector<1x128xf32>
    %9 = tpu.matmul %4, %8, %cst_7 {dimension_numbers = #tpu.dot_dimension_numbers<[1], [0], [0], [1], [0, 0, 1, 1], [], []>} : vector<1x128xf32>, vector<128x128xf32>, vector<1x128xf32> -> vector<1x128xf32>
    %c0_8 = arith.constant 0 : index
    %c0_9 = arith.constant 0 : index
    %10 = vector.load %arg3[%c0_8, %c0_9] : memref<128x128xf32, #tpu.memory_space<vmem>>, vector<128x128xf32>
    %cst_10 = arith.constant dense<0.000000e+00> : vector<1x128xf32>
    %11 = tpu.matmul %7, %10, %cst_10 {dimension_numbers = #tpu.dot_dimension_numbers<[1], [0], [0], [1], [0, 0, 1, 1], [], []>} : vector<1x128xf32>, vector<128x128xf32>, vector<1x128xf32> -> vector<1x128xf32>
    %cst_11 = arith.constant 7.812500e-03 : f32
    %12 = vector.broadcast %cst_11 : f32 to vector<1x128xf32>
    %13 = arith.mulf %9, %12 : vector<1x128xf32>
    %cst_12 = arith.constant 7.812500e-03 : f32
    %14 = vector.broadcast %cst_12 : f32 to vector<1x128xf32>
    %15 = arith.mulf %11, %14 : vector<1x128xf32>
    %16 = arith.mulf %13, %13 : vector<1x128xf32>
    %17 = arith.subf %15, %16 : vector<1x128xf32>
    %cst_13 = arith.constant 0.000000e+00 : f32
    %18 = vector.broadcast %cst_13 : f32 to vector<1x128xf32>
    %19 = arith.maximumf %17, %18 : vector<1x128xf32>
    %c0_14 = arith.constant 0 : index
    %c0_15 = arith.constant 0 : index
    %20 = vector.load %arg4[%c0_14, %c0_15] : memref<1x128xf32, #tpu.memory_space<vmem>>, vector<1x128xf32>
    %cst_16 = arith.constant 9.99999974E-6 : f32
    %21 = vector.broadcast %cst_16 : f32 to vector<1x128xf32>
    %22 = arith.addf %19, %21 : vector<1x128xf32>
    %23 = math.rsqrt %22 : vector<1x128xf32>
    %24 = arith.mulf %20, %23 : vector<1x128xf32>
    %c0_17 = arith.constant 0 : index
    %c0_18 = arith.constant 0 : index
    %25 = vector.load %arg5[%c0_17, %c0_18] : memref<1x128xf32, #tpu.memory_space<vmem>>, vector<1x128xf32>
    %26 = arith.mulf %13, %24 : vector<1x128xf32>
    %27 = arith.subf %25, %26 : vector<1x128xf32>
    %28 = vector.broadcast %24 : vector<1x128xf32> to vector<128x128xf32>
    %29 = arith.mulf %2, %28 : vector<128x128xf32>
    %30 = vector.broadcast %27 : vector<1x128xf32> to vector<128x128xf32>
    %31 = arith.addf %29, %30 : vector<128x128xf32>
    %cst_19 = arith.constant 0.000000e+00 : f32
    %32 = vector.broadcast %cst_19 : f32 to vector<128x128xf32>
    %33 = arith.maximumf %31, %32 : vector<128x128xf32>
    %34 = arith.truncf %33 : vector<128x128xf32> to vector<128x128xbf16>
    %c0_20 = arith.constant 0 : index
    %c0_21 = arith.constant 0 : index
    %35 = vector.load %arg6[%c0_20, %c0_21] : memref<128x128xbf16, #tpu.memory_space<vmem>>, vector<128x128xbf16>
    tpu.vector_store %arg6[%c0_20, %c0_21], %34 {strides = array<i32>} : memref<128x128xbf16, #tpu.memory_space<vmem>>, vector<128x128xbf16>,
    return
  }
  func.func @transform_0(%arg0: i32) -> (i32, i32) {
    %c0_i32 = arith.constant 0 : i32
    %c0_i32_0 = arith.constant 0 : i32
    %c0_i32_1 = arith.constant 0 : i32
    return %c0_i32, %c0_i32_0 : i32, i32
  }
  func.func @transform_1(%arg0: i32) -> (i32, i32) {
    %c0_i32 = arith.constant 0 : i32
    %c0_i32_0 = arith.constant 0 : i32
    %c0_i32_1 = arith.constant 0 : i32
    return %c0_i32, %c0_i32_0 : i32, i32
  }
  func.func @transform_2(%arg0: i32) -> (i32, i32) {
    %c0_i32 = arith.constant 0 : i32
    %c0_i32_0 = arith.constant 0 : i32
    %c0_i32_1 = arith.constant 0 : i32
    return %c0_i32, %c0_i32_0 : i32, i32
  }
  func.func @transform_3(%arg0: i32) -> (i32, i32) {
    %c0_i32 = arith.constant 0 : i32
    %c0_i32_0 = arith.constant 0 : i32
    %c0_i32_1 = arith.constant 0 : i32
    return %c0_i32, %c0_i32_0 : i32, i32
  }
  func.func @transform_4(%arg0: i32) -> (i32, i32) {
    %c0_i32 = arith.constant 0 : i32
    %c0_i32_0 = arith.constant 0 : i32
    %c0_i32_1 = arith.constant 0 : i32
    return %c0_i32, %c0_i32_0 : i32, i32
  }
  func.func @transform_5(%arg0: i32) -> (i32, i32) {
    %c0_i32 = arith.constant 0 : i32
    %c0_i32_0 = arith.constant 0 : i32
    %c0_i32_1 = arith.constant 0 : i32
    return %c0_i32, %c0_i32_0 : i32, i32
  }
}

module attributes {stable_mosaic.version = 11 : i64} {
  func.func @_conv_bn_relu_kernel(%arg0: i32, %arg1: memref<128x1152xbf16, #tpu.memory_space<vmem>>, %arg2: memref<1152x256xbf16, #tpu.memory_space<vmem>>, %arg3: memref<256x256xf32, #tpu.memory_space<vmem>>, %arg4: memref<1x256xf32, #tpu.memory_space<vmem>>, %arg5: memref<1x256xf32, #tpu.memory_space<vmem>>, %arg6: memref<128x256xbf16, #tpu.memory_space<vmem>>) attributes {dimension_semantics = [#tpu.dimension_semantics<arbitrary>], iteration_bounds = array<i64: 1>, scalar_prefetch = 0 : i64, scratch_operands = 0 : i64, tpu.core_type = #tpu.core_type<tc>, window_params = [{pipeline_mode = #tpu.pipeline_mode<synchronous>, transform_indices = @transform_0, window_bounds = array<i64: 128, 1152>}, {pipeline_mode = #tpu.pipeline_mode<synchronous>, transform_indices = @transform_1, window_bounds = array<i64: 1152, 256>}, {pipeline_mode = #tpu.pipeline_mode<synchronous>, transform_indices = @transform_2, window_bounds = array<i64: 256, 256>}, {pipeline_mode = #tpu.pipeline_mode<synchronous>, transform_indices = @transform_3, window_bounds = array<i64: 1, 256>}, {pipeline_mode = #tpu.pipeline_mode<synchronous>, transform_indices = @transform_4, window_bounds = array<i64: 1, 256>}, {pipeline_mode = #tpu.pipeline_mode<synchronous>, transform_indices = @transform_5, window_bounds = array<i64: 128, 256>}]} {
    %c0 = arith.constant 0 : index
    %c0_0 = arith.constant 0 : index
    %0 = vector.load %arg1[%c0, %c0_0] : memref<128x1152xbf16, #tpu.memory_space<vmem>>, vector<128x1152xbf16>
    %c0_1 = arith.constant 0 : index
    %c0_2 = arith.constant 0 : index
    %1 = vector.load %arg2[%c0_1, %c0_2] : memref<1152x256xbf16, #tpu.memory_space<vmem>>, vector<1152x256xbf16>
    %cst = arith.constant dense<0.000000e+00> : vector<128x256xf32>
    %2 = tpu.matmul %0, %1, %cst {dimension_numbers = #tpu.dot_dimension_numbers<[1], [0], [0], [1], [0, 0, 1, 1], [], []>} : vector<128x1152xbf16>, vector<1152x256xbf16>, vector<128x256xf32> -> vector<128x256xf32>
    %cst_3 = arith.constant dense<0.000000e+00> : vector<256xf32>
    %3 = vector.multi_reduction <add>, %2, %cst_3 [0] : vector<128x256xf32> to vector<256xf32>
    %4 = vector.shape_cast %3 : vector<256xf32> to vector<1x256xf32>
    %5 = arith.mulf %2, %2 : vector<128x256xf32>
    %cst_4 = arith.constant dense<0.000000e+00> : vector<256xf32>
    %6 = vector.multi_reduction <add>, %5, %cst_4 [0] : vector<128x256xf32> to vector<256xf32>
    %7 = vector.shape_cast %6 : vector<256xf32> to vector<1x256xf32>
    %c0_5 = arith.constant 0 : index
    %c0_6 = arith.constant 0 : index
    %8 = vector.load %arg3[%c0_5, %c0_6] : memref<256x256xf32, #tpu.memory_space<vmem>>, vector<256x256xf32>
    %cst_7 = arith.constant dense<0.000000e+00> : vector<1x256xf32>
    %9 = tpu.matmul %4, %8, %cst_7 {dimension_numbers = #tpu.dot_dimension_numbers<[1], [0], [0], [1], [0, 0, 1, 1], [], []>} : vector<1x256xf32>, vector<256x256xf32>, vector<1x256xf32> -> vector<1x256xf32>
    %c0_8 = arith.constant 0 : index
    %c0_9 = arith.constant 0 : index
    %10 = vector.load %arg3[%c0_8, %c0_9] : memref<256x256xf32, #tpu.memory_space<vmem>>, vector<256x256xf32>
    %cst_10 = arith.constant dense<0.000000e+00> : vector<1x256xf32>
    %11 = tpu.matmul %7, %10, %cst_10 {dimension_numbers = #tpu.dot_dimension_numbers<[1], [0], [0], [1], [0, 0, 1, 1], [], []>} : vector<1x256xf32>, vector<256x256xf32>, vector<1x256xf32> -> vector<1x256xf32>
    %cst_11 = arith.constant 0.001953125 : f32
    %12 = vector.broadcast %cst_11 : f32 to vector<1x256xf32>
    %13 = arith.mulf %9, %12 : vector<1x256xf32>
    %cst_12 = arith.constant 0.001953125 : f32
    %14 = vector.broadcast %cst_12 : f32 to vector<1x256xf32>
    %15 = arith.mulf %11, %14 : vector<1x256xf32>
    %16 = arith.mulf %13, %13 : vector<1x256xf32>
    %17 = arith.subf %15, %16 : vector<1x256xf32>
    %cst_13 = arith.constant 0.000000e+00 : f32
    %18 = vector.broadcast %cst_13 : f32 to vector<1x256xf32>
    %19 = arith.maximumf %17, %18 : vector<1x256xf32>
    %c0_14 = arith.constant 0 : index
    %c0_15 = arith.constant 0 : index
    %20 = vector.load %arg4[%c0_14, %c0_15] : memref<1x256xf32, #tpu.memory_space<vmem>>, vector<1x256xf32>
    %cst_16 = arith.constant 9.99999974E-6 : f32
    %21 = vector.broadcast %cst_16 : f32 to vector<1x256xf32>
    %22 = arith.addf %19, %21 : vector<1x256xf32>
    %23 = math.rsqrt %22 : vector<1x256xf32>
    %24 = arith.mulf %20, %23 : vector<1x256xf32>
    %c0_17 = arith.constant 0 : index
    %c0_18 = arith.constant 0 : index
    %25 = vector.load %arg5[%c0_17, %c0_18] : memref<1x256xf32, #tpu.memory_space<vmem>>, vector<1x256xf32>
    %26 = arith.mulf %13, %24 : vector<1x256xf32>
    %27 = arith.subf %25, %26 : vector<1x256xf32>
    %28 = vector.broadcast %24 : vector<1x256xf32> to vector<128x256xf32>
    %29 = arith.mulf %2, %28 : vector<128x256xf32>
    %30 = vector.broadcast %27 : vector<1x256xf32> to vector<128x256xf32>
    %31 = arith.addf %29, %30 : vector<128x256xf32>
    %cst_19 = arith.constant 0.000000e+00 : f32
    %32 = vector.broadcast %cst_19 : f32 to vector<128x256xf32>
    %33 = arith.maximumf %31, %32 : vector<128x256xf32>
    %34 = arith.truncf %33 : vector<128x256xf32> to vector<128x256xbf16>
    %c0_20 = arith.constant 0 : index
    %c0_21 = arith.constant 0 : index
    %35 = vector.load %arg6[%c0_20, %c0_21] : memref<128x256xbf16, #tpu.memory_space<vmem>>, vector<128x256xbf16>
    tpu.vector_store %arg6[%c0_20, %c0_21], %34 {strides = array<i32>} : memref<128x256xbf16, #tpu.memory_space<vmem>>, vector<128x256xbf16>,
    return
  }
  func.func @transform_0(%arg0: i32) -> (i32, i32) {
    %c0_i32 = arith.constant 0 : i32
    %c0_i32_0 = arith.constant 0 : i32
    %c0_i32_1 = arith.constant 0 : i32
    return %c0_i32, %c0_i32_0 : i32, i32
  }
  func.func @transform_1(%arg0: i32) -> (i32, i32) {
    %c0_i32 = arith.constant 0 : i32
    %c0_i32_0 = arith.constant 0 : i32
    %c0_i32_1 = arith.constant 0 : i32
    return %c0_i32, %c0_i32_0 : i32, i32
  }
  func.func @transform_2(%arg0: i32) -> (i32, i32) {
    %c0_i32 = arith.constant 0 : i32
    %c0_i32_0 = arith.constant 0 : i32
    %c0_i32_1 = arith.constant 0 : i32
    return %c0_i32, %c0_i32_0 : i32, i32
  }
  func.func @transform_3(%arg0: i32) -> (i32, i32) {
    %c0_i32 = arith.constant 0 : i32
    %c0_i32_0 = arith.constant 0 : i32
    %c0_i32_1 = arith.constant 0 : i32
    return %c0_i32, %c0_i32_0 : i32, i32
  }
  func.func @transform_4(%arg0: i32) -> (i32, i32) {
    %c0_i32 = arith.constant 0 : i32
    %c0_i32_0 = arith.constant 0 : i32
    %c0_i32_1 = arith.constant 0 : i32
    return %c0_i32, %c0_i32_0 : i32, i32
  }
  func.func @transform_5(%arg0: i32) -> (i32, i32) {
    %c0_i32 = arith.constant 0 : i32
    %c0_i32_0 = arith.constant 0 : i32
    %c0_i32_1 = arith.constant 0 : i32
    return %c0_i32, %c0_i32_0 : i32, i32
  }
}

module attributes {stable_mosaic.version = 11 : i64} {
  func.func @_conv_bn_relu_kernel(%arg0: i32, %arg1: memref<512x576xbf16, #tpu.memory_space<vmem>>, %arg2: memref<576x128xbf16, #tpu.memory_space<vmem>>, %arg3: memref<128x128xf32, #tpu.memory_space<vmem>>, %arg4: memref<1x128xf32, #tpu.memory_space<vmem>>, %arg5: memref<1x128xf32, #tpu.memory_space<vmem>>, %arg6: memref<512x128xbf16, #tpu.memory_space<vmem>>) attributes {dimension_semantics = [#tpu.dimension_semantics<arbitrary>], iteration_bounds = array<i64: 1>, scalar_prefetch = 0 : i64, scratch_operands = 0 : i64, tpu.core_type = #tpu.core_type<tc>, window_params = [{pipeline_mode = #tpu.pipeline_mode<synchronous>, transform_indices = @transform_0, window_bounds = array<i64: 512, 576>}, {pipeline_mode = #tpu.pipeline_mode<synchronous>, transform_indices = @transform_1, window_bounds = array<i64: 576, 128>}, {pipeline_mode = #tpu.pipeline_mode<synchronous>, transform_indices = @transform_2, window_bounds = array<i64: 128, 128>}, {pipeline_mode = #tpu.pipeline_mode<synchronous>, transform_indices = @transform_3, window_bounds = array<i64: 1, 128>}, {pipeline_mode = #tpu.pipeline_mode<synchronous>, transform_indices = @transform_4, window_bounds = array<i64: 1, 128>}, {pipeline_mode = #tpu.pipeline_mode<synchronous>, transform_indices = @transform_5, window_bounds = array<i64: 512, 128>}]} {
    %c0 = arith.constant 0 : index
    %c0_0 = arith.constant 0 : index
    %0 = vector.load %arg1[%c0, %c0_0] : memref<512x576xbf16, #tpu.memory_space<vmem>>, vector<512x576xbf16>
    %c0_1 = arith.constant 0 : index
    %c0_2 = arith.constant 0 : index
    %1 = vector.load %arg2[%c0_1, %c0_2] : memref<576x128xbf16, #tpu.memory_space<vmem>>, vector<576x128xbf16>
    %cst = arith.constant dense<0.000000e+00> : vector<512x128xf32>
    %2 = tpu.matmul %0, %1, %cst {dimension_numbers = #tpu.dot_dimension_numbers<[1], [0], [0], [1], [0, 0, 1, 1], [], []>} : vector<512x576xbf16>, vector<576x128xbf16>, vector<512x128xf32> -> vector<512x128xf32>
    %cst_3 = arith.constant dense<0.000000e+00> : vector<128xf32>
    %3 = vector.multi_reduction <add>, %2, %cst_3 [0] : vector<512x128xf32> to vector<128xf32>
    %4 = vector.shape_cast %3 : vector<128xf32> to vector<1x128xf32>
    %5 = arith.mulf %2, %2 : vector<512x128xf32>
    %cst_4 = arith.constant dense<0.000000e+00> : vector<128xf32>
    %6 = vector.multi_reduction <add>, %5, %cst_4 [0] : vector<512x128xf32> to vector<128xf32>
    %7 = vector.shape_cast %6 : vector<128xf32> to vector<1x128xf32>
    %c0_5 = arith.constant 0 : index
    %c0_6 = arith.constant 0 : index
    %8 = vector.load %arg3[%c0_5, %c0_6] : memref<128x128xf32, #tpu.memory_space<vmem>>, vector<128x128xf32>
    %cst_7 = arith.constant dense<0.000000e+00> : vector<1x128xf32>
    %9 = tpu.matmul %4, %8, %cst_7 {dimension_numbers = #tpu.dot_dimension_numbers<[1], [0], [0], [1], [0, 0, 1, 1], [], []>} : vector<1x128xf32>, vector<128x128xf32>, vector<1x128xf32> -> vector<1x128xf32>
    %c0_8 = arith.constant 0 : index
    %c0_9 = arith.constant 0 : index
    %10 = vector.load %arg3[%c0_8, %c0_9] : memref<128x128xf32, #tpu.memory_space<vmem>>, vector<128x128xf32>
    %cst_10 = arith.constant dense<0.000000e+00> : vector<1x128xf32>
    %11 = tpu.matmul %7, %10, %cst_10 {dimension_numbers = #tpu.dot_dimension_numbers<[1], [0], [0], [1], [0, 0, 1, 1], [], []>} : vector<1x128xf32>, vector<128x128xf32>, vector<1x128xf32> -> vector<1x128xf32>
    %cst_11 = arith.constant 4.8828125E-4 : f32
    %12 = vector.broadcast %cst_11 : f32 to vector<1x128xf32>
    %13 = arith.mulf %9, %12 : vector<1x128xf32>
    %cst_12 = arith.constant 4.8828125E-4 : f32
    %14 = vector.broadcast %cst_12 : f32 to vector<1x128xf32>
    %15 = arith.mulf %11, %14 : vector<1x128xf32>
    %16 = arith.mulf %13, %13 : vector<1x128xf32>
    %17 = arith.subf %15, %16 : vector<1x128xf32>
    %cst_13 = arith.constant 0.000000e+00 : f32
    %18 = vector.broadcast %cst_13 : f32 to vector<1x128xf32>
    %19 = arith.maximumf %17, %18 : vector<1x128xf32>
    %c0_14 = arith.constant 0 : index
    %c0_15 = arith.constant 0 : index
    %20 = vector.load %arg4[%c0_14, %c0_15] : memref<1x128xf32, #tpu.memory_space<vmem>>, vector<1x128xf32>
    %cst_16 = arith.constant 9.99999974E-6 : f32
    %21 = vector.broadcast %cst_16 : f32 to vector<1x128xf32>
    %22 = arith.addf %19, %21 : vector<1x128xf32>
    %23 = math.rsqrt %22 : vector<1x128xf32>
    %24 = arith.mulf %20, %23 : vector<1x128xf32>
    %c0_17 = arith.constant 0 : index
    %c0_18 = arith.constant 0 : index
    %25 = vector.load %arg5[%c0_17, %c0_18] : memref<1x128xf32, #tpu.memory_space<vmem>>, vector<1x128xf32>
    %26 = arith.mulf %13, %24 : vector<1x128xf32>
    %27 = arith.subf %25, %26 : vector<1x128xf32>
    %28 = vector.broadcast %24 : vector<1x128xf32> to vector<512x128xf32>
    %29 = arith.mulf %2, %28 : vector<512x128xf32>
    %30 = vector.broadcast %27 : vector<1x128xf32> to vector<512x128xf32>
    %31 = arith.addf %29, %30 : vector<512x128xf32>
    %cst_19 = arith.constant 0.000000e+00 : f32
    %32 = vector.broadcast %cst_19 : f32 to vector<512x128xf32>
    %33 = arith.maximumf %31, %32 : vector<512x128xf32>
    %34 = arith.truncf %33 : vector<512x128xf32> to vector<512x128xbf16>
    %c0_20 = arith.constant 0 : index
    %c0_21 = arith.constant 0 : index
    %35 = vector.load %arg6[%c0_20, %c0_21] : memref<512x128xbf16, #tpu.memory_space<vmem>>, vector<512x128xbf16>
    tpu.vector_store %arg6[%c0_20, %c0_21], %34 {strides = array<i32>} : memref<512x128xbf16, #tpu.memory_space<vmem>>, vector<512x128xbf16>,
    return
  }
  func.func @transform_0(%arg0: i32) -> (i32, i32) {
    %c0_i32 = arith.constant 0 : i32
    %c0_i32_0 = arith.constant 0 : i32
    %c0_i32_1 = arith.constant 0 : i32
    return %c0_i32, %c0_i32_0 : i32, i32
  }
  func.func @transform_1(%arg0: i32) -> (i32, i32) {
    %c0_i32 = arith.constant 0 : i32
    %c0_i32_0 = arith.constant 0 : i32
    %c0_i32_1 = arith.constant 0 : i32
    return %c0_i32, %c0_i32_0 : i32, i32
  }
  func.func @transform_2(%arg0: i32) -> (i32, i32) {
    %c0_i32 = arith.constant 0 : i32
    %c0_i32_0 = arith.constant 0 : i32
    %c0_i32_1 = arith.constant 0 : i32
    return %c0_i32, %c0_i32_0 : i32, i32
  }
  func.func @transform_3(%arg0: i32) -> (i32, i32) {
    %c0_i32 = arith.constant 0 : i32
    %c0_i32_0 = arith.constant 0 : i32
    %c0_i32_1 = arith.constant 0 : i32
    return %c0_i32, %c0_i32_0 : i32, i32
  }
  func.func @transform_4(%arg0: i32) -> (i32, i32) {
    %c0_i32 = arith.constant 0 : i32
    %c0_i32_0 = arith.constant 0 : i32
    %c0_i32_1 = arith.constant 0 : i32
    return %c0_i32, %c0_i32_0 : i32, i32
  }
  func.func @transform_5(%arg0: i32) -> (i32, i32) {
    %c0_i32 = arith.constant 0 : i32
    %c0_i32_0 = arith.constant 0 : i32
    %c0_i32_1 = arith.constant 0 : i32
    return %c0_i32, %c0_i32_0 : i32, i32
  }
}

module attributes {stable_mosaic.version = 11 : i64} {
  func.func @_mm_bias_kernel(%arg0: i32, %arg1: memref<1024x288xbf16, #tpu.memory_space<vmem>>, %arg2: memref<288x128xbf16, #tpu.memory_space<vmem>>, %arg3: memref<1x128xf32, #tpu.memory_space<vmem>>, %arg4: memref<1024x128xf32, #tpu.memory_space<vmem>>) attributes {dimension_semantics = [#tpu.dimension_semantics<parallel>], iteration_bounds = array<i64: 2>, scalar_prefetch = 0 : i64, scratch_operands = 0 : i64, tpu.core_type = #tpu.core_type<tc>, window_params = [{transform_indices = @transform_0, window_bounds = array<i64: 1024, 288>}, {pipeline_mode = #tpu.pipeline_mode<synchronous>, transform_indices = @transform_1, window_bounds = array<i64: 288, 128>}, {pipeline_mode = #tpu.pipeline_mode<synchronous>, transform_indices = @transform_2, window_bounds = array<i64: 1, 128>}, {transform_indices = @transform_3, window_bounds = array<i64: 1024, 128>}]} {
    %c0 = arith.constant 0 : index
    %c0_0 = arith.constant 0 : index
    %0 = vector.load %arg1[%c0, %c0_0] : memref<1024x288xbf16, #tpu.memory_space<vmem>>, vector<1024x288xbf16>
    %c0_1 = arith.constant 0 : index
    %c0_2 = arith.constant 0 : index
    %1 = vector.load %arg2[%c0_1, %c0_2] : memref<288x128xbf16, #tpu.memory_space<vmem>>, vector<288x128xbf16>
    %cst = arith.constant dense<0.000000e+00> : vector<1024x128xf32>
    %2 = tpu.matmul %0, %1, %cst {dimension_numbers = #tpu.dot_dimension_numbers<[1], [0], [0], [1], [0, 0, 1, 1], [], []>} : vector<1024x288xbf16>, vector<288x128xbf16>, vector<1024x128xf32> -> vector<1024x128xf32>
    %c0_3 = arith.constant 0 : index
    %c0_4 = arith.constant 0 : index
    %3 = vector.load %arg3[%c0_3, %c0_4] : memref<1x128xf32, #tpu.memory_space<vmem>>, vector<1x128xf32>
    %4 = vector.broadcast %3 : vector<1x128xf32> to vector<1024x128xf32>
    %5 = arith.addf %2, %4 : vector<1024x128xf32>
    %c0_5 = arith.constant 0 : index
    %c0_6 = arith.constant 0 : index
    %6 = vector.load %arg4[%c0_5, %c0_6] : memref<1024x128xf32, #tpu.memory_space<vmem>>, vector<1024x128xf32>
    tpu.vector_store %arg4[%c0_5, %c0_6], %5 {strides = array<i32>} : memref<1024x128xf32, #tpu.memory_space<vmem>>, vector<1024x128xf32>,
    return
  }
  func.func @transform_0(%arg0: i32) -> (i32, i32) {
    %c0_i32 = arith.constant 0 : i32
    %c0_i32_0 = arith.constant 0 : i32
    return %arg0, %c0_i32 : i32, i32
  }
  func.func @transform_1(%arg0: i32) -> (i32, i32) {
    %c0_i32 = arith.constant 0 : i32
    %c0_i32_0 = arith.constant 0 : i32
    %c0_i32_1 = arith.constant 0 : i32
    return %c0_i32, %c0_i32_0 : i32, i32
  }
  func.func @transform_2(%arg0: i32) -> (i32, i32) {
    %c0_i32 = arith.constant 0 : i32
    %c0_i32_0 = arith.constant 0 : i32
    %c0_i32_1 = arith.constant 0 : i32
    return %c0_i32, %c0_i32_0 : i32, i32
  }
  func.func @transform_3(%arg0: i32) -> (i32, i32) {
    %c0_i32 = arith.constant 0 : i32
    %c0_i32_0 = arith.constant 0 : i32
    return %arg0, %c0_i32 : i32, i32
  }
}

module attributes {stable_mosaic.version = 11 : i64} {
  func.func @_mm_bias_kernel(%arg0: i32, %arg1: memref<128x128xbf16, #tpu.memory_space<vmem>>, %arg2: memref<128x128xbf16, #tpu.memory_space<vmem>>, %arg3: memref<1x128xf32, #tpu.memory_space<vmem>>, %arg4: memref<128x128xf32, #tpu.memory_space<vmem>>) attributes {dimension_semantics = [#tpu.dimension_semantics<parallel>], iteration_bounds = array<i64: 1>, scalar_prefetch = 0 : i64, scratch_operands = 0 : i64, tpu.core_type = #tpu.core_type<tc>, window_params = [{transform_indices = @transform_0, window_bounds = array<i64: 128, 128>}, {pipeline_mode = #tpu.pipeline_mode<synchronous>, transform_indices = @transform_1, window_bounds = array<i64: 128, 128>}, {pipeline_mode = #tpu.pipeline_mode<synchronous>, transform_indices = @transform_2, window_bounds = array<i64: 1, 128>}, {transform_indices = @transform_3, window_bounds = array<i64: 128, 128>}]} {
    %c0 = arith.constant 0 : index
    %c0_0 = arith.constant 0 : index
    %0 = vector.load %arg1[%c0, %c0_0] : memref<128x128xbf16, #tpu.memory_space<vmem>>, vector<128x128xbf16>
    %c0_1 = arith.constant 0 : index
    %c0_2 = arith.constant 0 : index
    %1 = vector.load %arg2[%c0_1, %c0_2] : memref<128x128xbf16, #tpu.memory_space<vmem>>, vector<128x128xbf16>
    %cst = arith.constant dense<0.000000e+00> : vector<128x128xf32>
    %2 = tpu.matmul %0, %1, %cst {dimension_numbers = #tpu.dot_dimension_numbers<[1], [0], [0], [1], [0, 0, 1, 1], [], []>} : vector<128x128xbf16>, vector<128x128xbf16>, vector<128x128xf32> -> vector<128x128xf32>
    %c0_3 = arith.constant 0 : index
    %c0_4 = arith.constant 0 : index
    %3 = vector.load %arg3[%c0_3, %c0_4] : memref<1x128xf32, #tpu.memory_space<vmem>>, vector<1x128xf32>
    %4 = vector.broadcast %3 : vector<1x128xf32> to vector<128x128xf32>
    %5 = arith.addf %2, %4 : vector<128x128xf32>
    %c0_5 = arith.constant 0 : index
    %c0_6 = arith.constant 0 : index
    %6 = vector.load %arg4[%c0_5, %c0_6] : memref<128x128xf32, #tpu.memory_space<vmem>>, vector<128x128xf32>
    tpu.vector_store %arg4[%c0_5, %c0_6], %5 {strides = array<i32>} : memref<128x128xf32, #tpu.memory_space<vmem>>, vector<128x128xf32>,
    return
  }
  func.func @transform_0(%arg0: i32) -> (i32, i32) {
    %c0_i32 = arith.constant 0 : i32
    %c0_i32_0 = arith.constant 0 : i32
    return %arg0, %c0_i32 : i32, i32
  }
  func.func @transform_1(%arg0: i32) -> (i32, i32) {
    %c0_i32 = arith.constant 0 : i32
    %c0_i32_0 = arith.constant 0 : i32
    %c0_i32_1 = arith.constant 0 : i32
    return %c0_i32, %c0_i32_0 : i32, i32
  }
  func.func @transform_2(%arg0: i32) -> (i32, i32) {
    %c0_i32 = arith.constant 0 : i32
    %c0_i32_0 = arith.constant 0 : i32
    %c0_i32_1 = arith.constant 0 : i32
    return %c0_i32, %c0_i32_0 : i32, i32
  }
  func.func @transform_3(%arg0: i32) -> (i32, i32) {
    %c0_i32 = arith.constant 0 : i32
    %c0_i32_0 = arith.constant 0 : i32
    return %arg0, %c0_i32 : i32, i32
  }
}

</mosaic_0001>

<bundles_post_ra>
// kernel: adaptive_cnn_forward.8
= control target key start
LH: loop header
LB: loop body
LE: loop exit
PB: predicated region body
PF: predicated region fallthrough
CT: control target
= control target key end

     0   :  { %vm266_vm0 = vcmask 293888   ;;  %vm363_vm1 = vcmask 1041408   ;;  %s1837_s1 = inlined_call_operand.vmem [shape: bf16[36,128], index: 1, kind: input, shape index: {}]   ;;  %s1838_s0 = inlined_call_operand.vmem [shape: bf16[512,36], index: 0, kind: input, shape index: {}]   ;;  %s1839_s2 = inlined_call_operand.vmem [shape: f32[1,128], index: 2, kind: input, shape index: {}]   ;;  %s1840_s3 = inlined_call_operand.vmem [shape: bf16[512,128], index: 3, kind: output, shape index: {}]  }
   0x1   :  { %v1480_v0 = vld [vmem:[%s1837_s1] sm:$0xff]   ;;  %v1481_v1 = vld [vmem:[%s1837_s1 + $0x8] sm:$0xff]   ;;  %v1482_v2 = vld [vmem:[%s1837_s1 + $0x10] ss:$0 sps:$4 sm:$0x33]  }
   0x2   :  { %1402 = vmatprep.subr.bf16.mxu0 %v1480_v0  ;;  %1472 = vmatprep.subr.bf16.mxu1 %v1480_v0  ;;  %v1483_v3 = vld [vmem:[%s1838_s0] sm:$0xff]   ;;  %v365_v5 = vsel %vm363_vm1, %v1482_v2, 0  ;;  %v1485_v6 = vld [vmem:[%s1838_s0 + $0x8] sm:$0xff]   ;;  %v1487_v8 = vld [vmem:[%s1838_s0 + $0x10] sm:$0xff]  }
   0x3   :  { %1403 = vmatpush3.bf16.msra.mxu0 %v1480_v0  ;;  %1475 = vmatpush3.bf16.msra.mxu1 %v1480_v0  ;;  %v1484_v4 = vld [vmem:[%s1838_s0 + $0x80] sm:$0xff]   ;;  %v1486_v7 = vld [vmem:[%s1838_s0 + $0x88] sm:$0xff]   ;;  %v1488_v9 = vld [vmem:[%s1838_s0 + $0x90] sm:$0xff]  }
   0x4   :  { %1404 = vmatprep.subr.bf16.mxu0 %v1481_v1  ;;  %1473 = vmatprep.subr.bf16.mxu1 %v1481_v1  ;;  %v1489_v10 = vld [vmem:[%s1838_s0 + $0x18] sm:$0xff]   ;;  %v1491_v12 = vld [vmem:[%s1838_s0 + $0x20] sm:$0xff]   ;;  %v1493_v14 = vld [vmem:[%s1838_s0 + $0x28] sm:$0xff]  }
   0x5   :  { %1408 = vmatprep.mubr.msk.bf16.mxu0 %vm266_vm0, %v1483_v3  ;;  %1440 = vmatprep.mubr.msk.bf16.mxu1 %vm266_vm0, %v1484_v4  ;;  %v1490_v11 = vld [vmem:[%s1838_s0 + $0x98] sm:$0xff]   ;;  %v1492_v13 = vld [vmem:[%s1838_s0 + $0xa0] sm:$0xff]   ;;  %v1494_v15 = vld [vmem:[%s1838_s0 + $0xa8] sm:$0xff]  }
   0x6   :  { %v1495_v16 = vld [vmem:[%s1838_s0 + $0x30] sm:$0xff]   ;;  %v1497_v18 = vld [vmem:[%s1838_s0 + $0x38] sm:$0xff]   ;;  %v1499_v20 = vld [vmem:[%s1838_s0 + $0x40] sm:$0xff]  }
   0x7   :  { %1405 = vmatpush3.bf16.msra.mxu0 %v1481_v1  ;;  %1476 = vmatpush3.bf16.msra.mxu1 %v1481_v1  ;;  %v1496_v17 = vld [vmem:[%s1838_s0 + $0xb0] sm:$0xff]   ;;  %v1498_v19 = vld [vmem:[%s1838_s0 + $0xb8] sm:$0xff]   ;;  %v1500_v21 = vld [vmem:[%s1838_s0 + $0xc0] sm:$0xff]  }
   0x8   :  { %1478 = vmatprep.subr.msk.bf16.mxu0 %vm363_vm1, %v1482_v2  ;;  %1479 = vmatprep.subr.msk.bf16.mxu1 %vm363_vm1, %v1482_v2  ;;  %v1501_v22 = vld [vmem:[%s1838_s0 + $0x48] sm:$0xff]   ;;  %v1503_v24 = vld [vmem:[%s1838_s0 + $0x50] sm:$0xff]   ;;  %v1505_v26 = vld [vmem:[%s1838_s0 + $0x58] sm:$0xff]  }
   0x9   :  { %v1502_v23 = vld [vmem:[%s1838_s0 + $0xc8] sm:$0xff]   ;;  %v1504_v25 = vld [vmem:[%s1838_s0 + $0xd0] sm:$0xff]   ;;  %v1506_v27 = vld [vmem:[%s1838_s0 + $0xd8] sm:$0xff]  }
   0xa   :  { %v1507_v28 = vld [vmem:[%s1838_s0 + $0x60] sm:$0xff]   ;;  %v1509_v30 = vld [vmem:[%s1838_s0 + $0x68] sm:$0xff]   ;;  %v1511_v32 = vld [vmem:[%s1838_s0 + $0x70] sm:$0xff]  }
   0xb   :  { %1407 = vmatpush3.bf16.msra.mxu0 %v365_v5  ;;  %1477 = vmatpush3.bf16.msra.mxu1 %v365_v5  ;;  %v1508_v29 = vld [vmem:[%s1838_s0 + $0xe0] sm:$0xff]   ;;  %v1510_v31 = vld [vmem:[%s1838_s0 + $0xe8] sm:$0xff]   ;;  %v1512_v33 = vld [vmem:[%s1838_s0 + $0xf0] sm:$0xff]  }
   0xc   :  { %v1513_v34 = vld [vmem:[%s1838_s0 + $0x78] sm:$0xff]   ;;  %v1675_v37 = vld [vmem:[%s1839_s2] ss:$0 sm:$0xff] }
   0xd   :  { %v1514_v35 = vld [vmem:[%s1838_s0 + $0xf8] sm:$0xff]  }
   0xe   :  { %1409 = vmatmul.mubr.msk.bf16.vlgmr.msra.gmra.mrb[0].mxu0 %vm266_vm0, %v1485_v6  ;;  %1441 = vmatmul.mubr.msk.bf16.vlgmr.msra.gmra.mrb[0].mxu1 %vm266_vm0, %v1486_v7 }
   0xf   :  { %1412 = vmatprep.mubr.msk.bf16.mxu0 %vm266_vm0, %v1487_v8  ;;  %1444 = vmatprep.mubr.msk.bf16.mxu1 %vm266_vm0, %v1488_v9 }
  0x16   :  { %1413 = vmatmul.mubr.msk.bf16.gmra.mrb[4].mxu0 %vm266_vm0, %v1489_v10  ;;  %1445 = vmatmul.mubr.msk.bf16.gmra.mrb[4].mxu1 %vm266_vm0, %v1490_v11 }
  0x17   :  { %1416 = vmatprep.mubr.msk.bf16.mxu0 %vm266_vm0, %v1491_v12  ;;  %1448 = vmatprep.mubr.msk.bf16.mxu1 %vm266_vm0, %v1492_v13 }
  0x1e   :  { %1417 = vmatmul.mubr.msk.bf16.gmra.mrb[8].mxu0 %vm266_vm0, %v1493_v14  ;;  %1449 = vmatmul.mubr.msk.bf16.gmra.mrb[8].mxu1 %vm266_vm0, %v1494_v15 }
  0x1f   :  { %1420 = vmatprep.mubr.msk.bf16.mxu0 %vm266_vm0, %v1495_v16  ;;  %1452 = vmatprep.mubr.msk.bf16.mxu1 %vm266_vm0, %v1496_v17 }
  0x26   :  { %1421 = vmatmul.mubr.msk.bf16.gmra.mrb[12].mxu0 %vm266_vm0, %v1497_v18  ;;  %1453 = vmatmul.mubr.msk.bf16.gmra.mrb[12].mxu1 %vm266_vm0, %v1498_v19 }
  0x27   :  { %1424 = vmatprep.mubr.msk.bf16.mxu0 %vm266_vm0, %v1499_v20  ;;  %1456 = vmatprep.mubr.msk.bf16.mxu1 %vm266_vm0, %v1500_v21 }
  0x2e   :  { %1425 = vmatmul.mubr.msk.bf16.gmra.mrb[16].mxu0 %vm266_vm0, %v1501_v22  ;;  %1457 = vmatmul.mubr.msk.bf16.gmra.mrb[16].mxu1 %vm266_vm0, %v1502_v23 }
  0x2f   :  { %1428 = vmatprep.mubr.msk.bf16.mxu0 %vm266_vm0, %v1503_v24  ;;  %1460 = vmatprep.mubr.msk.bf16.mxu1 %vm266_vm0, %v1504_v25 }
  0x36   :  { %1429 = vmatmul.mubr.msk.bf16.gmra.mrb[20].mxu0 %vm266_vm0, %v1505_v26  ;;  %1461 = vmatmul.mubr.msk.bf16.gmra.mrb[20].mxu1 %vm266_vm0, %v1506_v27 }
  0x37   :  { %1432 = vmatprep.mubr.msk.bf16.mxu0 %vm266_vm0, %v1507_v28  ;;  %1464 = vmatprep.mubr.msk.bf16.mxu1 %vm266_vm0, %v1508_v29 }
  0x3e   :  { %1433 = vmatmul.mubr.msk.bf16.gmra.mrb[24].mxu0 %vm266_vm0, %v1509_v30  ;;  %1465 = vmatmul.mubr.msk.bf16.gmra.mrb[24].mxu1 %vm266_vm0, %v1510_v31 }
  0x3f   :  { %1436 = vmatprep.mubr.msk.bf16.mxu0 %vm266_vm0, %v1511_v32  ;;  %1468 = vmatprep.mubr.msk.bf16.mxu1 %vm266_vm0, %v1512_v33 }
  0x46   :  { %1437 = vmatmul.mubr.msk.bf16.gmra.mrb[28].mxu0 %vm266_vm0, %v1513_v34  ;;  %1469 = vmatmul.mubr.msk.bf16.gmra.mrb[28].mxu1 %vm266_vm0, %v1514_v35 }
  0xe1   :  { %v1410_v36 = vpop.f32.mrb[0].mxu0  ;;  %v1442_v38 = vpop.f32.mrb[0].mxu1 }
  0xe2   :  { %v401_v39 = vpop.f32.mrb[1].mxu0  ;;  %v529_v40 = vpop.f32.mrb[1].mxu1  ;;  %v410_v43 = vadd.f32 %v1410_v36, %v1675_v37  ;;  %v538_v44 = vadd.f32 %v1442_v38, %v1675_v37 }
  0xe3   :  { %v1411_v41 = vpop.f32.mrb[2].mxu0  ;;  %v1443_v42 = vpop.f32.mrb[2].mxu1  ;;  %v402_v49 = vadd.f32 %v1675_v37, %v401_v39  ;;  %v530_v50 = vadd.f32 %v1675_v37, %v529_v40 }
  0xe4   :  { %v413_v45 = vadd.f32 %v1411_v41, %v1675_v37  ;;  %v541_v46 = vadd.f32 %v1443_v42, %v1675_v37  ;;  %v404_v47 = vpop.f32.mrb[3].mxu0  ;;  %v532_v48 = vpop.f32.mrb[3].mxu1 }
  0xe5   :  { %v405_v51 = vadd.f32 %v1675_v37, %v404_v47  ;;  %v533_v52 = vadd.f32 %v1675_v37, %v532_v48 }
  0xe6   :  { %v1184_v53 = vpack.c.bf16 %v413_v45, %v410_v43  ;;  %v1264_v54 = vpack.c.bf16 %v541_v46, %v538_v44 }
  0xe7   :  { %v1179_v55 = vpack.c.bf16 %v405_v51, %v402_v49  ;;  %v1259_v56 = vpack.c.bf16 %v533_v52, %v530_v50 }
  0xe8   :  { %1336 = vst [vmem:[%s1840_s3 + $0x8] sm:$0xff] %v1184_v53   ;;  %1352 = vst [vmem:[%s1840_s3 + $0x88] sm:$0xff] %v1264_v54  }
  0xe9   :  { %1180 = vst [vmem:[%s1840_s3] sm:$0xff] %v1179_v55   ;;  %1351 = vst [vmem:[%s1840_s3 + $0x80] sm:$0xff] %v1259_v56   ;;  %v1414_v57 = vpop.f32.mrb[4].mxu0  ;;  %v1446_v58 = vpop.f32.mrb[4].mxu1 }
  0xea   :  { %v417_v59 = vpop.f32.mrb[5].mxu0  ;;  %v545_v60 = vpop.f32.mrb[5].mxu1  ;;  %v426_v63 = vadd.f32 %v1414_v57, %v1675_v37  ;;  %v554_v0 = vadd.f32 %v1446_v58, %v1675_v37 }
  0xeb   :  { %v1415_v61 = vpop.f32.mrb[6].mxu0  ;;  %v1447_v62 = vpop.f32.mrb[6].mxu1  ;;  %v418_v5 = vadd.f32 %v1675_v37, %v417_v59  ;;  %v546_v6 = vadd.f32 %v1675_v37, %v545_v60 }
  0xec   :  { %v429_v1 = vadd.f32 %v1415_v61, %v1675_v37  ;;  %v557_v2 = vadd.f32 %v1447_v62, %v1675_v37  ;;  %v420_v3 = vpop.f32.mrb[7].mxu0  ;;  %v548_v4 = vpop.f32.mrb[7].mxu1 }
  0xed   :  { %v421_v7 = vadd.f32 %v1675_v37, %v420_v3  ;;  %v549_v8 = vadd.f32 %v1675_v37, %v548_v4 }
  0xee   :  { %v1194_v9 = vpack.c.bf16 %v429_v1, %v426_v63  ;;  %v1274_v10 = vpack.c.bf16 %v557_v2, %v554_v0 }
  0xef   :  { %v1189_v11 = vpack.c.bf16 %v421_v7, %v418_v5  ;;  %v1269_v12 = vpack.c.bf16 %v549_v8, %v546_v6 }
  0xf0   :  { %1338 = vst [vmem:[%s1840_s3 + $0x18] sm:$0xff] %v1194_v9   ;;  %1354 = vst [vmem:[%s1840_s3 + $0x98] sm:$0xff] %v1274_v10  }
  0xf1   :  { %1337 = vst [vmem:[%s1840_s3 + $0x10] sm:$0xff] %v1189_v11   ;;  %1353 = vst [vmem:[%s1840_s3 + $0x90] sm:$0xff] %v1269_v12   ;;  %v1418_v13 = vpop.f32.mrb[8].mxu0  ;;  %v1450_v14 = vpop.f32.mrb[8].mxu1 }
  0xf2   :  { %v433_v15 = vpop.f32.mrb[9].mxu0  ;;  %v561_v16 = vpop.f32.mrb[9].mxu1  ;;  %v442_v19 = vadd.f32 %v1418_v13, %v1675_v37  ;;  %v570_v20 = vadd.f32 %v1450_v14, %v1675_v37 }
  0xf3   :  { %v1419_v17 = vpop.f32.mrb[10].mxu0  ;;  %v1451_v18 = vpop.f32.mrb[10].mxu1  ;;  %v434_v25 = vadd.f32 %v1675_v37, %v433_v15  ;;  %v562_v26 = vadd.f32 %v1675_v37, %v561_v16 }
  0xf4   :  { %v445_v21 = vadd.f32 %v1419_v17, %v1675_v37  ;;  %v573_v22 = vadd.f32 %v1451_v18, %v1675_v37  ;;  %v436_v23 = vpop.f32.mrb[11].mxu0  ;;  %v564_v24 = vpop.f32.mrb[11].mxu1 }
  0xf5   :  { %v437_v27 = vadd.f32 %v1675_v37, %v436_v23  ;;  %v565_v28 = vadd.f32 %v1675_v37, %v564_v24 }
  0xf6   :  { %v1204_v29 = vpack.c.bf16 %v445_v21, %v442_v19  ;;  %v1284_v30 = vpack.c.bf16 %v573_v22, %v570_v20 }
  0xf7   :  { %v1199_v31 = vpack.c.bf16 %v437_v27, %v434_v25  ;;  %v1279_v32 = vpack.c.bf16 %v565_v28, %v562_v26 }
  0xf8   :  { %1340 = vst [vmem:[%s1840_s3 + $0x28] sm:$0xff] %v1204_v29   ;;  %1356 = vst [vmem:[%s1840_s3 + $0xa8] sm:$0xff] %v1284_v30  }
  0xf9   :  { %1339 = vst [vmem:[%s1840_s3 + $0x20] sm:$0xff] %v1199_v31   ;;  %1355 = vst [vmem:[%s1840_s3 + $0xa0] sm:$0xff] %v1279_v32   ;;  %v1422_v33 = vpop.f32.mrb[12].mxu0  ;;  %v1454_v34 = vpop.f32.mrb[12].mxu1 }
  0xfa   :  { %v449_v35 = vpop.f32.mrb[13].mxu0  ;;  %v577_v36 = vpop.f32.mrb[13].mxu1  ;;  %v458_v40 = vadd.f32 %v1422_v33, %v1675_v37  ;;  %v586_v41 = vadd.f32 %v1454_v34, %v1675_v37 }
  0xfb   :  { %v1423_v38 = vpop.f32.mrb[14].mxu0  ;;  %v1455_v39 = vpop.f32.mrb[14].mxu1  ;;  %v450_v46 = vadd.f32 %v1675_v37, %v449_v35  ;;  %v578_v47 = vadd.f32 %v1675_v37, %v577_v36 }
  0xfc   :  { %v461_v42 = vadd.f32 %v1423_v38, %v1675_v37  ;;  %v589_v43 = vadd.f32 %v1455_v39, %v1675_v37  ;;  %v452_v44 = vpop.f32.mrb[15].mxu0  ;;  %v580_v45 = vpop.f32.mrb[15].mxu1 }
  0xfd   :  { %v453_v48 = vadd.f32 %v1675_v37, %v452_v44  ;;  %v581_v49 = vadd.f32 %v1675_v37, %v580_v45 }
  0xfe   :  { %v1214_v50 = vpack.c.bf16 %v461_v42, %v458_v40  ;;  %v1294_v51 = vpack.c.bf16 %v589_v43, %v586_v41 }
  0xff   :  { %v1209_v52 = vpack.c.bf16 %v453_v48, %v450_v46  ;;  %v1289_v53 = vpack.c.bf16 %v581_v49, %v578_v47 }
 0x100   :  { %1342 = vst [vmem:[%s1840_s3 + $0x38] sm:$0xff] %v1214_v50   ;;  %1358 = vst [vmem:[%s1840_s3 + $0xb8] sm:$0xff] %v1294_v51  }
 0x101   :  { %1341 = vst [vmem:[%s1840_s3 + $0x30] sm:$0xff] %v1209_v52   ;;  %1357 = vst [vmem:[%s1840_s3 + $0xb0] sm:$0xff] %v1289_v53   ;;  %v1426_v54 = vpop.f32.mrb[16].mxu0  ;;  %v1458_v55 = vpop.f32.mrb[16].mxu1 }
 0x102   :  { %v465_v56 = vpop.f32.mrb[17].mxu0  ;;  %v593_v57 = vpop.f32.mrb[17].mxu1  ;;  %v474_v60 = vadd.f32 %v1426_v54, %v1675_v37  ;;  %v602_v61 = vadd.f32 %v1458_v55, %v1675_v37 }
 0x103   :  { %v1427_v58 = vpop.f32.mrb[18].mxu0  ;;  %v1459_v59 = vpop.f32.mrb[18].mxu1  ;;  %v466_v2 = vadd.f32 %v1675_v37, %v465_v56  ;;  %v594_v3 = vadd.f32 %v1675_v37, %v593_v57 }
 0x104   :  { %v477_v62 = vadd.f32 %v1427_v58, %v1675_v37  ;;  %v605_v63 = vadd.f32 %v1459_v59, %v1675_v37  ;;  %v468_v0 = vpop.f32.mrb[19].mxu0  ;;  %v596_v1 = vpop.f32.mrb[19].mxu1 }
 0x105   :  { %v469_v4 = vadd.f32 %v1675_v37, %v468_v0  ;;  %v597_v5 = vadd.f32 %v1675_v37, %v596_v1 }
 0x106   :  { %v1224_v6 = vpack.c.bf16 %v477_v62, %v474_v60  ;;  %v1304_v7 = vpack.c.bf16 %v605_v63, %v602_v61 }
 0x107   :  { %v1219_v8 = vpack.c.bf16 %v469_v4, %v466_v2  ;;  %v1299_v9 = vpack.c.bf16 %v597_v5, %v594_v3 }
 0x108   :  { %1344 = vst [vmem:[%s1840_s3 + $0x48] sm:$0xff] %v1224_v6   ;;  %1360 = vst [vmem:[%s1840_s3 + $0xc8] sm:$0xff] %v1304_v7  }
 0x109   :  { %1343 = vst [vmem:[%s1840_s3 + $0x40] sm:$0xff] %v1219_v8   ;;  %1359 = vst [vmem:[%s1840_s3 + $0xc0] sm:$0xff] %v1299_v9   ;;  %v1430_v10 = vpop.f32.mrb[20].mxu0  ;;  %v1462_v11 = vpop.f32.mrb[20].mxu1 }
 0x10a   :  { %v481_v12 = vpop.f32.mrb[21].mxu0  ;;  %v609_v13 = vpop.f32.mrb[21].mxu1  ;;  %v490_v16 = vadd.f32 %v1430_v10, %v1675_v37  ;;  %v618_v17 = vadd.f32 %v1462_v11, %v1675_v37 }
 0x10b   :  { %v1431_v14 = vpop.f32.mrb[22].mxu0  ;;  %v1463_v15 = vpop.f32.mrb[22].mxu1  ;;  %v482_v22 = vadd.f32 %v1675_v37, %v481_v12  ;;  %v610_v23 = vadd.f32 %v1675_v37, %v609_v13 }
 0x10c   :  { %v493_v18 = vadd.f32 %v1431_v14, %v1675_v37  ;;  %v621_v19 = vadd.f32 %v1463_v15, %v1675_v37  ;;  %v484_v20 = vpop.f32.mrb[23].mxu0  ;;  %v612_v21 = vpop.f32.mrb[23].mxu1 }
 0x10d   :  { %v485_v24 = vadd.f32 %v1675_v37, %v484_v20  ;;  %v613_v25 = vadd.f32 %v1675_v37, %v612_v21 }
 0x10e   :  { %v1234_v26 = vpack.c.bf16 %v493_v18, %v490_v16  ;;  %v1314_v27 = vpack.c.bf16 %v621_v19, %v618_v17 }
 0x10f   :  { %v1229_v28 = vpack.c.bf16 %v485_v24, %v482_v22  ;;  %v1309_v29 = vpack.c.bf16 %v613_v25, %v610_v23 }
 0x110   :  { %1346 = vst [vmem:[%s1840_s3 + $0x58] sm:$0xff] %v1234_v26   ;;  %1362 = vst [vmem:[%s1840_s3 + $0xd8] sm:$0xff] %v1314_v27  }
 0x111   :  { %1345 = vst [vmem:[%s1840_s3 + $0x50] sm:$0xff] %v1229_v28   ;;  %1361 = vst [vmem:[%s1840_s3 + $0xd0] sm:$0xff] %v1309_v29   ;;  %v1434_v30 = vpop.f32.mrb[24].mxu0  ;;  %v1466_v31 = vpop.f32.mrb[24].mxu1 }
 0x112   :  { %v497_v32 = vpop.f32.mrb[25].mxu0  ;;  %v625_v33 = vpop.f32.mrb[25].mxu1  ;;  %v506_v36 = vadd.f32 %v1434_v30, %v1675_v37  ;;  %v634_v38 = vadd.f32 %v1466_v31, %v1675_v37 }
 0x113   :  { %v1435_v34 = vpop.f32.mrb[26].mxu0  ;;  %v1467_v35 = vpop.f32.mrb[26].mxu1  ;;  %v498_v43 = vadd.f32 %v1675_v37, %v497_v32  ;;  %v626_v44 = vadd.f32 %v1675_v37, %v625_v33 }
 0x114   :  { %v509_v39 = vadd.f32 %v1435_v34, %v1675_v37  ;;  %v637_v40 = vadd.f32 %v1467_v35, %v1675_v37  ;;  %v500_v41 = vpop.f32.mrb[27].mxu0  ;;  %v628_v42 = vpop.f32.mrb[27].mxu1 }
 0x115   :  { %v501_v45 = vadd.f32 %v1675_v37, %v500_v41  ;;  %v629_v46 = vadd.f32 %v1675_v37, %v628_v42 }
 0x116   :  { %v1244_v47 = vpack.c.bf16 %v509_v39, %v506_v36  ;;  %v1324_v48 = vpack.c.bf16 %v637_v40, %v634_v38 }
 0x117   :  { %v1239_v49 = vpack.c.bf16 %v501_v45, %v498_v43  ;;  %v1319_v50 = vpack.c.bf16 %v629_v46, %v626_v44 }
 0x118   :  { %1348 = vst [vmem:[%s1840_s3 + $0x68] sm:$0xff] %v1244_v47   ;;  %1364 = vst [vmem:[%s1840_s3 + $0xe8] sm:$0xff] %v1324_v48  }
 0x119   :  { %1347 = vst [vmem:[%s1840_s3 + $0x60] sm:$0xff] %v1239_v49   ;;  %1363 = vst [vmem:[%s1840_s3 + $0xe0] sm:$0xff] %v1319_v50   ;;  %v1438_v51 = vpop.f32.mrb[28].mxu0  ;;  %v1470_v52 = vpop.f32.mrb[28].mxu1 }
 0x11a   :  { %v513_v53 = vpop.f32.mrb[29].mxu0  ;;  %v641_v54 = vpop.f32.mrb[29].mxu1  ;;  %v522_v57 = vadd.f32 %v1438_v51, %v1675_v37  ;;  %v650_v58 = vadd.f32 %v1470_v52, %v1675_v37 }
 0x11b   :  { %v1439_v55 = vpop.f32.mrb[30].mxu0  ;;  %v1471_v56 = vpop.f32.mrb[30].mxu1  ;;  %v514_v63 = vadd.f32 %v1675_v37, %v513_v53  ;;  %v642_v0 = vadd.f32 %v1675_v37, %v641_v54 }
 0x11c   :  { %v525_v59 = vadd.f32 %v1439_v55, %v1675_v37  ;;  %v653_v60 = vadd.f32 %v1471_v56, %v1675_v37  ;;  %v516_v61 = vpop.f32.mrb[31].mxu0  ;;  %v644_v62 = vpop.f32.mrb[31].mxu1 }
 0x11d   :  { %v517_v1 = vadd.f32 %v1675_v37, %v516_v61  ;;  %v645_v2 = vadd.f32 %v1675_v37, %v644_v62 }
 0x11e   :  { %v1254_v3 = vpack.c.bf16 %v525_v59, %v522_v57  ;;  %v1334_v4 = vpack.c.bf16 %v653_v60, %v650_v58 }
 0x11f   :  { %v1249_v5 = vpack.c.bf16 %v517_v1, %v514_v63  ;;  %v1329_v6 = vpack.c.bf16 %v645_v2, %v642_v0 }
 0x120   :  { %1350 = vst [vmem:[%s1840_s3 + $0x78] sm:$0xff] %v1254_v3   ;;  %1366 = vst [vmem:[%s1840_s3 + $0xf8] sm:$0xff] %v1334_v4  }
 0x121   :  { %1349 = vst [vmem:[%s1840_s3 + $0x70] sm:$0xff] %v1249_v5   ;;  %1365 = vst [vmem:[%s1840_s3 + $0xf0] sm:$0xff] %v1329_v6  }

// kernel: adaptive_cnn_forward.9
= control target key start
LH: loop header
LB: loop body
LE: loop exit
PB: predicated region body
PF: predicated region fallthrough
CT: control target
= control target key end

     0   :  { %v3249_v0 = vmov 0   ;;  %vm773_vm0 = vcmask 261120   ;;  %vm3251_vm1 = vmmov 0   ;;  %s4916_s1 = inlined_call_operand.vmem [shape: bf16[288,128], index: 1, kind: input, shape index: {}]   ;;  %s4917_s0 = inlined_call_operand.vmem [shape: bf16[512,288], index: 0, kind: input, shape index: {}]   ;;  %s4918_s2 = inlined_call_operand.vmem [shape: f32[128,128], index: 2, kind: input, shape index: {}]   ;;  %s4919_s3 = inlined_call_operand.vmem [shape: f32[1,128], index: 3, kind: input, shape index: {}]   ;;  %s4920_s4 = inlined_call_operand.vmem [shape: f32[1,128], index: 4, kind: input, shape index: {}]   ;;  %s4921_s5 = inlined_call_operand.vmem [shape: bf16[512,128], index: 5, kind: output, shape index: {}]  }
   0x1   :  { %870 = vmatprep.subr.bf16.mxu0 %v3249_v0  ;;  %3065 = vmatprep.subr.bf16.mxu1 %v3249_v0  ;;  %v3101_v1 = vld [vmem:[%s4916_s1] sm:$0xff]   ;;  %v3102_v2 = vld [vmem:[%s4916_s1 + $0x8] sm:$0xff]   ;;  %v3103_v3 = vld [vmem:[%s4916_s1 + $0x10] sm:$0xff]  }
   0x2   :  { %871 = vmatpush1.bf16.msra.mxu0 %v3101_v1  ;;  %3081 = vmatpush1.bf16.msra.mxu1 %v3101_v1  ;;  %v3104_v4 = vld [vmem:[%s4916_s1 + $0x18] sm:$0xff]   ;;  %v3105_v5 = vld [vmem:[%s4916_s1 + $0x20] sm:$0xff]   ;;  %v3106_v7 = vld [vmem:[%s4916_s1 + $0x28] sm:$0xff]  }
   0x3   :  { %872 = vmatprep.subr.bf16.mxu0 %v3249_v0  ;;  %3066 = vmatprep.subr.bf16.mxu1 %v3249_v0  ;;  %v3119_v6 = vld [vmem:[%s4917_s0 + $0x4] ss:$12 sps:$4 sm:$0xff]   ;;  %v3122_v8 = vld [vmem:[%s4917_s0 + $0x28c] ss:$12 sps:$4 sm:$0xff]   ;;  %v3120_v21 = vld [vmem:[%s4917_s0 + $0x288] ss:$12 sps:$4 sm:$0xff]  }
   0x4   :  { %902 = vmatprep.mubr.bf16.mxu0 %v3119_v6  ;;  %1118 = vmatprep.mubr.bf16.mxu1 %v3122_v8  ;;  %v3107_v9 = vld [vmem:[%s4916_s1 + $0x30] sm:$0xff]   ;;  %v3108_v10 = vld [vmem:[%s4916_s1 + $0x38] sm:$0xff]   ;;  %v3109_v11 = vld [vmem:[%s4916_s1 + $0x40] sm:$0xff]  }
   0x5   :  { %v3110_v12 = vld [vmem:[%s4916_s1 + $0x48] sm:$0xff]   ;;  %v3111_v13 = vld [vmem:[%s4916_s1 + $0x50] sm:$0xff]   ;;  %v3112_v14 = vld [vmem:[%s4916_s1 + $0x58] sm:$0xff]  }
   0x6   :  { %873 = vmatpush1.bf16.msra.mxu0 %v3102_v2  ;;  %3082 = vmatpush1.bf16.msra.mxu1 %v3102_v2  ;;  %v3113_v15 = vld [vmem:[%s4916_s1 + $0x60] sm:$0xff]   ;;  %v3114_v16 = vld [vmem:[%s4916_s1 + $0x68] sm:$0xff]   ;;  %v3115_v17 = vld [vmem:[%s4916_s1 + $0x70] sm:$0xff]  }
   0x7   :  { %874 = vmatprep.subr.bf16.mxu0 %v3249_v0  ;;  %3067 = vmatprep.subr.bf16.mxu1 %v3249_v0  ;;  %v3116_v18 = vld [vmem:[%s4916_s1 + $0x78] sm:$0xff]   ;;  %v3117_v19 = vld [vmem:[%s4917_s0] ss:$12 sps:$4 sm:$0xff]   ;;  %v3125_v23 = vld [vmem:[%s4917_s0 + $0x2a4] ss:$12 sps:$4 sm:$0xff]  }
   0x8   :  { %v3147_v20 = vld [vmem:[%s4916_s1 + $0x80] sm:$0xff]   ;;  %v3123_v22 = vld [vmem:[%s4917_s0 + $0x1c] ss:$12 sps:$4 sm:$0xff]   ;;  %v3135_v31 = vld [vmem:[%s4917_s0 + $0x4c] ss:$12 sps:$4 sm:$0xff]  }
   0x9   :  { %v3148_v24 = vld [vmem:[%s4916_s1 + $0x88] sm:$0xff]   ;;  %v3127_v25 = vld [vmem:[%s4917_s0 + $0x18] ss:$12 sps:$4 sm:$0xff]   ;;  %v3129_v27 = vld [vmem:[%s4917_s0 + $0x34] ss:$12 sps:$4 sm:$0xff]  }
   0xa   :  { %875 = vmatpush1.bf16.msra.mxu0 %v3103_v3  ;;  %3083 = vmatpush1.bf16.msra.mxu1 %v3103_v3  ;;  %v3128_v26 = vld [vmem:[%s4917_s0 + $0x2a0] ss:$12 sps:$4 sm:$0xff]   ;;  %v3131_v28 = vld [vmem:[%s4917_s0 + $0x2bc] ss:$12 sps:$4 sm:$0xff]   ;;  %v3134_v30 = vld [vmem:[%s4917_s0 + $0x2b8] ss:$12 sps:$4 sm:$0xff]  }
   0xb   :  { %876 = vmatprep.subr.bf16.mxu0 %v3249_v0  ;;  %3068 = vmatprep.subr.bf16.mxu1 %v3249_v0  ;;  %v3133_v29 = vld [vmem:[%s4917_s0 + $0x30] ss:$12 sps:$4 sm:$0xff]   ;;  %v3137_v32 = vld [vmem:[%s4917_s0 + $0x2d4] ss:$12 sps:$4 sm:$0xff]   ;;  %v3143_v36 = vld [vmem:[%s4917_s0 + $0x2ec] ss:$12 sps:$4 sm:$0xff]  }
   0xc   :  { %v3139_v33 = vld [vmem:[%s4917_s0 + $0x48] ss:$12 sps:$4 sm:$0xff]   ;;  %v3140_v34 = vld [vmem:[%s4917_s0 + $0x2d0] ss:$12 sps:$4 sm:$0xff]   ;;  %v3145_v37 = vld [vmem:[%s4917_s0 + $0x60] ss:$12 sps:$4 sm:$0xff]  }
   0xd   :  { %v3141_v35 = vld [vmem:[%s4917_s0 + $0x64] ss:$12 sps:$4 sm:$0xff]   ;;  %v3146_v38 = vld [vmem:[%s4917_s0 + $0x2e8] ss:$12 sps:$4 sm:$0xff]   ;;  %v3153_v42 = vld [vmem:[%s4917_s0 + $0x20] ss:$12 sps:$4 sm:$0xff]  }
   0xe   :  { %877 = vmatpush1.bf16.msra.mxu0 %v3104_v4  ;;  %3084 = vmatpush1.bf16.msra.mxu1 %v3104_v4  ;;  %v3149_v39 = vld [vmem:[%s4917_s0 + $0x7c] ss:$12 sps:$4 sm:$0xff]   ;;  %v3152_v41 = vld [vmem:[%s4917_s0 + $0x78] ss:$12 sps:$4 sm:$0xff]   ;;  %v3154_v43 = vld [vmem:[%s4917_s0 + $0x94] ss:$12 sps:$4 sm:$0xff]  }
   0xf   :  { %878 = vmatprep.subr.bf16.mxu0 %v3249_v0  ;;  %3069 = vmatprep.subr.bf16.mxu1 %v3249_v0  ;;  %v3151_v40 = vld [vmem:[%s4917_s0 + $0x8] ss:$12 sps:$4 sm:$0xff]   ;;  %v3156_v44 = vld [vmem:[%s4917_s0 + $0x38] ss:$12 sps:$4 sm:$0xff]   ;;  %v3157_v45 = vld [vmem:[%s4917_s0 + $0x90] ss:$12 sps:$4 sm:$0xff]  }
  0x10   :  { %v3158_v46 = vld [vmem:[%s4917_s0 + $0x50] ss:$12 sps:$4 sm:$0xff]   ;;  %v3159_v47 = vld [vmem:[%s4917_s0 + $0xac] ss:$12 sps:$4 sm:$0xff]   ;;  %v3161_v48 = vld [vmem:[%s4917_s0 + $0x68] ss:$12 sps:$4 sm:$0xff]  }
  0x11   :  { %v3162_v49 = vld [vmem:[%s4917_s0 + $0xa8] ss:$12 sps:$4 sm:$0xff]   ;;  %v3163_v50 = vld [vmem:[%s4917_s0 + $0x80] ss:$12 sps:$4 sm:$0xff]   ;;  %v3164_v51 = vld [vmem:[%s4917_s0 + $0xc4] ss:$12 sps:$4 sm:$0xff]  }
  0x12   :  { %879 = vmatpush1.bf16.msra.mxu0 %v3105_v5  ;;  %3085 = vmatpush1.bf16.msra.mxu1 %v3105_v5  ;;  %v3166_v52 = vld [vmem:[%s4917_s0 + $0x98] ss:$12 sps:$4 sm:$0xff]   ;;  %v3167_v53 = vld [vmem:[%s4917_s0 + $0xc0] ss:$12 sps:$4 sm:$0xff]   ;;  %v3168_v54 = vld [vmem:[%s4917_s0 + $0xb0] ss:$12 sps:$4 sm:$0xff]  }
  0x13   :  { %880 = vmatprep.subr.bf16.mxu0 %v3249_v0  ;;  %3070 = vmatprep.subr.bf16.mxu1 %v3249_v0  ;;  %v3169_v55 = vld [vmem:[%s4917_s0 + $0xdc] ss:$12 sps:$4 sm:$0xff]   ;;  %v3172_v57 = vld [vmem:[%s4917_s0 + $0xd8] ss:$12 sps:$4 sm:$0xff]   ;;  %v3173_v58 = vld [vmem:[%s4917_s0 + $0xe0] ss:$12 sps:$4 sm:$0xff]  }
  0x14   :  { %v3171_v56 = vld [vmem:[%s4917_s0 + $0xc8] ss:$12 sps:$4 sm:$0xff]   ;;  %v3176_v60 = vld [vmem:[%s4917_s0 + $0xf8] ss:$12 sps:$4 sm:$0xff]   ;;  %v3177_v61 = vld [vmem:[%s4917_s0 + $0xf0] ss:$12 sps:$4 sm:$0xff]  }
  0x15   :  { %v3174_v59 = vld [vmem:[%s4917_s0 + $0xf4] ss:$12 sps:$4 sm:$0xff]   ;;  %v3178_v62 = vld [vmem:[%s4917_s0 + $0x110] ss:$12 sps:$4 sm:$0xff]   ;;  %v3179_v63 = vld [vmem:[%s4917_s0 + $0x10c] ss:$12 sps:$4 sm:$0xff]  }
  0x16   :  { %881 = vmatpush1.bf16.msra.mxu0 %v3106_v7  ;;  %3086 = vmatpush1.bf16.msra.mxu1 %v3106_v7  ;;  %v3182_v1 = vld [vmem:[%s4917_s0 + $0x108] ss:$12 sps:$4 sm:$0xff]   ;;  %v3183_v2 = vld [vmem:[%s4917_s0 + $0x140] ss:$12 sps:$4 sm:$0xff]   ;;  %v3184_v3 = vld [vmem:[%s4917_s0 + $0x124] ss:$12 sps:$4 sm:$0xff]  }
  0x17   :  { %882 = vmatprep.subr.bf16.mxu0 %v3249_v0  ;;  %3071 = vmatprep.subr.bf16.mxu1 %v3249_v0  ;;  %v3186_v4 = vld [vmem:[%s4917_s0 + $0x158] ss:$12 sps:$4 sm:$0xff]   ;;  %v3187_v5 = vld [vmem:[%s4917_s0 + $0x120] ss:$12 sps:$4 sm:$0xff]   ;;  %v3188_v6 = vld [vmem:[%s4917_s0 + $0x170] ss:$12 sps:$4 sm:$0xff]  }
  0x18   :  { %v3189_v7 = vld [vmem:[%s4917_s0 + $0x13c] ss:$12 sps:$4 sm:$0xff]  }
  0x19   :  { %v3191_v8 = vld [vmem:[%s4917_s0 + $0x188] ss:$12 sps:$4 sm:$0xff]  }
  0x1a   :  { %883 = vmatpush1.bf16.msra.mxu0 %v3107_v9  ;;  %3087 = vmatpush1.bf16.msra.mxu1 %v3107_v9  ;;  %v3192_v9 = vld [vmem:[%s4917_s0 + $0x138] ss:$12 sps:$4 sm:$0xff]  }
  0x1b   :  { %884 = vmatprep.subr.bf16.mxu0 %v3249_v0  ;;  %3072 = vmatprep.subr.bf16.mxu1 %v3249_v0 }
  0x1e   :  { %885 = vmatpush1.bf16.msra.mxu0 %v3108_v10  ;;  %3088 = vmatpush1.bf16.msra.mxu1 %v3108_v10  ;;  %v3193_v10 = vld [vmem:[%s4917_s0 + $0x1a0] ss:$12 sps:$4 sm:$0xff]  }
  0x1f   :  { %886 = vmatprep.subr.bf16.mxu0 %v3249_v0  ;;  %3073 = vmatprep.subr.bf16.mxu1 %v3249_v0 }
  0x22   :  { %887 = vmatpush1.bf16.msra.mxu0 %v3109_v11  ;;  %3089 = vmatpush1.bf16.msra.mxu1 %v3109_v11  ;;  %v3194_v11 = vld [vmem:[%s4917_s0 + $0x154] ss:$12 sps:$4 sm:$0xff]  }
  0x23   :  { %888 = vmatprep.subr.bf16.mxu0 %v3249_v0  ;;  %3074 = vmatprep.subr.bf16.mxu1 %v3249_v0 }
  0x26   :  { %889 = vmatpush1.bf16.msra.mxu0 %v3110_v12  ;;  %3090 = vmatpush1.bf16.msra.mxu1 %v3110_v12  ;;  %v3196_v12 = vld [vmem:[%s4917_s0 + $0x1b8] ss:$12 sps:$4 sm:$0xff]  }
  0x27   :  { %890 = vmatprep.subr.bf16.mxu0 %v3249_v0  ;;  %3075 = vmatprep.subr.bf16.mxu1 %v3249_v0 }
  0x2a   :  { %891 = vmatpush1.bf16.msra.mxu0 %v3111_v13  ;;  %3091 = vmatpush1.bf16.msra.mxu1 %v3111_v13  ;;  %v3197_v13 = vld [vmem:[%s4917_s0 + $0x150] ss:$12 sps:$4 sm:$0xff]  }
  0x2b   :  { %892 = vmatprep.subr.bf16.mxu0 %v3249_v0  ;;  %3076 = vmatprep.subr.bf16.mxu1 %v3249_v0 }
  0x2e   :  { %893 = vmatpush1.bf16.msra.mxu0 %v3112_v14  ;;  %3092 = vmatpush1.bf16.msra.mxu1 %v3112_v14  ;;  %v3198_v14 = vld [vmem:[%s4917_s0 + $0x1d0] ss:$12 sps:$4 sm:$0xff]  }
  0x2f   :  { %894 = vmatprep.subr.bf16.mxu0 %v3249_v0  ;;  %3077 = vmatprep.subr.bf16.mxu1 %v3249_v0 }
  0x32   :  { %895 = vmatpush1.bf16.msra.mxu0 %v3113_v15  ;;  %3093 = vmatpush1.bf16.msra.mxu1 %v3113_v15  ;;  %v3199_v15 = vld [vmem:[%s4917_s0 + $0x16c] ss:$12 sps:$4 sm:$0xff]  }
  0x33   :  { %896 = vmatprep.subr.bf16.mxu0 %v3249_v0  ;;  %3078 = vmatprep.subr.bf16.mxu1 %v3249_v0 }
  0x36   :  { %897 = vmatpush1.bf16.msra.mxu0 %v3114_v16  ;;  %3094 = vmatpush1.bf16.msra.mxu1 %v3114_v16  ;;  %v3201_v16 = vld [vmem:[%s4917_s0 + $0x1e8] ss:$12 sps:$4 sm:$0xff]  }
  0x37   :  { %898 = vmatprep.subr.bf16.mxu0 %v3249_v0  ;;  %3079 = vmatprep.subr.bf16.mxu1 %v3249_v0 }
  0x3a   :  { %899 = vmatpush1.bf16.msra.mxu0 %v3115_v17  ;;  %3095 = vmatpush1.bf16.msra.mxu1 %v3115_v17  ;;  %v3202_v17 = vld [vmem:[%s4917_s0 + $0x168] ss:$12 sps:$4 sm:$0xff]  }
  0x3b   :  { %900 = vmatprep.subr.bf16.mxu0 %v3249_v0  ;;  %3080 = vmatprep.subr.bf16.mxu1 %v3249_v0  ;;  %v3181_v0 = vld [vmem:[%s4917_s0 + $0x128] ss:$12 sps:$4 sm:$0xff]  }
  0x3e   :  { %901 = vmatpush1.bf16.msra.mxu0 %v3116_v18  ;;  %3096 = vmatpush1.bf16.msra.mxu1 %v3116_v18  ;;  %v3203_v18 = vld [vmem:[%s4917_s0 + $0x200] ss:$12 sps:$4 sm:$0xff]  }
  0x3f   :  { %2879 = vmatprep.subr.bf16.mxu1 %v3147_v20 }
  0x41   :  { %903 = vmatmul.mubr.bf16.vlgmr.msra.gmra.mrb[0].mxu0 %v3117_v19  ;;  %1119 = vmatmul.mubr.bf16.vlgmr.msra.gmra.mrb[0].mxu1 %v3120_v21  ;;  %v3204_v19 = vld [vmem:[%s4917_s0 + $0x184] ss:$12 sps:$4 sm:$0xff]   ;;  %v3207_v21 = vld [vmem:[%s4917_s0 + $0x180] ss:$12 sps:$4 sm:$0xff]  }
  0x42   :  { %910 = vmatprep.mubr.bf16.mxu0 %v3123_v22  ;;  %1126 = vmatprep.mubr.bf16.mxu1 %v3125_v23  ;;  %v3208_v22 = vld [vmem:[%s4917_s0 + $0x230] ss:$12 sps:$4 sm:$0xff]  }
  0x43   :  { %2880 = vmatpush3.bf16.msra.mxu1 %v3147_v20  ;;  %v3206_v20 = vld [vmem:[%s4917_s0 + $0x218] ss:$12 sps:$4 sm:$0xff]   ;;  %v3209_v23 = vld [vmem:[%s4917_s0 + $0x19c] ss:$12 sps:$4 sm:$0xff]  }
  0x44   :  { %2881 = vmatprep.subr.bf16.mxu1 %v3148_v24 }
  0x47   :  { %2882 = vmatpush3.bf16.msra.mxu1 %v3148_v24  ;;  %v3211_v24 = vld [vmem:[%s4917_s0 + $0x248] ss:$12 sps:$4 sm:$0xff]  }
  0x49   :  { %911 = vmatmul.mubr.bf16.gmra.mrb[4].mxu0 %v3127_v25  ;;  %1127 = vmatmul.mubr.bf16.gmra.mrb[4].mxu1 %v3128_v26  ;;  %v3212_v25 = vld [vmem:[%s4917_s0 + $0x198] ss:$12 sps:$4 sm:$0xff]   ;;  %v3213_v26 = vld [vmem:[%s4917_s0 + $0x260] ss:$12 sps:$4 sm:$0xff]  }
  0x4a   :  { %918 = vmatprep.mubr.bf16.mxu0 %v3129_v27  ;;  %1134 = vmatprep.mubr.bf16.mxu1 %v3131_v28  ;;  %v3214_v27 = vld [vmem:[%s4917_s0 + $0x1b4] ss:$12 sps:$4 sm:$0xff]   ;;  %v3216_v28 = vld [vmem:[%s4917_s0 + $0x278] ss:$12 sps:$4 sm:$0xff]  }
  0x51   :  { %919 = vmatmul.mubr.bf16.gmra.mrb[8].mxu0 %v3133_v29  ;;  %1135 = vmatmul.mubr.bf16.gmra.mrb[8].mxu1 %v3134_v30  ;;  %v3217_v29 = vld [vmem:[%s4917_s0 + $0x1b0] ss:$12 sps:$4 sm:$0xff]  }
  0x52   :  { %926 = vmatprep.mubr.bf16.mxu0 %v3135_v31  ;;  %1142 = vmatprep.mubr.bf16.mxu1 %v3137_v32  ;;  %v3218_v30 = vld [vmem:[%s4917_s0 + $0x290] ss:$12 sps:$4 sm:$0xff]   ;;  %v3219_v31 = vld [vmem:[%s4917_s0 + $0x1cc] ss:$12 sps:$4 sm:$0xff]   ;;  %v3221_v32 = vld [vmem:[%s4917_s0 + $0x2a8] ss:$12 sps:$4 sm:$0xff]  }
  0x59   :  { %927 = vmatmul.mubr.bf16.gmra.mrb[12].mxu0 %v3139_v33  ;;  %1143 = vmatmul.mubr.bf16.gmra.mrb[12].mxu1 %v3140_v34  ;;  %v3222_v33 = vld [vmem:[%s4917_s0 + $0x1c8] ss:$12 sps:$4 sm:$0xff]   ;;  %v3223_v34 = vld [vmem:[%s4917_s0 + $0x2c0] ss:$12 sps:$4 sm:$0xff]  }
  0x5a   :  { %934 = vmatprep.mubr.bf16.mxu0 %v3141_v35  ;;  %1150 = vmatprep.mubr.bf16.mxu1 %v3143_v36  ;;  %v3224_v35 = vld [vmem:[%s4917_s0 + $0x1e4] ss:$12 sps:$4 sm:$0xff]  }
  0x5b   :  { %v3226_v36 = vld [vmem:[%s4917_s0 + $0x2d8] ss:$12 sps:$4 sm:$0xff]  }
  0x61   :  { %935 = vmatmul.mubr.bf16.gmra.mrb[16].mxu0 %v3145_v37  ;;  %1151 = vmatmul.mubr.bf16.gmra.mrb[16].mxu1 %v3146_v38  ;;  %v3227_v37 = vld [vmem:[%s4917_s0 + $0x1e0] ss:$12 sps:$4 sm:$0xff]   ;;  %v3228_v38 = vld [vmem:[%s4917_s0 + $0x2f0] ss:$12 sps:$4 sm:$0xff]  }
  0x62   :  { %942 = vmatprep.mubr.bf16.mxu0 %v3149_v39  ;;  %2883 = vmatprep.mubr.msk.bf16.mxu1 %vm773_vm0, %v3151_v40  ;;  %v3229_v39 = vld [vmem:[%s4917_s0 + $0x1fc] ss:$12 sps:$4 sm:$0xff]   ;;  %v3231_v40 = vld [vmem:[%s4917_s0 + $0x1f8] ss:$12 sps:$4 sm:$0xff]  }
  0x69   :  { %943 = vmatmul.mubr.bf16.gmra.mrb[20].mxu0 %v3152_v41  ;;  %2884 = vmatmul.mubr.msk.bf16.vlgmr.msra.gmra.mrb[20].mxu1 %vm773_vm0, %v3153_v42  ;;  %v3232_v41 = vld [vmem:[%s4917_s0 + $0x214] ss:$12 sps:$4 sm:$0xff]   ;;  %v3234_v42 = vld [vmem:[%s4917_s0 + $0x210] ss:$12 sps:$4 sm:$0xff]  }
  0x6a   :  { %950 = vmatprep.mubr.bf16.mxu0 %v3154_v43  ;;  %2887 = vmatprep.mubr.msk.bf16.mxu1 %vm773_vm0, %v3156_v44  ;;  %v3235_v43 = vld [vmem:[%s4917_s0 + $0x22c] ss:$12 sps:$4 sm:$0xff]   ;;  %v3237_v44 = vld [vmem:[%s4917_s0 + $0x228] ss:$12 sps:$4 sm:$0xff]  }
  0x71   :  { %951 = vmatmul.mubr.bf16.gmra.mrb[24].mxu0 %v3157_v45  ;;  %2888 = vmatmul.mubr.msk.bf16.gmra.mrb[24].mxu1 %vm773_vm0, %v3158_v46  ;;  %v3238_v45 = vld [vmem:[%s4917_s0 + $0x244] ss:$12 sps:$4 sm:$0xff]   ;;  %v3240_v46 = vld [vmem:[%s4917_s0 + $0x240] ss:$12 sps:$4 sm:$0xff]  }
  0x72   :  { %958 = vmatprep.mubr.bf16.mxu0 %v3159_v47  ;;  %2891 = vmatprep.mubr.msk.bf16.mxu1 %vm773_vm0, %v3161_v48  ;;  %v3241_v47 = vld [vmem:[%s4917_s0 + $0x25c] ss:$12 sps:$4 sm:$0xff]   ;;  %v3243_v48 = vld [vmem:[%s4917_s0 + $0x258] ss:$12 sps:$4 sm:$0xff]  }
  0x79   :  { %959 = vmatmul.mubr.bf16.gmra.mrb[28].mxu0 %v3162_v49  ;;  %2892 = vmatmul.mubr.msk.bf16.gmra.mrb[28].mxu1 %vm773_vm0, %v3163_v50  ;;  %v3244_v49 = vld [vmem:[%s4917_s0 + $0x274] ss:$12 sps:$4 sm:$0xff]   ;;  %v4927_v50 = vmov 0.0|0.0  }
  0x7a   :  { %966 = vmatprep.mubr.bf16.mxu0 %v3164_v51  ;;  %2895 = vmatprep.mubr.msk.bf16.mxu1 %vm773_vm0, %v3166_v52  ;;  %v1650_v51 = vld [vmem:[%s4918_s2] sm:$0xff]  ;;  %v1651_v52 = vld [vmem:[%s4918_s2 + $0x8] sm:$0xff] }
  0x7b   :  { %3017 = vmatprep.subr.bf16.mxu1 %v4927_v50 }
  0x81   :  { %967 = vmatmul.mubr.bf16.gmra.mrb[32].mxu0 %v3167_v53  ;;  %2896 = vmatmul.mubr.msk.bf16.gmra.mrb[32].mxu1 %vm773_vm0, %v3168_v54  ;;  %v3246_v53 = vld [vmem:[%s4917_s0 + $0x270] ss:$12 sps:$4 sm:$0xff]   ;;  %v3696_v54 = vpack.c.bf16 %v1651_v52, %v1650_v51 }
  0x82   :  { %974 = vmatprep.mubr.bf16.mxu0 %v3169_v55  ;;  %2899 = vmatprep.mubr.msk.bf16.mxu1 %vm773_vm0, %v3171_v56 }
  0x83   :  { %3019 = vmatpush3.bf16.msra.mxu1 %v3696_v54 }
  0x84   :  { %3020 = vmatprep.subr.bf16.mxu1 %v4927_v50 }
  0x89   :  { %975 = vmatmul.mubr.bf16.gmra.mrb[36].mxu0 %v3172_v57  ;;  %2900 = vmatmul.mubr.msk.bf16.gmra.mrb[36].mxu1 %vm773_vm0, %v3173_v58 }
  0x8a   :  { %982 = vmatprep.mubr.bf16.mxu0 %v3174_v59  ;;  %2903 = vmatprep.mubr.msk.bf16.mxu1 %vm773_vm0, %v3176_v60 }
  0x91   :  { %983 = vmatmul.mubr.bf16.gmra.mrb[40].mxu0 %v3177_v61  ;;  %2904 = vmatmul.mubr.msk.bf16.gmra.mrb[40].mxu1 %vm773_vm0, %v3178_v62 }
  0x92   :  { %990 = vmatprep.mubr.bf16.mxu0 %v3179_v63  ;;  %2907 = vmatprep.mubr.msk.bf16.mxu1 %vm773_vm0, %v3181_v0  ;;  %v1652_v63 = vld [vmem:[%s4918_s2 + $0x10] sm:$0xff]  ;;  %v1653_v0 = vld [vmem:[%s4918_s2 + $0x18] sm:$0xff] }
  0x99   :  { %991 = vmatmul.mubr.bf16.gmra.mrb[44].mxu0 %v3182_v1  ;;  %2908 = vmatmul.mubr.msk.bf16.gmra.mrb[44].mxu1 %vm773_vm0, %v3183_v2 }
  0x9a   :  { %998 = vmatprep.mubr.bf16.mxu0 %v3184_v3  ;;  %2911 = vmatprep.mubr.msk.bf16.mxu1 %vm773_vm0, %v3186_v4  ;;  %v3712_v3 = vpack.c.bf16 %v1653_v0, %v1652_v63 }
  0x9c   :  { %3022 = vmatpush3.bf16.msra.mxu1 %v3712_v3 }
  0x9d   :  { %3023 = vmatprep.subr.bf16.mxu1 %v4927_v50 }
  0xa1   :  { %999 = vmatmul.mubr.bf16.gmra.mrb[48].mxu0 %v3187_v5  ;;  %2912 = vmatmul.mubr.msk.bf16.gmra.mrb[48].mxu1 %vm773_vm0, %v3188_v6 }
  0xa2   :  { %1006 = vmatprep.mubr.bf16.mxu0 %v3189_v7  ;;  %2915 = vmatprep.mubr.msk.bf16.mxu1 %vm773_vm0, %v3191_v8 }
  0xa9   :  { %1007 = vmatmul.mubr.bf16.gmra.mrb[52].mxu0 %v3192_v9  ;;  %2916 = vmatmul.mubr.msk.bf16.gmra.mrb[52].mxu1 %vm773_vm0, %v3193_v10 }
  0xaa   :  { %1014 = vmatprep.mubr.bf16.mxu0 %v3194_v11  ;;  %2919 = vmatprep.mubr.msk.bf16.mxu1 %vm773_vm0, %v3196_v12 }
  0xb1   :  { %1015 = vmatmul.mubr.bf16.gmra.mrb[56].mxu0 %v3197_v13  ;;  %2920 = vmatmul.mubr.msk.bf16.gmra.mrb[56].mxu1 %vm773_vm0, %v3198_v14 }
  0xb2   :  { %1022 = vmatprep.mubr.bf16.mxu0 %v3199_v15  ;;  %2923 = vmatprep.mubr.msk.bf16.mxu1 %vm773_vm0, %v3201_v16 }
  0xb9   :  { %1023 = vmatmul.mubr.bf16.gmra.mrb[60].mxu0 %v3202_v17  ;;  %2924 = vmatmul.mubr.msk.bf16.gmra.mrb[60].mxu1 %vm773_vm0, %v3203_v18  ;;  %v1654_v18 = vld [vmem:[%s4918_s2 + $0x20] sm:$0xff] }
  0xba   :  { %1030 = vmatprep.mubr.bf16.mxu0 %v3204_v19  ;;  %2927 = vmatprep.mubr.msk.bf16.mxu1 %vm773_vm0, %v3206_v20  ;;  %v1655_v19 = vld [vmem:[%s4918_s2 + $0x28] sm:$0xff] }
  0xc1   :  { %1031 = vmatmul.mubr.bf16.gmra.mrb[64].mxu0 %v3207_v21  ;;  %2928 = vmatmul.mubr.msk.bf16.gmra.mrb[64].mxu1 %vm773_vm0, %v3208_v22  ;;  %v3732_v22 = vpack.c.bf16 %v1655_v19, %v1654_v18 }
  0xc2   :  { %1038 = vmatprep.mubr.bf16.mxu0 %v3209_v23  ;;  %2931 = vmatprep.mubr.msk.bf16.mxu1 %vm773_vm0, %v3211_v24 }
  0xc3   :  { %3025 = vmatpush3.bf16.msra.mxu1 %v3732_v22 }
  0xc4   :  { %3026 = vmatprep.subr.bf16.mxu1 %v4927_v50 }
  0xc9   :  { %1039 = vmatmul.mubr.bf16.gmra.mrb[68].mxu0 %v3212_v25  ;;  %2932 = vmatmul.mubr.msk.bf16.gmra.mrb[68].mxu1 %vm773_vm0, %v3213_v26 }
  0xca   :  { %1046 = vmatprep.mubr.bf16.mxu0 %v3214_v27  ;;  %2935 = vmatprep.mubr.msk.bf16.mxu1 %vm773_vm0, %v3216_v28 }
  0xd1   :  { %1047 = vmatmul.mubr.bf16.gmra.mrb[72].mxu0 %v3217_v29  ;;  %2936 = vmatmul.mubr.msk.bf16.gmra.mrb[72].mxu1 %vm773_vm0, %v3218_v30 }
  0xd2   :  { %1054 = vmatprep.mubr.bf16.mxu0 %v3219_v31  ;;  %2939 = vmatprep.mubr.msk.bf16.mxu1 %vm773_vm0, %v3221_v32 }
  0xd9   :  { %1055 = vmatmul.mubr.bf16.gmra.mrb[76].mxu0 %v3222_v33  ;;  %2940 = vmatmul.mubr.msk.bf16.gmra.mrb[76].mxu1 %vm773_vm0, %v3223_v34 }
  0xda   :  { %1062 = vmatprep.mubr.bf16.mxu0 %v3224_v35  ;;  %2943 = vmatprep.mubr.msk.bf16.mxu1 %vm773_vm0, %v3226_v36 }
  0xe1   :  { %1063 = vmatmul.mubr.bf16.gmra.mrb[80].mxu0 %v3227_v37  ;;  %2944 = vmatmul.mubr.msk.bf16.gmra.mrb[80].mxu1 %vm773_vm0, %v3228_v38  ;;  %v1656_v37 = vld [vmem:[%s4918_s2 + $0x30] sm:$0xff]  ;;  %v1657_v38 = vld [vmem:[%s4918_s2 + $0x38] sm:$0xff] }
  0xe2   :  { %1070 = vmatprep.mubr.bf16.mxu0 %v3229_v39 }
  0xe9   :  { %1071 = vmatmul.mubr.bf16.gmra.mrb[84].mxu0 %v3231_v40 }
  0xea   :  { %1078 = vmatprep.mubr.bf16.mxu0 %v3232_v41  ;;  %v3750_v41 = vpack.c.bf16 %v1657_v38, %v1656_v37 }
  0xec   :  { %3028 = vmatpush3.bf16.msra.mxu1 %v3750_v41 }
  0xed   :  { %3029 = vmatprep.subr.bf16.mxu1 %v4927_v50 }
  0xf1   :  { %1079 = vmatmul.mubr.bf16.gmra.mrb[88].mxu0 %v3234_v42 }
  0xf2   :  { %1086 = vmatprep.mubr.bf16.mxu0 %v3235_v43 }
  0xf9   :  { %1087 = vmatmul.mubr.bf16.gmra.mrb[92].mxu0 %v3237_v44 }
  0xfa   :  { %1094 = vmatprep.mubr.bf16.mxu0 %v3238_v45 }
 0x101   :  { %1095 = vmatmul.mubr.bf16.gmra.mrb[96].mxu0 %v3240_v46 }
 0x102   :  { %1102 = vmatprep.mubr.bf16.mxu0 %v3241_v47 }
 0x109   :  { %1103 = vmatmul.mubr.bf16.gmra.mrb[100].mxu0 %v3243_v48 }
 0x10a   :  { %1110 = vmatprep.mubr.bf16.mxu0 %v3244_v49 }
 0x111   :  { %1111 = vmatmul.mubr.bf16.gmra.mrb[104].mxu0 %v3246_v53 }
 0x114   :  { %v904_v55 = vpop.f32.mrb[0].mxu0  ;;  %v3700_v56 = vpop.f32.mrb[0].mxu1 }
 0x115   :  { %v906_v57 = vpop.f32.mrb[1].mxu0  ;;  %v1122_v58 = vpop.f32.mrb[1].mxu1 }
 0x116   :  { %v907_v59 = vpop.f32.mrb[2].mxu0  ;;  %v3702_v60 = vpop.f32.mrb[2].mxu1 }
 0x117   :  { %v909_v61 = vpop.f32.mrb[3].mxu0  ;;  %v1125_v62 = vpop.f32.mrb[3].mxu1 }
 0x11c   :  { %v912_v1 = vpop.f32.mrb[4].mxu0  ;;  %v3710_v2 = vpop.f32.mrb[4].mxu1 }
 0x11d   :  { %v914_v4 = vpop.f32.mrb[5].mxu0  ;;  %v1130_v5 = vpop.f32.mrb[5].mxu1 }
 0x11e   :  { %v915_v6 = vpop.f32.mrb[6].mxu0  ;;  %v3714_v7 = vpop.f32.mrb[6].mxu1 }
 0x11f   :  { %v917_v8 = vpop.f32.mrb[7].mxu0  ;;  %v1133_v9 = vpop.f32.mrb[7].mxu1 }
 0x124   :  { %v920_v10 = vpop.f32.mrb[8].mxu0  ;;  %v3718_v11 = vpop.f32.mrb[8].mxu1 }
 0x125   :  { %v922_v12 = vpop.f32.mrb[9].mxu0  ;;  %v1138_v13 = vpop.f32.mrb[9].mxu1 }
 0x126   :  { %v3720_v14 = vpop.f32.mrb[10].mxu0  ;;  %v3722_v15 = vpop.f32.mrb[10].mxu1 }
 0x127   :  { %v925_v16 = vpop.f32.mrb[11].mxu0  ;;  %v1141_v17 = vpop.f32.mrb[11].mxu1 }
 0x12c   :  { %v928_v20 = vpop.f32.mrb[12].mxu0  ;;  %v3730_v21 = vpop.f32.mrb[12].mxu1 }
 0x12d   :  { %v930_v23 = vpop.f32.mrb[13].mxu0  ;;  %v1146_v24 = vpop.f32.mrb[13].mxu1 }
 0x12e   :  { %v931_v25 = vpop.f32.mrb[14].mxu0  ;;  %v3734_v26 = vpop.f32.mrb[14].mxu1 }
 0x12f   :  { %v933_v27 = vpop.f32.mrb[15].mxu0  ;;  %v1149_v28 = vpop.f32.mrb[15].mxu1 }
 0x134   :  { %v936_v29 = vpop.f32.mrb[16].mxu0  ;;  %v3738_v30 = vpop.f32.mrb[16].mxu1 }
 0x135   :  { %v938_v31 = vpop.f32.mrb[17].mxu0  ;;  %v1154_v32 = vpop.f32.mrb[17].mxu1 }
 0x136   :  { %v3740_v33 = vpop.f32.mrb[18].mxu0  ;;  %v3742_v34 = vpop.f32.mrb[18].mxu1  ;;  %v1659_v31 = vld [vmem:[%s4918_s2 + $0x48] sm:$0xff] }
 0x137   :  { %v941_v35 = vpop.f32.mrb[19].mxu0  ;;  %v1157_v36 = vpop.f32.mrb[19].mxu1 }
 0x13c   :  { %v944_v39 = vpop.f32.mrb[20].mxu0  ;;  %v2885_v40 = vpop.f32.mrb[20].mxu1 }
 0x13d   :  { %v3752_v42 = vadd.f32 %v2885_v40, %v912_v1  ;;  %v946_v43 = vpop.f32.mrb[21].mxu0  ;;  %v1193_v44 = vpop.f32.mrb[21].mxu1 }
 0x13e   :  { %v3754_v45 = vadd.f32 %v1193_v44, %v904_v55  ;;  %v947_v46 = vpop.f32.mrb[22].mxu0  ;;  %v2886_v47 = vpop.f32.mrb[22].mxu1 }
 0x13f   :  { %v3757_v48 = vadd.f32 %v2886_v47, %v915_v6  ;;  %v949_v49 = vpop.f32.mrb[23].mxu0  ;;  %v1196_v51 = vpop.f32.mrb[23].mxu1  ;;  %v1519_v58 = vmul.f32 %v3752_v42, %v3752_v42 }
 0x140   :  { %v3760_v52 = vadd.f32 %v1196_v51, %v907_v59  ;;  %v1517_v53 = vmul.f32 %v3754_v45, %v3754_v45 }
 0x141   :  { %v1520_v5 = vmul.f32 %v3757_v48, %v3757_v48 }
 0x142   :  { %v1448_v57 = vadd.f32 %v3760_v52, %v3754_v45  ;;  %v1518_v55 = vmul.f32 %v3760_v52, %v3760_v52 }
 0x144   :  { %v1449_v61 = vadd.f32 %v1448_v57, %v3752_v42  ;;  %v1581_v62 = vadd.f32 %v1518_v55, %v1517_v53  ;;  %v952_v63 = vpop.f32.mrb[24].mxu0  ;;  %v2889_v0 = vpop.f32.mrb[24].mxu1 }
 0x145   :  { %v3771_v1 = vadd.f32 %v2889_v0, %v928_v20  ;;  %v954_v59 = vpop.f32.mrb[25].mxu0  ;;  %v1209_v4 = vpop.f32.mrb[25].mxu1 }
 0x146   :  { %v1450_v6 = vadd.f32 %v1449_v61, %v3757_v48  ;;  %v1582_v8 = vadd.f32 %v1581_v62, %v1519_v58  ;;  %v3776_v9 = vadd.f32 %v1209_v4, %v920_v10  ;;  %v955_v12 = vpop.f32.mrb[26].mxu0  ;;  %v2890_v13 = vpop.f32.mrb[26].mxu1 }
 0x147   :  { %v3778_v16 = vadd.f32 %v2890_v13, %v931_v25  ;;  %v957_v17 = vpop.f32.mrb[27].mxu0  ;;  %v1212_v18 = vpop.f32.mrb[27].mxu1  ;;  %v1658_v25 = vld [vmem:[%s4918_s2 + $0x40] sm:$0xff]  ;;  %v1523_v49 = vmul.f32 %v3771_v1, %v3771_v1 }
 0x148   :  { %v1583_v19 = vadd.f32 %v1582_v8, %v1520_v5  ;;  %v1451_v20 = vadd.f32 %v1450_v6, %v3776_v9  ;;  %v1521_v23 = vmul.f32 %v3776_v9, %v3776_v9  ;;  %v3784_v24 = vadd.f32 %v1212_v18, %v3720_v14 }
 0x149   :  { %4957 = vst [vmem:[#allocation2_spill] sm:$0xff] %v3778_v16  ;;  %v3795_v36 = vpack.c.bf16 %v1659_v31, %v1658_v25  ;;  %v1524_v58 = vmul.f32 %v3778_v16, %v3778_v16  ;;  %v1661_v25 = vld [vmem:[%s4918_s2 + $0x58] sm:$0xff] }
 0x14a   :  { %v1584_v27 = vadd.f32 %v1583_v19, %v1521_v23  ;;  %v1522_v10 = vmul.f32 %v3784_v24, %v3784_v24  ;;  %v1452_v28 = vadd.f32 %v1451_v20, %v3784_v24 }
 0x14b   :  { %3031 = vmatpush3.bf16.msra.mxu1 %v3795_v36 }
 0x14c   :  { %v960_v32 = vpop.f32.mrb[28].mxu0  ;;  %v2893_v35 = vpop.f32.mrb[28].mxu1  ;;  %v1585_v14 = vadd.f32 %v1584_v27, %v1522_v10  ;;  %v1453_v51 = vadd.f32 %v1452_v28, %v3771_v1  ;;  %3032 = vmatprep.subr.bf16.mxu1 %v4927_v50 }
 0x14d   :  { %v3797_v37 = vadd.f32 %v2893_v35, %v944_v39  ;;  %v962_v38 = vpop.f32.mrb[29].mxu0  ;;  %v1225_v40 = vpop.f32.mrb[29].mxu1 }
 0x14e   :  { %v3799_v43 = vadd.f32 %v1225_v40, %v936_v29  ;;  %v963_v44 = vpop.f32.mrb[30].mxu0  ;;  %v2894_v47 = vpop.f32.mrb[30].mxu1  ;;  %v1586_v29 = vadd.f32 %v1585_v14, %v1523_v49  ;;  %v1454_v61 = vadd.f32 %v1453_v51, %v3778_v16 }
 0x14f   :  { %4958 = vst [vmem:[#allocation3_spill] sm:$0xff] %v3797_v37  ;;  %v3805_v53 = vadd.f32 %v2894_v47, %v947_v46  ;;  %v965_v57 = vpop.f32.mrb[31].mxu0  ;;  %v1228_v55 = vpop.f32.mrb[31].mxu1  ;;  %v1527_v51 = vmul.f32 %v3797_v37, %v3797_v37 }
 0x150   :  { %4959 = vst [vmem:[#allocation4_spill] sm:$0xff] %v3799_v43  ;;  %v3809_v39 = vadd.f32 %v1228_v55, %v3740_v33  ;;  %v1587_v59 = vadd.f32 %v1586_v29, %v1524_v58  ;;  %v1525_v46 = vmul.f32 %v3799_v43, %v3799_v43  ;;  %v1455_v17 = vadd.f32 %v1454_v61, %v3799_v43 }
 0x151   :  { %4960 = vst [vmem:[#allocation5_spill] sm:$0xff] %v3805_v53 }
 0x152   :  { %4961 = vst [vmem:[#allocation6_spill] sm:$0xff] %v3809_v39  ;;  %v1588_v27 = vadd.f32 %v1587_v59, %v1525_v46  ;;  %v1526_v10 = vmul.f32 %v3809_v39, %v3809_v39  ;;  %v1456_v28 = vadd.f32 %v1455_v17, %v3809_v39 }
 0x154   :  { %v968_v62 = vpop.f32.mrb[32].mxu0  ;;  %v2897_v0 = vpop.f32.mrb[32].mxu1  ;;  %v1457_v57 = vadd.f32 %v1456_v28, %v3797_v37 }
 0x155   :  { %v3816_v4 = vadd.f32 %v2897_v0, %v960_v32  ;;  %v970_v5 = vpop.f32.mrb[33].mxu0  ;;  %v1241_v6 = vpop.f32.mrb[33].mxu1 }
 0x156   :  { %v3818_v8 = vadd.f32 %v1241_v6, %v952_v63  ;;  %v971_v33 = vpop.f32.mrb[34].mxu0  ;;  %v2898_v13 = vpop.f32.mrb[34].mxu1  ;;  %v1660_v63 = vld [vmem:[%s4918_s2 + $0x50] sm:$0xff]  ;;  %v1458_v59 = vadd.f32 %v1457_v57, %v3805_v53 }
 0x157   :  { %4962 = vst [vmem:[#allocation7_spill] sm:$0xff] %v3816_v4  ;;  %v3821_v18 = vadd.f32 %v2898_v13, %v963_v44  ;;  %v973_v19 = vpop.f32.mrb[35].mxu0  ;;  %v1244_v20 = vpop.f32.mrb[35].mxu1  ;;  %v3834_v35 = vpack.c.bf16 %v1661_v25, %v1660_v63 }
 0x158   :  { %4963 = vst [vmem:[#allocation8_spill] sm:$0xff] %v3818_v8  ;;  %v3823_v23 = vadd.f32 %v1244_v20, %v955_v12  ;;  %v1589_v12 = vadd.f32 %v1588_v27, %v1526_v10  ;;  %v1529_v13 = vmul.f32 %v3818_v8, %v3818_v8 }
 0x159   :  { %4964 = vst [vmem:[#allocation9_spill] sm:$0xff] %v3821_v18  ;;  %3034 = vmatpush3.bf16.msra.mxu1 %v3834_v35 }
 0x15a   :  { %4965 = vst [vmem:[#allocation10_spill] sm:$0xff] %v3823_v23  ;;  %3035 = vmatprep.subr.bf16.mxu1 %v4927_v50  ;;  %v1590_v0 = vadd.f32 %v1589_v12, %v1527_v51 }
 0x15c   :  { %v976_v31 = vpop.f32.mrb[36].mxu0  ;;  %v2901_v32 = vpop.f32.mrb[36].mxu1 }
 0x15d   :  { %v3836_v14 = vadd.f32 %v2901_v32, %v976_v31  ;;  %v978_v38 = vpop.f32.mrb[37].mxu0  ;;  %v1257_v40 = vpop.f32.mrb[37].mxu1  ;;  %v1530_v32 = vmul.f32 %v3823_v23, %v3823_v23 }
 0x15e   :  { %v3838_v44 = vadd.f32 %v1257_v40, %v968_v62  ;;  %v979_v47 = vpop.f32.mrb[38].mxu0  ;;  %v2902_v49 = vpop.f32.mrb[38].mxu1  ;;  %v1528_v62 = vmul.f32 %v3805_v53, %v3805_v53 }
 0x15f   :  { %4966 = vst [vmem:[#allocation11_spill] sm:$0xff] %v3836_v14  ;;  %v3844_v55 = vadd.f32 %v2902_v49, %v979_v47  ;;  %v981_v29 = vpop.f32.mrb[39].mxu0  ;;  %v1260_v58 = vpop.f32.mrb[39].mxu1 }
 0x160   :  { %4967 = vst [vmem:[#allocation12_spill] sm:$0xff] %v3838_v44  ;;  %v3847_v61 = vadd.f32 %v1260_v58, %v971_v33  ;;  %v1591_v6 = vadd.f32 %v1590_v0, %v1528_v62  ;;  %v1459_v33 = vadd.f32 %v1458_v59, %v3818_v8  ;;  %v1531_v0 = vmul.f32 %v3816_v4, %v3816_v4 }
 0x161   :  { %4968 = vst [vmem:[#allocation13_spill] sm:$0xff] %v3844_v55 }
 0x162   :  { %4969 = vst [vmem:[#allocation14_spill] sm:$0xff] %v3847_v61  ;;  %v1592_v31 = vadd.f32 %v1591_v6, %v1529_v13  ;;  %v1460_v12 = vadd.f32 %v1459_v33, %v3823_v23 }
 0x164   :  { %v984_v46 = vpop.f32.mrb[40].mxu0  ;;  %v2905_v5 = vpop.f32.mrb[40].mxu1  ;;  %v1593_v47 = vadd.f32 %v1592_v31, %v1530_v32  ;;  %v1461_v62 = vadd.f32 %v1460_v12, %v3816_v4 }
 0x165   :  { %v986_v17 = vpop.f32.mrb[41].mxu0  ;;  %v1273_v19 = vpop.f32.mrb[41].mxu1 }
 0x166   :  { %v3854_v20 = vadd.f32 %v1273_v19, %v984_v46  ;;  %v987_v27 = vpop.f32.mrb[42].mxu0  ;;  %v2906_v10 = vpop.f32.mrb[42].mxu1  ;;  %v1594_v13 = vadd.f32 %v1593_v47, %v1531_v0  ;;  %v1532_v17 = vmul.f32 %v3821_v18, %v3821_v18 }
 0x167   :  { %v989_v28 = vpop.f32.mrb[43].mxu0  ;;  %v1276_v63 = vpop.f32.mrb[43].mxu1 }
 0x168   :  { %4970 = vst [vmem:[#allocation15_spill] sm:$0xff] %v3854_v20  ;;  %v3857_v25 = vadd.f32 %v1276_v63, %v987_v27  ;;  %v1595_v33 = vadd.f32 %v1594_v13, %v1532_v17  ;;  %v1533_v28 = vmul.f32 %v3838_v44, %v3838_v44  ;;  %v1664_v13 = vld [vmem:[%s4918_s2 + $0x70] sm:$0xff]  ;;  %v1665_v17 = vld [vmem:[%s4918_s2 + $0x78] sm:$0xff] }
 0x16a   :  { %4971 = vst [vmem:[#allocation16_spill] sm:$0xff] %v3857_v25  ;;  %v1596_v0 = vadd.f32 %v1595_v33, %v1533_v28 }
 0x16c   :  { %v992_v38 = vpop.f32.mrb[44].mxu0  ;;  %v2909_v40 = vpop.f32.mrb[44].mxu1 }
 0x16d   :  { %v3862_v49 = vadd.f32 %v2905_v5, %v992_v38  ;;  %v994_v51 = vpop.f32.mrb[45].mxu0  ;;  %v1289_v57 = vpop.f32.mrb[45].mxu1  ;;  %v1462_v5 = vadd.f32 %v1461_v62, %v3821_v18  ;;  %v1534_v62 = vmul.f32 %v3847_v61, %v3847_v61 }
 0x16e   :  { %v995_v29 = vpop.f32.mrb[46].mxu0  ;;  %v2910_v58 = vpop.f32.mrb[46].mxu1 }
 0x16f   :  { %4972 = vst [vmem:[#allocation17_spill] sm:$0xff] %v3862_v49  ;;  %v3867_v59 = vadd.f32 %v2906_v10, %v995_v29  ;;  %v997_v46 = vpop.f32.mrb[47].mxu0  ;;  %v1292_v6 = vpop.f32.mrb[47].mxu1  ;;  %v1463_v38 = vadd.f32 %v1462_v5, %v3838_v44 }
 0x170   :  { %v1663_v46 = vld [vmem:[%s4918_s2 + $0x68] sm:$0xff] }
 0x171   :  { %4973 = vst [vmem:[#allocation18_spill] sm:$0xff] %v3867_v59  ;;  %v1464_v5 = vadd.f32 %v1463_v38, %v3847_v61 }
 0x173   :  { %v1465_v44 = vadd.f32 %v1464_v5, %v3836_v14 }
 0x174   :  { %v1000_v19 = vpop.f32.mrb[48].mxu0  ;;  %v3872_v27 = vpop.f32.mrb[48].mxu1 }
 0x175   :  { %v3876_v63 = vadd.f32 %v1289_v57, %v1000_v19  ;;  %v1002_v31 = vpop.f32.mrb[49].mxu0  ;;  %v1305_v10 = vpop.f32.mrb[49].mxu1  ;;  %v1662_v57 = vld [vmem:[%s4918_s2 + $0x60] sm:$0xff]  ;;  %v4923_v19 = vmov 0.0  }
 0x176   :  { %v1003_v32 = vpop.f32.mrb[50].mxu0  ;;  %v3878_v12 = vpop.f32.mrb[50].mxu1  ;;  %2979 = vmatprep.mubr.msk.f32.mxu1 %vm3251_vm1, %v4923_v19  ;;  %v3905_v31 = vpack.c.bf16 %v1665_v17, %v1664_v13  ;;  %v1535_v19 = vmul.f32 %v3836_v14, %v3836_v14 }
 0x177   :  { %4974 = vst [vmem:[#allocation19_spill] sm:$0xff] %v3876_v63  ;;  %v3881_v47 = vadd.f32 %v1292_v6, %v1003_v32  ;;  %v1005_v51 = vpop.f32.mrb[51].mxu0  ;;  %v1308_v29 = vpop.f32.mrb[51].mxu1  ;;  %v3894_v6 = vpack.c.bf16 %v1663_v46, %v1662_v57  ;;  %v1597_v32 = vadd.f32 %v1596_v0, %v1534_v62  ;;  %v1536_v0 = vmul.f32 %v3844_v55, %v3844_v55 }
 0x178   :  { %v1466_v62 = vadd.f32 %v1465_v44, %v3844_v55 }
 0x179   :  { %4975 = vst [vmem:[#allocation20_spill] sm:$0xff] %v3881_v47  ;;  %3037 = vmatpush3.bf16.msra.mxu1 %v3894_v6 }
 0x17a   :  { %3038 = vmatprep.subr.bf16.mxu1 %v4927_v50 }
 0x17c   :  { %v1008_v33 = vpop.f32.mrb[52].mxu0  ;;  %v3902_v28 = vpop.f32.mrb[52].mxu1 }
 0x17d   :  { %v3907_v51 = vadd.f32 %v2909_v40, %v1008_v33  ;;  %v1010_v57 = vpop.f32.mrb[53].mxu0  ;;  %v1321_v46 = vpop.f32.mrb[53].mxu1  ;;  %3040 = vmatpush3.bf16.msra.mxu1 %v3905_v31  ;;  %v1598_v40 = vadd.f32 %v1597_v32, %v1535_v19 }
 0x17e   :  { %v1011_v38 = vpop.f32.mrb[54].mxu0  ;;  %v3910_v61 = vpop.f32.mrb[54].mxu1  ;;  %3041 = vmatprep.subr.bf16.mxu1 %v4927_v50  ;;  %v1467_v50 = vadd.f32 %v1466_v62, %v3854_v20 }
 0x17f   :  { %4976 = vst [vmem:[#allocation21_spill] sm:$0xff] %v3907_v51  ;;  %v3915_v18 = vadd.f32 %v2910_v58, %v1011_v38  ;;  %v1013_v4 = vpop.f32.mrb[55].mxu0  ;;  %v1324_v13 = vpop.f32.mrb[55].mxu1  ;;  %v1599_v57 = vadd.f32 %v1598_v40, %v1536_v0  ;;  %v1537_v58 = vmul.f32 %v3854_v20, %v3854_v20  ;;  %v1538_v40 = vmul.f32 %v3857_v25, %v3857_v25 }
 0x180   :  { %v1539_v0 = vmul.f32 %v3862_v49, %v3862_v49 }
 0x181   :  { %4977 = vst [vmem:[#allocation22_spill] sm:$0xff] %v3915_v18  ;;  %v1600_v23 = vadd.f32 %v1599_v57, %v1537_v58 }
 0x183   :  { %v1601_v8 = vadd.f32 %v1600_v23, %v1538_v40 }
 0x184   :  { %v1016_v17 = vpop.f32.mrb[56].mxu0  ;;  %v3922_v33 = vpop.f32.mrb[56].mxu1 }
 0x185   :  { %v3926_v5 = vadd.f32 %v1305_v10, %v1016_v17  ;;  %v1018_v4 = vpop.f32.mrb[57].mxu0  ;;  %v3928_v38 = vpop.f32.mrb[57].mxu1  ;;  %v1468_v10 = vadd.f32 %v1467_v50, %v3857_v25  ;;  %v1602_v20 = vadd.f32 %v1601_v8, %v1539_v0  ;;  %v1540_v50 = vmul.f32 %v3867_v59, %v3867_v59 }
 0x186   :  { %v1019_v19 = vpop.f32.mrb[58].mxu0  ;;  %v3930_v32 = vpop.f32.mrb[58].mxu1  ;;  %v1542_v0 = vmul.f32 %v3881_v47, %v3881_v47 }
 0x187   :  { %4978 = vst [vmem:[#allocation23_spill] sm:$0xff] %v3926_v5  ;;  %v3933_v14 = vadd.f32 %v1308_v29, %v1019_v19  ;;  %v1021_v44 = vpop.f32.mrb[59].mxu0  ;;  %v3935_v55 = vpop.f32.mrb[59].mxu1  ;;  %v1469_v62 = vadd.f32 %v1468_v10, %v3862_v49  ;;  %v1603_v10 = vadd.f32 %v1602_v20, %v1540_v50  ;;  %v1543_v20 = vmul.f32 %v3907_v51, %v3907_v51 }
 0x189   :  { %4979 = vst [vmem:[#allocation24_spill] sm:$0xff] %v3933_v14  ;;  %v1470_v40 = vadd.f32 %v1469_v62, %v3867_v59 }
 0x18c   :  { %v1024_v17 = vpop.f32.mrb[60].mxu0  ;;  %v3942_v4 = vpop.f32.mrb[60].mxu1 }
 0x18d   :  { %v3946_v29 = vadd.f32 %v3872_v27, %v1024_v17  ;;  %v1026_v19 = vpop.f32.mrb[61].mxu0  ;;  %v3948_v44 = vpop.f32.mrb[61].mxu1  ;;  %v1541_v27 = vmul.f32 %v3876_v63, %v3876_v63  ;;  %v1471_v17 = vadd.f32 %v1470_v40, %v3876_v63 }
 0x18e   :  { %v1027_v57 = vpop.f32.mrb[62].mxu0  ;;  %v3950_v58 = vpop.f32.mrb[62].mxu1 }
 0x18f   :  { %v3955_v25 = vadd.f32 %v3878_v12, %v1027_v57  ;;  %v1029_v53 = vpop.f32.mrb[63].mxu0  ;;  %v3957_v23 = vpop.f32.mrb[63].mxu1  ;;  %v1604_v8 = vadd.f32 %v1603_v10, %v1541_v27  ;;  %v1472_v59 = vadd.f32 %v1471_v17, %v3881_v47  ;;  %v1545_v47 = vmul.f32 %v3926_v5, %v3926_v5 }
 0x191   :  { %v1605_v10 = vadd.f32 %v1604_v8, %v1542_v0 }
 0x194   :  { %v1032_v19 = vpop.f32.mrb[64].mxu0  ;;  %v3963_v49 = vpop.f32.mrb[64].mxu1 }
 0x195   :  { %v3967_v12 = vadd.f32 %v1321_v46, %v1032_v19  ;;  %v1034_v53 = vpop.f32.mrb[65].mxu0  ;;  %v3969_v57 = vpop.f32.mrb[65].mxu1  ;;  %v1473_v46 = vadd.f32 %v1472_v59, %v3907_v51  ;;  %v1606_v19 = vadd.f32 %v1605_v10, %v1543_v20 }
 0x196   :  { %v1035_v37 = vpop.f32.mrb[66].mxu0  ;;  %v3971_v62 = vpop.f32.mrb[66].mxu1  ;;  %v1544_v53 = vmul.f32 %v3915_v18, %v3915_v18 }
 0x197   :  { %4980 = vst [vmem:[#allocation25_spill] sm:$0xff] %v3967_v12  ;;  %v3976_v50 = vadd.f32 %v1324_v13, %v1035_v37  ;;  %v1037_v40 = vpop.f32.mrb[67].mxu0  ;;  %v3978_v27 = vpop.f32.mrb[67].mxu1  ;;  %v1474_v17 = vadd.f32 %v1473_v46, %v3915_v18 }
 0x198   :  { %v1607_v0 = vadd.f32 %v1606_v19, %v1544_v53 }
 0x199   :  { %4981 = vst [vmem:[#allocation26_spill] sm:$0xff] %v3976_v50  ;;  %v1475_v20 = vadd.f32 %v1474_v17, %v3926_v5 }
 0x19a   :  { %v1608_v18 = vadd.f32 %v1607_v0, %v1545_v47 }
 0x19c   :  { %v1040_v63 = vpop.f32.mrb[68].mxu0  ;;  %v3983_v39 = vpop.f32.mrb[68].mxu1 }
 0x19d   :  { %v3989_v37 = vadd.f32 %v3902_v28, %v1040_v63  ;;  %v1042_v13 = vpop.f32.mrb[69].mxu0  ;;  %v3991_v40 = vpop.f32.mrb[69].mxu1  ;;  %v1546_v63 = vmul.f32 %v3933_v14, %v3933_v14  ;;  %v1476_v28 = vadd.f32 %v1475_v20, %v3933_v14  ;;  %v1548_v14 = vmul.f32 %v3955_v25, %v3955_v25 }
 0x19e   :  { %v1043_v8 = vpop.f32.mrb[70].mxu0  ;;  %v3993_v59 = vpop.f32.mrb[70].mxu1  ;;  %v1547_v13 = vmul.f32 %v3946_v29, %v3946_v29 }
 0x19f   :  { %v3997_v10 = vadd.f32 %v3910_v61, %v1043_v8  ;;  %v1045_v51 = vpop.f32.mrb[71].mxu0  ;;  %v3999_v46 = vpop.f32.mrb[71].mxu1  ;;  %v1609_v19 = vadd.f32 %v1608_v18, %v1546_v63  ;;  %v1477_v53 = vadd.f32 %v1476_v28, %v3946_v29 }
 0x1a1   :  { %4982 = vst [vmem:[#allocation27_spill] sm:$0xff] %v3997_v10  ;;  %v1610_v20 = vadd.f32 %v1609_v19, %v1547_v13 }
 0x1a4   :  { %v1048_v43 = vpop.f32.mrb[72].mxu0  ;;  %v2937_v16 = vpop.f32.mrb[72].mxu1 }
 0x1a5   :  { %v4008_v61 = vadd.f32 %v3928_v38, %v1048_v43  ;;  %v4011_v51 = vadd.f32 %v2937_v16, %v3700_v56  ;;  %v1050_v47 = vpop.f32.mrb[73].mxu0  ;;  %v4013_v17 = vpop.f32.mrb[73].mxu1  ;;  %v1478_v56 = vadd.f32 %v1477_v53, %v3955_v25  ;;  %v1549_v16 = vmul.f32 %v3967_v12, %v3967_v12 }
 0x1a6   :  { %v1051_v8 = vpop.f32.mrb[74].mxu0  ;;  %v2938_v0 = vpop.f32.mrb[74].mxu1  ;;  %v1611_v38 = vadd.f32 %v1610_v20, %v1548_v14 }
 0x1a7   :  { %v4018_v5 = vadd.f32 %v3935_v55, %v1051_v8  ;;  %v1053_v18 = vpop.f32.mrb[75].mxu0  ;;  %v4020_v63 = vpop.f32.mrb[75].mxu1  ;;  %v4023_v43 = vadd.f32 %v2938_v0, %v3702_v60  ;;  %v1479_v28 = vadd.f32 %v1478_v56, %v3967_v12  ;;  %v1550_v55 = vmul.f32 %v3976_v50, %v3976_v50 }
 0x1a8   :  { %v1612_v47 = vadd.f32 %v1611_v38, %v1549_v16  ;;  %v1551_v16 = vmul.f32 %v3989_v37, %v3989_v37 }
 0x1a9   :  { %v1480_v56 = vadd.f32 %v1479_v28, %v3976_v50  ;;  %v1552_v28 = vmul.f32 %v3997_v10, %v3997_v10 }
 0x1ac   :  { %v1056_v13 = vpop.f32.mrb[76].mxu0  ;;  %v2941_v19 = vpop.f32.mrb[76].mxu1 }
 0x1ad   :  { %v4032_v8 = vadd.f32 %v3922_v33, %v1056_v13  ;;  %v4035_v60 = vadd.f32 %v2941_v19, %v3718_v11  ;;  %v1058_v0 = vpop.f32.mrb[77].mxu0  ;;  %v1417_v53 = vpop.f32.mrb[77].mxu1 }
 0x1ae   :  { %v4038_v18 = vadd.f32 %v1417_v53, %v3710_v2  ;;  %v1059_v14 = vpop.f32.mrb[78].mxu0  ;;  %v2942_v20 = vpop.f32.mrb[78].mxu1  ;;  %v1613_v2 = vadd.f32 %v1612_v47, %v1550_v55  ;;  %v1481_v0 = vadd.f32 %v1480_v56, %v3989_v37 }
 0x1af   :  { %v4044_v38 = vadd.f32 %v3930_v32, %v1059_v14  ;;  %v1061_v33 = vpop.f32.mrb[79].mxu0  ;;  %v1420_v13 = vpop.f32.mrb[79].mxu1  ;;  %v4047_v11 = vadd.f32 %v2942_v20, %v3722_v15  ;;  %v1553_v14 = vmul.f32 %v4008_v61, %v4008_v61 }
 0x1b0   :  { %v4050_v19 = vadd.f32 %v1420_v13, %v3714_v7  ;;  %v1614_v53 = vadd.f32 %v1613_v2, %v1551_v16  ;;  %v1482_v32 = vadd.f32 %v1481_v0, %v3997_v10 }
 0x1b2   :  { %v1615_v33 = vadd.f32 %v1614_v53, %v1552_v28  ;;  %v1483_v13 = vadd.f32 %v1482_v32, %v4008_v61  ;;  %v1555_v53 = vmul.f32 %v4032_v8, %v4032_v8 }
 0x1b4   :  { %v1064_v50 = vpop.f32.mrb[80].mxu0  ;;  %v2945_v12 = vpop.f32.mrb[80].mxu1 }
 0x1b5   :  { %v4059_v15 = vadd.f32 %v3948_v44, %v1064_v50  ;;  %v4062_v7 = vadd.f32 %v2945_v12, %v3738_v30  ;;  %v1066_v47 = vpop.f32.mrb[81].mxu0  ;;  %v1433_v55 = vpop.f32.mrb[81].mxu1  ;;  %v1616_v12 = vadd.f32 %v1615_v33, %v1553_v14  ;;  %v1484_v50 = vadd.f32 %v1483_v13, %v4018_v5 }
 0x1b6   :  { %v4065_v20 = vadd.f32 %v1433_v55, %v3730_v21  ;;  %v1067_v56 = vpop.f32.mrb[82].mxu0  ;;  %v2946_v16 = vpop.f32.mrb[82].mxu1  ;;  %v1554_v21 = vmul.f32 %v4018_v5, %v4018_v5 }
 0x1b7   :  { %v4069_v2 = vadd.f32 %v3957_v23, %v1067_v56  ;;  %v1069_v0 = vpop.f32.mrb[83].mxu0  ;;  %v1436_v10 = vpop.f32.mrb[83].mxu1  ;;  %v4072_v44 = vadd.f32 %v2946_v16, %v3742_v34  ;;  %v1485_v32 = vadd.f32 %v1484_v50, %v4032_v8  ;;  %v1557_v33 = vmul.f32 %v4059_v15, %v4059_v15 }
 0x1b8   :  { %v4075_v30 = vadd.f32 %v1436_v10, %v3734_v26  ;;  %v1617_v23 = vadd.f32 %v1616_v12, %v1554_v21  ;;  %v1556_v10 = vmul.f32 %v4044_v38, %v4044_v38 }
 0x1b9   :  { %v1486_v16 = vadd.f32 %v1485_v32, %v4044_v38  ;;  %v1558_v21 = vmul.f32 %v4069_v2, %v4069_v2 }
 0x1ba   :  { %v1618_v26 = vadd.f32 %v1617_v23, %v1555_v53 }
 0x1bb   :  { %v1487_v0 = vadd.f32 %v1486_v16, %v4059_v15 }
 0x1bc   :  { %v1072_v28 = vpop.f32.mrb[84].mxu0  ;;  %v1619_v13 = vadd.f32 %v1618_v26, %v1556_v10 }
 0x1bd   :  { %v4084_v47 = vadd.f32 %v3942_v4, %v1072_v28  ;;  %v1074_v34 = vpop.f32.mrb[85].mxu0  ;;  %v1488_v28 = vadd.f32 %v1487_v0, %v4069_v2 }
 0x1be   :  { %v1075_v55 = vpop.f32.mrb[86].mxu0  ;;  %v1620_v12 = vadd.f32 %v1619_v13, %v1557_v33 }
 0x1bf   :  { %v4089_v14 = vadd.f32 %v3950_v58, %v1075_v55  ;;  %v1077_v56 = vpop.f32.mrb[87].mxu0  ;;  %v1559_v23 = vmul.f32 %v4084_v47, %v4084_v47  ;;  %v1489_v26 = vadd.f32 %v1488_v28, %v4084_v47 }
 0x1c0   :  { %v1621_v55 = vadd.f32 %v1620_v12, %v1558_v21 }
 0x1c1   :  { %v1560_v56 = vmul.f32 %v4089_v14, %v4089_v14  ;;  %v1490_v16 = vadd.f32 %v1489_v26, %v4089_v14 }
 0x1c2   :  { %v1622_v10 = vadd.f32 %v1621_v55, %v1559_v23 }
 0x1c4   :  { %v1080_v4 = vpop.f32.mrb[88].mxu0 }
 0x1c5   :  { %v4098_v50 = vadd.f32 %v3969_v57, %v1080_v4  ;;  %v1082_v53 = vpop.f32.mrb[89].mxu0  ;;  %v1623_v4 = vadd.f32 %v1622_v10, %v1560_v56 }
 0x1c6   :  { %v1083_v58 = vpop.f32.mrb[90].mxu0 }
 0x1c7   :  { %v4104_v32 = vadd.f32 %v3978_v27, %v1083_v58  ;;  %v1085_v34 = vpop.f32.mrb[91].mxu0  ;;  %v1561_v33 = vmul.f32 %v4098_v50, %v4098_v50  ;;  %v1491_v12 = vadd.f32 %v1490_v16, %v4098_v50 }
 0x1c9   :  { %v1624_v58 = vadd.f32 %v1623_v4, %v1561_v33  ;;  %v1562_v28 = vmul.f32 %v4104_v32, %v4104_v32  ;;  %v1492_v23 = vadd.f32 %v1491_v12, %v4104_v32 }
 0x1cb   :  { %v1625_v55 = vadd.f32 %v1624_v58, %v1562_v28 }
 0x1cc   :  { %v1088_v57 = vpop.f32.mrb[92].mxu0 }
 0x1cd   :  { %v4113_v13 = vadd.f32 %v3963_v49, %v1088_v57  ;;  %v1090_v0 = vpop.f32.mrb[93].mxu0 }
 0x1ce   :  { %v1091_v27 = vpop.f32.mrb[94].mxu0 }
 0x1cf   :  { %v4117_v21 = vadd.f32 %v3971_v62, %v1091_v27  ;;  %v1093_v53 = vpop.f32.mrb[95].mxu0  ;;  %v1563_v34 = vmul.f32 %v4113_v13, %v4113_v13  ;;  %v1493_v26 = vadd.f32 %v1492_v23, %v4113_v13 }
 0x1d1   :  { %v1626_v57 = vadd.f32 %v1625_v55, %v1563_v34  ;;  %v1564_v16 = vmul.f32 %v4117_v21, %v4117_v21  ;;  %v1494_v27 = vadd.f32 %v1493_v26, %v4117_v21 }
 0x1d3   :  { %v1627_v12 = vadd.f32 %v1626_v57, %v1564_v16 }
 0x1d4   :  { %v1096_v49 = vpop.f32.mrb[96].mxu0 }
 0x1d5   :  { %v4126_v10 = vadd.f32 %v3991_v40, %v1096_v49  ;;  %v1098_v56 = vpop.f32.mrb[97].mxu0 }
 0x1d6   :  { %v1099_v62 = vpop.f32.mrb[98].mxu0 }
 0x1d7   :  { %v4131_v33 = vadd.f32 %v3999_v46, %v1099_v62  ;;  %v1101_v0 = vpop.f32.mrb[99].mxu0  ;;  %v1565_v4 = vmul.f32 %v4126_v10, %v4126_v10  ;;  %v1495_v53 = vadd.f32 %v1494_v27, %v4126_v10 }
 0x1d9   :  { %v1628_v58 = vadd.f32 %v1627_v12, %v1565_v4  ;;  %v1566_v28 = vmul.f32 %v4131_v33, %v4131_v33  ;;  %v1496_v49 = vadd.f32 %v1495_v53, %v4131_v33 }
 0x1db   :  { %v1629_v62 = vadd.f32 %v1628_v58, %v1566_v28 }
 0x1dc   :  { %v1104_v40 = vpop.f32.mrb[100].mxu0 }
 0x1dd   :  { %v4140_v23 = vadd.f32 %v3983_v39, %v1104_v40  ;;  %v1106_v34 = vpop.f32.mrb[101].mxu0 }
 0x1de   :  { %v1107_v46 = vpop.f32.mrb[102].mxu0 }
 0x1df   :  { %v1567_v55 = vmul.f32 %v4140_v23, %v4140_v23  ;;  %v4146_v26 = vadd.f32 %v3993_v59, %v1107_v46  ;;  %v1109_v56 = vpop.f32.mrb[103].mxu0  ;;  %v1497_v57 = vadd.f32 %v1496_v49, %v4140_v23 }
 0x1e1   :  { %v1630_v16 = vadd.f32 %v1629_v62, %v1567_v55  ;;  %v1568_v0 = vmul.f32 %v4146_v26, %v4146_v26  ;;  %v1498_v27 = vadd.f32 %v1497_v57, %v4146_v26 }
 0x1e3   :  { %v1631_v40 = vadd.f32 %v1630_v16, %v1568_v0 }
 0x1e4   :  { %v1112_v39 = vpop.f32.mrb[104].mxu0 }
 0x1e5   :  { %v4153_v4 = vadd.f32 %v4013_v17, %v1112_v39  ;;  %v1114_v12 = vpop.f32.mrb[105].mxu0  ;;  %v1571_v17 = vmul.f32 %v4011_v51, %v4011_v51 }
 0x1e6   :  { %v1115_v53 = vpop.f32.mrb[106].mxu0  ;;  %v1573_v12 = vmul.f32 %v4038_v18, %v4038_v18 }
 0x1e7   :  { %v1499_v59 = vadd.f32 %v1498_v27, %v4153_v4  ;;  %v1569_v58 = vmul.f32 %v4153_v4, %v4153_v4  ;;  %v4159_v28 = vadd.f32 %v4020_v63, %v1115_v53  ;;  %v1117_v34 = vpop.f32.mrb[107].mxu0  ;;  %v1572_v63 = vmul.f32 %v4023_v43, %v4023_v43 }
 0x1e9   :  { %v1632_v46 = vadd.f32 %v1631_v40, %v1569_v58  ;;  %v1500_v49 = vadd.f32 %v1499_v59, %v4159_v28  ;;  %v1570_v55 = vmul.f32 %v4159_v28, %v4159_v28  ;;  %v1574_v58 = vmul.f32 %v4050_v19, %v4050_v19 }
 0x1eb   :  { %v1501_v56 = vadd.f32 %v1500_v49, %v4011_v51  ;;  %v1633_v62 = vadd.f32 %v1632_v46, %v1570_v55  ;;  %v1575_v55 = vmul.f32 %v4035_v60, %v4035_v60 }
 0x1ed   :  { %v1502_v57 = vadd.f32 %v1501_v56, %v4023_v43  ;;  %v1634_v16 = vadd.f32 %v1633_v62, %v1571_v17 }
 0x1ef   :  { %v1503_v0 = vadd.f32 %v1502_v57, %v4038_v18  ;;  %v1635_v27 = vadd.f32 %v1634_v16, %v1572_v63  ;;  %v1576_v57 = vmul.f32 %v4047_v11, %v4047_v11 }
 0x1f1   :  { %v1504_v39 = vadd.f32 %v1503_v0, %v4050_v19  ;;  %v1636_v59 = vadd.f32 %v1635_v27, %v1573_v12 }
 0x1f3   :  { %v1505_v53 = vadd.f32 %v1504_v39, %v4035_v60  ;;  %v1637_v49 = vadd.f32 %v1636_v59, %v1574_v58  ;;  %v1577_v39 = vmul.f32 %v4065_v20, %v4065_v20 }
 0x1f5   :  { %v1506_v40 = vadd.f32 %v1505_v53, %v4047_v11  ;;  %v1638_v56 = vadd.f32 %v1637_v49, %v1575_v55  ;;  %v4983_v49 = vmov 0.0   ;;  %v4984_v55 = vmov 0.0|0.0  }
 0x1f7   :  { %v1507_v34 = vadd.f32 %v1506_v40, %v4065_v20  ;;  %v1639_v63 = vadd.f32 %v1638_v56, %v1576_v57  ;;  %v1578_v40 = vmul.f32 %v4075_v30, %v4075_v30  ;;  %v1580_v56 = vmul.f32 %v4072_v44, %v4072_v44 }
 0x1f9   :  { %v1508_v46 = vadd.f32 %v1507_v34, %v4075_v30  ;;  %v1640_v53 = vadd.f32 %v1639_v63, %v1577_v39 }
 0x1fb   :  { %v1509_v17 = vadd.f32 %v1508_v46, %v4062_v7  ;;  %v1641_v34 = vadd.f32 %v1640_v53, %v1578_v40  ;;  %v1579_v46 = vmul.f32 %v4062_v7, %v4062_v7 }
 0x1fd   :  { %v1510_v62 = vadd.f32 %v1509_v17, %v4072_v44  ;;  %v1642_v17 = vadd.f32 %v1641_v34, %v1579_v46 }
 0x1ff   :  { %v1511_v16 = vrot.slane %v1510_v62, 4 }
 0x201   :  { %v1512_v0 = vadd.f32 %v1511_v16, %v1510_v62  ;;  %v1643_v62 = vadd.f32 %v1642_v17, %v1580_v56 }
 0x203   :  { %v1513_v27 = vrot.slane %v1512_v0, 2  ;;  %v1644_v57 = vrot.slane %v1643_v62, 4 }
 0x205   :  { %v1514_v12 = vadd.f32 %v1513_v27, %v1512_v0 }
 0x207   :  { %v1515_v59 = vrot.slane %v1514_v12, 1 }
 0x209   :  { %v1516_v58 = vadd.f32 %v1515_v59, %v1514_v12 }
 0x20b   :  { %2980 = vmatmul.mubr.f32.vlgmr.msra.gmra.mrb[84].mxu1 %v1516_v58  ;;  %v1819_v58 = vlaneseq }
 0x20c   :  { %3043 = vmatpush3.bf16.msra.mxu1 %v3696_v54  ;;  %3014 = vmatprep.mubr.msk.f32.mxu1 %vm3251_vm1, %v4983_v49  ;;  %v1645_v54 = vadd.f32 %v1644_v57, %v1643_v62 }
 0x20d   :  { %3044 = vmatprep.subr.bf16.mxu1 %v4984_v55 }
 0x20e   :  { %v1646_v16 = vrot.slane %v1645_v54, 2 }
 0x210   :  { %3046 = vmatpush3.bf16.msra.mxu1 %v3712_v3  ;;  %v1647_v3 = vadd.f32 %v1646_v16, %v1645_v54 }
 0x211   :  { %3047 = vmatprep.subr.bf16.mxu1 %v4984_v55 }
 0x214   :  { %3049 = vmatpush3.bf16.msra.mxu1 %v3732_v22  ;;  %v1648_v22 = vrot.slane %v1647_v3, 1 }
 0x215   :  { %3050 = vmatprep.subr.bf16.mxu1 %v4984_v55 }
 0x218   :  { %3052 = vmatpush3.bf16.msra.mxu1 %v3750_v41  ;;  %v1649_v41 = vadd.f32 %v1648_v22, %v1647_v3 }
 0x219   :  { %3053 = vmatprep.subr.bf16.mxu1 %v4984_v55 }
 0x21c   :  { %3055 = vmatpush3.bf16.msra.mxu1 %v3795_v36 }
 0x21d   :  { %3056 = vmatprep.subr.bf16.mxu1 %v4984_v55 }
 0x220   :  { %3058 = vmatpush3.bf16.msra.mxu1 %v3834_v35 }
 0x221   :  { %3059 = vmatprep.subr.bf16.mxu1 %v4984_v55 }
 0x224   :  { %3061 = vmatpush3.bf16.msra.mxu1 %v3894_v6  ;;  %v4211_v6 = vshrl.u32 %v1819_v58, 7  ;;  %v4993_v58 = vld [vmem:[#allocation9_spill] sm:$0xff] }
 0x225   :  { %3062 = vmatprep.subr.bf16.mxu1 %v4984_v55  ;;  %v4220_v55 = vld [vmem:[%s4920_s4] sm:$0x1] }
 0x226   :  { %v4951_v34 = vsub.s32 0, %v4211_v6 }
 0x228   :  { %3064 = vmatpush3.bf16.msra.mxu1 %v3905_v31  ;;  %v1811_v31 = vld [vmem:[%s4919_s3] sm:$0x1] }
 0x22b   :  { %3015 = vmatmul.mubr.f32.vlgmr.msra.gmra.mrb[86].mxu1 %v1649_v41  ;;  %v4985_v41 = vld [vmem:[#allocation2_spill] sm:$0xff] }
 0x2de   :  { %v1732_v63 = vpop.f32.mrb[84].mxu1 }
 0x2df   :  { %v2981_v0 = vpop.f32.mrb[85].mxu1  ;;  %v1806_v36 = vmul.f32 0.001953125, %v1732_v63  ;;  %v4986_v63 = vld [vmem:[#allocation4_spill] sm:$0xff] }
 0x2e0   :  { %v4987_v0 = vld [vmem:[#allocation6_spill] sm:$0xff] }
 0x2e1   :  { %v1808_v27 = vmul.f32 %v1806_v36, %v1806_v36 }
 0x2fe   :  { %v1802_v39 = vpop.f32.mrb[86].mxu1 }
 0x2ff   :  { %v1807_v12 = vmul.f32 0.001953125, %v1802_v39  ;;  %v3016_v53 = vpop.f32.mrb[87].mxu1  ;;  %v4989_v39 = vld [vmem:[#allocation5_spill] sm:$0xff] }
 0x300   :  { %v4991_v53 = vld [vmem:[#allocation10_spill] sm:$0xff] }
 0x301   :  { %v1809_v35 = vsub.f32 %v1807_v12, %v1808_v27  ;;  %v4990_v27 = vld [vmem:[#allocation8_spill] sm:$0xff] }
 0x303   :  { %v1810_v40 = vmax.f32 %v1809_v35, 0.0 }
 0x305   :  { %v1812_v59 = vadd.f32 1e-05, %v1810_v40  ;;  %v4992_v40 = vld [vmem:[#allocation7_spill] sm:$0xff] }
 0x307   :  { %3247 = vrsqrt.f32 %v1812_v59 }
 0x311   :  { %v3248_v46 = vpop.eup %3247 }
 0x312   :  { %v1814_v49 = vmul.f32 %v3248_v46, %v1811_v31  ;;  %v4994_v46 = vld [vmem:[#allocation12_spill] sm:$0xff] }
 0x314   :  { %v4222_v17 = vmul.f32 %v1814_v49, %v1806_v36  ;;  %v4226_v56 = vrot.slane %v1814_v49, %v4951_v34  ;;  %v4988_v36 = vld [vmem:[#allocation3_spill] sm:$0xff] }
 0x315   :  { %v5007_v34 = vld [vmem:[#allocation19_spill] sm:$0xff] }
 0x316   :  { %v1817_v62 = vsub.f32 %v4220_v55, %v4222_v17  ;;  %v4232_v57 = vmul.f32 %v4226_v56, %v3754_v45  ;;  %v4236_v54 = vmul.f32 %v4226_v56, %v3760_v52  ;;  %v4240_v16 = vmul.f32 %v4226_v56, %v3752_v42  ;;  %v4995_v55 = vld [vmem:[#allocation14_spill] sm:$0xff] }
 0x317   :  { %v4244_v3 = vmul.f32 %v4226_v56, %v3757_v48  ;;  %v4248_v22 = vmul.f32 %v4226_v56, %v3776_v9  ;;  %v4252_v45 = vmul.f32 %v4226_v56, %v3784_v24  ;;  %v4256_v52 = vmul.f32 %v4226_v56, %v3771_v1 }
 0x318   :  { %v4260_v42 = vmul.f32 %v4226_v56, %v4985_v41  ;;  %v4264_v48 = vmul.f32 %v4226_v56, %v4986_v63  ;;  %v4268_v9 = vmul.f32 %v4226_v56, %v4987_v0  ;;  %v4272_v24 = vmul.f32 %v4226_v56, %v4988_v36  ;;  %v4996_v41 = vld [vmem:[#allocation11_spill] sm:$0xff]  ;;  %v4997_v0 = vld [vmem:[#allocation13_spill] sm:$0xff] }
 0x319   :  { %v4276_v1 = vmul.f32 %v4226_v56, %v4989_v39  ;;  %v4280_v12 = vmul.f32 %v4226_v56, %v4990_v27  ;;  %v4284_v35 = vmul.f32 %v4226_v56, %v4991_v53  ;;  %v4288_v59 = vmul.f32 %v4226_v56, %v4992_v40  ;;  %v4999_v39 = vld [vmem:[#allocation15_spill] sm:$0xff]  ;;  %v5001_v53 = vld [vmem:[#allocation16_spill] sm:$0xff] }
 0x31a   :  { %v4292_v31 = vmul.f32 %v4226_v56, %v4993_v58  ;;  %v4296_v49 = vmul.f32 %v4226_v56, %v4994_v46  ;;  %v4300_v17 = vmul.f32 %v4226_v56, %v4995_v55  ;;  %v4304_v63 = vmul.f32 %v4226_v56, %v4996_v41  ;;  %v5003_v58 = vld [vmem:[#allocation17_spill] sm:$0xff]  ;;  %v5005_v55 = vld [vmem:[#allocation18_spill] sm:$0xff] }
 0x31b   :  { %v4308_v36 = vmul.f32 %v4226_v56, %v4997_v0  ;;  %v4312_v27 = vmul.f32 %v4226_v56, %v4999_v39  ;;  %v4316_v40 = vmul.f32 %v4226_v56, %v5001_v53  ;;  %v4320_v46 = vmul.f32 %v4226_v56, %v5003_v58 }
 0x31c   :  { %v4324_v41 = vmul.f32 %v4226_v56, %v5005_v55  ;;  %v4328_v0 = vmul.f32 %v4226_v56, %v5007_v34 }
 0x31d   :  { %4998 = vst [vmem:[#allocation2_spill] sm:$0xff] %v4308_v36  ;;  %5000 = vst [vmem:[#allocation4_spill] sm:$0xff] %v4312_v27  ;;  %v5008_v36 = vld [vmem:[#allocation20_spill] sm:$0xff]  ;;  %v5009_v27 = vld [vmem:[#allocation21_spill] sm:$0xff] }
 0x31e   :  { %5002 = vst [vmem:[#allocation6_spill] sm:$0xff] %v4316_v40  ;;  %5004 = vst [vmem:[#allocation3_spill] sm:$0xff] %v4320_v46  ;;  %v4332_v39 = vmul.f32 %v4226_v56, %v5008_v36  ;;  %v4336_v53 = vmul.f32 %v4226_v56, %v5009_v27  ;;  %v5011_v40 = vld [vmem:[#allocation22_spill] sm:$0xff]  ;;  %v5013_v46 = vld [vmem:[#allocation23_spill] sm:$0xff]  ;;  %v4352_v36 = vmul.f32 %v4226_v56, %v3946_v29 }
 0x31f   :  { %5006 = vst [vmem:[#allocation5_spill] sm:$0xff] %v4324_v41  ;;  %v4340_v58 = vmul.f32 %v4226_v56, %v5011_v40  ;;  %v4344_v55 = vmul.f32 %v4226_v56, %v5013_v46  ;;  %v5014_v41 = vld [vmem:[#allocation24_spill] sm:$0xff]  ;;  %v4356_v27 = vmul.f32 %v4226_v56, %v3955_v25  ;;  %v4376_v25 = vmul.f32 %v4226_v56, %v4008_v61 }
 0x320   :  { %5010 = vst [vmem:[#allocation8_spill] sm:$0xff] %v4336_v53  ;;  %v4348_v34 = vmul.f32 %v4226_v56, %v5014_v41  ;;  %v5016_v53 = vld [vmem:[#allocation25_spill] sm:$0xff]  ;;  %v4368_v41 = vmul.f32 %v4226_v56, %v3989_v37  ;;  %v4388_v37 = vmul.f32 %v4226_v56, %v4044_v38  ;;  %v4396_v61 = vmul.f32 %v4226_v56, %v4069_v2 }
 0x321   :  { %5012 = vst [vmem:[#allocation10_spill] sm:$0xff] %v4340_v58  ;;  %v4360_v40 = vmul.f32 %v4226_v56, %v5016_v53  ;;  %v5017_v58 = vld [vmem:[#allocation26_spill] sm:$0xff]  ;;  %v4380_v53 = vmul.f32 %v4226_v56, %v4018_v5  ;;  %v4400_v5 = vmul.f32 %v4226_v56, %v4084_v47  ;;  %v4408_v38 = vmul.f32 %v4226_v56, %v4098_v50 }
 0x322   :  { %5015 = vst [vmem:[#allocation7_spill] sm:$0xff] %v4348_v34  ;;  %v4364_v46 = vmul.f32 %v4226_v56, %v5017_v58  ;;  %v5018_v34 = vld [vmem:[#allocation27_spill] sm:$0xff]  ;;  %v4384_v58 = vmul.f32 %v4226_v56, %v4032_v8  ;;  %v4404_v8 = vmul.f32 %v4226_v56, %v4089_v14  ;;  %v4416_v2 = vmul.f32 %v4226_v56, %v4113_v13 }
 0x323   :  { %v4372_v29 = vmul.f32 %v4226_v56, %v5018_v34  ;;  %v4392_v34 = vmul.f32 %v4226_v56, %v4059_v15  ;;  %v4412_v15 = vmul.f32 %v4226_v56, %v4104_v32  ;;  %v4420_v47 = vmul.f32 %v4226_v56, %v4117_v21 }
 0x324   :  { %v4424_v14 = vmul.f32 %v4226_v56, %v4126_v10  ;;  %v4428_v50 = vmul.f32 %v4226_v56, %v4131_v33  ;;  %v4432_v32 = vmul.f32 %v4226_v56, %v4140_v23  ;;  %v4436_v13 = vmul.f32 %v4226_v56, %v4146_v26 }
 0x325   :  { %v4440_v21 = vmul.f32 %v4226_v56, %v4153_v4  ;;  %v4444_v10 = vmul.f32 %v4226_v56, %v4159_v28  ;;  %v4448_v33 = vmul.f32 %v4226_v56, %v4011_v51  ;;  %v4452_v23 = vmul.f32 %v4226_v56, %v4023_v43 }
 0x326   :  { %v4456_v26 = vmul.f32 %v4226_v56, %v4038_v18  ;;  %v4460_v4 = vmul.f32 %v4226_v56, %v4050_v19  ;;  %v4464_v28 = vmul.f32 %v4226_v56, %v4035_v60  ;;  %v4468_v51 = vmul.f32 %v4226_v56, %v4047_v11 }
 0x327   :  { %5019 = vst [vmem:[#allocation9_spill] sm:$0xff] %v4448_v33  ;;  %v5020_v33 = vsub.s32 0, %v4211_v6  ;;  %v4476_v18 = vmul.f32 %v4226_v56, %v4065_v20  ;;  %v4480_v19 = vmul.f32 %v4226_v56, %v4075_v30  ;;  %v4484_v60 = vmul.f32 %v4226_v56, %v4062_v7 }
 0x328   :  { %v4488_v11 = vmul.f32 %v4226_v56, %v4072_v44 }
 0x329   :  { %v4472_v43 = vrot.slane %v1817_v62, %v5020_v33  ;;  %v5031_v33 = vld [vmem:[#allocation6_spill] sm:$0xff] }
 0x32b   :  { %v4492_v6 = vadd.f32 %v4472_v43, %v4232_v57  ;;  %v4496_v20 = vadd.f32 %v4472_v43, %v4236_v54  ;;  %v4500_v30 = vadd.f32 %v4472_v43, %v4240_v16  ;;  %v4504_v7 = vadd.f32 %v4472_v43, %v4244_v3 }
 0x32c   :  { %v4508_v44 = vadd.f32 %v4472_v43, %v4248_v22  ;;  %v4512_v56 = vadd.f32 %v4472_v43, %v4252_v45  ;;  %v4516_v62 = vadd.f32 %v4472_v43, %v4256_v52  ;;  %v4520_v57 = vadd.f32 %v4472_v43, %v4260_v42 }
 0x32d   :  { %5021 = vst [vmem:[#allocation12_spill] sm:$0xff] %v4492_v6  ;;  %5022 = vst [vmem:[#allocation14_spill] sm:$0xff] %v4496_v20  ;;  %v4524_v54 = vadd.f32 %v4472_v43, %v4264_v48  ;;  %v4528_v16 = vadd.f32 %v4472_v43, %v4268_v9  ;;  %v4532_v3 = vadd.f32 %v4472_v43, %v4272_v24 }
 0x32e   :  { %5023 = vst [vmem:[#allocation11_spill] sm:$0xff] %v4500_v30  ;;  %5024 = vst [vmem:[#allocation13_spill] sm:$0xff] %v4504_v7  ;;  %v4536_v22 = vadd.f32 %v4472_v43, %v4276_v1  ;;  %v4540_v45 = vadd.f32 %v4472_v43, %v4280_v12  ;;  %v4544_v52 = vadd.f32 %v4472_v43, %v4284_v35  ;;  %v5028_v12 = vld [vmem:[#allocation2_spill] sm:$0xff] }
 0x32f   :  { %5025 = vst [vmem:[#allocation15_spill] sm:$0xff] %v4508_v44  ;;  %v4548_v42 = vadd.f32 %v4472_v43, %v4288_v59  ;;  %v4552_v48 = vadd.f32 %v4472_v43, %v4292_v31  ;;  %v4556_v9 = vadd.f32 %v4472_v43, %v4296_v49  ;;  %v4560_v24 = vadd.f32 %v4472_v43, %v4300_v17  ;;  %v5029_v59 = vld [vmem:[#allocation4_spill] sm:$0xff] }
 0x330   :  { %v4564_v1 = vadd.f32 %v4472_v43, %v4304_v63  ;;  %v4568_v35 = vadd.f32 %v4472_v43, %v5028_v12  ;;  %v4572_v31 = vadd.f32 %v4472_v43, %v5029_v59  ;;  %v4576_v49 = vadd.f32 %v4472_v43, %v5031_v33 }
 0x331   :  { %5026 = vst [vmem:[#allocation16_spill] sm:$0xff] %v4556_v9  ;;  %5027 = vst [vmem:[#allocation17_spill] sm:$0xff] %v4560_v24  ;;  %v5033_v9 = vld [vmem:[#allocation3_spill] sm:$0xff]  ;;  %v5034_v24 = vld [vmem:[#allocation5_spill] sm:$0xff]  ;;  %v4588_v12 = vadd.f32 %v4472_v43, %v4328_v0  ;;  %v4592_v59 = vadd.f32 %v4472_v43, %v4332_v39  ;;  %v4612_v39 = vadd.f32 %v4472_v43, %v4352_v36 }
 0x332   :  { %5030 = vst [vmem:[#allocation18_spill] sm:$0xff] %v4572_v31  ;;  %5032 = vst [vmem:[#allocation19_spill] sm:$0xff] %v4576_v49  ;;  %v4580_v17 = vadd.f32 %v4472_v43, %v5033_v9  ;;  %v4584_v63 = vadd.f32 %v4472_v43, %v5034_v24  ;;  %v5036_v31 = vld [vmem:[#allocation8_spill] sm:$0xff]  ;;  %v5037_v49 = vld [vmem:[#allocation10_spill] sm:$0xff]  ;;  %v4604_v24 = vadd.f32 %v4472_v43, %v4344_v55 }
 0x333   :  { %v4596_v33 = vadd.f32 %v4472_v43, %v5036_v31  ;;  %v4600_v9 = vadd.f32 %v4472_v43, %v5037_v49  ;;  %v4616_v31 = vadd.f32 %v4472_v43, %v4356_v27  ;;  %v4620_v49 = vadd.f32 %v4472_v43, %v4360_v40 }
 0x334   :  { %5035 = vst [vmem:[#allocation20_spill] sm:$0xff] %v4584_v63  ;;  %v5038_v63 = vld [vmem:[#allocation7_spill] sm:$0xff]  ;;  %v4624_v55 = vadd.f32 %v4472_v43, %v4364_v46  ;;  %v4632_v36 = vadd.f32 %v4472_v43, %v4372_v29  ;;  %v4636_v27 = vadd.f32 %v4472_v43, %v4376_v25  ;;  %v4640_v40 = vadd.f32 %v4472_v43, %v4380_v53 }
 0x335   :  { %v4608_v0 = vadd.f32 %v4472_v43, %v5038_v63  ;;  %v4628_v63 = vadd.f32 %v4472_v43, %v4368_v41  ;;  %v4644_v46 = vadd.f32 %v4472_v43, %v4384_v58  ;;  %v4648_v41 = vadd.f32 %v4472_v43, %v4388_v37 }
 0x336   :  { %v4652_v29 = vadd.f32 %v4472_v43, %v4392_v34  ;;  %v4656_v25 = vadd.f32 %v4472_v43, %v4396_v61  ;;  %v4660_v53 = vadd.f32 %v4472_v43, %v4400_v5  ;;  %v4664_v58 = vadd.f32 %v4472_v43, %v4404_v8 }
 0x337   :  { %v4668_v37 = vadd.f32 %v4472_v43, %v4408_v38  ;;  %v4672_v34 = vadd.f32 %v4472_v43, %v4412_v15  ;;  %v4676_v61 = vadd.f32 %v4472_v43, %v4416_v2  ;;  %v4680_v5 = vadd.f32 %v4472_v43, %v4420_v47 }
 0x338   :  { %v4684_v8 = vadd.f32 %v4472_v43, %v4424_v14  ;;  %v4688_v38 = vadd.f32 %v4472_v43, %v4428_v50  ;;  %v4692_v15 = vadd.f32 %v4472_v43, %v4432_v32  ;;  %v4696_v2 = vadd.f32 %v4472_v43, %v4436_v13  ;;  %v5048_v44 = vld [vmem:[#allocation17_spill] sm:$0xff] }
 0x339   :  { %v4700_v47 = vadd.f32 %v4472_v43, %v4440_v21  ;;  %v4704_v14 = vadd.f32 %v4472_v43, %v4444_v10  ;;  %v4712_v32 = vadd.f32 %v4472_v43, %v4452_v23  ;;  %v4716_v13 = vadd.f32 %v4472_v43, %v4456_v26  ;;  %v5049_v7 = vld [vmem:[#allocation18_spill] sm:$0xff]  ;;  %v5050_v30 = vld [vmem:[#allocation19_spill] sm:$0xff] }
 0x33a   :  { %5039 = vst [vmem:[#allocation21_spill] sm:$0xff] %v4684_v8  ;;  %v5040_v8 = vld [vmem:[#allocation9_spill] sm:$0xff]  ;;  %v4720_v21 = vadd.f32 %v4472_v43, %v4460_v4  ;;  %v4724_v10 = vadd.f32 %v4472_v43, %v4464_v28  ;;  %v4732_v23 = vadd.f32 %v4472_v43, %v4476_v18  ;;  %v4736_v26 = vadd.f32 %v4472_v43, %v4480_v19 }
 0x33b   :  { %v4708_v50 = vadd.f32 %v4472_v43, %v5040_v8  ;;  %v4728_v8 = vadd.f32 %v4472_v43, %v4468_v51  ;;  %v4740_v4 = vadd.f32 %v4472_v43, %v4484_v60  ;;  %v4744_v28 = vadd.f32 %v4472_v43, %v4488_v11  ;;  %v5051_v20 = vld [vmem:[#allocation20_spill] sm:$0xff] }
 0x33c   :  { %5041 = vst [vmem:[#allocation22_spill] sm:$0xff] %v4724_v10  ;;  %5043 = vst [vmem:[#allocation24_spill] sm:$0xff] %v4732_v23  ;;  %v1963_v19 = vmax.f32 %v4512_v56, 0.0  ;;  %v1965_v60 = vmax.f32 %v4520_v57, 0.0  ;;  %v1967_v43 = vmax.f32 %v4528_v16, 0.0  ;;  %v1968_v11 = vmax.f32 %v4532_v3, 0.0 }
 0x33d   :  { %5042 = vst [vmem:[#allocation23_spill] sm:$0xff] %v4728_v8  ;;  %5044 = vst [vmem:[#allocation25_spill] sm:$0xff] %v4736_v26  ;;  %v1964_v26 = vmax.f32 %v4516_v62, 0.0  ;;  %v1969_v51 = vmax.f32 %v4536_v22, 0.0  ;;  %v1970_v8 = vmax.f32 %v4540_v45, 0.0  ;;  %v1971_v18 = vmax.f32 %v4544_v52, 0.0 }
 0x33e   :  { %5045 = vst [vmem:[#allocation26_spill] sm:$0xff] %v4740_v4  ;;  %5046 = vst [vmem:[#allocation27_spill] sm:$0xff] %v4744_v28  ;;  %v1966_v4 = vmax.f32 %v4524_v54, 0.0  ;;  %v1972_v23 = vmax.f32 %v4548_v42, 0.0  ;;  %v1973_v56 = vmax.f32 %v4552_v48, 0.0  ;;  %v5047_v10 = vld [vmem:[#allocation16_spill] sm:$0xff] }
 0x33f   :  { %v1974_v62 = vmax.f32 %v5047_v10, 0.0  ;;  %v1975_v57 = vmax.f32 %v5048_v44, 0.0  ;;  %v1976_v54 = vmax.f32 %v4564_v1, 0.0  ;;  %v1977_v16 = vmax.f32 %v4568_v35, 0.0 }
 0x340   :  { %v1978_v3 = vmax.f32 %v5049_v7, 0.0  ;;  %v1979_v22 = vmax.f32 %v5050_v30, 0.0  ;;  %v1980_v45 = vmax.f32 %v4580_v17, 0.0  ;;  %v1981_v52 = vmax.f32 %v5051_v20, 0.0 }
 0x341   :  { %v1982_v42 = vmax.f32 %v4588_v12, 0.0  ;;  %v1983_v48 = vmax.f32 %v4592_v59, 0.0  ;;  %v1984_v10 = vmax.f32 %v4596_v33, 0.0  ;;  %v1985_v44 = vmax.f32 %v4600_v9, 0.0  ;;  %v5052_v6 = vld [vmem:[#allocation21_spill] sm:$0xff] }
 0x342   :  { %v1986_v1 = vmax.f32 %v4604_v24, 0.0  ;;  %v1987_v35 = vmax.f32 %v4608_v0, 0.0  ;;  %v1988_v7 = vmax.f32 %v4612_v39, 0.0  ;;  %v1989_v30 = vmax.f32 %v4616_v31, 0.0 }
 0x343   :  { %v1990_v17 = vmax.f32 %v4620_v49, 0.0  ;;  %v1991_v20 = vmax.f32 %v4624_v55, 0.0  ;;  %v1992_v12 = vmax.f32 %v4628_v63, 0.0  ;;  %v1993_v59 = vmax.f32 %v4632_v36, 0.0  ;;  %v5053_v28 = vld [vmem:[#allocation22_spill] sm:$0xff] }
 0x344   :  { %v1994_v33 = vmax.f32 %v4636_v27, 0.0  ;;  %v1995_v9 = vmax.f32 %v4640_v40, 0.0  ;;  %v1996_v24 = vmax.f32 %v4644_v46, 0.0  ;;  %v1997_v0 = vmax.f32 %v4648_v41, 0.0 }
 0x345   :  { %v1998_v39 = vmax.f32 %v4652_v29, 0.0  ;;  %v1999_v31 = vmax.f32 %v4656_v25, 0.0  ;;  %v2000_v49 = vmax.f32 %v4660_v53, 0.0  ;;  %v2001_v55 = vmax.f32 %v4664_v58, 0.0 }
 0x346   :  { %v2002_v63 = vmax.f32 %v4668_v37, 0.0  ;;  %v2003_v36 = vmax.f32 %v4672_v34, 0.0  ;;  %v2004_v27 = vmax.f32 %v4676_v61, 0.0  ;;  %v2005_v40 = vmax.f32 %v4680_v5, 0.0 }
 0x347   :  { %v2006_v46 = vmax.f32 %v5052_v6, 0.0  ;;  %v2007_v41 = vmax.f32 %v4688_v38, 0.0  ;;  %v2008_v29 = vmax.f32 %v4692_v15, 0.0  ;;  %v2009_v25 = vmax.f32 %v4696_v2, 0.0  ;;  %v5054_v38 = vld [vmem:[#allocation23_spill] sm:$0xff]  ;;  %v5055_v2 = vld [vmem:[#allocation24_spill] sm:$0xff] }
 0x348   :  { %v2010_v53 = vmax.f32 %v4700_v47, 0.0  ;;  %v2011_v58 = vmax.f32 %v4704_v14, 0.0  ;;  %v2012_v37 = vmax.f32 %v4708_v50, 0.0  ;;  %v2013_v34 = vmax.f32 %v4712_v32, 0.0  ;;  %v5056_v14 = vld [vmem:[#allocation25_spill] sm:$0xff]  ;;  %v5057_v32 = vld [vmem:[#allocation26_spill] sm:$0xff] }
 0x349   :  { %v2014_v61 = vmax.f32 %v4716_v13, 0.0  ;;  %v2015_v5 = vmax.f32 %v4720_v21, 0.0  ;;  %v2016_v6 = vmax.f32 %v5053_v28, 0.0  ;;  %v2017_v15 = vmax.f32 %v5054_v38, 0.0  ;;  %v5058_v21 = vld [vmem:[#allocation27_spill] sm:$0xff]  ;;  %v5059_v38 = vld [vmem:[#allocation12_spill] sm:$0xff] }
 0x34a   :  { %v2018_v47 = vmax.f32 %v5055_v2, 0.0  ;;  %v2019_v50 = vmax.f32 %v5056_v14, 0.0  ;;  %v2020_v13 = vmax.f32 %v5057_v32, 0.0  ;;  %v2021_v28 = vmax.f32 %v5058_v21, 0.0  ;;  %v5061_v14 = vld [vmem:[#allocation14_spill] sm:$0xff] }
 0x34b   :  { %v5060_v2 = vmax.f32 %v5059_v38, 0.0  ;;  %v5062_v32 = vmax.f32 %v5061_v14, 0.0  ;;  %v5063_v38 = vld [vmem:[#allocation11_spill] sm:$0xff] }
 0x34c   :  { %v5064_v14 = vmax.f32 %v5063_v38, 0.0 }
 0x34d   :  { %v2623_v21 = vpack.c.bf16 %v5062_v32, %v5060_v2  ;;  %v5065_v2 = vld [vmem:[#allocation13_spill] sm:$0xff] }
 0x34e   :  { %v5066_v32 = vmax.f32 %v5065_v2, 0.0  ;;  %v5067_v2 = vld [vmem:[#allocation15_spill] sm:$0xff] }
 0x34f   :  { %2624 = vst [vmem:[%s4921_s5] sm:$0xff] %v2623_v21  }
 0x350   :  { %v2628_v38 = vpack.c.bf16 %v5066_v32, %v5064_v14  ;;  %v5068_v14 = vmax.f32 %v5067_v2, 0.0  ;;  %v2638_v2 = vpack.c.bf16 %v1965_v60, %v1964_v26  ;;  %v2653_v26 = vpack.c.bf16 %v1971_v18, %v1970_v8 }
 0x351   :  { %v2658_v60 = vpack.c.bf16 %v1973_v56, %v1972_v23  ;;  %v2673_v8 = vpack.c.bf16 %v1979_v22, %v1978_v3  ;;  %v2678_v23 = vpack.c.bf16 %v1981_v52, %v1980_v45  ;;  %v2683_v18 = vpack.c.bf16 %v1983_v48, %v1982_v42 }
 0x352   :  { %v2633_v32 = vpack.c.bf16 %v1963_v19, %v5068_v14  ;;  %v2643_v14 = vpack.c.bf16 %v1967_v43, %v1966_v4  ;;  %v2648_v19 = vpack.c.bf16 %v1969_v51, %v1968_v11  ;;  %2780 = vst [vmem:[%s4921_s5 + $0x8] sm:$0xff] %v2628_v38   ;;  %2782 = vst [vmem:[%s4921_s5 + $0x18] sm:$0xff] %v2638_v2  }
 0x353   :  { %v2663_v4 = vpack.c.bf16 %v1975_v57, %v1974_v62  ;;  %v2668_v51 = vpack.c.bf16 %v1977_v16, %v1976_v54  ;;  %2785 = vst [vmem:[%s4921_s5 + $0x30] sm:$0xff] %v2653_v26   ;;  %2786 = vst [vmem:[%s4921_s5 + $0x38] sm:$0xff] %v2658_v60   ;;  %v2688_v43 = vpack.c.bf16 %v1985_v44, %v1984_v10 }
 0x354   :  { %2781 = vst [vmem:[%s4921_s5 + $0x10] sm:$0xff] %v2633_v32   ;;  %2783 = vst [vmem:[%s4921_s5 + $0x20] sm:$0xff] %v2643_v14   ;;  %v2693_v11 = vpack.c.bf16 %v1987_v35, %v1986_v1  ;;  %v2698_v56 = vpack.c.bf16 %v1989_v30, %v1988_v7  ;;  %v2703_v62 = vpack.c.bf16 %v1991_v20, %v1990_v17 }
 0x355   :  { %2784 = vst [vmem:[%s4921_s5 + $0x28] sm:$0xff] %v2648_v19   ;;  %2787 = vst [vmem:[%s4921_s5 + $0x40] sm:$0xff] %v2663_v4   ;;  %v2708_v57 = vpack.c.bf16 %v1993_v59, %v1992_v12  ;;  %v2713_v54 = vpack.c.bf16 %v1995_v9, %v1994_v33  ;;  %v2718_v16 = vpack.c.bf16 %v1997_v0, %v1996_v24 }
 0x356   :  { %2788 = vst [vmem:[%s4921_s5 + $0x48] sm:$0xff] %v2668_v51   ;;  %2789 = vst [vmem:[%s4921_s5 + $0x50] sm:$0xff] %v2673_v8   ;;  %v2723_v3 = vpack.c.bf16 %v1999_v31, %v1998_v39  ;;  %v2728_v22 = vpack.c.bf16 %v2001_v55, %v2000_v49  ;;  %v2733_v45 = vpack.c.bf16 %v2003_v36, %v2002_v63 }
 0x357   :  { %2790 = vst [vmem:[%s4921_s5 + $0x58] sm:$0xff] %v2678_v23   ;;  %2791 = vst [vmem:[%s4921_s5 + $0x60] sm:$0xff] %v2683_v18   ;;  %v2738_v52 = vpack.c.bf16 %v2005_v40, %v2004_v27  ;;  %v2743_v42 = vpack.c.bf16 %v2007_v41, %v2006_v46  ;;  %v2748_v48 = vpack.c.bf16 %v2009_v25, %v2008_v29 }
 0x358   :  { %2792 = vst [vmem:[%s4921_s5 + $0x68] sm:$0xff] %v2688_v43   ;;  %2793 = vst [vmem:[%s4921_s5 + $0x70] sm:$0xff] %v2693_v11   ;;  %v2753_v10 = vpack.c.bf16 %v2011_v58, %v2010_v53  ;;  %v2758_v44 = vpack.c.bf16 %v2013_v34, %v2012_v37  ;;  %v2763_v1 = vpack.c.bf16 %v2015_v5, %v2014_v61 }
 0x359   :  { %2794 = vst [vmem:[%s4921_s5 + $0x78] sm:$0xff] %v2698_v56   ;;  %2795 = vst [vmem:[%s4921_s5 + $0x80] sm:$0xff] %v2703_v62   ;;  %v2768_v35 = vpack.c.bf16 %v2017_v15, %v2016_v6  ;;  %v2773_v7 = vpack.c.bf16 %v2019_v50, %v2018_v47  ;;  %v2778_v30 = vpack.c.bf16 %v2021_v28, %v2020_v13 }
 0x35a   :  { %2796 = vst [vmem:[%s4921_s5 + $0x88] sm:$0xff] %v2708_v57   ;;  %2797 = vst [vmem:[%s4921_s5 + $0x90] sm:$0xff] %v2713_v54  }
 0x35b   :  { %2798 = vst [vmem:[%s4921_s5 + $0x98] sm:$0xff] %v2718_v16   ;;  %2799 = vst [vmem:[%s4921_s5 + $0xa0] sm:$0xff] %v2723_v3  }
 0x35c   :  { %2800 = vst [vmem:[%s4921_s5 + $0xa8] sm:$0xff] %v2728_v22   ;;  %2801 = vst [vmem:[%s4921_s5 + $0xb0] sm:$0xff] %v2733_v45  }
 0x35d   :  { %2802 = vst [vmem:[%s4921_s5 + $0xb8] sm:$0xff] %v2738_v52   ;;  %2803 = vst [vmem:[%s4921_s5 + $0xc0] sm:$0xff] %v2743_v42  }
 0x35e   :  { %2804 = vst [vmem:[%s4921_s5 + $0xc8] sm:$0xff] %v2748_v48   ;;  %2805 = vst [vmem:[%s4921_s5 + $0xd0] sm:$0xff] %v2753_v10  }
 0x35f   :  { %2806 = vst [vmem:[%s4921_s5 + $0xd8] sm:$0xff] %v2758_v44   ;;  %2807 = vst [vmem:[%s4921_s5 + $0xe0] sm:$0xff] %v2763_v1  }
 0x360   :  { %2808 = vst [vmem:[%s4921_s5 + $0xe8] sm:$0xff] %v2768_v35   ;;  %2809 = vst [vmem:[%s4921_s5 + $0xf0] sm:$0xff] %v2773_v7  }
 0x361   :  { %2810 = vst [vmem:[%s4921_s5 + $0xf8] sm:$0xff] %v2778_v30  }

// kernel: adaptive_cnn_forward.10
= control target key start
LH: loop header
LB: loop body
LE: loop exit
PB: predicated region body
PF: predicated region fallthrough
CT: control target
= control target key end

     0   :  { %vm317_vm0 = vcmask 261120   ;;  %v1336_v45 = vmov 0.0|0.0   ;;  %vm1337_vm1 = vmmov 0   ;;  %s1735_s1 = inlined_call_operand.vmem [shape: bf16[288,128], index: 1, kind: input, shape index: {}]   ;;  %s1736_s0 = inlined_call_operand.vmem [shape: bf16[128,288], index: 0, kind: input, shape index: {}]   ;;  %s1737_s2 = inlined_call_operand.vmem [shape: f32[128,128], index: 2, kind: input, shape index: {}]   ;;  %s1738_s3 = inlined_call_operand.vmem [shape: f32[1,128], index: 3, kind: input, shape index: {}]   ;;  %s1739_s4 = inlined_call_operand.vmem [shape: f32[1,128], index: 4, kind: input, shape index: {}]   ;;  %s1740_s5 = inlined_call_operand.vmem [shape: bf16[128,128], index: 5, kind: output, shape index: {}]  }
   0x1   :  { %v1284_v0 = vld [vmem:[%s1735_s1 + $0x40] sm:$0xff]   ;;  %v1286_v2 = vld [vmem:[%s1735_s1 + $0x48] sm:$0xff]   ;;  %v1288_v4 = vld [vmem:[%s1735_s1 + $0x50] sm:$0xff]  }
   0x2   :  { %v1285_v1 = vld [vmem:[%s1735_s1] sm:$0xff]   ;;  %1035 = vmatprep.subr.bf16.mxu0 %v1284_v0  ;;  %v1287_v3 = vld [vmem:[%s1735_s1 + $0x8] sm:$0xff]   ;;  %v1289_v5 = vld [vmem:[%s1735_s1 + $0x10] sm:$0xff]  }
   0x3   :  { %1036 = vmatpush3.bf16.msra.mxu0 %v1285_v1  ;;  %v1290_v6 = vld [vmem:[%s1735_s1 + $0x58] sm:$0xff]   ;;  %v1292_v8 = vld [vmem:[%s1735_s1 + $0x60] sm:$0xff]   ;;  %v1294_v11 = vld [vmem:[%s1735_s1 + $0x68] sm:$0xff]  }
   0x4   :  { %1037 = vmatprep.subr.bf16.mxu0 %v1286_v2  ;;  %v1291_v7 = vld [vmem:[%s1735_s1 + $0x18] sm:$0xff]   ;;  %v1298_v9 = vld [vmem:[%s1735_s1 + $0x80] sm:$0xff]   ;;  %v1295_v12 = vld [vmem:[%s1735_s1 + $0x28] sm:$0xff]  }
   0x5   :  { %v1293_v10 = vld [vmem:[%s1735_s1 + $0x20] sm:$0xff]   ;;  %1143 = vmatprep.subr.bf16.mxu1 %v1298_v9  ;;  %v1301_v13 = vld [vmem:[%s1735_s1 + $0x88] sm:$0xff]   ;;  %v1296_v14 = vld [vmem:[%s1735_s1 + $0x70] sm:$0xff]  }
   0x6   :  { %1144 = vmatpush3.bf16.msra.mxu1 %v1298_v9  ;;  %v1304_v15 = vld [vmem:[%s1736_s0 + $0x4] ss:$12 sps:$4 sm:$0xff]   ;;  %v1305_v16 = vld [vmem:[%s1736_s0 + $0x8] ss:$12 sps:$4 sm:$0xff]   ;;  %v1306_v17 = vld [vmem:[%s1736_s0 + $0x20] ss:$12 sps:$4 sm:$0xff]  }
   0x7   :  { %1038 = vmatpush3.bf16.msra.mxu0 %v1287_v3  ;;  %1145 = vmatprep.subr.bf16.mxu1 %v1301_v13  ;;  %v1297_v18 = vld [vmem:[%s1735_s1 + $0x30] sm:$0xff]   ;;  %v1299_v19 = vld [vmem:[%s1735_s1 + $0x78] sm:$0xff]   ;;  %v1302_v24 = vld [vmem:[%s1736_s0] ss:$12 sps:$4 sm:$0xff]   ;;  %v1338_v3 = vmov 0.0  }
   0x8   :  { %1039 = vmatprep.subr.bf16.mxu0 %v1288_v4  ;;  %374 = vmatprep.mubr.bf16.mxu0 %v1304_v15  ;;  %v1313_v20 = vld [vmem:[%s1736_s0 + $0x38] ss:$12 sps:$4 sm:$0xff]   ;;  %v1314_v22 = vld [vmem:[%s1736_s0 + $0x50] ss:$12 sps:$4 sm:$0xff]   ;;  %v1321_v23 = vld [vmem:[%s1736_s0 + $0x68] ss:$12 sps:$4 sm:$0xff]  }
   0x9   :  { %1147 = vmatprep.mubr.msk.bf16.mxu1 %vm317_vm0, %v1305_v16  ;;  %v1300_v21 = vld [vmem:[%s1735_s1 + $0x38] sm:$0xff]   ;;  %v1322_v26 = vld [vmem:[%s1736_s0 + $0x80] ss:$12 sps:$4 sm:$0xff]   ;;  %v1317_v33 = vld [vmem:[%s1736_s0 + $0x48] ss:$12 sps:$4 sm:$0xff]  }
   0xa   :  { %1146 = vmatpush3.bf16.msra.mxu1 %v1301_v13  ;;  %v1307_v25 = vld [vmem:[%s1736_s0 + $0x1c] ss:$12 sps:$4 sm:$0xff]   ;;  %v1329_v27 = vld [vmem:[%s1736_s0 + $0x98] ss:$12 sps:$4 sm:$0xff]   ;;  %v1310_v29 = vld [vmem:[%s1736_s0 + $0x34] ss:$12 sps:$4 sm:$0xff]  }
   0xb   :  { %1040 = vmatpush3.bf16.msra.mxu0 %v1289_v5  ;;  %v1309_v28 = vld [vmem:[%s1736_s0 + $0x18] ss:$12 sps:$4 sm:$0xff]   ;;  %v1330_v30 = vld [vmem:[%s1736_s0 + $0xb0] ss:$12 sps:$4 sm:$0xff]   ;;  %v1320_v35 = vld [vmem:[%s1736_s0 + $0x60] ss:$12 sps:$4 sm:$0xff]   ;;  %1233 = vmatprep.subr.bf16.mxu1 %v1336_v45 }
   0xc   :  { %1041 = vmatprep.subr.bf16.mxu0 %v1290_v6  ;;  %v1312_v31 = vld [vmem:[%s1736_s0 + $0x30] ss:$12 sps:$4 sm:$0xff]   ;;  %v1315_v32 = vld [vmem:[%s1736_s0 + $0x4c] ss:$12 sps:$4 sm:$0xff]   ;;  %v1326_v38 = vld [vmem:[%s1736_s0 + $0x94] ss:$12 sps:$4 sm:$0xff]  }
   0xd   :  { %1148 = vmatmul.mubr.msk.bf16.vlgmr.msra.gmra.mrb[0].mxu1 %vm317_vm0, %v1306_v17  ;;  %v1318_v34 = vld [vmem:[%s1736_s0 + $0x64] ss:$12 sps:$4 sm:$0xff]   ;;  %v1323_v36 = vld [vmem:[%s1736_s0 + $0x7c] ss:$12 sps:$4 sm:$0xff]   ;;  %v1331_v40 = vld [vmem:[%s1736_s0 + $0xac] ss:$12 sps:$4 sm:$0xff]  }
   0xe   :  { %1151 = vmatprep.mubr.msk.bf16.mxu1 %vm317_vm0, %v1313_v20  ;;  %v1325_v37 = vld [vmem:[%s1736_s0 + $0x78] ss:$12 sps:$4 sm:$0xff]   ;;  %v1328_v39 = vld [vmem:[%s1736_s0 + $0x90] ss:$12 sps:$4 sm:$0xff]   ;;  %v1333_v41 = vld [vmem:[%s1736_s0 + $0xa8] ss:$12 sps:$4 sm:$0xff]  }
   0xf   :  { %1042 = vmatpush3.bf16.msra.mxu0 %v1291_v7  ;;  %v594_v42 = vld [vmem:[%s1737_s2] sm:$0xff]  ;;  %v595_v43 = vld [vmem:[%s1737_s2 + $0x8] sm:$0xff]  ;;  %v596_v46 = vld [vmem:[%s1737_s2 + $0x10] sm:$0xff] }
  0x10   :  { %1043 = vmatprep.subr.bf16.mxu0 %v1292_v8  ;;  %v1509_v44 = vpack.c.bf16 %v595_v43, %v594_v42  ;;  %v597_v47 = vld [vmem:[%s1737_s2 + $0x18] sm:$0xff]  ;;  %v598_v49 = vld [vmem:[%s1737_s2 + $0x20] sm:$0xff]  ;;  %v599_v50 = vld [vmem:[%s1737_s2 + $0x28] sm:$0xff] }
  0x11   :  { %v1520_v48 = vpack.c.bf16 %v597_v47, %v596_v46  ;;  %v1530_v51 = vpack.c.bf16 %v599_v50, %v598_v49  ;;  %v600_v52 = vld [vmem:[%s1737_s2 + $0x30] sm:$0xff]  ;;  %v601_v53 = vld [vmem:[%s1737_s2 + $0x38] sm:$0xff]  ;;  %v602_v55 = vld [vmem:[%s1737_s2 + $0x40] sm:$0xff] }
  0x12   :  { %1235 = vmatpush3.bf16.msra.mxu1 %v1509_v44  ;;  %v1540_v54 = vpack.c.bf16 %v601_v53, %v600_v52  ;;  %v603_v56 = vld [vmem:[%s1737_s2 + $0x48] sm:$0xff]  ;;  %v604_v58 = vld [vmem:[%s1737_s2 + $0x50] sm:$0xff]  ;;  %v605_v59 = vld [vmem:[%s1737_s2 + $0x58] sm:$0xff] }
  0x13   :  { %1044 = vmatpush3.bf16.msra.mxu0 %v1293_v10  ;;  %1236 = vmatprep.subr.bf16.mxu1 %v1336_v45  ;;  %v1550_v57 = vpack.c.bf16 %v603_v56, %v602_v55  ;;  %v1560_v60 = vpack.c.bf16 %v605_v59, %v604_v58  ;;  %v606_v61 = vld [vmem:[%s1737_s2 + $0x60] sm:$0xff]  ;;  %v607_v62 = vld [vmem:[%s1737_s2 + $0x68] sm:$0xff]  ;;  %v608_v0 = vld [vmem:[%s1737_s2 + $0x70] sm:$0xff] }
  0x14   :  { %1045 = vmatprep.subr.bf16.mxu0 %v1294_v11  ;;  %v1570_v63 = vpack.c.bf16 %v607_v62, %v606_v61  ;;  %v609_v1 = vld [vmem:[%s1737_s2 + $0x78] sm:$0xff] }
  0x15   :  { %1152 = vmatmul.mubr.msk.bf16.gmra.mrb[4].mxu1 %vm317_vm0, %v1314_v22  ;;  %v1580_v2 = vpack.c.bf16 %v609_v1, %v608_v0 }
  0x16   :  { %1155 = vmatprep.mubr.msk.bf16.mxu1 %vm317_vm0, %v1321_v23  ;;  %1238 = vmatpush3.bf16.msra.mxu1 %v1520_v48 }
  0x17   :  { %1046 = vmatpush3.bf16.msra.mxu0 %v1295_v12  ;;  %1239 = vmatprep.subr.bf16.mxu1 %v1336_v45 }
  0x18   :  { %1047 = vmatprep.subr.bf16.mxu0 %v1296_v14 }
  0x1a   :  { %1241 = vmatpush3.bf16.msra.mxu1 %v1530_v51 }
  0x1b   :  { %1048 = vmatpush3.bf16.msra.mxu0 %v1297_v18  ;;  %1242 = vmatprep.subr.bf16.mxu1 %v1336_v45 }
  0x1c   :  { %1049 = vmatprep.subr.bf16.mxu0 %v1299_v19 }
  0x1d   :  { %1156 = vmatmul.mubr.msk.bf16.gmra.mrb[8].mxu1 %vm317_vm0, %v1322_v26 }
  0x1e   :  { %1159 = vmatprep.mubr.msk.bf16.mxu1 %vm317_vm0, %v1329_v27  ;;  %1244 = vmatpush3.bf16.msra.mxu1 %v1540_v54 }
  0x1f   :  { %1050 = vmatpush3.bf16.msra.mxu0 %v1300_v21  ;;  %1245 = vmatprep.subr.bf16.mxu1 %v1336_v45 }
  0x22   :  { %375 = vmatmul.mubr.bf16.vlgmr.msra.gmra.mrb[0].mxu0 %v1302_v24  ;;  %1247 = vmatpush3.bf16.msra.mxu1 %v1550_v57 }
  0x23   :  { %382 = vmatprep.mubr.bf16.mxu0 %v1307_v25  ;;  %1248 = vmatprep.subr.bf16.mxu1 %v1336_v45 }
  0x25   :  { %1160 = vmatmul.mubr.msk.bf16.gmra.mrb[12].mxu1 %vm317_vm0, %v1330_v30 }
  0x26   :  { %1250 = vmatpush3.bf16.msra.mxu1 %v1560_v60  ;;  %1195 = vmatprep.mubr.msk.f32.mxu1 %vm1337_vm1, %v1338_v3 }
  0x27   :  { %1251 = vmatprep.subr.bf16.mxu1 %v1336_v45 }
  0x2a   :  { %383 = vmatmul.mubr.bf16.gmra.mrb[4].mxu0 %v1309_v28  ;;  %1253 = vmatpush3.bf16.msra.mxu1 %v1570_v63 }
  0x2b   :  { %390 = vmatprep.mubr.bf16.mxu0 %v1310_v29  ;;  %1254 = vmatprep.subr.bf16.mxu1 %v1336_v45 }
  0x2e   :  { %1256 = vmatpush3.bf16.msra.mxu1 %v1580_v2 }
  0x2f   :  { %1257 = vmatprep.subr.bf16.mxu1 %v1336_v45 }
  0x32   :  { %391 = vmatmul.mubr.bf16.gmra.mrb[8].mxu0 %v1312_v31 }
  0x33   :  { %398 = vmatprep.mubr.bf16.mxu0 %v1315_v32 }
  0x3a   :  { %399 = vmatmul.mubr.bf16.gmra.mrb[12].mxu0 %v1317_v33 }
  0x3b   :  { %406 = vmatprep.mubr.bf16.mxu0 %v1318_v34 }
  0x42   :  { %407 = vmatmul.mubr.bf16.gmra.mrb[16].mxu0 %v1320_v35 }
  0x43   :  { %414 = vmatprep.mubr.bf16.mxu0 %v1323_v36 }
  0x4a   :  { %415 = vmatmul.mubr.bf16.gmra.mrb[20].mxu0 %v1325_v37 }
  0x4b   :  { %422 = vmatprep.mubr.bf16.mxu0 %v1326_v38 }
  0x52   :  { %423 = vmatmul.mubr.bf16.gmra.mrb[24].mxu0 %v1328_v39 }
  0x53   :  { %430 = vmatprep.mubr.bf16.mxu0 %v1331_v40 }
  0x5a   :  { %431 = vmatmul.mubr.bf16.gmra.mrb[28].mxu0 %v1333_v41 }
  0xe0   :  { %v1149_v4 = vpop.f32.mrb[0].mxu1 }
  0xe1   :  { %v473_v5 = vpop.f32.mrb[1].mxu1 }
  0xe2   :  { %v1150_v6 = vpop.f32.mrb[2].mxu1 }
  0xe3   :  { %v476_v7 = vpop.f32.mrb[3].mxu1 }
  0xe8   :  { %v1153_v8 = vpop.f32.mrb[4].mxu1 }
  0xe9   :  { %v489_v9 = vpop.f32.mrb[5].mxu1 }
  0xea   :  { %v1154_v11 = vpop.f32.mrb[6].mxu1 }
  0xeb   :  { %v492_v13 = vpop.f32.mrb[7].mxu1 }
  0xf0   :  { %v1157_v20 = vpop.f32.mrb[8].mxu1 }
  0xf1   :  { %v505_v21 = vpop.f32.mrb[9].mxu1 }
  0xf2   :  { %v1158_v23 = vpop.f32.mrb[10].mxu1 }
  0xf3   :  { %v508_v25 = vpop.f32.mrb[11].mxu1 }
  0xf5   :  { %v1051_v10 = vpop.f32.mrb[0].mxu0 }
  0xf6   :  { %v1052_v12 = vpop.f32.mrb[1].mxu0 }
  0xf7   :  { %v1053_v14 = vadd.f32 %v1052_v12, %v1051_v10  ;;  %v1054_v15 = vpop.f32.mrb[2].mxu0 }
  0xf8   :  { %v1055_v16 = vpop.f32.mrb[3].mxu0  ;;  %v1594_v32 = vpop.f32.mrb[12].mxu1 }
  0xf9   :  { %v1056_v17 = vadd.f32 %v1055_v16, %v1054_v15  ;;  %v1586_v18 = vadd.f32 %v1053_v14, %v473_v5  ;;  %v521_v33 = vpop.f32.mrb[13].mxu1 }
  0xfa   :  { %v1596_v35 = vpop.f32.mrb[14].mxu1 }
  0xfb   :  { %v1588_v19 = vadd.f32 %v1056_v17, %v476_v7  ;;  %v524_v37 = vpop.f32.mrb[15].mxu1 }
  0xfd   :  { %v1057_v22 = vpop.f32.mrb[4].mxu0  ;;  %v536_v46 = vadd.f32 %v1588_v19, %v1586_v18 }
  0xfe   :  { %v1058_v24 = vpop.f32.mrb[5].mxu0 }
  0xff   :  { %v1059_v26 = vadd.f32 %v1058_v24, %v1057_v22  ;;  %v1060_v27 = vpop.f32.mrb[6].mxu0 }
 0x100   :  { %v1061_v28 = vpop.f32.mrb[7].mxu0 }
 0x101   :  { %v1590_v29 = vadd.f32 %v1149_v4, %v1059_v26  ;;  %v1062_v30 = vadd.f32 %v1061_v28, %v1060_v27 }
 0x103   :  { %v1592_v31 = vadd.f32 %v1150_v6, %v1062_v30  ;;  %v537_v50 = vadd.f32 %v536_v46, %v1590_v29  ;;  %v559_v14 = vmul.f32 %v1590_v29, %v1590_v29 }
 0x105   :  { %v1063_v34 = vpop.f32.mrb[8].mxu0  ;;  %v538_v59 = vadd.f32 %v537_v50, %v1592_v31  ;;  %v560_v28 = vmul.f32 %v1592_v31, %v1592_v31 }
 0x106   :  { %v1064_v36 = vpop.f32.mrb[9].mxu0 }
 0x107   :  { %v1065_v38 = vadd.f32 %v1064_v36, %v1063_v34  ;;  %v1066_v39 = vpop.f32.mrb[10].mxu0 }
 0x108   :  { %v1067_v40 = vpop.f32.mrb[11].mxu0 }
 0x109   :  { %v1068_v41 = vadd.f32 %v1067_v40, %v1066_v39  ;;  %v1598_v42 = vadd.f32 %v1065_v38, %v489_v9 }
 0x10b   :  { %v1600_v43 = vadd.f32 %v1068_v41, %v492_v13  ;;  %v539_v62 = vadd.f32 %v538_v59, %v1598_v42  ;;  %v561_v36 = vmul.f32 %v1598_v42, %v1598_v42 }
 0x10d   :  { %v1069_v47 = vpop.f32.mrb[12].mxu0  ;;  %v540_v7 = vadd.f32 %v539_v62, %v1600_v43 }
 0x10e   :  { %v1070_v49 = vpop.f32.mrb[13].mxu0 }
 0x10f   :  { %v1071_v52 = vadd.f32 %v1070_v49, %v1069_v47  ;;  %v1072_v53 = vpop.f32.mrb[14].mxu0  ;;  %v562_v49 = vmul.f32 %v1600_v43, %v1600_v43 }
 0x110   :  { %v1073_v55 = vpop.f32.mrb[15].mxu0 }
 0x111   :  { %v1605_v56 = vadd.f32 %v1153_v8, %v1071_v52  ;;  %v1074_v58 = vadd.f32 %v1073_v55, %v1072_v53  ;;  %v558_v8 = vmul.f32 %v1588_v19, %v1588_v19 }
 0x113   :  { %v1608_v61 = vadd.f32 %v1154_v11, %v1074_v58  ;;  %v541_v12 = vadd.f32 %v540_v7, %v1605_v56  ;;  %v557_v11 = vmul.f32 %v1586_v18, %v1586_v18  ;;  %v563_v55 = vmul.f32 %v1605_v56, %v1605_v56 }
 0x115   :  { %v1075_v0 = vpop.f32.mrb[16].mxu0  ;;  %v573_v16 = vadd.f32 %v558_v8, %v557_v11  ;;  %v542_v22 = vadd.f32 %v541_v12, %v1608_v61 }
 0x116   :  { %v1076_v1 = vpop.f32.mrb[17].mxu0 }
 0x117   :  { %v1077_v4 = vadd.f32 %v1076_v1, %v1075_v0  ;;  %v1078_v5 = vpop.f32.mrb[18].mxu0  ;;  %v574_v26 = vadd.f32 %v573_v16, %v559_v14 }
 0x118   :  { %v1079_v6 = vpop.f32.mrb[19].mxu0 }
 0x119   :  { %v1080_v9 = vadd.f32 %v1079_v6, %v1078_v5  ;;  %v1612_v10 = vadd.f32 %v1077_v4, %v505_v21  ;;  %v575_v39 = vadd.f32 %v574_v26, %v560_v28  ;;  %v564_v4 = vmul.f32 %v1608_v61, %v1608_v61 }
 0x11b   :  { %v1617_v13 = vadd.f32 %v1080_v9, %v508_v25  ;;  %v543_v25 = vadd.f32 %v542_v22, %v1612_v10  ;;  %v576_v47 = vadd.f32 %v575_v39, %v561_v36  ;;  %v565_v9 = vmul.f32 %v1612_v10, %v1612_v10 }
 0x11d   :  { %v1081_v15 = vpop.f32.mrb[20].mxu0  ;;  %v544_v40 = vadd.f32 %v543_v25, %v1617_v13  ;;  %v577_v59 = vadd.f32 %v576_v47, %v562_v49 }
 0x11e   :  { %v1082_v17 = vpop.f32.mrb[21].mxu0 }
 0x11f   :  { %v1083_v21 = vadd.f32 %v1082_v17, %v1081_v15  ;;  %v1084_v24 = vpop.f32.mrb[22].mxu0  ;;  %v578_v1 = vadd.f32 %v577_v59, %v563_v55  ;;  %v566_v17 = vmul.f32 %v1617_v13, %v1617_v13 }
 0x120   :  { %v1085_v27 = vpop.f32.mrb[23].mxu0 }
 0x121   :  { %v1627_v30 = vadd.f32 %v1157_v20, %v1083_v21  ;;  %v1086_v34 = vadd.f32 %v1085_v27, %v1084_v24  ;;  %v579_v11 = vadd.f32 %v578_v1, %v564_v4 }
 0x123   :  { %v1631_v38 = vadd.f32 %v1158_v23, %v1086_v34  ;;  %v545_v50 = vadd.f32 %v544_v40, %v1627_v30  ;;  %v580_v16 = vadd.f32 %v579_v11, %v565_v9  ;;  %v567_v24 = vmul.f32 %v1627_v30, %v1627_v30  ;;  %v759_v11 = vld [vmem:[%s1739_s4] sm:$0x1] }
 0x125   :  { %v1087_v41 = vpop.f32.mrb[24].mxu0  ;;  %v546_v62 = vadd.f32 %v545_v50, %v1631_v38  ;;  %v581_v27 = vadd.f32 %v580_v16, %v566_v17 }
 0x126   :  { %v1088_v46 = vpop.f32.mrb[25].mxu0 }
 0x127   :  { %v1089_v52 = vadd.f32 %v1088_v46, %v1087_v41  ;;  %v1090_v20 = vpop.f32.mrb[26].mxu0  ;;  %v582_v25 = vadd.f32 %v581_v27, %v567_v24 }
 0x128   :  { %v1091_v53 = vpop.f32.mrb[27].mxu0 }
 0x129   :  { %v1092_v58 = vadd.f32 %v1091_v53, %v1090_v20  ;;  %v1639_v23 = vadd.f32 %v1089_v52, %v521_v33 }
 0x12b   :  { %v1642_v0 = vadd.f32 %v1092_v58, %v524_v37  ;;  %v547_v5 = vadd.f32 %v546_v62, %v1639_v23  ;;  %v569_v36 = vmul.f32 %v1639_v23, %v1639_v23 }
 0x12d   :  { %v1093_v6 = vpop.f32.mrb[28].mxu0  ;;  %v548_v14 = vadd.f32 %v547_v5, %v1642_v0  ;;  %v570_v46 = vmul.f32 %v1642_v0, %v1642_v0 }
 0x12e   :  { %v1094_v7 = vpop.f32.mrb[29].mxu0 }
 0x12f   :  { %v1095_v8 = vadd.f32 %v1094_v7, %v1093_v6  ;;  %v1096_v12 = vpop.f32.mrb[30].mxu0 }
 0x130   :  { %v1097_v33 = vpop.f32.mrb[31].mxu0 }
 0x131   :  { %v1651_v37 = vadd.f32 %v1594_v32, %v1095_v8  ;;  %v1098_v15 = vadd.f32 %v1097_v33, %v1096_v12  ;;  %v568_v32 = vmul.f32 %v1631_v38, %v1631_v38  ;;  %v763_v8 = vlaneseq }
 0x133   :  { %v549_v22 = vadd.f32 %v548_v14, %v1651_v37  ;;  %v1657_v21 = vadd.f32 %v1596_v35, %v1098_v15  ;;  %v583_v40 = vadd.f32 %v582_v25, %v568_v32  ;;  %v571_v49 = vmul.f32 %v1651_v37, %v1651_v37 }
 0x135   :  { %v550_v26 = vadd.f32 %v549_v22, %v1657_v21  ;;  %v584_v35 = vadd.f32 %v583_v40, %v569_v36  ;;  %v572_v53 = vmul.f32 %v1657_v21, %v1657_v21 }
 0x137   :  { %v551_v28 = vrot.slane %v550_v26, 4  ;;  %v585_v52 = vadd.f32 %v584_v35, %v570_v46 }
 0x139   :  { %v552_v34 = vadd.f32 %v551_v28, %v550_v26  ;;  %v586_v20 = vadd.f32 %v585_v52, %v571_v49 }
 0x13b   :  { %v553_v39 = vrot.slane %v552_v34, 2  ;;  %v587_v55 = vadd.f32 %v586_v20, %v572_v53 }
 0x13d   :  { %v554_v41 = vadd.f32 %v553_v39, %v552_v34  ;;  %v588_v58 = vrot.slane %v587_v55, 4 }
 0x13f   :  { %v555_v47 = vrot.slane %v554_v41, 1 }
 0x141   :  { %v556_v50 = vadd.f32 %v555_v47, %v554_v41 }
 0x143   :  { %1196 = vmatmul.mubr.f32.vlgmr.msra.gmra.mrb[16].mxu1 %v556_v50 }
 0x144   :  { %1259 = vmatpush3.bf16.msra.mxu1 %v1509_v44  ;;  %1230 = vmatprep.mubr.msk.f32.mxu1 %vm1337_vm1, %v1338_v3  ;;  %v589_v44 = vadd.f32 %v588_v58, %v587_v55 }
 0x145   :  { %1260 = vmatprep.subr.bf16.mxu1 %v1336_v45 }
 0x146   :  { %v590_v3 = vrot.slane %v589_v44, 2 }
 0x148   :  { %1262 = vmatpush3.bf16.msra.mxu1 %v1520_v48  ;;  %v591_v48 = vadd.f32 %v590_v3, %v589_v44 }
 0x149   :  { %1263 = vmatprep.subr.bf16.mxu1 %v1336_v45 }
 0x14c   :  { %1265 = vmatpush3.bf16.msra.mxu1 %v1530_v51  ;;  %v592_v51 = vrot.slane %v591_v48, 1 }
 0x14d   :  { %1266 = vmatprep.subr.bf16.mxu1 %v1336_v45 }
 0x150   :  { %1268 = vmatpush3.bf16.msra.mxu1 %v1540_v54  ;;  %v593_v54 = vadd.f32 %v592_v51, %v591_v48 }
 0x151   :  { %1269 = vmatprep.subr.bf16.mxu1 %v1336_v45 }
 0x154   :  { %1271 = vmatpush3.bf16.msra.mxu1 %v1550_v57 }
 0x155   :  { %1272 = vmatprep.subr.bf16.mxu1 %v1336_v45 }
 0x158   :  { %1274 = vmatpush3.bf16.msra.mxu1 %v1560_v60 }
 0x159   :  { %1275 = vmatprep.subr.bf16.mxu1 %v1336_v45 }
 0x15c   :  { %1277 = vmatpush3.bf16.msra.mxu1 %v1570_v63  ;;  %v764_v63 = vshrl.u32 %v763_v8, 7 }
 0x15d   :  { %1278 = vmatprep.subr.bf16.mxu1 %v1336_v45  ;;  %v755_v45 = vld [vmem:[%s1738_s3] sm:$0x1] }
 0x160   :  { %1280 = vmatpush3.bf16.msra.mxu1 %v1580_v2  ;;  %v765_v2 = vsub.s32 0, %v764_v63 }
 0x163   :  { %1231 = vmatmul.mubr.f32.vlgmr.msra.gmra.mrb[18].mxu1 %v593_v54 }
 0x216   :  { %v676_v59 = vpop.f32.mrb[16].mxu1 }
 0x217   :  { %v1197_v62 = vpop.f32.mrb[17].mxu1  ;;  %v750_v57 = vmul.f32 0.0078125, %v676_v59 }
 0x219   :  { %v752_v4 = vmul.f32 %v750_v57, %v750_v57 }
 0x236   :  { %v746_v1 = vpop.f32.mrb[18].mxu1 }
 0x237   :  { %v751_v5 = vmul.f32 0.0078125, %v746_v1  ;;  %v1232_v6 = vpop.f32.mrb[19].mxu1 }
 0x239   :  { %v753_v60 = vsub.f32 %v751_v5, %v752_v4 }
 0x23b   :  { %v754_v7 = vmax.f32 %v753_v60, 0.0 }
 0x23d   :  { %v756_v9 = vadd.f32 1e-05, %v754_v7 }
 0x23f   :  { %1334 = vrsqrt.f32 %v756_v9 }
 0x249   :  { %v1335_v12 = vpop.eup %1334 }
 0x24a   :  { %v758_v33 = vmul.f32 %v1335_v12, %v755_v45 }
 0x24c   :  { %v760_v14 = vmul.f32 %v758_v33, %v750_v57  ;;  %v766_v15 = vrot.slane %v758_v33, %v765_v2 }
 0x24e   :  { %v761_v16 = vsub.f32 %v759_v11, %v760_v14  ;;  %v768_v17 = vmul.f32 %v766_v15, %v1586_v18  ;;  %v769_v22 = vmul.f32 %v766_v15, %v1588_v19  ;;  %v770_v24 = vmul.f32 %v766_v15, %v1590_v29 }
 0x24f   :  { %v771_v26 = vmul.f32 %v766_v15, %v1592_v31  ;;  %v772_v27 = vmul.f32 %v766_v15, %v1598_v42  ;;  %v773_v28 = vmul.f32 %v766_v15, %v1600_v43  ;;  %v774_v25 = vmul.f32 %v766_v15, %v1605_v56 }
 0x250   :  { %v775_v32 = vmul.f32 %v766_v15, %v1608_v61  ;;  %v776_v34 = vmul.f32 %v766_v15, %v1612_v10  ;;  %v777_v36 = vmul.f32 %v766_v15, %v1617_v13  ;;  %v778_v18 = vmul.f32 %v766_v15, %v1627_v30 }
 0x251   :  { %v779_v19 = vmul.f32 %v766_v15, %v1631_v38  ;;  %v788_v39 = vrot.slane %v761_v16, %v765_v2  ;;  %v780_v29 = vmul.f32 %v766_v15, %v1639_v23  ;;  %v781_v31 = vmul.f32 %v766_v15, %v1642_v0 }
 0x252   :  { %v782_v42 = vmul.f32 %v766_v15, %v1651_v37  ;;  %v783_v43 = vmul.f32 %v766_v15, %v1657_v21 }
 0x253   :  { %v790_v56 = vadd.f32 %v788_v39, %v768_v17  ;;  %v791_v40 = vadd.f32 %v788_v39, %v769_v22  ;;  %v792_v61 = vadd.f32 %v788_v39, %v770_v24  ;;  %v793_v41 = vadd.f32 %v788_v39, %v771_v26 }
 0x254   :  { %v794_v10 = vadd.f32 %v788_v39, %v772_v27  ;;  %v795_v35 = vadd.f32 %v788_v39, %v773_v28  ;;  %v796_v13 = vadd.f32 %v788_v39, %v774_v25  ;;  %v797_v46 = vadd.f32 %v788_v39, %v775_v32 }
 0x255   :  { %v798_v30 = vadd.f32 %v788_v39, %v776_v34  ;;  %v799_v47 = vadd.f32 %v788_v39, %v777_v36  ;;  %v800_v38 = vadd.f32 %v788_v39, %v778_v18  ;;  %v801_v49 = vadd.f32 %v788_v39, %v779_v19 }
 0x256   :  { %v802_v50 = vadd.f32 %v788_v39, %v780_v29  ;;  %v803_v23 = vadd.f32 %v788_v39, %v781_v31  ;;  %v804_v52 = vadd.f32 %v788_v39, %v782_v42  ;;  %v805_v0 = vadd.f32 %v788_v39, %v783_v43 }
 0x257   :  { %v806_v20 = vmax.f32 %v790_v56, 0.0  ;;  %v807_v37 = vmax.f32 %v791_v40, 0.0  ;;  %v808_v53 = vmax.f32 %v792_v61, 0.0  ;;  %v809_v21 = vmax.f32 %v793_v41, 0.0 }
 0x258   :  { %v810_v55 = vmax.f32 %v794_v10, 0.0  ;;  %v811_v58 = vmax.f32 %v795_v35, 0.0  ;;  %v812_v44 = vmax.f32 %v796_v13, 0.0  ;;  %v813_v3 = vmax.f32 %v797_v46, 0.0 }
 0x259   :  { %v814_v48 = vmax.f32 %v798_v30, 0.0  ;;  %v815_v51 = vmax.f32 %v799_v47, 0.0  ;;  %v816_v54 = vmax.f32 %v800_v38, 0.0  ;;  %v817_v59 = vmax.f32 %v801_v49, 0.0 }
 0x25a   :  { %v818_v62 = vmax.f32 %v802_v50, 0.0  ;;  %v819_v57 = vmax.f32 %v803_v23, 0.0  ;;  %v820_v1 = vmax.f32 %v804_v52, 0.0  ;;  %v821_v4 = vmax.f32 %v805_v0, 0.0 }
 0x25b   :  { %v991_v5 = vpack.c.bf16 %v807_v37, %v806_v20  ;;  %v996_v6 = vpack.c.bf16 %v809_v21, %v808_v53  ;;  %v1001_v60 = vpack.c.bf16 %v811_v58, %v810_v55  ;;  %v1006_v7 = vpack.c.bf16 %v813_v3, %v812_v44 }
 0x25c   :  { %v1011_v9 = vpack.c.bf16 %v815_v51, %v814_v48  ;;  %v1016_v8 = vpack.c.bf16 %v817_v59, %v816_v54  ;;  %v1021_v63 = vpack.c.bf16 %v819_v57, %v818_v62  ;;  %v1026_v45 = vpack.c.bf16 %v821_v4, %v820_v1 }
 0x25d   :  { %992 = vst [vmem:[%s1740_s5] sm:$0xff] %v991_v5   ;;  %1028 = vst [vmem:[%s1740_s5 + $0x8] sm:$0xff] %v996_v6  }
 0x25e   :  { %1029 = vst [vmem:[%s1740_s5 + $0x10] sm:$0xff] %v1001_v60   ;;  %1030 = vst [vmem:[%s1740_s5 + $0x18] sm:$0xff] %v1006_v7  }
 0x25f   :  { %1031 = vst [vmem:[%s1740_s5 + $0x20] sm:$0xff] %v1011_v9   ;;  %1032 = vst [vmem:[%s1740_s5 + $0x28] sm:$0xff] %v1016_v8  }
 0x260   :  { %1033 = vst [vmem:[%s1740_s5 + $0x30] sm:$0xff] %v1021_v63   ;;  %1034 = vst [vmem:[%s1740_s5 + $0x38] sm:$0xff] %v1026_v45  }

// kernel: adaptive_cnn_forward.11
= control target key start
LH: loop header
LB: loop body
LE: loop exit
PB: predicated region body
PF: predicated region fallthrough
CT: control target
= control target key end

     0   :  { %vm557_vm0 = vcmask 523264   ;;  %vm1820_vm1 = vmmov 0   ;;  %s2301_s1 = inlined_call_operand.vmem [shape: bf16[576,128], index: 1, kind: input, shape index: {}]   ;;  %s2302_s0 = inlined_call_operand.vmem [shape: bf16[128,576], index: 0, kind: input, shape index: {}]   ;;  %s2303_s2 = inlined_call_operand.vmem [shape: f32[128,128], index: 2, kind: input, shape index: {}]   ;;  %s2304_s3 = inlined_call_operand.vmem [shape: f32[1,128], index: 3, kind: input, shape index: {}]   ;;  %s2305_s4 = inlined_call_operand.vmem [shape: f32[1,128], index: 4, kind: input, shape index: {}]   ;;  %s2306_s5 = inlined_call_operand.vmem [shape: bf16[128,128], index: 5, kind: output, shape index: {}]  }
   0x1   :  { %v1725_v0 = vld [vmem:[%s2301_s1 + $0x40] sm:$0xff]   ;;  %v1729_v4 = vld [vmem:[%s2301_s1 + $0x48] sm:$0xff]   ;;  %v1733_v8 = vld [vmem:[%s2301_s1 + $0x50] sm:$0xff]  }
   0x2   :  { %v1726_v1 = vld [vmem:[%s2301_s1 + $0xc0] sm:$0xff]   ;;  %1406 = vmatprep.subr.bf16.mxu0 %v1725_v0  ;;  %v1730_v5 = vld [vmem:[%s2301_s1 + $0xc8] sm:$0xff]   ;;  %v1734_v9 = vld [vmem:[%s2301_s1 + $0xd0] sm:$0xff]  }
   0x3   :  { %v1727_v2 = vld [vmem:[%s2301_s1] sm:$0xff]   ;;  %1470 = vmatprep.subr.bf16.mxu1 %v1726_v1  ;;  %v1731_v6 = vld [vmem:[%s2301_s1 + $0x8] sm:$0xff]   ;;  %v1735_v10 = vld [vmem:[%s2301_s1 + $0x10] sm:$0xff]  }
   0x4   :  { %v1728_v3 = vld [vmem:[%s2301_s1 + $0x80] sm:$0xff]   ;;  %1407 = vmatpush3.bf16.msra.mxu0 %v1727_v2  ;;  %v1732_v7 = vld [vmem:[%s2301_s1 + $0x88] sm:$0xff]   ;;  %v1736_v11 = vld [vmem:[%s2301_s1 + $0x90] sm:$0xff]  }
   0x5   :  { %1471 = vmatpush3.bf16.msra.mxu1 %v1728_v3  ;;  %1408 = vmatprep.subr.bf16.mxu0 %v1729_v4  ;;  %v1737_v12 = vld [vmem:[%s2301_s1 + $0x58] sm:$0xff]   ;;  %v1741_v16 = vld [vmem:[%s2301_s1 + $0x60] sm:$0xff]   ;;  %v1745_v20 = vld [vmem:[%s2301_s1 + $0x68] sm:$0xff]  }
   0x6   :  { %1472 = vmatprep.subr.bf16.mxu1 %v1730_v5  ;;  %v1738_v13 = vld [vmem:[%s2301_s1 + $0xd8] sm:$0xff]   ;;  %v1742_v17 = vld [vmem:[%s2301_s1 + $0xe0] sm:$0xff]   ;;  %v1746_v21 = vld [vmem:[%s2301_s1 + $0xe8] sm:$0xff]  }
   0x7   :  { %v1739_v14 = vld [vmem:[%s2301_s1 + $0x18] sm:$0xff]   ;;  %v1743_v18 = vld [vmem:[%s2301_s1 + $0x20] sm:$0xff]   ;;  %v1747_v22 = vld [vmem:[%s2301_s1 + $0x28] sm:$0xff]  }
   0x8   :  { %1409 = vmatpush3.bf16.msra.mxu0 %v1731_v6  ;;  %v1740_v15 = vld [vmem:[%s2301_s1 + $0x98] sm:$0xff]   ;;  %v1744_v19 = vld [vmem:[%s2301_s1 + $0xa0] sm:$0xff]   ;;  %v1748_v23 = vld [vmem:[%s2301_s1 + $0xa8] sm:$0xff]  }
   0x9   :  { %1473 = vmatpush3.bf16.msra.mxu1 %v1732_v7  ;;  %1410 = vmatprep.subr.bf16.mxu0 %v1733_v8  ;;  %v1749_v24 = vld [vmem:[%s2301_s1 + $0x70] sm:$0xff]   ;;  %v1753_v28 = vld [vmem:[%s2301_s1 + $0x78] sm:$0xff]   ;;  %v1762_v35 = vld [vmem:[%s2302_s0 + $0xc] ss:$20 sps:$4 sm:$0xff]  }
   0xa   :  { %1474 = vmatprep.subr.bf16.mxu1 %v1734_v9  ;;  %v1750_v25 = vld [vmem:[%s2301_s1 + $0xf0] sm:$0xff]   ;;  %v1754_v29 = vld [vmem:[%s2301_s1 + $0xf8] sm:$0xff]   ;;  %v1763_v36 = vld [vmem:[%s2301_s1 + $0x100] sm:$0xff]   ;;  %711 = vmatprep.mubr.bf16.mxu1 %v1762_v35 }
   0xb   :  { %v1751_v26 = vld [vmem:[%s2301_s1 + $0x30] sm:$0xff]   ;;  %v1755_v30 = vld [vmem:[%s2301_s1 + $0x38] sm:$0xff]   ;;  %v1764_v37 = vld [vmem:[%s2302_s0 + $0x2c] ss:$20 sps:$4 sm:$0xff]  }
   0xc   :  { %1411 = vmatpush3.bf16.msra.mxu0 %v1735_v10  ;;  %v1752_v27 = vld [vmem:[%s2301_s1 + $0xb0] sm:$0xff]   ;;  %v1756_v31 = vld [vmem:[%s2301_s1 + $0xb8] sm:$0xff]   ;;  %v1776_v42 = vld [vmem:[%s2301_s1 + $0x108] sm:$0xff]  }
   0xd   :  { %1475 = vmatpush3.bf16.msra.mxu1 %v1736_v11  ;;  %1412 = vmatprep.subr.bf16.mxu0 %v1737_v12  ;;  %v1757_v32 = vld [vmem:[%s2302_s0] ss:$20 sps:$4 sm:$0xff]   ;;  %v1759_v33 = vld [vmem:[%s2302_s0 + $0x4] ss:$20 sps:$4 sm:$0xff]   ;;  %v1760_v34 = vld [vmem:[%s2302_s0 + $0x8] ss:$20 sps:$4 sm:$0xff]  }
   0xe   :  { %1476 = vmatprep.subr.bf16.mxu1 %v1738_v13  ;;  %614 = vmatprep.mubr.bf16.mxu0 %v1759_v33  ;;  %v1766_v38 = vld [vmem:[%s2302_s0 + $0x34] ss:$20 sps:$4 sm:$0xff]   ;;  %v1769_v40 = vld [vmem:[%s2302_s0 + $0x30] ss:$20 sps:$4 sm:$0xff]   ;;  %v1775_v45 = vld [vmem:[%s2302_s0 + $0x58] ss:$20 sps:$4 sm:$0xff]  }
   0xf   :  { %v1768_v39 = vld [vmem:[%s2302_s0 + $0x28] ss:$20 sps:$4 sm:$0xff]   ;;  %v1774_v44 = vld [vmem:[%s2302_s0 + $0x50] ss:$20 sps:$4 sm:$0xff]   ;;  %v1781_v50 = vld [vmem:[%s2302_s0 + $0x78] ss:$20 sps:$4 sm:$0xff]  }
  0x10   :  { %1413 = vmatpush3.bf16.msra.mxu0 %v1739_v14  ;;  %v1770_v41 = vld [vmem:[%s2302_s0 + $0x54] ss:$20 sps:$4 sm:$0xff]   ;;  %v1772_v43 = vld [vmem:[%s2302_s0 + $0x5c] ss:$20 sps:$4 sm:$0xff]   ;;  %v1779_v48 = vld [vmem:[%s2302_s0 + $0x84] ss:$20 sps:$4 sm:$0xff]  }
  0x11   :  { %1477 = vmatpush3.bf16.msra.mxu1 %v1740_v15  ;;  %1414 = vmatprep.subr.bf16.mxu0 %v1741_v16  ;;  %v1789_v46 = vld [vmem:[%s2301_s1 + $0x110] sm:$0xff]   ;;  %v1802_v49 = vld [vmem:[%s2301_s1 + $0x118] sm:$0xff]   ;;  %v1785_v53 = vld [vmem:[%s2302_s0 + $0xac] ss:$20 sps:$4 sm:$0xff]   ;;  %v1819_v12 = vmov 0.0|0.0  }
  0x12   :  { %1478 = vmatprep.subr.bf16.mxu1 %v1742_v17  ;;  %v1777_v47 = vld [vmem:[%s2302_s0 + $0x7c] ss:$20 sps:$4 sm:$0xff]   ;;  %v1782_v51 = vld [vmem:[%s2302_s0 + $0x80] ss:$20 sps:$4 sm:$0xff]   ;;  %v1783_v52 = vld [vmem:[%s2302_s0 + $0xa4] ss:$20 sps:$4 sm:$0xff]  }
  0x13   :  { %v1787_v54 = vld [vmem:[%s2302_s0 + $0xa0] ss:$20 sps:$4 sm:$0xff]   ;;  %v1788_v55 = vld [vmem:[%s2302_s0 + $0xa8] ss:$20 sps:$4 sm:$0xff]   ;;  %v1795_v59 = vld [vmem:[%s2302_s0 + $0xd0] ss:$20 sps:$4 sm:$0xff]  }
  0x14   :  { %1415 = vmatpush3.bf16.msra.mxu0 %v1743_v18  ;;  %v1790_v56 = vld [vmem:[%s2302_s0 + $0xcc] ss:$20 sps:$4 sm:$0xff]   ;;  %v1792_v57 = vld [vmem:[%s2302_s0 + $0xd4] ss:$20 sps:$4 sm:$0xff]   ;;  %v1798_v61 = vld [vmem:[%s2302_s0 + $0xfc] ss:$20 sps:$4 sm:$0xff]  }
  0x15   :  { %1479 = vmatpush3.bf16.msra.mxu1 %v1744_v19  ;;  %1416 = vmatprep.subr.bf16.mxu0 %v1745_v20  ;;  %v1794_v58 = vld [vmem:[%s2302_s0 + $0xc8] ss:$20 sps:$4 sm:$0xff]   ;;  %v1800_v62 = vld [vmem:[%s2302_s0 + $0xf0] ss:$20 sps:$4 sm:$0xff]   ;;  %v1801_v63 = vld [vmem:[%s2302_s0 + $0xf8] ss:$20 sps:$4 sm:$0xff]  }
  0x16   :  { %1480 = vmatprep.subr.bf16.mxu1 %v1746_v21  ;;  %v1796_v60 = vld [vmem:[%s2302_s0 + $0xf4] ss:$20 sps:$4 sm:$0xff]   ;;  %v1803_v0 = vld [vmem:[%s2302_s0 + $0x11c] ss:$20 sps:$4 sm:$0xff]   ;;  %v1805_v1 = vld [vmem:[%s2302_s0 + $0x124] ss:$20 sps:$4 sm:$0xff]  }
  0x17   :  { %v1807_v2 = vld [vmem:[%s2302_s0 + $0x118] ss:$20 sps:$4 sm:$0xff]   ;;  %v1808_v3 = vld [vmem:[%s2302_s0 + $0x120] ss:$20 sps:$4 sm:$0xff]   ;;  %v1809_v4 = vld [vmem:[%s2302_s0 + $0x10] ss:$20 sps:$4 sm:$0xff]  }
  0x18   :  { %1417 = vmatpush3.bf16.msra.mxu0 %v1747_v22  ;;  %v1810_v5 = vld [vmem:[%s2302_s0 + $0x38] ss:$20 sps:$4 sm:$0xff]   ;;  %v1811_v6 = vld [vmem:[%s2302_s0 + $0x60] ss:$20 sps:$4 sm:$0xff]   ;;  %v1812_v7 = vld [vmem:[%s2302_s0 + $0x88] ss:$20 sps:$4 sm:$0xff]  }
  0x19   :  { %1481 = vmatpush3.bf16.msra.mxu1 %v1748_v23  ;;  %1418 = vmatprep.subr.bf16.mxu0 %v1749_v24  ;;  %v1813_v8 = vld [vmem:[%s2302_s0 + $0xb0] ss:$20 sps:$4 sm:$0xff]   ;;  %v1814_v9 = vld [vmem:[%s2302_s0 + $0xd8] ss:$20 sps:$4 sm:$0xff]   ;;  %v1815_v10 = vld [vmem:[%s2302_s0 + $0x100] ss:$20 sps:$4 sm:$0xff]  }
  0x1a   :  { %1482 = vmatprep.subr.bf16.mxu1 %v1750_v25  ;;  %v1816_v11 = vld [vmem:[%s2302_s0 + $0x128] ss:$20 sps:$4 sm:$0xff]   ;;  %v931_v13 = vld [vmem:[%s2303_s2] sm:$0xff]  ;;  %v933_v16 = vld [vmem:[%s2303_s2 + $0x10] sm:$0xff] }
  0x1b   :  { %v932_v14 = vld [vmem:[%s2303_s2 + $0x8] sm:$0xff]  ;;  %v934_v17 = vld [vmem:[%s2303_s2 + $0x18] sm:$0xff]  ;;  %v935_v19 = vld [vmem:[%s2303_s2 + $0x20] sm:$0xff] }
  0x1c   :  { %1419 = vmatpush3.bf16.msra.mxu0 %v1751_v26  ;;  %v1675_v15 = vpack.c.bf16 %v932_v14, %v931_v13  ;;  %v1678_v18 = vpack.c.bf16 %v934_v17, %v933_v16  ;;  %v936_v20 = vld [vmem:[%s2303_s2 + $0x28] sm:$0xff]  ;;  %v937_v22 = vld [vmem:[%s2303_s2 + $0x30] sm:$0xff]  ;;  %v938_v23 = vld [vmem:[%s2303_s2 + $0x38] sm:$0xff] }
  0x1d   :  { %1483 = vmatpush3.bf16.msra.mxu1 %v1752_v27  ;;  %1420 = vmatprep.subr.bf16.mxu0 %v1753_v28  ;;  %v1681_v21 = vpack.c.bf16 %v936_v20, %v935_v19  ;;  %v1684_v24 = vpack.c.bf16 %v938_v23, %v937_v22  ;;  %v939_v25 = vld [vmem:[%s2303_s2 + $0x40] sm:$0xff]  ;;  %v940_v26 = vld [vmem:[%s2303_s2 + $0x48] sm:$0xff]  ;;  %v941_v28 = vld [vmem:[%s2303_s2 + $0x50] sm:$0xff] }
  0x1e   :  { %1484 = vmatprep.subr.bf16.mxu1 %v1754_v29  ;;  %v1687_v27 = vpack.c.bf16 %v940_v26, %v939_v25  ;;  %v942_v29 = vld [vmem:[%s2303_s2 + $0x58] sm:$0xff] }
  0x1f   :  { %v946_v35 = vld [vmem:[%s2303_s2 + $0x78] sm:$0xff] }
  0x20   :  { %1421 = vmatpush3.bf16.msra.mxu0 %v1755_v30  ;;  %v1690_v30 = vpack.c.bf16 %v942_v29, %v941_v28 }
  0x21   :  { %1485 = vmatpush3.bf16.msra.mxu1 %v1756_v31  ;;  %1580 = vmatprep.subr.bf16.mxu0 %v1763_v36  ;;  %v943_v31 = vld [vmem:[%s2303_s2 + $0x60] sm:$0xff] }
  0x22   :  { %1674 = vmatprep.subr.bf16.mxu1 %v1819_v12 }
  0x23   :  { %615 = vmatmul.mubr.bf16.vlgmr.msra.gmra.mrb[0].mxu0 %v1757_v32  ;;  %v944_v32 = vld [vmem:[%s2303_s2 + $0x68] sm:$0xff] }
  0x24   :  { %712 = vmatmul.mubr.bf16.vlgmr.msra.gmra.mrb[0].mxu1 %v1760_v34  ;;  %1581 = vmatpush3.bf16.msra.mxu0 %v1763_v36  ;;  %v1693_v33 = vpack.c.bf16 %v944_v32, %v943_v31  ;;  %v945_v34 = vld [vmem:[%s2303_s2 + $0x70] sm:$0xff] }
  0x25   :  { %622 = vmatprep.mubr.bf16.mxu0 %v1764_v37  ;;  %719 = vmatprep.mubr.bf16.mxu1 %v1766_v38  ;;  %v1696_v36 = vpack.c.bf16 %v946_v35, %v945_v34  ;;  %v1821_v37 = vmov 0.0  }
  0x26   :  { %1582 = vmatprep.subr.bf16.mxu0 %v1776_v42  ;;  %1676 = vmatpush3.bf16.msra.mxu1 %v1675_v15 }
  0x27   :  { %1677 = vmatprep.subr.bf16.mxu1 %v1819_v12 }
  0x28   :  { %1583 = vmatpush3.bf16.msra.mxu0 %v1776_v42 }
  0x29   :  { %1584 = vmatprep.subr.bf16.mxu0 %v1789_v46 }
  0x2a   :  { %1679 = vmatpush3.bf16.msra.mxu1 %v1678_v18 }
  0x2b   :  { %623 = vmatmul.mubr.bf16.gmra.mrb[4].mxu0 %v1768_v39  ;;  %1680 = vmatprep.subr.bf16.mxu1 %v1819_v12 }
  0x2c   :  { %720 = vmatmul.mubr.bf16.gmra.mrb[4].mxu1 %v1769_v40  ;;  %630 = vmatprep.mubr.bf16.mxu0 %v1770_v41 }
  0x2d   :  { %727 = vmatprep.mubr.bf16.mxu1 %v1772_v43  ;;  %1585 = vmatpush3.bf16.msra.mxu0 %v1789_v46 }
  0x2e   :  { %1586 = vmatprep.subr.bf16.mxu0 %v1802_v49  ;;  %1682 = vmatpush3.bf16.msra.mxu1 %v1681_v21 }
  0x2f   :  { %1683 = vmatprep.subr.bf16.mxu1 %v1819_v12 }
  0x31   :  { %1587 = vmatpush3.bf16.msra.mxu0 %v1802_v49 }
  0x32   :  { %1698 = vmatprep.subr.bf16.mxu0 %v1819_v12  ;;  %1685 = vmatpush3.bf16.msra.mxu1 %v1684_v24 }
  0x33   :  { %631 = vmatmul.mubr.bf16.gmra.mrb[8].mxu0 %v1774_v44  ;;  %1686 = vmatprep.subr.bf16.mxu1 %v1819_v12 }
  0x34   :  { %728 = vmatmul.mubr.bf16.gmra.mrb[8].mxu1 %v1775_v45  ;;  %638 = vmatprep.mubr.bf16.mxu0 %v1777_v47 }
  0x35   :  { %735 = vmatprep.mubr.bf16.mxu1 %v1779_v48 }
  0x36   :  { %1688 = vmatpush3.bf16.msra.mxu1 %v1687_v27 }
  0x37   :  { %1689 = vmatprep.subr.bf16.mxu1 %v1819_v12 }
  0x3a   :  { %1691 = vmatpush3.bf16.msra.mxu1 %v1690_v30 }
  0x3b   :  { %639 = vmatmul.mubr.bf16.gmra.mrb[12].mxu0 %v1781_v50  ;;  %1692 = vmatprep.subr.bf16.mxu1 %v1819_v12 }
  0x3c   :  { %736 = vmatmul.mubr.bf16.gmra.mrb[12].mxu1 %v1782_v51  ;;  %646 = vmatprep.mubr.bf16.mxu0 %v1783_v52 }
  0x3d   :  { %743 = vmatprep.mubr.bf16.mxu1 %v1785_v53 }
  0x3e   :  { %1694 = vmatpush3.bf16.msra.mxu1 %v1693_v33 }
  0x3f   :  { %1695 = vmatprep.subr.bf16.mxu1 %v1819_v12 }
  0x42   :  { %1697 = vmatpush3.bf16.msra.mxu1 %v1696_v36 }
  0x43   :  { %647 = vmatmul.mubr.bf16.gmra.mrb[16].mxu0 %v1787_v54 }
  0x44   :  { %744 = vmatmul.mubr.bf16.gmra.mrb[16].mxu1 %v1788_v55  ;;  %654 = vmatprep.mubr.bf16.mxu0 %v1790_v56 }
  0x45   :  { %751 = vmatprep.mubr.bf16.mxu1 %v1792_v57 }
  0x4b   :  { %655 = vmatmul.mubr.bf16.gmra.mrb[20].mxu0 %v1794_v58 }
  0x4c   :  { %752 = vmatmul.mubr.bf16.gmra.mrb[20].mxu1 %v1795_v59  ;;  %662 = vmatprep.mubr.bf16.mxu0 %v1796_v60 }
  0x4d   :  { %759 = vmatprep.mubr.bf16.mxu1 %v1798_v61 }
  0x53   :  { %663 = vmatmul.mubr.bf16.gmra.mrb[24].mxu0 %v1800_v62 }
  0x54   :  { %760 = vmatmul.mubr.bf16.gmra.mrb[24].mxu1 %v1801_v63  ;;  %670 = vmatprep.mubr.bf16.mxu0 %v1803_v0 }
  0x55   :  { %767 = vmatprep.mubr.bf16.mxu1 %v1805_v1 }
  0x5b   :  { %671 = vmatmul.mubr.bf16.gmra.mrb[28].mxu0 %v1807_v2 }
  0x5c   :  { %768 = vmatmul.mubr.bf16.gmra.mrb[28].mxu1 %v1808_v3  ;;  %1588 = vmatprep.mubr.msk.bf16.mxu0 %vm557_vm0, %v1809_v4 }
  0x5d   :  { %1636 = vmatprep.mubr.msk.f32.mxu1 %vm1820_vm1, %v1821_v37 }
  0x63   :  { %1589 = vmatmul.mubr.msk.bf16.vlgmr.msra.gmra.mrb[32].mxu0 %vm557_vm0, %v1810_v5 }
  0x64   :  { %1592 = vmatprep.mubr.msk.bf16.mxu0 %vm557_vm0, %v1811_v6  ;;  %1700 = vmatpush3.bf16.msra.mxu0 %v1675_v15 }
  0x65   :  { %1701 = vmatprep.subr.bf16.mxu0 %v1819_v12 }
  0x68   :  { %1703 = vmatpush3.bf16.msra.mxu0 %v1678_v18 }
  0x69   :  { %1704 = vmatprep.subr.bf16.mxu0 %v1819_v12 }
  0x6b   :  { %1593 = vmatmul.mubr.msk.bf16.gmra.mrb[36].mxu0 %vm557_vm0, %v1812_v7 }
  0x6c   :  { %1596 = vmatprep.mubr.msk.bf16.mxu0 %vm557_vm0, %v1813_v8  ;;  %1706 = vmatpush3.bf16.msra.mxu0 %v1681_v21 }
  0x6d   :  { %1707 = vmatprep.subr.bf16.mxu0 %v1819_v12 }
  0x70   :  { %1709 = vmatpush3.bf16.msra.mxu0 %v1684_v24 }
  0x71   :  { %1710 = vmatprep.subr.bf16.mxu0 %v1819_v12 }
  0x73   :  { %1597 = vmatmul.mubr.msk.bf16.gmra.mrb[40].mxu0 %vm557_vm0, %v1814_v9 }
  0x74   :  { %1600 = vmatprep.mubr.msk.bf16.mxu0 %vm557_vm0, %v1815_v10  ;;  %1712 = vmatpush3.bf16.msra.mxu0 %v1687_v27 }
  0x75   :  { %1713 = vmatprep.subr.bf16.mxu0 %v1819_v12 }
  0x78   :  { %1715 = vmatpush3.bf16.msra.mxu0 %v1690_v30 }
  0x79   :  { %1716 = vmatprep.subr.bf16.mxu0 %v1819_v12 }
  0x7b   :  { %1601 = vmatmul.mubr.msk.bf16.gmra.mrb[44].mxu0 %vm557_vm0, %v1816_v11 }
  0x7c   :  { %1718 = vmatpush3.bf16.msra.mxu0 %v1693_v33  ;;  %1671 = vmatprep.mubr.msk.f32.mxu0 %vm1820_vm1, %v1821_v37 }
  0x7d   :  { %1719 = vmatprep.subr.bf16.mxu0 %v1819_v12 }
  0x80   :  { %1721 = vmatpush3.bf16.msra.mxu0 %v1696_v36 }
  0xf6   :  { %v1422_v38 = vpop.f32.mrb[0].mxu0 }
  0xf7   :  { %v1486_v39 = vpop.f32.mrb[0].mxu1  ;;  %v1423_v40 = vpop.f32.mrb[1].mxu0 }
  0xf8   :  { %v1424_v41 = vadd.f32 %v1423_v40, %v1422_v38  ;;  %v1487_v42 = vpop.f32.mrb[1].mxu1  ;;  %v1425_v43 = vpop.f32.mrb[2].mxu0 }
  0xf9   :  { %v1488_v44 = vadd.f32 %v1487_v42, %v1486_v39  ;;  %v1489_v45 = vpop.f32.mrb[2].mxu1  ;;  %v1426_v46 = vpop.f32.mrb[3].mxu0 }
  0xfa   :  { %v1427_v47 = vadd.f32 %v1426_v46, %v1425_v43  ;;  %v1490_v48 = vpop.f32.mrb[3].mxu1 }
  0xfb   :  { %v1491_v49 = vadd.f32 %v1490_v48, %v1489_v45  ;;  %v2136_v50 = vadd.f32 %v1488_v44, %v1424_v41 }
  0xfd   :  { %v2138_v51 = vadd.f32 %v1491_v49, %v1427_v47 }
  0xfe   :  { %v1428_v52 = vpop.f32.mrb[4].mxu0 }
  0xff   :  { %v1492_v53 = vpop.f32.mrb[4].mxu1  ;;  %v1429_v54 = vpop.f32.mrb[5].mxu0 }
 0x100   :  { %v1430_v55 = vadd.f32 %v1429_v54, %v1428_v52  ;;  %v1493_v56 = vpop.f32.mrb[5].mxu1  ;;  %v1431_v57 = vpop.f32.mrb[6].mxu0 }
 0x101   :  { %v1494_v58 = vadd.f32 %v1493_v56, %v1492_v53  ;;  %v1495_v59 = vpop.f32.mrb[6].mxu1  ;;  %v1432_v60 = vpop.f32.mrb[7].mxu0 }
 0x102   :  { %v1433_v61 = vadd.f32 %v1432_v60, %v1431_v57  ;;  %v1496_v62 = vpop.f32.mrb[7].mxu1 }
 0x103   :  { %v1497_v63 = vadd.f32 %v1496_v62, %v1495_v59  ;;  %v2140_v0 = vadd.f32 %v1494_v58, %v1430_v55 }
 0x105   :  { %v2142_v1 = vadd.f32 %v1497_v63, %v1433_v61 }
 0x106   :  { %v1434_v2 = vpop.f32.mrb[8].mxu0 }
 0x107   :  { %v1498_v3 = vpop.f32.mrb[8].mxu1  ;;  %v1435_v4 = vpop.f32.mrb[9].mxu0 }
 0x108   :  { %v1436_v5 = vadd.f32 %v1435_v4, %v1434_v2  ;;  %v1499_v6 = vpop.f32.mrb[9].mxu1  ;;  %v1437_v7 = vpop.f32.mrb[10].mxu0 }
 0x109   :  { %v1500_v8 = vadd.f32 %v1499_v6, %v1498_v3  ;;  %v1501_v9 = vpop.f32.mrb[10].mxu1  ;;  %v1438_v10 = vpop.f32.mrb[11].mxu0 }
 0x10a   :  { %v1439_v11 = vadd.f32 %v1438_v10, %v1437_v7  ;;  %v1502_v12 = vpop.f32.mrb[11].mxu1 }
 0x10b   :  { %v1503_v13 = vadd.f32 %v1502_v12, %v1501_v9  ;;  %v2144_v14 = vadd.f32 %v1500_v8, %v1436_v5 }
 0x10d   :  { %v2146_v15 = vadd.f32 %v1503_v13, %v1439_v11 }
 0x10e   :  { %v1440_v16 = vpop.f32.mrb[12].mxu0 }
 0x10f   :  { %v1504_v17 = vpop.f32.mrb[12].mxu1  ;;  %v1441_v18 = vpop.f32.mrb[13].mxu0 }
 0x110   :  { %v1442_v19 = vadd.f32 %v1441_v18, %v1440_v16  ;;  %v1505_v20 = vpop.f32.mrb[13].mxu1  ;;  %v1443_v21 = vpop.f32.mrb[14].mxu0 }
 0x111   :  { %v1506_v22 = vadd.f32 %v1505_v20, %v1504_v17  ;;  %v1507_v23 = vpop.f32.mrb[14].mxu1  ;;  %v1444_v24 = vpop.f32.mrb[15].mxu0 }
 0x112   :  { %v1445_v25 = vadd.f32 %v1444_v24, %v1443_v21  ;;  %v1508_v26 = vpop.f32.mrb[15].mxu1 }
 0x113   :  { %v1509_v27 = vadd.f32 %v1508_v26, %v1507_v23  ;;  %v2148_v28 = vadd.f32 %v1506_v22, %v1442_v19 }
 0x115   :  { %v2150_v29 = vadd.f32 %v1509_v27, %v1445_v25 }
 0x116   :  { %v1446_v30 = vpop.f32.mrb[16].mxu0 }
 0x117   :  { %v1510_v31 = vpop.f32.mrb[16].mxu1  ;;  %v1447_v32 = vpop.f32.mrb[17].mxu0 }
 0x118   :  { %v1448_v33 = vadd.f32 %v1447_v32, %v1446_v30  ;;  %v1511_v34 = vpop.f32.mrb[17].mxu1  ;;  %v1449_v35 = vpop.f32.mrb[18].mxu0 }
 0x119   :  { %v1512_v36 = vadd.f32 %v1511_v34, %v1510_v31  ;;  %v1513_v37 = vpop.f32.mrb[18].mxu1  ;;  %v1450_v38 = vpop.f32.mrb[19].mxu0 }
 0x11a   :  { %v1451_v39 = vadd.f32 %v1450_v38, %v1449_v35  ;;  %v1514_v40 = vpop.f32.mrb[19].mxu1 }
 0x11b   :  { %v1515_v41 = vadd.f32 %v1514_v40, %v1513_v37  ;;  %v2152_v42 = vadd.f32 %v1512_v36, %v1448_v33 }
 0x11d   :  { %v2154_v43 = vadd.f32 %v1515_v41, %v1451_v39 }
 0x11e   :  { %v1452_v44 = vpop.f32.mrb[20].mxu0 }
 0x11f   :  { %v1516_v45 = vpop.f32.mrb[20].mxu1  ;;  %v1453_v46 = vpop.f32.mrb[21].mxu0 }
 0x120   :  { %v1454_v47 = vadd.f32 %v1453_v46, %v1452_v44  ;;  %v1517_v48 = vpop.f32.mrb[21].mxu1  ;;  %v1455_v49 = vpop.f32.mrb[22].mxu0 }
 0x121   :  { %v1518_v52 = vadd.f32 %v1517_v48, %v1516_v45  ;;  %v1519_v53 = vpop.f32.mrb[22].mxu1  ;;  %v1456_v54 = vpop.f32.mrb[23].mxu0 }
 0x122   :  { %v1457_v55 = vadd.f32 %v1456_v54, %v1455_v49  ;;  %v1520_v56 = vpop.f32.mrb[23].mxu1 }
 0x123   :  { %v1521_v57 = vadd.f32 %v1520_v56, %v1519_v53  ;;  %v2156_v58 = vadd.f32 %v1518_v52, %v1454_v47 }
 0x125   :  { %v2158_v59 = vadd.f32 %v1521_v57, %v1457_v55 }
 0x126   :  { %v1458_v60 = vpop.f32.mrb[24].mxu0 }
 0x127   :  { %v1522_v61 = vpop.f32.mrb[24].mxu1  ;;  %v1459_v62 = vpop.f32.mrb[25].mxu0 }
 0x128   :  { %v1460_v63 = vadd.f32 %v1459_v62, %v1458_v60  ;;  %v1523_v2 = vpop.f32.mrb[25].mxu1  ;;  %v1461_v3 = vpop.f32.mrb[26].mxu0 }
 0x129   :  { %v1524_v4 = vadd.f32 %v1523_v2, %v1522_v61  ;;  %v1525_v5 = vpop.f32.mrb[26].mxu1  ;;  %v1462_v6 = vpop.f32.mrb[27].mxu0 }
 0x12a   :  { %v1463_v7 = vadd.f32 %v1462_v6, %v1461_v3  ;;  %v1526_v8 = vpop.f32.mrb[27].mxu1 }
 0x12b   :  { %v1527_v9 = vadd.f32 %v1526_v8, %v1525_v5  ;;  %v2160_v10 = vadd.f32 %v1524_v4, %v1460_v63 }
 0x12d   :  { %v2162_v11 = vadd.f32 %v1527_v9, %v1463_v7 }
 0x12e   :  { %v1464_v12 = vpop.f32.mrb[28].mxu0 }
 0x12f   :  { %v1528_v13 = vpop.f32.mrb[28].mxu1  ;;  %v1465_v16 = vpop.f32.mrb[29].mxu0 }
 0x130   :  { %v1466_v17 = vadd.f32 %v1465_v16, %v1464_v12  ;;  %v1529_v18 = vpop.f32.mrb[29].mxu1  ;;  %v1467_v19 = vpop.f32.mrb[30].mxu0 }
 0x131   :  { %v1530_v20 = vadd.f32 %v1529_v18, %v1528_v13  ;;  %v1531_v21 = vpop.f32.mrb[30].mxu1  ;;  %v1468_v22 = vpop.f32.mrb[31].mxu0 }
 0x132   :  { %v1469_v23 = vadd.f32 %v1468_v22, %v1467_v19  ;;  %v1532_v24 = vpop.f32.mrb[31].mxu1 }
 0x133   :  { %v1533_v25 = vadd.f32 %v1532_v24, %v1531_v21  ;;  %v770_v26 = vadd.f32 %v1530_v20, %v1466_v17 }
 0x135   :  { %v2164_v27 = vadd.f32 %v1533_v25, %v1469_v23 }
 0x136   :  { %v1590_v30 = vpop.f32.mrb[32].mxu0 }
 0x137   :  { %v2167_v31 = vadd.f32 %v1590_v30, %v2140_v0  ;;  %v810_v32 = vpop.f32.mrb[33].mxu0 }
 0x138   :  { %v2170_v33 = vadd.f32 %v810_v32, %v2136_v50  ;;  %v1591_v34 = vpop.f32.mrb[34].mxu0 }
 0x139   :  { %v2173_v35 = vadd.f32 %v1591_v34, %v2142_v1  ;;  %v813_v36 = vpop.f32.mrb[35].mxu0  ;;  %v896_v50 = vmul.f32 %v2167_v31, %v2167_v31 }
 0x13a   :  { %v2176_v37 = vadd.f32 %v813_v36, %v2138_v51  ;;  %v894_v38 = vmul.f32 %v2170_v33, %v2170_v33 }
 0x13b   :  { %v897_v45 = vmul.f32 %v2173_v35, %v2173_v35 }
 0x13c   :  { %v873_v39 = vadd.f32 %v2176_v37, %v2170_v33  ;;  %v895_v0 = vmul.f32 %v2176_v37, %v2176_v37 }
 0x13e   :  { %v874_v40 = vadd.f32 %v873_v39, %v2167_v31  ;;  %v910_v1 = vadd.f32 %v895_v0, %v894_v38  ;;  %v1594_v41 = vpop.f32.mrb[36].mxu0 }
 0x13f   :  { %v2188_v44 = vadd.f32 %v1594_v41, %v2148_v28  ;;  %v826_v51 = vpop.f32.mrb[37].mxu0 }
 0x140   :  { %v911_v46 = vadd.f32 %v910_v1, %v896_v50  ;;  %v2193_v47 = vadd.f32 %v826_v51, %v2144_v14  ;;  %v875_v48 = vadd.f32 %v874_v40, %v2173_v35  ;;  %v1595_v49 = vpop.f32.mrb[38].mxu0 }
 0x141   :  { %v2197_v52 = vadd.f32 %v1595_v49, %v2150_v29  ;;  %v829_v53 = vpop.f32.mrb[39].mxu0  ;;  %v900_v29 = vmul.f32 %v2188_v44, %v2188_v44 }
 0x142   :  { %v876_v54 = vadd.f32 %v875_v48, %v2193_v47  ;;  %v898_v28 = vmul.f32 %v2193_v47, %v2193_v47  ;;  %v912_v55 = vadd.f32 %v911_v46, %v897_v45  ;;  %v2203_v56 = vadd.f32 %v829_v53, %v2146_v15 }
 0x143   :  { %v901_v15 = vmul.f32 %v2197_v52, %v2197_v52 }
 0x144   :  { %v913_v57 = vadd.f32 %v912_v55, %v898_v28  ;;  %v877_v14 = vadd.f32 %v876_v54, %v2203_v56  ;;  %v899_v60 = vmul.f32 %v2203_v56, %v2203_v56 }
 0x146   :  { %v878_v61 = vadd.f32 %v877_v14, %v2188_v44  ;;  %v914_v62 = vadd.f32 %v913_v57, %v899_v60  ;;  %v1598_v63 = vpop.f32.mrb[40].mxu0 }
 0x147   :  { %v2212_v2 = vadd.f32 %v1598_v63, %v2156_v58  ;;  %v842_v3 = vpop.f32.mrb[41].mxu0 }
 0x148   :  { %v915_v4 = vadd.f32 %v914_v62, %v900_v29  ;;  %v2217_v5 = vadd.f32 %v842_v3, %v2152_v42  ;;  %v879_v6 = vadd.f32 %v878_v61, %v2197_v52  ;;  %v1599_v7 = vpop.f32.mrb[42].mxu0 }
 0x149   :  { %v2221_v8 = vadd.f32 %v1599_v7, %v2158_v59  ;;  %v845_v9 = vpop.f32.mrb[43].mxu0  ;;  %v904_v59 = vmul.f32 %v2212_v2, %v2212_v2 }
 0x14a   :  { %v880_v12 = vadd.f32 %v879_v6, %v2217_v5  ;;  %v902_v58 = vmul.f32 %v2217_v5, %v2217_v5  ;;  %v916_v13 = vadd.f32 %v915_v4, %v901_v15  ;;  %v2227_v16 = vadd.f32 %v845_v9, %v2154_v43 }
 0x14b   :  { %v905_v43 = vmul.f32 %v2221_v8, %v2221_v8 }
 0x14c   :  { %v917_v17 = vadd.f32 %v916_v13, %v902_v58  ;;  %v881_v42 = vadd.f32 %v880_v12, %v2227_v16  ;;  %v903_v18 = vmul.f32 %v2227_v16, %v2227_v16 }
 0x14e   :  { %v882_v19 = vadd.f32 %v881_v42, %v2212_v2  ;;  %v918_v20 = vadd.f32 %v917_v17, %v903_v18  ;;  %v1602_v21 = vpop.f32.mrb[44].mxu0  ;;  %v1100_v17 = vlaneseq  ;;  %v1092_v18 = vld [vmem:[%s2304_s3] sm:$0x1] }
 0x14f   :  { %v2235_v22 = vadd.f32 %v1602_v21, %v770_v26  ;;  %v858_v23 = vpop.f32.mrb[45].mxu0  ;;  %v1096_v21 = vld [vmem:[%s2305_s4] sm:$0x1] }
 0x150   :  { %v919_v24 = vadd.f32 %v918_v20, %v904_v59  ;;  %v2240_v25 = vadd.f32 %v858_v23, %v2160_v10  ;;  %v883_v30 = vadd.f32 %v882_v19, %v2221_v8  ;;  %v1603_v32 = vpop.f32.mrb[46].mxu0  ;;  %v1101_v42 = vshrl.u32 %v1100_v17, 7 }
 0x151   :  { %v2244_v34 = vadd.f32 %v1603_v32, %v2164_v27  ;;  %v861_v36 = vpop.f32.mrb[47].mxu0  ;;  %v908_v10 = vmul.f32 %v2235_v22, %v2235_v22 }
 0x152   :  { %v884_v38 = vadd.f32 %v883_v30, %v2240_v25  ;;  %v906_v26 = vmul.f32 %v2240_v25, %v2240_v25  ;;  %v920_v39 = vadd.f32 %v919_v24, %v905_v43  ;;  %v862_v0 = vadd.f32 %v861_v36, %v2162_v11 }
 0x153   :  { %v909_v27 = vmul.f32 %v2244_v34, %v2244_v34  ;;  %v1102_v59 = vsub.s32 0, %v1101_v42 }
 0x154   :  { %v921_v50 = vadd.f32 %v920_v39, %v906_v26  ;;  %v885_v40 = vadd.f32 %v884_v38, %v862_v0  ;;  %v907_v1 = vmul.f32 %v862_v0, %v862_v0 }
 0x156   :  { %v886_v41 = vadd.f32 %v885_v40, %v2235_v22  ;;  %v922_v51 = vadd.f32 %v921_v50, %v907_v1 }
 0x158   :  { %v887_v45 = vadd.f32 %v886_v41, %v2244_v34  ;;  %v923_v46 = vadd.f32 %v922_v51, %v908_v10 }
 0x15a   :  { %v888_v48 = vrot.slane %v887_v45, 4  ;;  %v924_v49 = vadd.f32 %v923_v46, %v909_v27 }
 0x15c   :  { %v889_v53 = vadd.f32 %v888_v48, %v887_v45  ;;  %v925_v54 = vrot.slane %v924_v49, 4 }
 0x15e   :  { %v890_v11 = vrot.slane %v889_v53, 2  ;;  %v926_v28 = vadd.f32 %v925_v54, %v924_v49 }
 0x160   :  { %v891_v55 = vadd.f32 %v890_v11, %v889_v53  ;;  %v927_v57 = vrot.slane %v926_v28, 2 }
 0x162   :  { %v892_v14 = vrot.slane %v891_v55, 1  ;;  %v928_v60 = vadd.f32 %v927_v57, %v926_v28 }
 0x164   :  { %v893_v29 = vadd.f32 %v892_v14, %v891_v55  ;;  %v929_v61 = vrot.slane %v928_v60, 1 }
 0x166   :  { %1637 = vmatmul.mubr.f32.vlgmr.msra.gmra.mrb[32].mxu1 %v893_v29  ;;  %v930_v62 = vadd.f32 %v929_v61, %v928_v60 }
 0x168   :  { %1672 = vmatmul.mubr.f32.vlgmr.msra.gmra.mrb[48].mxu0 %v930_v62 }
 0x239   :  { %v1013_v63 = vpop.f32.mrb[32].mxu1 }
 0x23a   :  { %v1087_v3 = vmul.f32 0.0078125, %v1013_v63  ;;  %v1638_v15 = vpop.f32.mrb[33].mxu1 }
 0x23b   :  { %v1083_v4 = vpop.f32.mrb[48].mxu0 }
 0x23c   :  { %v1089_v6 = vmul.f32 %v1087_v3, %v1087_v3  ;;  %v1088_v7 = vmul.f32 0.0078125, %v1083_v4  ;;  %v1673_v9 = vpop.f32.mrb[49].mxu0 }
 0x23e   :  { %v1090_v12 = vsub.f32 %v1088_v7, %v1089_v6 }
 0x240   :  { %v1091_v58 = vmax.f32 %v1090_v12, 0.0 }
 0x242   :  { %v1093_v13 = vadd.f32 1e-05, %v1091_v58 }
 0x244   :  { %1817 = vrsqrt.f32 %v1093_v13 }
 0x24e   :  { %v1818_v19 = vpop.eup %1817 }
 0x24f   :  { %v1095_v20 = vmul.f32 %v1818_v19, %v1092_v18 }
 0x251   :  { %v1097_v23 = vmul.f32 %v1095_v20, %v1087_v3  ;;  %v1103_v43 = vrot.slane %v1095_v20, %v1102_v59 }
 0x253   :  { %v1098_v24 = vsub.f32 %v1096_v21, %v1097_v23  ;;  %v1105_v30 = vmul.f32 %v1103_v43, %v2170_v33  ;;  %v1106_v32 = vmul.f32 %v1103_v43, %v2176_v37  ;;  %v1107_v36 = vmul.f32 %v1103_v43, %v2167_v31 }
 0x254   :  { %v1108_v38 = vmul.f32 %v1103_v43, %v2173_v35  ;;  %v1109_v26 = vmul.f32 %v1103_v43, %v2193_v47  ;;  %v1110_v39 = vmul.f32 %v1103_v43, %v2203_v56  ;;  %v1111_v50 = vmul.f32 %v1103_v43, %v2188_v44 }
 0x255   :  { %v1112_v40 = vmul.f32 %v1103_v43, %v2197_v52  ;;  %v1113_v1 = vmul.f32 %v1103_v43, %v2217_v5  ;;  %v1114_v10 = vmul.f32 %v1103_v43, %v2227_v16  ;;  %v1115_v33 = vmul.f32 %v1103_v43, %v2212_v2 }
 0x256   :  { %v1116_v37 = vmul.f32 %v1103_v43, %v2221_v8  ;;  %v1125_v41 = vrot.slane %v1098_v24, %v1102_v59  ;;  %v1117_v31 = vmul.f32 %v1103_v43, %v2240_v25  ;;  %v1118_v35 = vmul.f32 %v1103_v43, %v862_v0 }
 0x257   :  { %v1119_v47 = vmul.f32 %v1103_v43, %v2235_v22  ;;  %v1120_v56 = vmul.f32 %v1103_v43, %v2244_v34 }
 0x258   :  { %v1127_v51 = vadd.f32 %v1125_v41, %v1105_v30  ;;  %v1128_v44 = vadd.f32 %v1125_v41, %v1106_v32  ;;  %v1129_v27 = vadd.f32 %v1125_v41, %v1107_v36  ;;  %v1130_v52 = vadd.f32 %v1125_v41, %v1108_v38 }
 0x259   :  { %v1131_v45 = vadd.f32 %v1125_v41, %v1109_v26  ;;  %v1132_v5 = vadd.f32 %v1125_v41, %v1110_v39  ;;  %v1133_v46 = vadd.f32 %v1125_v41, %v1111_v50  ;;  %v1134_v16 = vadd.f32 %v1125_v41, %v1112_v40 }
 0x25a   :  { %v1135_v48 = vadd.f32 %v1125_v41, %v1113_v1  ;;  %v1136_v2 = vadd.f32 %v1125_v41, %v1114_v10  ;;  %v1137_v49 = vadd.f32 %v1125_v41, %v1115_v33  ;;  %v1138_v8 = vadd.f32 %v1125_v41, %v1116_v37 }
 0x25b   :  { %v1139_v53 = vadd.f32 %v1125_v41, %v1117_v31  ;;  %v1140_v54 = vadd.f32 %v1125_v41, %v1118_v35  ;;  %v1141_v25 = vadd.f32 %v1125_v41, %v1119_v47  ;;  %v1142_v0 = vadd.f32 %v1125_v41, %v1120_v56 }
 0x25c   :  { %v1143_v11 = vmax.f32 %v1127_v51, 0.0  ;;  %v1144_v22 = vmax.f32 %v1128_v44, 0.0  ;;  %v1145_v28 = vmax.f32 %v1129_v27, 0.0  ;;  %v1146_v34 = vmax.f32 %v1130_v52, 0.0 }
 0x25d   :  { %v1147_v55 = vmax.f32 %v1131_v45, 0.0  ;;  %v1148_v57 = vmax.f32 %v1132_v5, 0.0  ;;  %v1149_v14 = vmax.f32 %v1133_v46, 0.0  ;;  %v1150_v60 = vmax.f32 %v1134_v16, 0.0 }
 0x25e   :  { %v1151_v29 = vmax.f32 %v1135_v48, 0.0  ;;  %v1152_v61 = vmax.f32 %v1136_v2, 0.0  ;;  %v1153_v62 = vmax.f32 %v1137_v49, 0.0  ;;  %v1154_v63 = vmax.f32 %v1138_v8, 0.0 }
 0x25f   :  { %v1155_v3 = vmax.f32 %v1139_v53, 0.0  ;;  %v1156_v15 = vmax.f32 %v1140_v54, 0.0  ;;  %v1157_v4 = vmax.f32 %v1141_v25, 0.0  ;;  %v1158_v6 = vmax.f32 %v1142_v0, 0.0 }
 0x260   :  { %v1362_v7 = vpack.c.bf16 %v1144_v22, %v1143_v11  ;;  %v1367_v9 = vpack.c.bf16 %v1146_v34, %v1145_v28  ;;  %v1372_v12 = vpack.c.bf16 %v1148_v57, %v1147_v55  ;;  %v1377_v58 = vpack.c.bf16 %v1150_v60, %v1149_v14 }
 0x261   :  { %v1382_v13 = vpack.c.bf16 %v1152_v61, %v1151_v29  ;;  %v1387_v17 = vpack.c.bf16 %v1154_v63, %v1153_v62  ;;  %v1392_v42 = vpack.c.bf16 %v1156_v15, %v1155_v3  ;;  %v1397_v18 = vpack.c.bf16 %v1158_v6, %v1157_v4 }
 0x262   :  { %1363 = vst [vmem:[%s2306_s5] sm:$0xff] %v1362_v7   ;;  %1399 = vst [vmem:[%s2306_s5 + $0x8] sm:$0xff] %v1367_v9  }
 0x263   :  { %1400 = vst [vmem:[%s2306_s5 + $0x10] sm:$0xff] %v1372_v12   ;;  %1401 = vst [vmem:[%s2306_s5 + $0x18] sm:$0xff] %v1377_v58  }
 0x264   :  { %1402 = vst [vmem:[%s2306_s5 + $0x20] sm:$0xff] %v1382_v13   ;;  %1403 = vst [vmem:[%s2306_s5 + $0x28] sm:$0xff] %v1387_v17  }
 0x265   :  { %1404 = vst [vmem:[%s2306_s5 + $0x30] sm:$0xff] %v1392_v42   ;;  %1405 = vst [vmem:[%s2306_s5 + $0x38] sm:$0xff] %v1397_v18  }

// kernel: tile.27
= control target key start
LH: loop header
LB: loop body
LE: loop exit
PB: predicated region body
PF: predicated region fallthrough
CT: control target
= control target key end

     0   :  { %s22_s0 = inlined_call_operand.vmem [shape: f32[64], index: 0, kind: input, shape index: {}]   ;;  %s23_s1 = inlined_call_operand.vmem [shape: f32[4,64], index: 1, kind: output, shape index: {}]  }
   0x1   :  { %v4_v0 = vld [vmem:[%s22_s0] ss:$0 sm:$0xff] }
   0x2   :  { %5 = vst [vmem:[%s23_s1] sm:$0xf] %v4_v0 }

// kernel: tile.28
= control target key start
LH: loop header
LB: loop body
LE: loop exit
PB: predicated region body
PF: predicated region fallthrough
CT: control target
= control target key end

     0   :  { %s6_s8 = smov 3  ;;  %vm8_vm0 = vcmask 523264   ;;  %s30_s9 = smov 64   ;;  %vm15_vm1 = vcmask 1048064   ;;  %s50_s0 = inlined_call_operand.vmem [shape: f32[4,64], index: 0, kind: input, shape index: {}]   ;;  %s51_s1 = inlined_call_operand.vmem [shape: f32[1,256], index: 1, kind: output, shape index: {}]  }
   0x1   :  { %v4_v0 = vld [vmem:[%s50_s0] sm:$0xf]  ;;  %s11_s0 = smov 3 }
   0x2   :  { %5 = vst [vmem:[#allocation1] sm:$0xf] %v4_v0 }
   0x9   :  { %v12_v1 = vld [vmem:[#allocation1 + $0x1] ss:$2 sm:%s11_s0]   ;;  %v7_v2 = vld [vmem:[#allocation1] ss:$2 sm:%s6_s8]  }
   0xa   :  { %13 = vrot.lane.b32.xlu0 %v12_v1, %s30_s9  ;;  %9 = vst.msk [vmem:[#allocation0] ss:$8 sm:$0x3] %vm8_vm0, %v7_v2  }
  0x7c   :  { %v14_v3 = vpop.permute.xlu0 %13  }
  0x7d   :  { %16 = vst.msk [vmem:[#allocation0] ss:$8 sm:$0x3] %vm15_vm1, %v14_v3  }
  0x84   :  { %v20_v4 = vld [vmem:[#allocation0] sm:$0x1]  ;;  %v24_v5 = vld [vmem:[#allocation0 + $0x8] sm:$0x1] }
  0x85   :  { %22 = vst [vmem:[%s51_s1] sm:$0x1] %v20_v4  ;;  %28 = vst [vmem:[%s51_s1 + $0x1] sm:$0x1] %v24_v5 }

// kernel: adaptive_cnn_forward.12
= control target key start
LH: loop header
LB: loop body
LE: loop exit
PB: predicated region body
PF: predicated region fallthrough
CT: control target
= control target key end

     0   :  { %s4655_s1 = inlined_call_operand.vmem [shape: bf16[1152,256], index: 1, kind: input, shape index: {}]   ;;  %s4656_s0 = inlined_call_operand.vmem [shape: bf16[128,1152], index: 0, kind: input, shape index: {}]   ;;  %s4657_s2 = inlined_call_operand.vmem [shape: f32[256,256], index: 2, kind: input, shape index: {}]   ;;  %s4658_s3 = inlined_call_operand.vmem [shape: f32[1,256], index: 3, kind: input, shape index: {}]   ;;  %s4659_s4 = inlined_call_operand.vmem [shape: f32[1,256], index: 4, kind: input, shape index: {}]   ;;  %s4660_s5 = inlined_call_operand.vmem [shape: bf16[128,256], index: 5, kind: output, shape index: {}]  }
   0x1   :  { %v3016_v0 = vld [vmem:[%s4655_s1 + $0x4] ss:$8 sps:$4 sm:$0xff]   ;;  %v3020_v2 = vld [vmem:[%s4655_s1] ss:$8 sps:$4 sm:$0xff]   ;;  %v3022_v4 = vld [vmem:[%s4655_s1 + $0x14] ss:$8 sps:$4 sm:$0xff]  }
   0x2   :  { %v3018_v1 = vld [vmem:[%s4655_s1 + $0x204] ss:$8 sps:$4 sm:$0xff]   ;;  %1333 = vmatprep.subr.bf16.mxu1 %v3016_v0  ;;  %v3021_v3 = vld [vmem:[%s4655_s1 + $0x200] ss:$8 sps:$4 sm:$0xff]   ;;  %v3024_v5 = vld [vmem:[%s4655_s1 + $0x214] ss:$8 sps:$4 sm:$0xff]  }
   0x3   :  { %1559 = vmatprep.subr.bf16.mxu0 %v3018_v1  ;;  %1334 = vmatpush1.bf16.msra.mxu1 %v3020_v2  ;;  %v3026_v6 = vld [vmem:[%s4655_s1 + $0x10] ss:$8 sps:$4 sm:$0xff]   ;;  %v3028_v8 = vld [vmem:[%s4655_s1 + $0x24] ss:$8 sps:$4 sm:$0xff]   ;;  %v3032_v10 = vld [vmem:[%s4655_s1 + $0x20] ss:$8 sps:$4 sm:$0xff]  }
   0x4   :  { %1560 = vmatpush1.bf16.msra.mxu0 %v3021_v3  ;;  %1335 = vmatprep.subr.bf16.mxu1 %v3022_v4  ;;  %v3027_v7 = vld [vmem:[%s4655_s1 + $0x210] ss:$8 sps:$4 sm:$0xff]   ;;  %v3030_v9 = vld [vmem:[%s4655_s1 + $0x224] ss:$8 sps:$4 sm:$0xff]   ;;  %v3033_v11 = vld [vmem:[%s4655_s1 + $0x220] ss:$8 sps:$4 sm:$0xff]  }
   0x5   :  { %1561 = vmatprep.subr.bf16.mxu0 %v3024_v5  ;;  %v3034_v12 = vld [vmem:[%s4655_s1 + $0x34] ss:$8 sps:$4 sm:$0xff]   ;;  %v3038_v14 = vld [vmem:[%s4655_s1 + $0x30] ss:$8 sps:$4 sm:$0xff]   ;;  %v3040_v16 = vld [vmem:[%s4655_s1 + $0x44] ss:$8 sps:$4 sm:$0xff]  }
   0x6   :  { %v3036_v13 = vld [vmem:[%s4655_s1 + $0x234] ss:$8 sps:$4 sm:$0xff]   ;;  %v3039_v15 = vld [vmem:[%s4655_s1 + $0x230] ss:$8 sps:$4 sm:$0xff]   ;;  %v3042_v17 = vld [vmem:[%s4655_s1 + $0x244] ss:$8 sps:$4 sm:$0xff]  }
   0x7   :  { %1336 = vmatpush1.bf16.msra.mxu1 %v3026_v6  ;;  %v3044_v18 = vld [vmem:[%s4655_s1 + $0x40] ss:$8 sps:$4 sm:$0xff]   ;;  %v3046_v20 = vld [vmem:[%s4655_s1 + $0x54] ss:$8 sps:$4 sm:$0xff]   ;;  %v3050_v22 = vld [vmem:[%s4655_s1 + $0x50] ss:$8 sps:$4 sm:$0xff]  }
   0x8   :  { %1562 = vmatpush1.bf16.msra.mxu0 %v3027_v7  ;;  %1337 = vmatprep.subr.bf16.mxu1 %v3028_v8  ;;  %v3045_v19 = vld [vmem:[%s4655_s1 + $0x240] ss:$8 sps:$4 sm:$0xff]   ;;  %v3048_v21 = vld [vmem:[%s4655_s1 + $0x254] ss:$8 sps:$4 sm:$0xff]   ;;  %v3051_v23 = vld [vmem:[%s4655_s1 + $0x250] ss:$8 sps:$4 sm:$0xff]  }
   0x9   :  { %1563 = vmatprep.subr.bf16.mxu0 %v3030_v9  ;;  %v3052_v24 = vld [vmem:[%s4655_s1 + $0x64] ss:$8 sps:$4 sm:$0xff]   ;;  %v3056_v26 = vld [vmem:[%s4655_s1 + $0x60] ss:$8 sps:$4 sm:$0xff]   ;;  %v3058_v28 = vld [vmem:[%s4655_s1 + $0x74] ss:$8 sps:$4 sm:$0xff]  }
   0xa   :  { %v3054_v25 = vld [vmem:[%s4655_s1 + $0x264] ss:$8 sps:$4 sm:$0xff]   ;;  %v3057_v27 = vld [vmem:[%s4655_s1 + $0x260] ss:$8 sps:$4 sm:$0xff]   ;;  %v3060_v29 = vld [vmem:[%s4655_s1 + $0x274] ss:$8 sps:$4 sm:$0xff]  }
   0xb   :  { %1338 = vmatpush1.bf16.msra.mxu1 %v3032_v10  ;;  %v3062_v30 = vld [vmem:[%s4655_s1 + $0x70] ss:$8 sps:$4 sm:$0xff]   ;;  %v3064_v32 = vld [vmem:[%s4655_s1 + $0x84] ss:$8 sps:$4 sm:$0xff]   ;;  %v3068_v34 = vld [vmem:[%s4655_s1 + $0x80] ss:$8 sps:$4 sm:$0xff]  }
   0xc   :  { %1564 = vmatpush1.bf16.msra.mxu0 %v3033_v11  ;;  %1339 = vmatprep.subr.bf16.mxu1 %v3034_v12  ;;  %v3063_v31 = vld [vmem:[%s4655_s1 + $0x270] ss:$8 sps:$4 sm:$0xff]   ;;  %v3066_v33 = vld [vmem:[%s4655_s1 + $0x284] ss:$8 sps:$4 sm:$0xff]   ;;  %v3069_v35 = vld [vmem:[%s4655_s1 + $0x280] ss:$8 sps:$4 sm:$0xff]  }
   0xd   :  { %1565 = vmatprep.subr.bf16.mxu0 %v3036_v13  ;;  %v3070_v36 = vld [vmem:[%s4655_s1 + $0x94] ss:$8 sps:$4 sm:$0xff]   ;;  %v3074_v38 = vld [vmem:[%s4655_s1 + $0x90] ss:$8 sps:$4 sm:$0xff]   ;;  %v3076_v40 = vld [vmem:[%s4655_s1 + $0xa4] ss:$8 sps:$4 sm:$0xff]  }
   0xe   :  { %v3072_v37 = vld [vmem:[%s4655_s1 + $0x294] ss:$8 sps:$4 sm:$0xff]   ;;  %v3075_v39 = vld [vmem:[%s4655_s1 + $0x290] ss:$8 sps:$4 sm:$0xff]   ;;  %v3078_v41 = vld [vmem:[%s4655_s1 + $0x2a4] ss:$8 sps:$4 sm:$0xff]  }
   0xf   :  { %1340 = vmatpush1.bf16.msra.mxu1 %v3038_v14  ;;  %v3080_v42 = vld [vmem:[%s4655_s1 + $0xa0] ss:$8 sps:$4 sm:$0xff]   ;;  %v3082_v44 = vld [vmem:[%s4655_s1 + $0xb4] ss:$8 sps:$4 sm:$0xff]   ;;  %v3086_v46 = vld [vmem:[%s4655_s1 + $0xb0] ss:$8 sps:$4 sm:$0xff]  }
  0x10   :  { %1566 = vmatpush1.bf16.msra.mxu0 %v3039_v15  ;;  %1341 = vmatprep.subr.bf16.mxu1 %v3040_v16  ;;  %v3081_v43 = vld [vmem:[%s4655_s1 + $0x2a0] ss:$8 sps:$4 sm:$0xff]   ;;  %v3084_v45 = vld [vmem:[%s4655_s1 + $0x2b4] ss:$8 sps:$4 sm:$0xff]   ;;  %v3087_v47 = vld [vmem:[%s4655_s1 + $0x2b0] ss:$8 sps:$4 sm:$0xff]  }
  0x11   :  { %1567 = vmatprep.subr.bf16.mxu0 %v3042_v17  ;;  %v3088_v48 = vld [vmem:[%s4655_s1 + $0xc4] ss:$8 sps:$4 sm:$0xff]   ;;  %v3117_v51 = vld [vmem:[%s4656_s0 + $0x14] ss:$36 sps:$4 sm:$0xff]   ;;  %v3092_v52 = vld [vmem:[%s4655_s1 + $0xc0] ss:$8 sps:$4 sm:$0xff]  }
  0x12   :  { %v3114_v49 = vld [vmem:[%s4656_s0 + $0x4] ss:$36 sps:$4 sm:$0xff]   ;;  %1591 = vmatprep.mubr.bf16.mxu0 %v3117_v51  ;;  %v3094_v54 = vld [vmem:[%s4655_s1 + $0xd4] ss:$8 sps:$4 sm:$0xff]   ;;  %v3098_v56 = vld [vmem:[%s4655_s1 + $0xd0] ss:$8 sps:$4 sm:$0xff]  }
  0x13   :  { %1342 = vmatpush1.bf16.msra.mxu1 %v3044_v18  ;;  %v3090_v50 = vld [vmem:[%s4655_s1 + $0x2c4] ss:$8 sps:$4 sm:$0xff]   ;;  %1365 = vmatprep.mubr.bf16.mxu1 %v3114_v49  ;;  %v3093_v53 = vld [vmem:[%s4655_s1 + $0x2c0] ss:$8 sps:$4 sm:$0xff]   ;;  %v3096_v55 = vld [vmem:[%s4655_s1 + $0x2d4] ss:$8 sps:$4 sm:$0xff]  }
  0x14   :  { %1568 = vmatpush1.bf16.msra.mxu0 %v3045_v19  ;;  %1343 = vmatprep.subr.bf16.mxu1 %v3046_v20  ;;  %v3099_v57 = vld [vmem:[%s4655_s1 + $0x2d0] ss:$8 sps:$4 sm:$0xff]   ;;  %v3100_v58 = vld [vmem:[%s4655_s1 + $0xe4] ss:$8 sps:$4 sm:$0xff]   ;;  %v3104_v60 = vld [vmem:[%s4655_s1 + $0xe0] ss:$8 sps:$4 sm:$0xff]  }
  0x15   :  { %1569 = vmatprep.subr.bf16.mxu0 %v3048_v21  ;;  %v3102_v59 = vld [vmem:[%s4655_s1 + $0x2e4] ss:$8 sps:$4 sm:$0xff]   ;;  %v3105_v61 = vld [vmem:[%s4655_s1 + $0x2e0] ss:$8 sps:$4 sm:$0xff]   ;;  %v3106_v62 = vld [vmem:[%s4655_s1 + $0xf4] ss:$8 sps:$4 sm:$0xff]  }
  0x16   :  { %v3108_v63 = vld [vmem:[%s4655_s1 + $0x2f4] ss:$8 sps:$4 sm:$0xff]   ;;  %v3110_v0 = vld [vmem:[%s4655_s1 + $0xf0] ss:$8 sps:$4 sm:$0xff]   ;;  %v3120_v2 = vld [vmem:[%s4655_s1 + $0x104] ss:$8 sps:$4 sm:$0xff]  }
  0x17   :  { %1344 = vmatpush1.bf16.msra.mxu1 %v3050_v22  ;;  %v3111_v1 = vld [vmem:[%s4655_s1 + $0x2f0] ss:$8 sps:$4 sm:$0xff]   ;;  %v3123_v3 = vld [vmem:[%s4655_s1 + $0x304] ss:$8 sps:$4 sm:$0xff]   ;;  %v3118_v6 = vld [vmem:[%s4655_s1 + $0x100] ss:$8 sps:$4 sm:$0xff]  }
  0x18   :  { %1570 = vmatpush1.bf16.msra.mxu0 %v3051_v23  ;;  %1345 = vmatprep.subr.bf16.mxu1 %v3052_v24  ;;  %v3112_v4 = vld [vmem:[%s4656_s0] ss:$36 sps:$4 sm:$0xff]   ;;  %v3115_v5 = vld [vmem:[%s4656_s0 + $0x10] ss:$36 sps:$4 sm:$0xff]   ;;  %v3134_v16 = vld [vmem:[%s4656_s0 + $0x48] ss:$36 sps:$4 sm:$0xff]  }
  0x19   :  { %1571 = vmatprep.subr.bf16.mxu0 %v3054_v25  ;;  %v3121_v7 = vld [vmem:[%s4655_s1 + $0x300] ss:$8 sps:$4 sm:$0xff]   ;;  %v3126_v8 = vld [vmem:[%s4655_s1 + $0x114] ss:$8 sps:$4 sm:$0xff]   ;;  %v3130_v10 = vld [vmem:[%s4656_s0 + $0x4c] ss:$36 sps:$4 sm:$0xff]  }
  0x1a   :  { %v3129_v9 = vld [vmem:[%s4655_s1 + $0x314] ss:$8 sps:$4 sm:$0xff]   ;;  %v3124_v12 = vld [vmem:[%s4655_s1 + $0x110] ss:$8 sps:$4 sm:$0xff]   ;;  %v3137_v14 = vld [vmem:[%s4655_s1 + $0x124] ss:$8 sps:$4 sm:$0xff]  }
  0x1b   :  { %1346 = vmatpush1.bf16.msra.mxu1 %v3056_v26  ;;  %v3132_v11 = vld [vmem:[%s4656_s0 + $0x5c] ss:$36 sps:$4 sm:$0xff]   ;;  %v3127_v13 = vld [vmem:[%s4655_s1 + $0x310] ss:$8 sps:$4 sm:$0xff]   ;;  %v3141_v15 = vld [vmem:[%s4655_s1 + $0x324] ss:$8 sps:$4 sm:$0xff]  }
  0x1c   :  { %1572 = vmatpush1.bf16.msra.mxu0 %v3057_v27  ;;  %1347 = vmatprep.subr.bf16.mxu1 %v3058_v28  ;;  %v3135_v17 = vld [vmem:[%s4655_s1 + $0x120] ss:$8 sps:$4 sm:$0xff]   ;;  %v3138_v18 = vld [vmem:[%s4656_s0 + $0x58] ss:$36 sps:$4 sm:$0xff]   ;;  %v3155_v26 = vld [vmem:[%s4655_s1 + $0x144] ss:$8 sps:$4 sm:$0xff]  }
  0x1d   :  { %1573 = vmatprep.subr.bf16.mxu0 %v3060_v29  ;;  %v3139_v19 = vld [vmem:[%s4655_s1 + $0x320] ss:$8 sps:$4 sm:$0xff]   ;;  %v3144_v20 = vld [vmem:[%s4655_s1 + $0x134] ss:$8 sps:$4 sm:$0xff]   ;;  %v3142_v24 = vld [vmem:[%s4655_s1 + $0x130] ss:$8 sps:$4 sm:$0xff]  }
  0x1e   :  { %v3147_v21 = vld [vmem:[%s4655_s1 + $0x334] ss:$8 sps:$4 sm:$0xff]   ;;  %v3150_v23 = vld [vmem:[%s4656_s0 + $0xa4] ss:$36 sps:$4 sm:$0xff]   ;;  %v3145_v25 = vld [vmem:[%s4655_s1 + $0x330] ss:$8 sps:$4 sm:$0xff]  }
  0x1f   :  { %1348 = vmatpush1.bf16.msra.mxu1 %v3062_v30  ;;  %v3148_v22 = vld [vmem:[%s4656_s0 + $0x94] ss:$36 sps:$4 sm:$0xff]   ;;  %v3159_v27 = vld [vmem:[%s4655_s1 + $0x344] ss:$8 sps:$4 sm:$0xff]   ;;  %v3153_v29 = vld [vmem:[%s4655_s1 + $0x140] ss:$8 sps:$4 sm:$0xff]  }
  0x20   :  { %1574 = vmatpush1.bf16.msra.mxu0 %v3063_v31  ;;  %1349 = vmatprep.subr.bf16.mxu1 %v3064_v32  ;;  %v3152_v28 = vld [vmem:[%s4656_s0 + $0x90] ss:$36 sps:$4 sm:$0xff]   ;;  %v3156_v30 = vld [vmem:[%s4656_s0 + $0xa0] ss:$36 sps:$4 sm:$0xff]  }
  0x21   :  { %1575 = vmatprep.subr.bf16.mxu0 %v3066_v33  ;;  %v3157_v31 = vld [vmem:[%s4655_s1 + $0x340] ss:$8 sps:$4 sm:$0xff]   ;;  %v3162_v32 = vld [vmem:[%s4655_s1 + $0x154] ss:$8 sps:$4 sm:$0xff]   ;;  %v3181_v49 = vld [vmem:[%s4655_s1 + $0x370] ss:$8 sps:$4 sm:$0xff]  }
  0x22   :  { %v3165_v33 = vld [vmem:[%s4655_s1 + $0x354] ss:$8 sps:$4 sm:$0xff]   ;;  %v3195_v51 = vld [vmem:[%s4655_s1 + $0x384] ss:$8 sps:$4 sm:$0xff]  }
  0x23   :  { %1350 = vmatpush1.bf16.msra.mxu1 %v3068_v34  ;;  %v3166_v34 = vld [vmem:[%s4656_s0 + $0xdc] ss:$36 sps:$4 sm:$0xff]  }
  0x24   :  { %1576 = vmatpush1.bf16.msra.mxu0 %v3069_v35  ;;  %1351 = vmatprep.subr.bf16.mxu1 %v3070_v36  ;;  %v3168_v35 = vld [vmem:[%s4656_s0 + $0xec] ss:$36 sps:$4 sm:$0xff]  }
  0x25   :  { %1577 = vmatprep.subr.bf16.mxu0 %v3072_v37  ;;  %v3160_v36 = vld [vmem:[%s4655_s1 + $0x150] ss:$8 sps:$4 sm:$0xff]  }
  0x26   :  { %v3163_v37 = vld [vmem:[%s4655_s1 + $0x350] ss:$8 sps:$4 sm:$0xff]  }
  0x27   :  { %1352 = vmatpush1.bf16.msra.mxu1 %v3074_v38  ;;  %v3173_v38 = vld [vmem:[%s4655_s1 + $0x164] ss:$8 sps:$4 sm:$0xff]  }
  0x28   :  { %1578 = vmatpush1.bf16.msra.mxu0 %v3075_v39  ;;  %1353 = vmatprep.subr.bf16.mxu1 %v3076_v40  ;;  %v3177_v39 = vld [vmem:[%s4655_s1 + $0x364] ss:$8 sps:$4 sm:$0xff]   ;;  %v3170_v40 = vld [vmem:[%s4656_s0 + $0xd8] ss:$36 sps:$4 sm:$0xff]  }
  0x29   :  { %1579 = vmatprep.subr.bf16.mxu0 %v3078_v41  ;;  %v3171_v41 = vld [vmem:[%s4655_s1 + $0x160] ss:$8 sps:$4 sm:$0xff]  }
  0x2b   :  { %1354 = vmatpush1.bf16.msra.mxu1 %v3080_v42  ;;  %v3174_v42 = vld [vmem:[%s4656_s0 + $0xe8] ss:$36 sps:$4 sm:$0xff]  }
  0x2c   :  { %1580 = vmatpush1.bf16.msra.mxu0 %v3081_v43  ;;  %1355 = vmatprep.subr.bf16.mxu1 %v3082_v44  ;;  %v3175_v43 = vld [vmem:[%s4655_s1 + $0x360] ss:$8 sps:$4 sm:$0xff]   ;;  %v3180_v44 = vld [vmem:[%s4655_s1 + $0x174] ss:$8 sps:$4 sm:$0xff]  }
  0x2d   :  { %1581 = vmatprep.subr.bf16.mxu0 %v3084_v45  ;;  %v3183_v45 = vld [vmem:[%s4655_s1 + $0x374] ss:$8 sps:$4 sm:$0xff]  }
  0x2f   :  { %1356 = vmatpush1.bf16.msra.mxu1 %v3086_v46  ;;  %v3184_v46 = vld [vmem:[%s4656_s0 + $0x124] ss:$36 sps:$4 sm:$0xff]  }
  0x30   :  { %1582 = vmatpush1.bf16.msra.mxu0 %v3087_v47  ;;  %1357 = vmatprep.subr.bf16.mxu1 %v3088_v48  ;;  %v3186_v47 = vld [vmem:[%s4656_s0 + $0x134] ss:$36 sps:$4 sm:$0xff]  }
  0x31   :  { %1583 = vmatprep.subr.bf16.mxu0 %v3090_v50  ;;  %v3178_v48 = vld [vmem:[%s4655_s1 + $0x170] ss:$8 sps:$4 sm:$0xff]   ;;  %v3191_v50 = vld [vmem:[%s4655_s1 + $0x184] ss:$8 sps:$4 sm:$0xff]  }
  0x33   :  { %1358 = vmatpush1.bf16.msra.mxu1 %v3092_v52  ;;  %v3188_v52 = vld [vmem:[%s4656_s0 + $0x120] ss:$36 sps:$4 sm:$0xff]  }
  0x34   :  { %1584 = vmatpush1.bf16.msra.mxu0 %v3093_v53  ;;  %1359 = vmatprep.subr.bf16.mxu1 %v3094_v54  ;;  %v3189_v53 = vld [vmem:[%s4655_s1 + $0x180] ss:$8 sps:$4 sm:$0xff]   ;;  %v3192_v54 = vld [vmem:[%s4656_s0 + $0x130] ss:$36 sps:$4 sm:$0xff]  }
  0x35   :  { %1585 = vmatprep.subr.bf16.mxu0 %v3096_v55  ;;  %v3193_v55 = vld [vmem:[%s4655_s1 + $0x380] ss:$8 sps:$4 sm:$0xff]  }
  0x37   :  { %1360 = vmatpush1.bf16.msra.mxu1 %v3098_v56  ;;  %v3198_v56 = vld [vmem:[%s4655_s1 + $0x194] ss:$8 sps:$4 sm:$0xff]  }
  0x38   :  { %1586 = vmatpush1.bf16.msra.mxu0 %v3099_v57  ;;  %1361 = vmatprep.subr.bf16.mxu1 %v3100_v58  ;;  %v3201_v57 = vld [vmem:[%s4655_s1 + $0x394] ss:$8 sps:$4 sm:$0xff]   ;;  %v3202_v58 = vld [vmem:[%s4656_s0 + $0x16c] ss:$36 sps:$4 sm:$0xff]  }
  0x39   :  { %1587 = vmatprep.subr.bf16.mxu0 %v3102_v59  ;;  %v3204_v59 = vld [vmem:[%s4656_s0 + $0x17c] ss:$36 sps:$4 sm:$0xff]  }
  0x3b   :  { %1362 = vmatpush1.bf16.msra.mxu1 %v3104_v60  ;;  %v3196_v60 = vld [vmem:[%s4655_s1 + $0x190] ss:$8 sps:$4 sm:$0xff]  }
  0x3c   :  { %1588 = vmatpush1.bf16.msra.mxu0 %v3105_v61  ;;  %1363 = vmatprep.subr.bf16.mxu1 %v3106_v62  ;;  %v3199_v61 = vld [vmem:[%s4655_s1 + $0x390] ss:$8 sps:$4 sm:$0xff]   ;;  %v3209_v62 = vld [vmem:[%s4655_s1 + $0x1a4] ss:$8 sps:$4 sm:$0xff]  }
  0x3d   :  { %1589 = vmatprep.subr.bf16.mxu0 %v3108_v63  ;;  %v3213_v63 = vld [vmem:[%s4655_s1 + $0x3a4] ss:$8 sps:$4 sm:$0xff]  }
  0x3f   :  { %1364 = vmatpush1.bf16.msra.mxu1 %v3110_v0  ;;  %v3206_v0 = vld [vmem:[%s4656_s0 + $0x168] ss:$36 sps:$4 sm:$0xff]  }
  0x40   :  { %1590 = vmatpush1.bf16.msra.mxu0 %v3111_v1  ;;  %1446 = vmatprep.subr.bf16.mxu1 %v3120_v2  ;;  %v3207_v1 = vld [vmem:[%s4655_s1 + $0x1a0] ss:$8 sps:$4 sm:$0xff]   ;;  %v3210_v2 = vld [vmem:[%s4656_s0 + $0x178] ss:$36 sps:$4 sm:$0xff]  }
  0x41   :  { %1672 = vmatprep.subr.bf16.mxu0 %v3123_v3  ;;  %v3211_v3 = vld [vmem:[%s4655_s1 + $0x3a0] ss:$8 sps:$4 sm:$0xff]  }
  0x42   :  { %1366 = vmatmul.mubr.bf16.vlgmr.msra.gmra.mrb[0].mxu1 %v3112_v4  ;;  %v3216_v4 = vld [vmem:[%s4655_s1 + $0x1b4] ss:$8 sps:$4 sm:$0xff]  }
  0x43   :  { %1592 = vmatmul.mubr.bf16.vlgmr.msra.gmra.mrb[0].mxu0 %v3115_v5  ;;  %1447 = vmatpush1.bf16.msra.mxu1 %v3118_v6  ;;  %v3219_v5 = vld [vmem:[%s4655_s1 + $0x3b4] ss:$8 sps:$4 sm:$0xff]  }
  0x44   :  { %1673 = vmatpush1.bf16.msra.mxu0 %v3121_v7  ;;  %1448 = vmatprep.subr.bf16.mxu1 %v3126_v8  ;;  %v3220_v6 = vld [vmem:[%s4656_s0 + $0x1b4] ss:$36 sps:$4 sm:$0xff]   ;;  %v3222_v7 = vld [vmem:[%s4656_s0 + $0x1c4] ss:$36 sps:$4 sm:$0xff]  }
  0x45   :  { %1674 = vmatprep.subr.bf16.mxu0 %v3129_v9  ;;  %1375 = vmatprep.mubr.bf16.mxu1 %v3130_v10  ;;  %v3214_v8 = vld [vmem:[%s4655_s1 + $0x1b0] ss:$8 sps:$4 sm:$0xff]   ;;  %v3227_v10 = vld [vmem:[%s4655_s1 + $0x1c4] ss:$8 sps:$4 sm:$0xff]  }
  0x46   :  { %1601 = vmatprep.mubr.bf16.mxu0 %v3132_v11  ;;  %v3217_v9 = vld [vmem:[%s4655_s1 + $0x3b0] ss:$8 sps:$4 sm:$0xff]   ;;  %v3231_v11 = vld [vmem:[%s4655_s1 + $0x3c4] ss:$8 sps:$4 sm:$0xff]  }
  0x47   :  { %1449 = vmatpush1.bf16.msra.mxu1 %v3124_v12  ;;  %v3224_v12 = vld [vmem:[%s4656_s0 + $0x1b0] ss:$36 sps:$4 sm:$0xff]  }
  0x48   :  { %1675 = vmatpush1.bf16.msra.mxu0 %v3127_v13  ;;  %1450 = vmatprep.subr.bf16.mxu1 %v3137_v14  ;;  %v3225_v13 = vld [vmem:[%s4655_s1 + $0x1c0] ss:$8 sps:$4 sm:$0xff]  }
  0x49   :  { %1676 = vmatprep.subr.bf16.mxu0 %v3141_v15  ;;  %v3228_v14 = vld [vmem:[%s4656_s0 + $0x1c0] ss:$36 sps:$4 sm:$0xff]  }
  0x4a   :  { %1376 = vmatmul.mubr.bf16.gmra.mrb[4].mxu1 %v3134_v16  ;;  %v3229_v15 = vld [vmem:[%s4655_s1 + $0x3c0] ss:$8 sps:$4 sm:$0xff]   ;;  %v3234_v16 = vld [vmem:[%s4655_s1 + $0x1d4] ss:$8 sps:$4 sm:$0xff]  }
  0x4b   :  { %1602 = vmatmul.mubr.bf16.gmra.mrb[4].mxu0 %v3138_v18  ;;  %1451 = vmatpush1.bf16.msra.mxu1 %v3135_v17  ;;  %v3237_v17 = vld [vmem:[%s4655_s1 + $0x3d4] ss:$8 sps:$4 sm:$0xff]  }
  0x4c   :  { %1677 = vmatpush1.bf16.msra.mxu0 %v3139_v19  ;;  %1452 = vmatprep.subr.bf16.mxu1 %v3144_v20  ;;  %v3238_v18 = vld [vmem:[%s4656_s0 + $0x1fc] ss:$36 sps:$4 sm:$0xff]   ;;  %v3240_v19 = vld [vmem:[%s4656_s0 + $0x20c] ss:$36 sps:$4 sm:$0xff]  }
  0x4d   :  { %1678 = vmatprep.subr.bf16.mxu0 %v3147_v21  ;;  %1385 = vmatprep.mubr.bf16.mxu1 %v3148_v22  ;;  %v3232_v20 = vld [vmem:[%s4655_s1 + $0x1d0] ss:$8 sps:$4 sm:$0xff]   ;;  %v3245_v22 = vld [vmem:[%s4655_s1 + $0x1e4] ss:$8 sps:$4 sm:$0xff]  }
  0x4e   :  { %1611 = vmatprep.mubr.bf16.mxu0 %v3150_v23  ;;  %v3235_v21 = vld [vmem:[%s4655_s1 + $0x3d0] ss:$8 sps:$4 sm:$0xff]   ;;  %v3249_v23 = vld [vmem:[%s4655_s1 + $0x3e4] ss:$8 sps:$4 sm:$0xff]  }
  0x4f   :  { %1453 = vmatpush1.bf16.msra.mxu1 %v3142_v24  ;;  %v3242_v24 = vld [vmem:[%s4656_s0 + $0x1f8] ss:$36 sps:$4 sm:$0xff]  }
  0x50   :  { %1679 = vmatpush1.bf16.msra.mxu0 %v3145_v25  ;;  %1454 = vmatprep.subr.bf16.mxu1 %v3155_v26  ;;  %v3243_v25 = vld [vmem:[%s4655_s1 + $0x1e0] ss:$8 sps:$4 sm:$0xff]  }
  0x51   :  { %1680 = vmatprep.subr.bf16.mxu0 %v3159_v27  ;;  %v3246_v26 = vld [vmem:[%s4656_s0 + $0x208] ss:$36 sps:$4 sm:$0xff]  }
  0x52   :  { %1386 = vmatmul.mubr.bf16.gmra.mrb[8].mxu1 %v3152_v28  ;;  %v3247_v27 = vld [vmem:[%s4655_s1 + $0x3e0] ss:$8 sps:$4 sm:$0xff]   ;;  %v3252_v28 = vld [vmem:[%s4655_s1 + $0x1f4] ss:$8 sps:$4 sm:$0xff]  }
  0x53   :  { %1612 = vmatmul.mubr.bf16.gmra.mrb[8].mxu0 %v3156_v30  ;;  %1455 = vmatpush1.bf16.msra.mxu1 %v3153_v29  ;;  %v3255_v29 = vld [vmem:[%s4655_s1 + $0x3f4] ss:$8 sps:$4 sm:$0xff]   ;;  %v3258_v30 = vld [vmem:[%s4656_s0 + $0xc] ss:$36 sps:$4 sm:$0xff]  }
  0x54   :  { %1681 = vmatpush1.bf16.msra.mxu0 %v3157_v31  ;;  %1456 = vmatprep.subr.bf16.mxu1 %v3162_v32  ;;  %v3261_v31 = vld [vmem:[%s4656_s0 + $0x1c] ss:$36 sps:$4 sm:$0xff]   ;;  %v3250_v32 = vld [vmem:[%s4655_s1 + $0x1f0] ss:$8 sps:$4 sm:$0xff]  }
  0x55   :  { %1682 = vmatprep.subr.bf16.mxu0 %v3165_v33  ;;  %1395 = vmatprep.mubr.bf16.mxu1 %v3166_v34  ;;  %v3253_v33 = vld [vmem:[%s4655_s1 + $0x3f0] ss:$8 sps:$4 sm:$0xff]   ;;  %v3264_v34 = vld [vmem:[%s4655_s1 + $0x404] ss:$8 sps:$4 sm:$0xff]  }
  0x56   :  { %1621 = vmatprep.mubr.bf16.mxu0 %v3168_v35  ;;  %v3256_v35 = vld [vmem:[%s4656_s0 + $0x8] ss:$36 sps:$4 sm:$0xff]  }
  0x57   :  { %1457 = vmatpush1.bf16.msra.mxu1 %v3160_v36  ;;  %v3259_v36 = vld [vmem:[%s4656_s0 + $0x18] ss:$36 sps:$4 sm:$0xff]  }
  0x58   :  { %1683 = vmatpush1.bf16.msra.mxu0 %v3163_v37  ;;  %1458 = vmatprep.subr.bf16.mxu1 %v3173_v38  ;;  %v3262_v37 = vld [vmem:[%s4655_s1 + $0x400] ss:$8 sps:$4 sm:$0xff]   ;;  %v3265_v38 = vld [vmem:[%s4656_s0 + $0x54] ss:$36 sps:$4 sm:$0xff]  }
  0x59   :  { %1684 = vmatprep.subr.bf16.mxu0 %v3177_v39  ;;  %v3267_v39 = vld [vmem:[%s4656_s0 + $0x64] ss:$36 sps:$4 sm:$0xff]  }
  0x5a   :  { %1396 = vmatmul.mubr.bf16.gmra.mrb[12].mxu1 %v3170_v40  ;;  %v3273_v40 = vld [vmem:[%s4655_s1 + $0x414] ss:$8 sps:$4 sm:$0xff]  }
  0x5b   :  { %1622 = vmatmul.mubr.bf16.gmra.mrb[12].mxu0 %v3174_v42  ;;  %1459 = vmatpush1.bf16.msra.mxu1 %v3171_v41  ;;  %v3271_v41 = vld [vmem:[%s4655_s1 + $0x410] ss:$8 sps:$4 sm:$0xff]   ;;  %v3282_v42 = vld [vmem:[%s4655_s1 + $0x424] ss:$8 sps:$4 sm:$0xff]  }
  0x5c   :  { %1685 = vmatpush1.bf16.msra.mxu0 %v3175_v43  ;;  %1460 = vmatprep.subr.bf16.mxu1 %v3180_v44  ;;  %v3269_v43 = vld [vmem:[%s4656_s0 + $0x50] ss:$36 sps:$4 sm:$0xff]   ;;  %v3270_v44 = vld [vmem:[%s4656_s0 + $0x60] ss:$36 sps:$4 sm:$0xff]  }
  0x5d   :  { %1686 = vmatprep.subr.bf16.mxu0 %v3183_v45  ;;  %1405 = vmatprep.mubr.bf16.mxu1 %v3184_v46  ;;  %v3274_v45 = vld [vmem:[%s4656_s0 + $0x9c] ss:$36 sps:$4 sm:$0xff]   ;;  %v3276_v46 = vld [vmem:[%s4656_s0 + $0xac] ss:$36 sps:$4 sm:$0xff]  }
  0x5e   :  { %1631 = vmatprep.mubr.bf16.mxu0 %v3186_v47  ;;  %v3280_v47 = vld [vmem:[%s4655_s1 + $0x420] ss:$8 sps:$4 sm:$0xff]  }
  0x5f   :  { %1461 = vmatpush1.bf16.msra.mxu1 %v3178_v48  ;;  %v3291_v48 = vld [vmem:[%s4655_s1 + $0x434] ss:$8 sps:$4 sm:$0xff]  }
  0x60   :  { %1687 = vmatpush1.bf16.msra.mxu0 %v3181_v49  ;;  %1462 = vmatprep.subr.bf16.mxu1 %v3191_v50  ;;  %v3278_v49 = vld [vmem:[%s4656_s0 + $0x98] ss:$36 sps:$4 sm:$0xff]   ;;  %v3279_v50 = vld [vmem:[%s4656_s0 + $0xa8] ss:$36 sps:$4 sm:$0xff]  }
  0x61   :  { %1688 = vmatprep.subr.bf16.mxu0 %v3195_v51  ;;  %v3289_v51 = vld [vmem:[%s4655_s1 + $0x430] ss:$8 sps:$4 sm:$0xff]  }
  0x62   :  { %1406 = vmatmul.mubr.bf16.gmra.mrb[16].mxu1 %v3188_v52  ;;  %v3300_v52 = vld [vmem:[%s4655_s1 + $0x444] ss:$8 sps:$4 sm:$0xff]  }
  0x63   :  { %1632 = vmatmul.mubr.bf16.gmra.mrb[16].mxu0 %v3192_v54  ;;  %1463 = vmatpush1.bf16.msra.mxu1 %v3189_v53  ;;  %v3283_v53 = vld [vmem:[%s4656_s0 + $0xe4] ss:$36 sps:$4 sm:$0xff]   ;;  %v3285_v54 = vld [vmem:[%s4656_s0 + $0xf4] ss:$36 sps:$4 sm:$0xff]  }
  0x64   :  { %1689 = vmatpush1.bf16.msra.mxu0 %v3193_v55  ;;  %1464 = vmatprep.subr.bf16.mxu1 %v3198_v56  ;;  %v3298_v55 = vld [vmem:[%s4655_s1 + $0x440] ss:$8 sps:$4 sm:$0xff]   ;;  %v3309_v56 = vld [vmem:[%s4655_s1 + $0x454] ss:$8 sps:$4 sm:$0xff]  }
  0x65   :  { %1690 = vmatprep.subr.bf16.mxu0 %v3201_v57  ;;  %1415 = vmatprep.mubr.bf16.mxu1 %v3202_v58  ;;  %v3307_v57 = vld [vmem:[%s4655_s1 + $0x450] ss:$8 sps:$4 sm:$0xff]   ;;  %v3318_v58 = vld [vmem:[%s4655_s1 + $0x464] ss:$8 sps:$4 sm:$0xff]  }
  0x66   :  { %1641 = vmatprep.mubr.bf16.mxu0 %v3204_v59  ;;  %v3287_v59 = vld [vmem:[%s4656_s0 + $0xe0] ss:$36 sps:$4 sm:$0xff]  }
  0x67   :  { %1465 = vmatpush1.bf16.msra.mxu1 %v3196_v60  ;;  %v3288_v60 = vld [vmem:[%s4656_s0 + $0xf0] ss:$36 sps:$4 sm:$0xff]  }
  0x68   :  { %1691 = vmatpush1.bf16.msra.mxu0 %v3199_v61  ;;  %1466 = vmatprep.subr.bf16.mxu1 %v3209_v62  ;;  %v3292_v61 = vld [vmem:[%s4656_s0 + $0x12c] ss:$36 sps:$4 sm:$0xff]   ;;  %v3294_v62 = vld [vmem:[%s4656_s0 + $0x13c] ss:$36 sps:$4 sm:$0xff]  }
  0x69   :  { %1692 = vmatprep.subr.bf16.mxu0 %v3213_v63  ;;  %v3316_v63 = vld [vmem:[%s4655_s1 + $0x460] ss:$8 sps:$4 sm:$0xff]  }
  0x6a   :  { %1416 = vmatmul.mubr.bf16.gmra.mrb[20].mxu1 %v3206_v0  ;;  %v3327_v0 = vld [vmem:[%s4655_s1 + $0x474] ss:$8 sps:$4 sm:$0xff]  }
  0x6b   :  { %1642 = vmatmul.mubr.bf16.gmra.mrb[20].mxu0 %v3210_v2  ;;  %1467 = vmatpush1.bf16.msra.mxu1 %v3207_v1  ;;  %v3325_v1 = vld [vmem:[%s4655_s1 + $0x470] ss:$8 sps:$4 sm:$0xff]   ;;  %v3296_v2 = vld [vmem:[%s4656_s0 + $0x128] ss:$36 sps:$4 sm:$0xff]  }
  0x6c   :  { %1693 = vmatpush1.bf16.msra.mxu0 %v3211_v3  ;;  %1468 = vmatprep.subr.bf16.mxu1 %v3216_v4  ;;  %v3297_v3 = vld [vmem:[%s4656_s0 + $0x138] ss:$36 sps:$4 sm:$0xff]  }
  0x6d   :  { %1694 = vmatprep.subr.bf16.mxu0 %v3219_v5  ;;  %1425 = vmatprep.mubr.bf16.mxu1 %v3220_v6  ;;  %v3301_v4 = vld [vmem:[%s4656_s0 + $0x174] ss:$36 sps:$4 sm:$0xff]   ;;  %v3303_v5 = vld [vmem:[%s4656_s0 + $0x184] ss:$36 sps:$4 sm:$0xff]  }
  0x6e   :  { %1651 = vmatprep.mubr.bf16.mxu0 %v3222_v7  ;;  %v3305_v6 = vld [vmem:[%s4656_s0 + $0x170] ss:$36 sps:$4 sm:$0xff]   ;;  %v3306_v7 = vld [vmem:[%s4656_s0 + $0x180] ss:$36 sps:$4 sm:$0xff]  }
  0x6f   :  { %1469 = vmatpush1.bf16.msra.mxu1 %v3214_v8  ;;  %v3310_v8 = vld [vmem:[%s4656_s0 + $0x1bc] ss:$36 sps:$4 sm:$0xff]  }
  0x70   :  { %1695 = vmatpush1.bf16.msra.mxu0 %v3217_v9  ;;  %1470 = vmatprep.subr.bf16.mxu1 %v3227_v10  ;;  %v3312_v9 = vld [vmem:[%s4656_s0 + $0x1cc] ss:$36 sps:$4 sm:$0xff]   ;;  %v3314_v10 = vld [vmem:[%s4656_s0 + $0x1b8] ss:$36 sps:$4 sm:$0xff]  }
  0x71   :  { %1696 = vmatprep.subr.bf16.mxu0 %v3231_v11  ;;  %v3315_v11 = vld [vmem:[%s4656_s0 + $0x1c8] ss:$36 sps:$4 sm:$0xff]  }
  0x72   :  { %1426 = vmatmul.mubr.bf16.gmra.mrb[24].mxu1 %v3224_v12  ;;  %v3319_v12 = vld [vmem:[%s4656_s0 + $0x204] ss:$36 sps:$4 sm:$0xff]  }
  0x73   :  { %1652 = vmatmul.mubr.bf16.gmra.mrb[24].mxu0 %v3228_v14  ;;  %1471 = vmatpush1.bf16.msra.mxu1 %v3225_v13  ;;  %v3321_v13 = vld [vmem:[%s4656_s0 + $0x214] ss:$36 sps:$4 sm:$0xff]   ;;  %v3323_v14 = vld [vmem:[%s4656_s0 + $0x200] ss:$36 sps:$4 sm:$0xff]  }
  0x74   :  { %1697 = vmatpush1.bf16.msra.mxu0 %v3229_v15  ;;  %1472 = vmatprep.subr.bf16.mxu1 %v3234_v16  ;;  %v3324_v15 = vld [vmem:[%s4656_s0 + $0x210] ss:$36 sps:$4 sm:$0xff]   ;;  %v3340_v16 = vmov 0  }
  0x75   :  { %1698 = vmatprep.subr.bf16.mxu0 %v3237_v17  ;;  %1435 = vmatprep.mubr.bf16.mxu1 %v3238_v18  ;;  %v3328_v17 = vld [vmem:[%s4656_s0 + $0x20] ss:$36 sps:$4 sm:$0xff]   ;;  %v3329_v18 = vld [vmem:[%s4656_s0 + $0x68] ss:$36 sps:$4 sm:$0xff]  }
  0x76   :  { %1661 = vmatprep.mubr.bf16.mxu0 %v3240_v19  ;;  %v3330_v19 = vld [vmem:[%s4656_s0 + $0xb0] ss:$36 sps:$4 sm:$0xff]  }
  0x77   :  { %1473 = vmatpush1.bf16.msra.mxu1 %v3232_v20  ;;  %v3331_v20 = vld [vmem:[%s4656_s0 + $0xf8] ss:$36 sps:$4 sm:$0xff]  }
  0x78   :  { %1699 = vmatpush1.bf16.msra.mxu0 %v3235_v21  ;;  %1474 = vmatprep.subr.bf16.mxu1 %v3245_v22  ;;  %v3332_v21 = vld [vmem:[%s4656_s0 + $0x140] ss:$36 sps:$4 sm:$0xff]   ;;  %v3333_v22 = vld [vmem:[%s4656_s0 + $0x188] ss:$36 sps:$4 sm:$0xff]  }
  0x79   :  { %1700 = vmatprep.subr.bf16.mxu0 %v3249_v23  ;;  %v3334_v23 = vld [vmem:[%s4656_s0 + $0x1d0] ss:$36 sps:$4 sm:$0xff]  }
  0x7a   :  { %1436 = vmatmul.mubr.bf16.gmra.mrb[28].mxu1 %v3242_v24  ;;  %v3335_v24 = vld [vmem:[%s4656_s0 + $0x218] ss:$36 sps:$4 sm:$0xff]  }
  0x7b   :  { %1662 = vmatmul.mubr.bf16.gmra.mrb[28].mxu0 %v3246_v26  ;;  %1475 = vmatpush1.bf16.msra.mxu1 %v3243_v25  ;;  %v2015_v25 = vld [vmem:[%s4657_s2 + $0x8] sm:$0xff]  ;;  %v2017_v26 = vld [vmem:[%s4657_s2 + $0x18] sm:$0xff] }
  0x7c   :  { %1701 = vmatpush1.bf16.msra.mxu0 %v3247_v27  ;;  %1476 = vmatprep.subr.bf16.mxu1 %v3252_v28  ;;  %v4026_v27 = vpack.c.bf16 %v2017_v26, %v2015_v25  ;;  %v2014_v28 = vld [vmem:[%s4657_s2] sm:$0xff]  ;;  %v2056_v25 = vld [vmem:[%s4657_s2 + $0x150] sm:$0xff] }
  0x7d   :  { %1702 = vmatprep.subr.bf16.mxu0 %v3255_v29  ;;  %1478 = vmatprep.mubr.bf16.mxu1 %v3258_v30  ;;  %v2016_v29 = vld [vmem:[%s4657_s2 + $0x10] sm:$0xff] }
  0x7e   :  { %1704 = vmatprep.mubr.bf16.mxu0 %v3261_v31  ;;  %v4034_v30 = vpack.c.bf16 %v2016_v29, %v2014_v28  ;;  %v2019_v31 = vld [vmem:[%s4657_s2 + $0x28] sm:$0xff]  ;;  %v2061_v29 = vld [vmem:[%s4657_s2 + $0x178] sm:$0xff] }
  0x7f   :  { %1477 = vmatpush1.bf16.msra.mxu1 %v3250_v32  ;;  %v2021_v32 = vld [vmem:[%s4657_s2 + $0x38] sm:$0xff]  ;;  %v2059_v28 = vld [vmem:[%s4657_s2 + $0x168] sm:$0xff] }
  0x80   :  { %1703 = vmatpush1.bf16.msra.mxu0 %v3253_v33  ;;  %2759 = vmatprep.subr.bf16.mxu1 %v4026_v27  ;;  %v4044_v33 = vpack.c.bf16 %v2021_v32, %v2019_v31  ;;  %v4224_v31 = vpack.c.bf16 %v2061_v29, %v2059_v28  ;;  %v2058_v32 = vld [vmem:[%s4657_s2 + $0x160] sm:$0xff] }
  0x81   :  { %1785 = vmatprep.subr.bf16.mxu0 %v3264_v34  ;;  %v2018_v34 = vld [vmem:[%s4657_s2 + $0x20] sm:$0xff] }
  0x82   :  { %1479 = vmatmul.mubr.bf16.vlgmr.msra.gmra.mrb[0].mxu1 %v3256_v35  ;;  %v2020_v35 = vld [vmem:[%s4657_s2 + $0x30] sm:$0xff]  ;;  %4685 = vst [vmem:[#allocation7_spill] sm:$0xff] %v4224_v31 }
  0x83   :  { %1705 = vmatmul.mubr.bf16.vlgmr.msra.gmra.mrb[0].mxu0 %v3259_v36  ;;  %1488 = vmatprep.mubr.bf16.mxu1 %v3265_v38  ;;  %v4052_v36 = vpack.c.bf16 %v2020_v35, %v2018_v34  ;;  %v2025_v38 = vld [vmem:[%s4657_s2 + $0x58] sm:$0xff]  ;;  %v2060_v34 = vld [vmem:[%s4657_s2 + $0x170] sm:$0xff] }
  0x84   :  { %1786 = vmatpush1.bf16.msra.mxu0 %v3262_v37  ;;  %1714 = vmatprep.mubr.bf16.mxu0 %v3267_v39  ;;  %v2023_v37 = vld [vmem:[%s4657_s2 + $0x48] sm:$0xff]  ;;  %v4232_v35 = vpack.c.bf16 %v2060_v34, %v2058_v32 }
  0x85   :  { %1787 = vmatprep.subr.bf16.mxu0 %v3273_v40  ;;  %2761 = vmatpush1.bf16.msra.mxu1 %v4034_v30  ;;  %v4062_v39 = vpack.c.bf16 %v2025_v38, %v2023_v37  ;;  %v2022_v40 = vld [vmem:[%s4657_s2 + $0x40] sm:$0xff]  ;;  %v2063_v37 = vld [vmem:[%s4657_s2 + $0x188] sm:$0xff]  ;;  %v2065_v38 = vld [vmem:[%s4657_s2 + $0x198] sm:$0xff] }
  0x86   :  { %2763 = vmatprep.subr.bf16.mxu1 %v4044_v33  ;;  %4686 = vst [vmem:[#allocation8_spill] sm:$0xff] %v4232_v35 }
  0x88   :  { %1788 = vmatpush1.bf16.msra.mxu0 %v3271_v41  ;;  %v2024_v41 = vld [vmem:[%s4657_s2 + $0x50] sm:$0xff] }
  0x89   :  { %1789 = vmatprep.subr.bf16.mxu0 %v3282_v42  ;;  %2765 = vmatpush1.bf16.msra.mxu1 %v4052_v36  ;;  %v4070_v42 = vpack.c.bf16 %v2024_v41, %v2022_v40  ;;  %v4242_v40 = vpack.c.bf16 %v2065_v38, %v2063_v37  ;;  %v2062_v41 = vld [vmem:[%s4657_s2 + $0x180] sm:$0xff] }
  0x8a   :  { %1489 = vmatmul.mubr.bf16.gmra.mrb[4].mxu1 %v3269_v43  ;;  %2767 = vmatprep.subr.bf16.mxu1 %v4062_v39  ;;  %v2027_v43 = vld [vmem:[%s4657_s2 + $0x68] sm:$0xff] }
  0x8b   :  { %1715 = vmatmul.mubr.bf16.gmra.mrb[4].mxu0 %v3270_v44  ;;  %1498 = vmatprep.mubr.bf16.mxu1 %v3274_v45  ;;  %v2029_v44 = vld [vmem:[%s4657_s2 + $0x78] sm:$0xff]  ;;  %4687 = vst [vmem:[#allocation9_spill] sm:$0xff] %v4242_v40 }
  0x8c   :  { %1724 = vmatprep.mubr.bf16.mxu0 %v3276_v46  ;;  %1790 = vmatpush1.bf16.msra.mxu0 %v3280_v47  ;;  %v4080_v45 = vpack.c.bf16 %v2029_v44, %v2027_v43  ;;  %v2026_v46 = vld [vmem:[%s4657_s2 + $0x60] sm:$0xff]  ;;  %v2028_v47 = vld [vmem:[%s4657_s2 + $0x70] sm:$0xff] }
  0x8d   :  { %1791 = vmatprep.subr.bf16.mxu0 %v3291_v48  ;;  %2769 = vmatpush1.bf16.msra.mxu1 %v4070_v42  ;;  %v4088_v48 = vpack.c.bf16 %v2028_v47, %v2026_v46  ;;  %v2064_v43 = vld [vmem:[%s4657_s2 + $0x190] sm:$0xff]  ;;  %v2067_v46 = vld [vmem:[%s4657_s2 + $0x1a8] sm:$0xff]  ;;  %v2069_v47 = vld [vmem:[%s4657_s2 + $0x1b8] sm:$0xff] }
  0x8e   :  { %2771 = vmatprep.subr.bf16.mxu1 %v4080_v45  ;;  %v4250_v44 = vpack.c.bf16 %v2064_v43, %v2062_v41 }
  0x90   :  { %1792 = vmatpush1.bf16.msra.mxu0 %v3289_v51  ;;  %4688 = vst [vmem:[#allocation10_spill] sm:$0xff] %v4250_v44 }
  0x91   :  { %1793 = vmatprep.subr.bf16.mxu0 %v3300_v52  ;;  %2773 = vmatpush1.bf16.msra.mxu1 %v4088_v48  ;;  %v2030_v52 = vld [vmem:[%s4657_s2 + $0x80] sm:$0xff] }
  0x92   :  { %1499 = vmatmul.mubr.bf16.gmra.mrb[8].mxu1 %v3278_v49  ;;  %v2031_v49 = vld [vmem:[%s4657_s2 + $0x88] sm:$0xff] }
  0x93   :  { %1725 = vmatmul.mubr.bf16.gmra.mrb[8].mxu0 %v3279_v50  ;;  %1508 = vmatprep.mubr.bf16.mxu1 %v3283_v53  ;;  %v2033_v50 = vld [vmem:[%s4657_s2 + $0x98] sm:$0xff]  ;;  %v2032_v53 = vld [vmem:[%s4657_s2 + $0x90] sm:$0xff] }
  0x94   :  { %1734 = vmatprep.mubr.bf16.mxu0 %v3285_v54  ;;  %1794 = vmatpush1.bf16.msra.mxu0 %v3298_v55  ;;  %v4098_v51 = vpack.c.bf16 %v2033_v50, %v2031_v49  ;;  %v4106_v54 = vpack.c.bf16 %v2032_v53, %v2030_v52  ;;  %v2035_v55 = vld [vmem:[%s4657_s2 + $0xa8] sm:$0xff]  ;;  %v4260_v49 = vpack.c.bf16 %v2069_v47, %v2067_v46  ;;  %v2066_v50 = vld [vmem:[%s4657_s2 + $0x1a0] sm:$0xff]  ;;  %v2068_v52 = vld [vmem:[%s4657_s2 + $0x1b0] sm:$0xff] }
  0x95   :  { %1795 = vmatprep.subr.bf16.mxu0 %v3309_v56  ;;  %v2037_v56 = vld [vmem:[%s4657_s2 + $0xb8] sm:$0xff]  ;;  %v4268_v53 = vpack.c.bf16 %v2068_v52, %v2066_v50 }
  0x96   :  { %2775 = vmatprep.subr.bf16.mxu1 %v4098_v51  ;;  %4689 = vst [vmem:[#allocation11_spill] sm:$0xff] %v4260_v49 }
  0x97   :  { %2777 = vmatpush1.bf16.msra.mxu1 %v4106_v54  ;;  %4690 = vst [vmem:[#allocation12_spill] sm:$0xff] %v4268_v53 }
  0x98   :  { %1796 = vmatpush1.bf16.msra.mxu0 %v3307_v57  ;;  %v4116_v57 = vpack.c.bf16 %v2037_v56, %v2035_v55 }
  0x99   :  { %1797 = vmatprep.subr.bf16.mxu0 %v3318_v58  ;;  %v2034_v58 = vld [vmem:[%s4657_s2 + $0xa0] sm:$0xff] }
  0x9a   :  { %1509 = vmatmul.mubr.bf16.gmra.mrb[12].mxu1 %v3287_v59  ;;  %v2036_v59 = vld [vmem:[%s4657_s2 + $0xb0] sm:$0xff]  ;;  %2779 = vmatprep.subr.bf16.mxu1 %v4116_v57 }
  0x9b   :  { %1735 = vmatmul.mubr.bf16.gmra.mrb[12].mxu0 %v3288_v60  ;;  %1518 = vmatprep.mubr.bf16.mxu1 %v3292_v61  ;;  %v4124_v60 = vpack.c.bf16 %v2036_v59, %v2034_v58  ;;  %v2039_v61 = vld [vmem:[%s4657_s2 + $0xc8] sm:$0xff]  ;;  %v2073_v59 = vld [vmem:[%s4657_s2 + $0x1d8] sm:$0xff] }
  0x9c   :  { %1744 = vmatprep.mubr.bf16.mxu0 %v3294_v62  ;;  %1798 = vmatpush1.bf16.msra.mxu0 %v3316_v63  ;;  %v2041_v62 = vld [vmem:[%s4657_s2 + $0xd8] sm:$0xff]  ;;  %v2071_v58 = vld [vmem:[%s4657_s2 + $0x1c8] sm:$0xff] }
  0x9d   :  { %1799 = vmatprep.subr.bf16.mxu0 %v3327_v0  ;;  %2781 = vmatpush1.bf16.msra.mxu1 %v4124_v60  ;;  %v4134_v63 = vpack.c.bf16 %v2041_v62, %v2039_v61  ;;  %v2038_v0 = vld [vmem:[%s4657_s2 + $0xc0] sm:$0xff]  ;;  %v4278_v62 = vpack.c.bf16 %v2073_v59, %v2071_v58 }
  0x9f   :  { %2783 = vmatprep.subr.bf16.mxu1 %v4134_v63  ;;  %4691 = vst [vmem:[#allocation13_spill] sm:$0xff] %v4278_v62 }
  0xa0   :  { %1800 = vmatpush1.bf16.msra.mxu0 %v3325_v1  ;;  %v2040_v1 = vld [vmem:[%s4657_s2 + $0xd0] sm:$0xff] }
  0xa2   :  { %1519 = vmatmul.mubr.bf16.gmra.mrb[16].mxu1 %v3296_v2  ;;  %v4142_v2 = vpack.c.bf16 %v2040_v1, %v2038_v0  ;;  %v2070_v0 = vld [vmem:[%s4657_s2 + $0x1c0] sm:$0xff]  ;;  %v2072_v1 = vld [vmem:[%s4657_s2 + $0x1d0] sm:$0xff] }
  0xa3   :  { %1745 = vmatmul.mubr.bf16.gmra.mrb[16].mxu0 %v3297_v3  ;;  %1528 = vmatprep.mubr.bf16.mxu1 %v3301_v4  ;;  %v2043_v3 = vld [vmem:[%s4657_s2 + $0xe8] sm:$0xff]  ;;  %v2045_v4 = vld [vmem:[%s4657_s2 + $0xf8] sm:$0xff] }
  0xa4   :  { %1754 = vmatprep.mubr.bf16.mxu0 %v3303_v5  ;;  %2785 = vmatpush1.bf16.msra.mxu1 %v4142_v2  ;;  %v4152_v5 = vpack.c.bf16 %v2045_v4, %v2043_v3  ;;  %v4286_v4 = vpack.c.bf16 %v2072_v1, %v2070_v0 }
  0xa6   :  { %2787 = vmatprep.subr.bf16.mxu1 %v4152_v5  ;;  %4692 = vst [vmem:[#allocation14_spill] sm:$0xff] %v4286_v4 }
  0xaa   :  { %1529 = vmatmul.mubr.bf16.gmra.mrb[20].mxu1 %v3305_v6  ;;  %v2042_v6 = vld [vmem:[%s4657_s2 + $0xe0] sm:$0xff] }
  0xab   :  { %1755 = vmatmul.mubr.bf16.gmra.mrb[20].mxu0 %v3306_v7  ;;  %1538 = vmatprep.mubr.bf16.mxu1 %v3310_v8  ;;  %v2044_v7 = vld [vmem:[%s4657_s2 + $0xf0] sm:$0xff] }
  0xac   :  { %1764 = vmatprep.mubr.bf16.mxu0 %v3312_v9  ;;  %v4160_v8 = vpack.c.bf16 %v2044_v7, %v2042_v6  ;;  %v2047_v9 = vld [vmem:[%s4657_s2 + $0x108] sm:$0xff]  ;;  %v2077_v7 = vld [vmem:[%s4657_s2 + $0x1f8] sm:$0xff] }
  0xad   :  { %v2075_v6 = vld [vmem:[%s4657_s2 + $0x1e8] sm:$0xff] }
  0xae   :  { %2789 = vmatpush1.bf16.msra.mxu1 %v4160_v8 }
  0xb2   :  { %1539 = vmatmul.mubr.bf16.gmra.mrb[24].mxu1 %v3314_v10  ;;  %v2049_v10 = vld [vmem:[%s4657_s2 + $0x118] sm:$0xff] }
  0xb3   :  { %1765 = vmatmul.mubr.bf16.gmra.mrb[24].mxu0 %v3315_v11  ;;  %1548 = vmatprep.mubr.bf16.mxu1 %v3319_v12  ;;  %v4170_v11 = vpack.c.bf16 %v2049_v10, %v2047_v9  ;;  %v2046_v12 = vld [vmem:[%s4657_s2 + $0x100] sm:$0xff]  ;;  %v4296_v9 = vpack.c.bf16 %v2077_v7, %v2075_v6 }
  0xb4   :  { %1774 = vmatprep.mubr.bf16.mxu0 %v3321_v13  ;;  %v2048_v13 = vld [vmem:[%s4657_s2 + $0x110] sm:$0xff]  ;;  %v2074_v10 = vld [vmem:[%s4657_s2 + $0x1e0] sm:$0xff] }
  0xb5   :  { %2791 = vmatprep.subr.bf16.mxu1 %v4170_v11  ;;  %4693 = vst [vmem:[#allocation15_spill] sm:$0xff] %v4296_v9 }
  0xba   :  { %1549 = vmatmul.mubr.bf16.gmra.mrb[28].mxu1 %v3323_v14  ;;  %v4178_v14 = vpack.c.bf16 %v2048_v13, %v2046_v12  ;;  %v2076_v12 = vld [vmem:[%s4657_s2 + $0x1f0] sm:$0xff] }
  0xbb   :  { %1775 = vmatmul.mubr.bf16.gmra.mrb[28].mxu0 %v3324_v15  ;;  %v2051_v15 = vld [vmem:[%s4657_s2 + $0x128] sm:$0xff]  ;;  %v4304_v13 = vpack.c.bf16 %v2076_v12, %v2074_v10 }
  0xbc   :  { %1817 = vmatprep.mubr.bf16.mxu0 %v3340_v16  ;;  %4680 = vst [vmem:[#allocation2_spill] sm:$0xff] %v4178_v14  ;;  %2793 = vmatpush1.bf16.msra.mxu1 %v4178_v14 }
  0xbd   :  { %4694 = vst [vmem:[#allocation16_spill] sm:$0xff] %v4304_v13 }
  0xc3   :  { %1818 = vmatmul.mubr.bf16.vlgmr.msra.gmra.mrb[0].mxu0 %v3328_v17 }
  0xc4   :  { %1827 = vmatprep.mubr.bf16.mxu0 %v3340_v16 }
  0xcb   :  { %1828 = vmatmul.mubr.bf16.gmra.mrb[4].mxu0 %v3329_v18  ;;  %v2050_v18 = vld [vmem:[%s4657_s2 + $0x120] sm:$0xff] }
  0xcc   :  { %1837 = vmatprep.mubr.bf16.mxu0 %v3340_v16 }
  0xd3   :  { %1838 = vmatmul.mubr.bf16.gmra.mrb[8].mxu0 %v3330_v19  ;;  %v2052_v19 = vld [vmem:[%s4657_s2 + $0x130] sm:$0xff] }
  0xd4   :  { %1847 = vmatprep.mubr.bf16.mxu0 %v3340_v16 }
  0xdb   :  { %1848 = vmatmul.mubr.bf16.gmra.mrb[12].mxu0 %v3331_v20  ;;  %v4196_v20 = vpack.c.bf16 %v2052_v19, %v2050_v18 }
  0xdc   :  { %1857 = vmatprep.mubr.bf16.mxu0 %v3340_v16 }
  0xdd   :  { %4682 = vst [vmem:[#allocation4_spill] sm:$0xff] %v4196_v20 }
  0xe3   :  { %1858 = vmatmul.mubr.bf16.gmra.mrb[16].mxu0 %v3332_v21  ;;  %v2055_v21 = vld [vmem:[%s4657_s2 + $0x148] sm:$0xff] }
  0xe4   :  { %1867 = vmatprep.mubr.bf16.mxu0 %v3340_v16 }
  0xeb   :  { %1868 = vmatmul.mubr.bf16.gmra.mrb[20].mxu0 %v3333_v22  ;;  %v2057_v22 = vld [vmem:[%s4657_s2 + $0x158] sm:$0xff] }
  0xec   :  { %1877 = vmatprep.mubr.bf16.mxu0 %v3340_v16 }
  0xf3   :  { %1878 = vmatmul.mubr.bf16.gmra.mrb[24].mxu0 %v3334_v23  ;;  %v4206_v23 = vpack.c.bf16 %v2057_v22, %v2055_v21 }
  0xf4   :  { %1887 = vmatprep.mubr.bf16.mxu0 %v3340_v16  ;;  %v2053_v16 = vld [vmem:[%s4657_s2 + $0x138] sm:$0xff] }
  0xf5   :  { %v4188_v17 = vpack.c.bf16 %v2053_v16, %v2051_v15  ;;  %4683 = vst [vmem:[#allocation5_spill] sm:$0xff] %v4206_v23 }
  0xf7   :  { %4681 = vst [vmem:[#allocation3_spill] sm:$0xff] %v4188_v17  ;;  %2795 = vmatprep.subr.bf16.mxu1 %v4188_v17 }
  0xf8   :  { %2797 = vmatpush1.bf16.msra.mxu1 %v4196_v20 }
  0xf9   :  { %2799 = vmatprep.subr.bf16.mxu1 %v4206_v23 }
  0xfb   :  { %1888 = vmatmul.mubr.bf16.gmra.mrb[28].mxu0 %v3335_v24  ;;  %v2054_v24 = vld [vmem:[%s4657_s2 + $0x140] sm:$0xff] }
  0xfc   :  { %v4214_v26 = vpack.c.bf16 %v2056_v25, %v2054_v24 }
  0xfe   :  { %4684 = vst [vmem:[#allocation6_spill] sm:$0xff] %v4214_v26  ;;  %2801 = vmatpush1.bf16.msra.mxu1 %v4214_v26 }
  0xff   :  { %2803 = vmatprep.subr.bf16.mxu1 %v4224_v31 }
 0x102   :  { %2805 = vmatpush1.bf16.msra.mxu1 %v4232_v35 }
 0x103   :  { %2807 = vmatprep.subr.bf16.mxu1 %v4242_v40 }
 0x106   :  { %2809 = vmatpush1.bf16.msra.mxu1 %v4250_v44 }
 0x107   :  { %2811 = vmatprep.subr.bf16.mxu1 %v4260_v49 }
 0x10a   :  { %2813 = vmatpush1.bf16.msra.mxu1 %v4268_v53 }
 0x10b   :  { %2815 = vmatprep.subr.bf16.mxu1 %v4278_v62 }
 0x10e   :  { %2817 = vmatpush1.bf16.msra.mxu1 %v4286_v4 }
 0x10f   :  { %2819 = vmatprep.subr.bf16.mxu1 %v4296_v9 }
 0x112   :  { %2821 = vmatpush1.bf16.msra.mxu1 %v4304_v13 }
 0x113   :  { %2823 = vmatprep.subr.bf16.mxu1 %v4026_v27 }
 0x155   :  { %v1480_v55 = vpop.f32.mrb[0].mxu1 }
 0x156   :  { %v1482_v56 = vpop.f32.mrb[1].mxu1 }
 0x157   :  { %v1484_v61 = vpop.f32.mrb[2].mxu1 }
 0x158   :  { %v1486_v3 = vpop.f32.mrb[3].mxu1 }
 0x15d   :  { %v1490_v15 = vpop.f32.mrb[4].mxu1 }
 0x15e   :  { %v1492_v16 = vpop.f32.mrb[5].mxu1 }
 0x15f   :  { %v1494_v18 = vpop.f32.mrb[6].mxu1 }
 0x160   :  { %v1496_v19 = vpop.f32.mrb[7].mxu1 }
 0x165   :  { %v1500_v21 = vpop.f32.mrb[8].mxu1 }
 0x166   :  { %v1502_v22 = vpop.f32.mrb[9].mxu1 }
 0x167   :  { %v1504_v24 = vpop.f32.mrb[10].mxu1 }
 0x168   :  { %v1506_v25 = vpop.f32.mrb[11].mxu1 }
 0x16d   :  { %v1510_v28 = vpop.f32.mrb[12].mxu1 }
 0x16e   :  { %v1512_v29 = vpop.f32.mrb[13].mxu1 }
 0x16f   :  { %v1514_v32 = vpop.f32.mrb[14].mxu1 }
 0x170   :  { %v1516_v34 = vpop.f32.mrb[15].mxu1 }
 0x175   :  { %v4309_v37 = vpop.f32.mrb[16].mxu1 }
 0x176   :  { %v4311_v38 = vpop.f32.mrb[17].mxu1 }
 0x177   :  { %v4313_v41 = vpop.f32.mrb[18].mxu1 }
 0x178   :  { %v4315_v43 = vpop.f32.mrb[19].mxu1 }
 0x17d   :  { %v4317_v46 = vpop.f32.mrb[20].mxu1 }
 0x17e   :  { %v4319_v27 = vpop.f32.mrb[21].mxu1 }
 0x17f   :  { %v4321_v47 = vpop.f32.mrb[22].mxu1 }
 0x180   :  { %v4323_v50 = vpop.f32.mrb[23].mxu1 }
 0x185   :  { %v4325_v52 = vpop.f32.mrb[24].mxu1 }
 0x186   :  { %v4327_v58 = vpop.f32.mrb[25].mxu1 }
 0x187   :  { %v4329_v59 = vpop.f32.mrb[26].mxu1 }
 0x188   :  { %v4331_v0 = vpop.f32.mrb[27].mxu1 }
 0x18d   :  { %v4333_v1 = vpop.f32.mrb[28].mxu1 }
 0x18e   :  { %v4335_v6 = vpop.f32.mrb[29].mxu1 }
 0x18f   :  { %v4337_v7 = vpop.f32.mrb[30].mxu1 }
 0x190   :  { %v4339_v10 = vpop.f32.mrb[31].mxu1 }
 0x196   :  { %v1819_v12 = vpop.f32.mrb[0].mxu0 }
 0x197   :  { %v4341_v13 = vadd.f32 %v1819_v12, %v1480_v55  ;;  %v1821_v9 = vpop.f32.mrb[1].mxu0 }
 0x198   :  { %v4343_v4 = vadd.f32 %v1821_v9, %v1482_v56  ;;  %v1823_v62 = vpop.f32.mrb[2].mxu0 }
 0x199   :  { %v4345_v53 = vadd.f32 %v1823_v62, %v1484_v61  ;;  %v1825_v49 = vpop.f32.mrb[3].mxu0 }
 0x19a   :  { %4695 = vst [vmem:[#allocation17_spill] sm:$0xff] %v4343_v4  ;;  %v4347_v44 = vadd.f32 %v1825_v49, %v1486_v3 }
 0x19c   :  { %4696 = vst [vmem:[#allocation18_spill] sm:$0xff] %v4347_v44 }
 0x19e   :  { %v1829_v40 = vpop.f32.mrb[4].mxu0 }
 0x19f   :  { %v4349_v35 = vadd.f32 %v1829_v40, %v1490_v15  ;;  %v1831_v31 = vpop.f32.mrb[5].mxu0 }
 0x1a0   :  { %v4351_v26 = vadd.f32 %v1831_v31, %v1492_v16  ;;  %v1833_v23 = vpop.f32.mrb[6].mxu0  ;;  %v1943_v31 = vmul.f32 %v4347_v44, %v4347_v44  ;;  %v1941_v16 = vmul.f32 %v4343_v4, %v4343_v4 }
 0x1a1   :  { %v4353_v20 = vadd.f32 %v1833_v23, %v1494_v18  ;;  %v1835_v55 = vpop.f32.mrb[7].mxu0  ;;  %v1898_v23 = vadd.f32 %v4345_v53, %v4341_v13  ;;  %v1919_v18 = vadd.f32 %v4347_v44, %v4343_v4 }
 0x1a2   :  { %v4355_v12 = vadd.f32 %v1835_v55, %v1496_v19  ;;  %v1945_v19 = vmul.f32 %v4351_v26, %v4351_v26 }
 0x1a6   :  { %v1839_v56 = vpop.f32.mrb[8].mxu0 }
 0x1a7   :  { %v4357_v9 = vadd.f32 %v1839_v56, %v1500_v21  ;;  %v1841_v61 = vpop.f32.mrb[9].mxu0  ;;  %v1899_v21 = vadd.f32 %v4349_v35, %v1898_v23 }
 0x1a8   :  { %v4359_v62 = vadd.f32 %v1841_v61, %v1502_v22  ;;  %v1843_v49 = vpop.f32.mrb[10].mxu0  ;;  %v1993_v22 = vadd.f32 %v1943_v31, %v1941_v16 }
 0x1a9   :  { %v4361_v3 = vadd.f32 %v1843_v49, %v1504_v24  ;;  %v1845_v40 = vpop.f32.mrb[11].mxu0  ;;  %v1920_v24 = vadd.f32 %v4351_v26, %v1919_v18  ;;  %v1947_v49 = vmul.f32 %v4355_v12, %v4355_v12  ;;  %v1900_v44 = vadd.f32 %v4353_v20, %v1899_v21 }
 0x1aa   :  { %v4365_v15 = vadd.f32 %v1845_v40, %v1506_v25  ;;  %v1994_v61 = vadd.f32 %v1993_v22, %v1945_v19  ;;  %v1949_v23 = vmul.f32 %v4359_v62, %v4359_v62 }
 0x1ab   :  { %v1921_v31 = vadd.f32 %v4355_v12, %v1920_v24  ;;  %v1901_v16 = vadd.f32 %v4357_v9, %v1900_v44 }
 0x1ac   :  { %v1995_v18 = vadd.f32 %v1994_v61, %v1947_v49  ;;  %v1951_v22 = vmul.f32 %v4365_v15, %v4365_v15 }
 0x1ad   :  { %v1922_v19 = vadd.f32 %v4359_v62, %v1921_v31 }
 0x1ae   :  { %v1849_v55 = vpop.f32.mrb[12].mxu0 }
 0x1af   :  { %v4377_v25 = vadd.f32 %v1849_v55, %v1510_v28  ;;  %v1851_v56 = vpop.f32.mrb[13].mxu0  ;;  %v1923_v55 = vadd.f32 %v4365_v15, %v1922_v19 }
 0x1b0   :  { %v4381_v40 = vadd.f32 %v1851_v56, %v1512_v29  ;;  %v1853_v17 = vpop.f32.mrb[14].mxu0  ;;  %v1996_v29 = vadd.f32 %v1995_v18, %v1949_v23 }
 0x1b1   :  { %v4384_v4 = vadd.f32 %v1853_v17, %v1514_v32  ;;  %v1855_v14 = vpop.f32.mrb[15].mxu0  ;;  %v1902_v17 = vadd.f32 %v4361_v3, %v1901_v16 }
 0x1b2   :  { %v4389_v28 = vadd.f32 %v1855_v14, %v1516_v34  ;;  %v1953_v14 = vmul.f32 %v4381_v40, %v4381_v40  ;;  %v1997_v31 = vadd.f32 %v1996_v29, %v1951_v22 }
 0x1b3   :  { %v1903_v56 = vadd.f32 %v4377_v25, %v1902_v17 }
 0x1b4   :  { %v1998_v16 = vadd.f32 %v1997_v31, %v1953_v14  ;;  %v1955_v18 = vmul.f32 %v4389_v28, %v4389_v28 }
 0x1b6   :  { %v1859_v21 = vpop.f32.mrb[16].mxu0 }
 0x1b7   :  { %v4397_v32 = vadd.f32 %v1859_v21, %v4309_v37  ;;  %v1861_v24 = vpop.f32.mrb[17].mxu0  ;;  %v1924_v37 = vadd.f32 %v4381_v40, %v1923_v55 }
 0x1b8   :  { %v4403_v44 = vadd.f32 %v1861_v24, %v4311_v38  ;;  %v1863_v34 = vpop.f32.mrb[18].mxu0  ;;  %v1904_v38 = vadd.f32 %v4384_v4, %v1903_v56 }
 0x1b9   :  { %v4407_v61 = vadd.f32 %v1863_v34, %v4313_v41  ;;  %v1865_v49 = vpop.f32.mrb[19].mxu0  ;;  %v1925_v19 = vadd.f32 %v4389_v28, %v1924_v37 }
 0x1ba   :  { %v4411_v23 = vadd.f32 %v1865_v49, %v4315_v43  ;;  %v1957_v21 = vmul.f32 %v4403_v44, %v4403_v44  ;;  %v1905_v17 = vadd.f32 %v4397_v32, %v1904_v38  ;;  %v1999_v43 = vadd.f32 %v1998_v16, %v1955_v18 }
 0x1bb   :  { %v1926_v24 = vadd.f32 %v4403_v44, %v1925_v19 }
 0x1bc   :  { %v2000_v49 = vadd.f32 %v1999_v43, %v1957_v21  ;;  %v1959_v31 = vmul.f32 %v4411_v23, %v4411_v23 }
 0x1bd   :  { %v1927_v16 = vadd.f32 %v4411_v23, %v1926_v24 }
 0x1be   :  { %v1869_v41 = vpop.f32.mrb[20].mxu0  ;;  %v2001_v38 = vadd.f32 %v2000_v49, %v1959_v31 }
 0x1bf   :  { %v4421_v29 = vadd.f32 %v1869_v41, %v4317_v46  ;;  %v1871_v22 = vpop.f32.mrb[21].mxu0  ;;  %v1906_v46 = vadd.f32 %v4407_v61, %v1905_v17 }
 0x1c0   :  { %v4425_v55 = vadd.f32 %v1871_v22, %v4319_v27  ;;  %v1873_v14 = vpop.f32.mrb[22].mxu0 }
 0x1c1   :  { %v4428_v34 = vadd.f32 %v1873_v14, %v4321_v47  ;;  %v1875_v56 = vpop.f32.mrb[23].mxu0  ;;  %v1907_v18 = vadd.f32 %v4421_v29, %v1906_v46 }
 0x1c2   :  { %v4433_v37 = vadd.f32 %v1875_v56, %v4323_v50  ;;  %v1961_v27 = vmul.f32 %v4425_v55, %v4425_v55  ;;  %v1928_v47 = vadd.f32 %v4425_v55, %v1927_v16 }
 0x1c3   :  { %v1908_v24 = vadd.f32 %v4428_v34, %v1907_v18 }
 0x1c4   :  { %v2002_v22 = vadd.f32 %v2001_v38, %v1961_v27  ;;  %v1963_v50 = vmul.f32 %v4433_v37, %v4433_v37  ;;  %v1929_v49 = vadd.f32 %v4433_v37, %v1928_v47 }
 0x1c6   :  { %v1879_v19 = vpop.f32.mrb[24].mxu0  ;;  %v2003_v16 = vadd.f32 %v2002_v22, %v1963_v50 }
 0x1c7   :  { %v4442_v21 = vadd.f32 %v1879_v19, %v4325_v52  ;;  %v1881_v41 = vpop.f32.mrb[25].mxu0 }
 0x1c8   :  { %v4447_v17 = vadd.f32 %v1881_v41, %v4327_v58  ;;  %v1883_v43 = vpop.f32.mrb[26].mxu0 }
 0x1c9   :  { %v4451_v14 = vadd.f32 %v1883_v43, %v4329_v59  ;;  %v1885_v56 = vpop.f32.mrb[27].mxu0  ;;  %v1909_v46 = vadd.f32 %v4442_v21, %v1908_v24 }
 0x1ca   :  { %v1965_v52 = vmul.f32 %v4447_v17, %v4447_v17  ;;  %v4457_v31 = vadd.f32 %v1885_v56, %v4331_v0  ;;  %v1930_v58 = vadd.f32 %v4447_v17, %v1929_v49 }
 0x1cb   :  { %v1910_v38 = vadd.f32 %v4451_v14, %v1909_v46 }
 0x1cc   :  { %v2004_v27 = vadd.f32 %v2003_v16, %v1965_v52  ;;  %v1967_v18 = vmul.f32 %v4457_v31, %v4457_v31  ;;  %v1931_v41 = vadd.f32 %v4457_v31, %v1930_v58 }
 0x1ce   :  { %v1889_v59 = vpop.f32.mrb[28].mxu0  ;;  %v2005_v56 = vadd.f32 %v2004_v27, %v1967_v18 }
 0x1cf   :  { %v4465_v47 = vadd.f32 %v1889_v59, %v4333_v1  ;;  %v1891_v19 = vpop.f32.mrb[29].mxu0 }
 0x1d0   :  { %v4469_v0 = vadd.f32 %v1891_v19, %v4335_v6  ;;  %v1893_v43 = vpop.f32.mrb[30].mxu0 }
 0x1d1   :  { %v1911_v22 = vadd.f32 %v4465_v47, %v1910_v38  ;;  %v4473_v50 = vadd.f32 %v1893_v43, %v4337_v7  ;;  %v1895_v24 = vpop.f32.mrb[31].mxu0 }
 0x1d2   :  { %4697 = vst [vmem:[#allocation19_spill] sm:$0xff] %v4469_v0  ;;  %v1932_v49 = vadd.f32 %v4469_v0, %v1931_v41  ;;  %v1969_v1 = vmul.f32 %v4469_v0, %v4469_v0  ;;  %v4479_v52 = vadd.f32 %v1895_v24, %v4339_v10  ;;  %v1942_v10 = vmul.f32 %v4345_v53, %v4345_v53 }
 0x1d3   :  { %v1912_v46 = vadd.f32 %v4473_v50, %v1911_v22 }
 0x1d4   :  { %4698 = vst [vmem:[#allocation20_spill] sm:$0xff] %v4479_v52  ;;  %v2006_v6 = vadd.f32 %v2005_v56, %v1969_v1  ;;  %v1933_v16 = vadd.f32 %v4479_v52, %v1932_v49  ;;  %v1971_v58 = vmul.f32 %v4479_v52, %v4479_v52  ;;  %v1940_v49 = vmul.f32 %v4341_v13, %v4341_v13 }
 0x1d5   :  { %v1913_v7 = vrot.slane %v1912_v46, 4  ;;  %v1944_v1 = vmul.f32 %v4349_v35, %v4349_v35 }
 0x1d6   :  { %v1934_v59 = vrot.slane %v1933_v16, 4  ;;  %v2007_v38 = vadd.f32 %v2006_v6, %v1971_v58 }
 0x1d7   :  { %v1914_v27 = vadd.f32 %v1913_v7, %v1912_v46 }
 0x1d8   :  { %v1935_v18 = vadd.f32 %v1934_v59, %v1933_v16  ;;  %v2008_v19 = vrot.slane %v2007_v38, 4  ;;  %v1972_v16 = vadd.f32 %v1942_v10, %v1940_v49 }
 0x1d9   :  { %v1915_v41 = vrot.slane %v1914_v27, 2 }
 0x1da   :  { %v1936_v43 = vrot.slane %v1935_v18, 2  ;;  %v2009_v0 = vadd.f32 %v2008_v19, %v2007_v38  ;;  %v1973_v59 = vadd.f32 %v1972_v16, %v1944_v1  ;;  %v1946_v38 = vmul.f32 %v4353_v20, %v4353_v20  ;;  %v4699_v1 = vld [vmem:[#allocation2_spill] sm:$0xff] }
 0x1db   :  { %v1916_v24 = vadd.f32 %v1915_v41, %v1914_v27 }
 0x1dc   :  { %v1937_v22 = vadd.f32 %v1936_v43, %v1935_v18  ;;  %v2010_v56 = vrot.slane %v2009_v0, 2  ;;  %v1948_v18 = vmul.f32 %v4357_v9, %v4357_v9  ;;  %v1974_v41 = vadd.f32 %v1973_v59, %v1946_v38  ;;  %v4704_v59 = vld [vmem:[#allocation7_spill] sm:$0xff] }
 0x1dd   :  { %v1917_v52 = vrot.slane %v1916_v24, 1  ;;  %v1950_v43 = vmul.f32 %v4361_v3, %v4361_v3 }
 0x1de   :  { %v1938_v6 = vrot.slane %v1937_v22, 1  ;;  %v2011_v46 = vadd.f32 %v2010_v56, %v2009_v0  ;;  %v1975_v0 = vadd.f32 %v1974_v41, %v1948_v18  ;;  %v4708_v41 = vld [vmem:[#allocation11_spill] sm:$0xff] }
 0x1df   :  { %v1918_v19 = vadd.f32 %v1917_v52, %v1916_v24  ;;  %v1952_v52 = vmul.f32 %v4377_v25, %v4377_v25 }
 0x1e0   :  { %v1939_v58 = vadd.f32 %v1938_v6, %v1937_v22  ;;  %v2012_v7 = vrot.slane %v2011_v46, 1  ;;  %v1976_v10 = vadd.f32 %v1975_v0, %v1950_v43  ;;  %v4709_v0 = vld [vmem:[#allocation12_spill] sm:$0xff]  ;;  %v4710_v43 = vld [vmem:[#allocation13_spill] sm:$0xff] }
 0x1e2   :  { %2142 = vmatprep.mubr.f32.mxu1 %v1939_v58  ;;  %v2013_v27 = vadd.f32 %v2012_v7, %v2011_v46  ;;  %v1977_v24 = vadd.f32 %v1976_v10, %v1952_v52  ;;  %v4700_v46 = vld [vmem:[#allocation3_spill] sm:$0xff]  ;;  %v4702_v58 = vld [vmem:[#allocation5_spill] sm:$0xff]  ;;  %v4711_v10 = vld [vmem:[#allocation14_spill] sm:$0xff] }
 0x1e3   :  { %2143 = vmatmul.mubr.f32.vlgmr.msra.gmra.mrb[32].mxu1 %v1918_v19  ;;  %v4706_v19 = vld [vmem:[#allocation9_spill] sm:$0xff] }
 0x1e4   :  { %2825 = vmatpush1.bf16.msra.mxu1 %v4034_v30  ;;  %2213 = vmatprep.mubr.f32.mxu1 %v2013_v27  ;;  %v1954_v30 = vmul.f32 %v4384_v4, %v4384_v4  ;;  %v4707_v27 = vld [vmem:[#allocation10_spill] sm:$0xff] }
 0x1e5   :  { %2827 = vmatprep.subr.bf16.mxu1 %v4044_v33  ;;  %v1956_v33 = vmul.f32 %v4397_v32, %v4397_v32 }
 0x1e8   :  { %2829 = vmatpush1.bf16.msra.mxu1 %v4052_v36  ;;  %v1978_v36 = vadd.f32 %v1977_v24, %v1954_v30  ;;  %v4712_v24 = vld [vmem:[#allocation15_spill] sm:$0xff] }
 0x1e9   :  { %2831 = vmatprep.subr.bf16.mxu1 %v4062_v39  ;;  %v1958_v39 = vmul.f32 %v4407_v61, %v4407_v61 }
 0x1ea   :  { %v1979_v22 = vadd.f32 %v1978_v36, %v1956_v33  ;;  %v4713_v33 = vld [vmem:[#allocation16_spill] sm:$0xff] }
 0x1ec   :  { %2833 = vmatpush1.bf16.msra.mxu1 %v4070_v42  ;;  %v1960_v42 = vmul.f32 %v4421_v29, %v4421_v29 }
 0x1ed   :  { %2835 = vmatprep.subr.bf16.mxu1 %v4080_v45  ;;  %v1980_v45 = vadd.f32 %v1979_v22, %v1958_v39 }
 0x1ef   :  { %v1981_v56 = vadd.f32 %v1980_v45, %v1960_v42 }
 0x1f0   :  { %2837 = vmatpush1.bf16.msra.mxu1 %v4088_v48  ;;  %v1962_v48 = vmul.f32 %v4428_v34, %v4428_v34 }
 0x1f1   :  { %2839 = vmatprep.subr.bf16.mxu1 %v4098_v51  ;;  %v1964_v51 = vmul.f32 %v4442_v21, %v4442_v21 }
 0x1f4   :  { %2841 = vmatpush1.bf16.msra.mxu1 %v4106_v54  ;;  %v1982_v54 = vadd.f32 %v1981_v56, %v1962_v48 }
 0x1f5   :  { %2843 = vmatprep.subr.bf16.mxu1 %v4116_v57  ;;  %v1966_v57 = vmul.f32 %v4451_v14, %v4451_v14 }
 0x1f6   :  { %v1983_v49 = vadd.f32 %v1982_v54, %v1964_v51 }
 0x1f8   :  { %2845 = vmatpush1.bf16.msra.mxu1 %v4124_v60  ;;  %v1968_v60 = vmul.f32 %v4465_v47, %v4465_v47 }
 0x1f9   :  { %2847 = vmatprep.subr.bf16.mxu1 %v4134_v63  ;;  %v1984_v63 = vadd.f32 %v1983_v49, %v1966_v57 }
 0x1fb   :  { %v1985_v6 = vadd.f32 %v1984_v63, %v1968_v60 }
 0x1fc   :  { %2849 = vmatpush1.bf16.msra.mxu1 %v4142_v2  ;;  %v1970_v2 = vmul.f32 %v4473_v50, %v4473_v50 }
 0x1fd   :  { %2851 = vmatprep.subr.bf16.mxu1 %v4152_v5  ;;  %v4701_v5 = vld [vmem:[#allocation4_spill] sm:$0xff] }
 0x1fe   :  { %v1986_v16 = vadd.f32 %v1985_v6, %v1970_v2 }
 0x200   :  { %2853 = vmatpush1.bf16.msra.mxu1 %v4160_v8  ;;  %v4703_v8 = vld [vmem:[#allocation6_spill] sm:$0xff]  ;;  %v1987_v7 = vrot.slane %v1986_v16, 4 }
 0x201   :  { %2855 = vmatprep.subr.bf16.mxu1 %v4170_v11  ;;  %v4705_v11 = vld [vmem:[#allocation8_spill] sm:$0xff] }
 0x202   :  { %v1988_v38 = vadd.f32 %v1987_v7, %v1986_v16 }
 0x204   :  { %2857 = vmatpush1.bf16.msra.mxu1 %v4699_v1  ;;  %v1989_v18 = vrot.slane %v1988_v38, 2 }
 0x205   :  { %2859 = vmatprep.subr.bf16.mxu1 %v4700_v46 }
 0x206   :  { %v1990_v52 = vadd.f32 %v1989_v18, %v1988_v38  ;;  %v2230_v18 = vld [vmem:[%s4658_s3] sm:$0x3] }
 0x208   :  { %2861 = vmatpush1.bf16.msra.mxu1 %v4701_v5  ;;  %v1991_v30 = vrot.slane %v1990_v52, 1  ;;  %v3341_v5 = vmov 1966171168  }
 0x209   :  { %2863 = vmatprep.subr.bf16.mxu1 %v4702_v58  ;;  %v2239_v16 = vunpack.c.l.s4 %v3341_v5  ;;  %v2241_v58 = vlaneseq }
 0x20a   :  { %v1992_v36 = vadd.f32 %v1991_v30, %v1990_v52 }
 0x20b   :  { %v2242_v7 = vshrl.u32 %v2241_v58, 7 }
 0x20c   :  { %2865 = vmatpush1.bf16.msra.mxu1 %v4703_v8  ;;  %v2240_v8 = vunpack.c.0.s8 %v2239_v16 }
 0x20d   :  { %2867 = vmatprep.subr.bf16.mxu1 %v4704_v59 }
 0x210   :  { %2869 = vmatpush1.bf16.msra.mxu1 %v4705_v11  ;;  %v2243_v11 = vsub.s32 %v2240_v8, %v2242_v7  ;;  %v4716_v8 = vld [vmem:[#allocation19_spill] sm:$0xff] }
 0x211   :  { %2871 = vmatprep.subr.bf16.mxu1 %v4706_v19 }
 0x214   :  { %2873 = vmatpush1.bf16.msra.mxu1 %v4707_v27 }
 0x215   :  { %2875 = vmatprep.subr.bf16.mxu1 %v4708_v41 }
 0x218   :  { %2877 = vmatpush1.bf16.msra.mxu1 %v4709_v0  ;;  %v2258_v0 = vsub.s32 0, %v2242_v7 }
 0x219   :  { %2879 = vmatprep.subr.bf16.mxu1 %v4710_v43  ;;  %v2262_v43 = vsub.s32 1, %v2242_v7  ;;  %v4717_v7 = vld [vmem:[#allocation20_spill] sm:$0xff] }
 0x21c   :  { %2881 = vmatpush1.bf16.msra.mxu1 %v4711_v10 }
 0x21d   :  { %2883 = vmatprep.subr.bf16.mxu1 %v4712_v24 }
 0x220   :  { %2885 = vmatpush1.bf16.msra.mxu1 %v4713_v33 }
 0x223   :  { %2214 = vmatmul.mubr.f32.vlgmr.msra.gmra.mrb[34].mxu1 %v1992_v36 }
 0x2b6   :  { %v2144_v22 = vpop.f32.mrb[32].mxu1 }
 0x2b7   :  { %v2146_v39 = vpop.f32.mrb[33].mxu1  ;;  %v2220_v42 = vmul.f32 0.001953125, %v2144_v22 }
 0x2b8   :  { %v2221_v45 = vmul.f32 0.001953125, %v2146_v39  ;;  %v4714_v39 = vld [vmem:[#allocation17_spill] sm:$0xff] }
 0x2b9   :  { %v2224_v48 = vmul.f32 %v2220_v42, %v2220_v42 }
 0x2ba   :  { %v2225_v49 = vmul.f32 %v2221_v45, %v2221_v45 }
 0x2f6   :  { %v2215_v56 = vpop.f32.mrb[34].mxu1 }
 0x2f7   :  { %v2222_v51 = vmul.f32 0.001953125, %v2215_v56  ;;  %v2217_v54 = vpop.f32.mrb[35].mxu1 }
 0x2f8   :  { %v2223_v57 = vmul.f32 0.001953125, %v2217_v54 }
 0x2f9   :  { %v2226_v60 = vsub.f32 %v2222_v51, %v2224_v48  ;;  %v4715_v51 = vld [vmem:[#allocation18_spill] sm:$0xff] }
 0x2fa   :  { %v2227_v63 = vsub.f32 %v2223_v57, %v2225_v49 }
 0x2fb   :  { %v2228_v1 = vmax.f32 %v2226_v60, 0.0 }
 0x2fc   :  { %v2229_v6 = vmax.f32 %v2227_v63, 0.0 }
 0x2fd   :  { %v2231_v2 = vadd.f32 1e-05, %v2228_v1 }
 0x2fe   :  { %v2232_v46 = vadd.f32 1e-05, %v2229_v6 }
 0x2ff   :  { %3336 = vrsqrt.f32 %v2231_v2 }
 0x300   :  { %3338 = vrsqrt.f32 %v2232_v46 }
 0x309   :  { %v3337_v59 = vpop.eup %3336 }
 0x30a   :  { %v3339_v38 = vpop.eup %3338 }
 0x30b   :  { %v2237_v19 = vcombine.low %v3337_v59, %v3339_v38 }
 0x30d   :  { %v2244_v27 = vrot.slane %v2237_v19, %v2243_v11 }
 0x30f   :  { %v2251_v41 = vrot.slane %v2244_v27, %v2243_v11 }
 0x311   :  { %v2253_v52 = vmul.f32 %v2251_v41, %v2230_v18 }
 0x313   :  { %v2259_v10 = vrot.slane %v2253_v52, %v2258_v0  ;;  %v2263_v24 = vrot.slane %v2253_v52, %v2262_v43 }
 0x315   :  { %v2266_v30 = vmul.f32 %v2259_v10, %v2220_v42  ;;  %v2267_v33 = vmul.f32 %v2263_v24, %v2221_v45  ;;  %v2287_v22 = vmul.f32 %v4341_v13, %v2259_v10  ;;  %v2288_v56 = vmul.f32 %v4714_v39, %v2263_v24  ;;  %v2254_v42 = vld [vmem:[%s4659_s4] sm:$0x3] }
 0x316   :  { %v2289_v48 = vmul.f32 %v4345_v53, %v2259_v10  ;;  %v2290_v54 = vmul.f32 %v4715_v51, %v2263_v24  ;;  %v2291_v49 = vmul.f32 %v4349_v35, %v2259_v10  ;;  %v2292_v60 = vmul.f32 %v4351_v26, %v2263_v24 }
 0x317   :  { %v2270_v36 = vcombine.low %v2266_v30, %v2267_v33  ;;  %v2293_v63 = vmul.f32 %v4353_v20, %v2259_v10  ;;  %v2294_v1 = vmul.f32 %v4355_v12, %v2263_v24  ;;  %v2295_v13 = vmul.f32 %v4357_v9, %v2259_v10 }
 0x318   :  { %v2296_v45 = vmul.f32 %v4359_v62, %v2263_v24  ;;  %v2297_v53 = vmul.f32 %v4361_v3, %v2259_v10  ;;  %v2298_v6 = vmul.f32 %v4365_v15, %v2263_v24  ;;  %v2299_v2 = vmul.f32 %v4377_v25, %v2259_v10 }
 0x319   :  { %v2277_v57 = vrot.slane %v2270_v36, %v2243_v11  ;;  %v2300_v26 = vmul.f32 %v4381_v40, %v2263_v24  ;;  %v2301_v20 = vmul.f32 %v4384_v4, %v2259_v10  ;;  %v2302_v12 = vmul.f32 %v4389_v28, %v2263_v24 }
 0x31a   :  { %v2303_v46 = vmul.f32 %v4397_v32, %v2259_v10  ;;  %v2304_v5 = vmul.f32 %v4403_v44, %v2263_v24  ;;  %v2305_v9 = vmul.f32 %v4407_v61, %v2259_v10  ;;  %v2306_v3 = vmul.f32 %v4411_v23, %v2263_v24 }
 0x31b   :  { %v2284_v35 = vrot.slane %v2277_v57, %v2243_v11  ;;  %v2307_v15 = vmul.f32 %v4421_v29, %v2259_v10  ;;  %v2308_v16 = vmul.f32 %v4425_v55, %v2263_v24  ;;  %v2309_v25 = vmul.f32 %v4428_v34, %v2259_v10 }
 0x31c   :  { %v2310_v40 = vmul.f32 %v4433_v37, %v2263_v24  ;;  %v2311_v4 = vmul.f32 %v4442_v21, %v2259_v10  ;;  %v2312_v28 = vmul.f32 %v4447_v17, %v2263_v24  ;;  %v2313_v32 = vmul.f32 %v4451_v14, %v2259_v10 }
 0x31d   :  { %v2286_v62 = vsub.f32 %v2254_v42, %v2284_v35  ;;  %v2314_v44 = vmul.f32 %v4457_v31, %v2263_v24  ;;  %v2315_v23 = vmul.f32 %v4465_v47, %v2259_v10  ;;  %v2316_v29 = vmul.f32 %v4716_v8, %v2263_v24 }
 0x31e   :  { %v2317_v55 = vmul.f32 %v4473_v50, %v2259_v10  ;;  %v2318_v34 = vmul.f32 %v4717_v7, %v2263_v24 }
 0x31f   :  { %v2323_v61 = vrot.slane %v2286_v62, %v2258_v0  ;;  %v2327_v58 = vrot.slane %v2286_v62, %v2262_v43 }
 0x321   :  { %v4586_v59 = vadd.f32 %v2323_v61, %v2287_v22  ;;  %v4588_v37 = vadd.f32 %v2327_v58, %v2288_v56  ;;  %v4590_v21 = vadd.f32 %v2323_v61, %v2289_v48  ;;  %v4592_v17 = vadd.f32 %v2327_v58, %v2290_v54 }
 0x322   :  { %v4594_v14 = vadd.f32 %v2323_v61, %v2291_v49  ;;  %v4596_v31 = vadd.f32 %v2327_v58, %v2292_v60  ;;  %v4598_v11 = vadd.f32 %v2323_v61, %v2293_v63  ;;  %v2337_v47 = vadd.f32 %v2327_v58, %v2294_v1 }
 0x323   :  { %v2338_v38 = vadd.f32 %v2323_v61, %v2295_v13  ;;  %v2339_v19 = vadd.f32 %v2327_v58, %v2296_v45  ;;  %v2340_v50 = vadd.f32 %v2323_v61, %v2297_v53  ;;  %v2341_v27 = vadd.f32 %v2327_v58, %v2298_v6 }
 0x324   :  { %v2342_v18 = vadd.f32 %v2323_v61, %v2299_v2  ;;  %v2343_v41 = vadd.f32 %v2327_v58, %v2300_v26  ;;  %v2344_v0 = vadd.f32 %v2323_v61, %v2301_v20  ;;  %v2345_v43 = vadd.f32 %v2327_v58, %v2302_v12 }
 0x325   :  { %v2346_v52 = vadd.f32 %v2323_v61, %v2303_v46  ;;  %v2347_v10 = vadd.f32 %v2327_v58, %v2304_v5  ;;  %v2348_v24 = vadd.f32 %v2323_v61, %v2305_v9  ;;  %v2349_v30 = vadd.f32 %v2327_v58, %v2306_v3 }
 0x326   :  { %v2350_v33 = vadd.f32 %v2323_v61, %v2307_v15  ;;  %v2351_v36 = vadd.f32 %v2327_v58, %v2308_v16  ;;  %v2352_v22 = vadd.f32 %v2323_v61, %v2309_v25  ;;  %v2353_v39 = vadd.f32 %v2327_v58, %v2310_v40 }
 0x327   :  { %v2354_v56 = vadd.f32 %v2323_v61, %v2311_v4  ;;  %v2355_v48 = vadd.f32 %v2327_v58, %v2312_v28  ;;  %v2356_v51 = vadd.f32 %v2323_v61, %v2313_v32  ;;  %v2357_v54 = vadd.f32 %v2327_v58, %v2314_v44 }
 0x328   :  { %v2358_v49 = vadd.f32 %v2323_v61, %v2315_v23  ;;  %v2359_v57 = vadd.f32 %v2327_v58, %v2316_v29  ;;  %v2360_v60 = vadd.f32 %v2323_v61, %v2317_v55  ;;  %v2361_v63 = vadd.f32 %v2327_v58, %v2318_v34 }
 0x329   :  { %v2362_v1 = vmax.f32 %v4586_v59, 0.0  ;;  %v2363_v42 = vmax.f32 %v4588_v37, 0.0  ;;  %v2364_v13 = vmax.f32 %v4590_v21, 0.0  ;;  %v2365_v45 = vmax.f32 %v4592_v17, 0.0 }
 0x32a   :  { %v2366_v53 = vmax.f32 %v4594_v14, 0.0  ;;  %v2367_v6 = vmax.f32 %v4596_v31, 0.0  ;;  %v2368_v35 = vmax.f32 %v4598_v11, 0.0  ;;  %v2369_v2 = vmax.f32 %v2337_v47, 0.0 }
 0x32b   :  { %v2370_v26 = vmax.f32 %v2338_v38, 0.0  ;;  %v2371_v20 = vmax.f32 %v2339_v19, 0.0  ;;  %v2372_v12 = vmax.f32 %v2340_v50, 0.0  ;;  %v2373_v46 = vmax.f32 %v2341_v27, 0.0 }
 0x32c   :  { %v2374_v5 = vmax.f32 %v2342_v18, 0.0  ;;  %v2375_v9 = vmax.f32 %v2343_v41, 0.0  ;;  %v2376_v62 = vmax.f32 %v2344_v0, 0.0  ;;  %v2377_v3 = vmax.f32 %v2345_v43, 0.0 }
 0x32d   :  { %v2378_v15 = vmax.f32 %v2346_v52, 0.0  ;;  %v2379_v16 = vmax.f32 %v2347_v10, 0.0  ;;  %v2380_v25 = vmax.f32 %v2348_v24, 0.0  ;;  %v2381_v40 = vmax.f32 %v2349_v30, 0.0 }
 0x32e   :  { %v2382_v4 = vmax.f32 %v2350_v33, 0.0  ;;  %v2383_v28 = vmax.f32 %v2351_v36, 0.0  ;;  %v2384_v32 = vmax.f32 %v2352_v22, 0.0  ;;  %v2385_v44 = vmax.f32 %v2353_v39, 0.0 }
 0x32f   :  { %v2386_v61 = vmax.f32 %v2354_v56, 0.0  ;;  %v2387_v58 = vmax.f32 %v2355_v48, 0.0  ;;  %v2388_v23 = vmax.f32 %v2356_v51, 0.0  ;;  %v2389_v8 = vmax.f32 %v2357_v54, 0.0 }
 0x330   :  { %v2390_v29 = vmax.f32 %v2358_v49, 0.0  ;;  %v2391_v55 = vmax.f32 %v2359_v57, 0.0  ;;  %v2392_v7 = vmax.f32 %v2360_v60, 0.0  ;;  %v2393_v34 = vmax.f32 %v2361_v63, 0.0 }
 0x331   :  { %v2742_v59 = vpack.c.bf16 %v2363_v42, %v2362_v1  ;;  %v2743_v37 = vpack.c.bf16 %v2365_v45, %v2364_v13  ;;  %v2744_v21 = vpack.c.bf16 %v2367_v6, %v2366_v53  ;;  %v2745_v17 = vpack.c.bf16 %v2369_v2, %v2368_v35 }
 0x332   :  { %v2746_v14 = vpack.c.bf16 %v2371_v20, %v2370_v26  ;;  %v2747_v31 = vpack.c.bf16 %v2373_v46, %v2372_v12  ;;  %v2748_v11 = vpack.c.bf16 %v2375_v9, %v2374_v5  ;;  %v2749_v47 = vpack.c.bf16 %v2377_v3, %v2376_v62 }
 0x333   :  { %v2750_v38 = vpack.c.bf16 %v2379_v16, %v2378_v15  ;;  %v2751_v19 = vpack.c.bf16 %v2381_v40, %v2380_v25  ;;  %v2752_v50 = vpack.c.bf16 %v2383_v28, %v2382_v4  ;;  %v2753_v27 = vpack.c.bf16 %v2385_v44, %v2384_v32  ;;  %2490 = vst [vmem:[%s4660_s5] sm:$0xff] %v2742_v59 }
 0x334   :  { %2491 = vst [vmem:[%s4660_s5 + $0x8] sm:$0xff] %v2743_v37  ;;  %2492 = vst [vmem:[%s4660_s5 + $0x10] sm:$0xff] %v2744_v21  ;;  %v2754_v18 = vpack.c.bf16 %v2387_v58, %v2386_v61  ;;  %v2755_v41 = vpack.c.bf16 %v2389_v8, %v2388_v23  ;;  %v2756_v0 = vpack.c.bf16 %v2391_v55, %v2390_v29 }
 0x335   :  { %2493 = vst [vmem:[%s4660_s5 + $0x18] sm:$0xff] %v2745_v17  ;;  %v2757_v43 = vpack.c.bf16 %v2393_v34, %v2392_v7  ;;  %2494 = vst [vmem:[%s4660_s5 + $0x20] sm:$0xff] %v2746_v14 }
 0x336   :  { %2495 = vst [vmem:[%s4660_s5 + $0x28] sm:$0xff] %v2747_v31  ;;  %2496 = vst [vmem:[%s4660_s5 + $0x30] sm:$0xff] %v2748_v11 }
 0x337   :  { %2497 = vst [vmem:[%s4660_s5 + $0x38] sm:$0xff] %v2749_v47  ;;  %2498 = vst [vmem:[%s4660_s5 + $0x40] sm:$0xff] %v2750_v38 }
 0x338   :  { %2499 = vst [vmem:[%s4660_s5 + $0x48] sm:$0xff] %v2751_v19  ;;  %2500 = vst [vmem:[%s4660_s5 + $0x50] sm:$0xff] %v2752_v50 }
 0x339   :  { %2501 = vst [vmem:[%s4660_s5 + $0x58] sm:$0xff] %v2753_v27  ;;  %2502 = vst [vmem:[%s4660_s5 + $0x60] sm:$0xff] %v2754_v18 }
 0x33a   :  { %2503 = vst [vmem:[%s4660_s5 + $0x68] sm:$0xff] %v2755_v41  ;;  %2504 = vst [vmem:[%s4660_s5 + $0x70] sm:$0xff] %v2756_v0 }
 0x33b   :  { %2505 = vst [vmem:[%s4660_s5 + $0x78] sm:$0xff] %v2757_v43 }

// kernel: tile.37
= control target key start
LH: loop header
LB: loop body
LE: loop exit
PB: predicated region body
PF: predicated region fallthrough
CT: control target
= control target key end

     0   :  { %s22_s0 = inlined_call_operand.vmem [shape: f32[32], index: 0, kind: input, shape index: {}]   ;;  %s23_s1 = inlined_call_operand.vmem [shape: f32[4,32], index: 1, kind: output, shape index: {}]  }
   0x1   :  { %v4_v0 = vld [vmem:[%s22_s0] ss:$0 sm:$0xff] }
   0x2   :  { %5 = vst [vmem:[%s23_s1] sm:$0xf] %v4_v0 }

// kernel: tile.38
= control target key start
LH: loop header
LB: loop body
LE: loop exit
PB: predicated region body
PF: predicated region fallthrough
CT: control target
= control target key end

     0   :  { %vm7_vm0 = vcmask 261120   ;;  %s37_s8 = smov 32   ;;  %s38_s9 = smov 64   ;;  %vm13_vm1 = vcmask 1048320   ;;  %vm19_vm2 = vcmask 785920   ;;  %vm25_vm3 = vcmask 523520   ;;  %s55_s0 = inlined_call_operand.vmem [shape: f32[4,32], index: 0, kind: input, shape index: {}]   ;;  %s56_s1 = inlined_call_operand.vmem [shape: f32[1,128], index: 1, kind: output, shape index: {}]  }
   0x1   :  { %v4_v0 = vld [vmem:[%s55_s0] sm:$0xf]  ;;  %s36_s0 = smov 96  }
   0x2   :  { %5 = vst [vmem:[#allocation1] sm:$0xf] %v4_v0 }
   0x9   :  { %v10_v1 = vld [vmem:[#allocation1 + $0x3] sm:$0x1]   ;;  %v22_v2 = vld [vmem:[#allocation1 + $0x1] sm:$0x1]   ;;  %v6_v3 = vld [vmem:[#allocation1] sm:$0x1]  }
   0xa   :  { %11 = vrot.lane.b32.xlu0 %v10_v1, %s36_s0  ;;  %23 = vrot.lane.b32.xlu1 %v22_v2, %s37_s8  ;;  %v16_v4 = vld [vmem:[#allocation1 + $0x2] sm:$0x1]   ;;  %8 = vst.msk [vmem:[#allocation0] sm:$0x1] %vm7_vm0, %v6_v3  }
   0xe   :  { %17 = vrot.lane.b32.xlu0 %v16_v4, %s38_s9 }
  0x7c   :  { %v12_v5 = vpop.permute.xlu0 %11   ;;  %v24_v6 = vpop.permute.xlu1 %23  }
  0x7d   :  { %14 = vst.msk [vmem:[#allocation0] sm:$0x1] %vm13_vm1, %v12_v5  }
  0x80   :  { %v18_v7 = vpop.permute.xlu0 %17  }
  0x81   :  { %20 = vst.msk [vmem:[#allocation0] sm:$0x1] %vm19_vm2, %v18_v7  }
  0x82   :  { %26 = vst.msk [vmem:[#allocation0] sm:$0x1] %vm25_vm3, %v24_v6  }
  0x89   :  { %v30_v8 = vld [vmem:[#allocation0] sm:$0x1] }
  0x8a   :  { %32 = vst [vmem:[%s56_s1] sm:$0x1] %v30_v8 }

// kernel: adaptive_cnn_forward.13
= control target key start
LH: loop header
LB: loop body
LE: loop exit
PB: predicated region body
PF: predicated region fallthrough
CT: control target
= control target key end

     0   :  { %v4354_v0 = vmov 0   ;;  %vm1301_vm0 = vcmask 523264   ;;  %vm4356_vm1 = vmmov 0   ;;  %s6433_s1 = inlined_call_operand.vmem [shape: bf16[576,128], index: 1, kind: input, shape index: {}]   ;;  %s6434_s0 = inlined_call_operand.vmem [shape: bf16[512,576], index: 0, kind: input, shape index: {}]   ;;  %s6435_s2 = inlined_call_operand.vmem [shape: f32[128,128], index: 2, kind: input, shape index: {}]   ;;  %s6436_s3 = inlined_call_operand.vmem [shape: f32[1,128], index: 3, kind: input, shape index: {}]   ;;  %s6437_s4 = inlined_call_operand.vmem [shape: f32[1,128], index: 4, kind: input, shape index: {}]   ;;  %s6438_s5 = inlined_call_operand.vmem [shape: bf16[512,128], index: 5, kind: output, shape index: {}]  }
   0x1   :  { %1398 = vmatprep.subr.bf16.mxu0 %v4354_v0  ;;  %3970 = vmatprep.subr.bf16.mxu1 %v4354_v0  ;;  %v4092_v1 = vld [vmem:[%s6433_s1] sm:$0xff]   ;;  %v4093_v2 = vld [vmem:[%s6433_s1 + $0x8] sm:$0xff]   ;;  %v4094_v3 = vld [vmem:[%s6433_s1 + $0x10] sm:$0xff]  }
   0x2   :  { %1399 = vmatpush1.bf16.msra.mxu0 %v4092_v1  ;;  %3986 = vmatpush1.bf16.msra.mxu1 %v4092_v1  ;;  %v4095_v4 = vld [vmem:[%s6433_s1 + $0x18] sm:$0xff]   ;;  %v4096_v5 = vld [vmem:[%s6433_s1 + $0x20] sm:$0xff]   ;;  %v4097_v7 = vld [vmem:[%s6433_s1 + $0x28] sm:$0xff]  }
   0x3   :  { %1400 = vmatprep.subr.bf16.mxu0 %v4354_v0  ;;  %3971 = vmatprep.subr.bf16.mxu1 %v4354_v0  ;;  %v4110_v6 = vld [vmem:[%s6434_s0 + $0x4] ss:$20 sps:$4 sm:$0xff]   ;;  %v4113_v8 = vld [vmem:[%s6434_s0 + $0x1bc] ss:$20 sps:$4 sm:$0xff]   ;;  %v4101_v12 = vld [vmem:[%s6433_s1 + $0x48] sm:$0xff]  }
   0x4   :  { %1430 = vmatprep.mubr.bf16.mxu0 %v4110_v6  ;;  %1518 = vmatprep.mubr.bf16.mxu1 %v4113_v8  ;;  %v4098_v9 = vld [vmem:[%s6433_s1 + $0x30] sm:$0xff]   ;;  %v4099_v10 = vld [vmem:[%s6433_s1 + $0x38] sm:$0xff]   ;;  %v4100_v11 = vld [vmem:[%s6433_s1 + $0x40] sm:$0xff]  }
   0x5   :  { %v4102_v13 = vld [vmem:[%s6433_s1 + $0x50] sm:$0xff]   ;;  %v4103_v14 = vld [vmem:[%s6433_s1 + $0x58] sm:$0xff]   ;;  %v4104_v15 = vld [vmem:[%s6433_s1 + $0x60] sm:$0xff]  }
   0x6   :  { %1401 = vmatpush1.bf16.msra.mxu0 %v4093_v2  ;;  %3987 = vmatpush1.bf16.msra.mxu1 %v4093_v2  ;;  %v4105_v16 = vld [vmem:[%s6433_s1 + $0x68] sm:$0xff]   ;;  %v4106_v17 = vld [vmem:[%s6433_s1 + $0x70] sm:$0xff]   ;;  %v4107_v18 = vld [vmem:[%s6433_s1 + $0x78] sm:$0xff]  }
   0x7   :  { %1402 = vmatprep.subr.bf16.mxu0 %v4354_v0  ;;  %3972 = vmatprep.subr.bf16.mxu1 %v4354_v0  ;;  %v4153_v19 = vld [vmem:[%s6433_s1 + $0x100] sm:$0xff]   ;;  %v4111_v21 = vld [vmem:[%s6434_s0 + $0x1b8] ss:$20 sps:$4 sm:$0xff]   ;;  %v4120_v27 = vld [vmem:[%s6434_s0 + $0x28] ss:$20 sps:$4 sm:$0xff]  }
   0x8   :  { %v4108_v20 = vld [vmem:[%s6434_s0] ss:$20 sps:$4 sm:$0xff]   ;;  %v4117_v24 = vld [vmem:[%s6434_s0 + $0x1e4] ss:$20 sps:$4 sm:$0xff]   ;;  %v4196_v25 = vld [vmem:[%s6433_s1 + $0x108] sm:$0xff]  }
   0x9   :  { %v4114_v22 = vld [vmem:[%s6433_s1 + $0x80] sm:$0xff]   ;;  %v4119_v26 = vld [vmem:[%s6433_s1 + $0x88] sm:$0xff]   ;;  %v4122_v29 = vld [vmem:[%s6433_s1 + $0x90] sm:$0xff]  }
   0xa   :  { %1403 = vmatpush1.bf16.msra.mxu0 %v4094_v3  ;;  %3988 = vmatpush1.bf16.msra.mxu1 %v4094_v3  ;;  %v4115_v23 = vld [vmem:[%s6434_s0 + $0x2c] ss:$20 sps:$4 sm:$0xff]   ;;  %v4123_v30 = vld [vmem:[%s6434_s0 + $0x54] ss:$20 sps:$4 sm:$0xff]   ;;  %v4129_v32 = vld [vmem:[%s6433_s1 + $0x98] sm:$0xff]  }
   0xb   :  { %1404 = vmatprep.subr.bf16.mxu0 %v4354_v0  ;;  %3973 = vmatprep.subr.bf16.mxu1 %v4354_v0  ;;  %v4121_v28 = vld [vmem:[%s6434_s0 + $0x1e0] ss:$20 sps:$4 sm:$0xff]   ;;  %v4127_v33 = vld [vmem:[%s6434_s0 + $0x50] ss:$20 sps:$4 sm:$0xff]   ;;  %v4128_v34 = vld [vmem:[%s6434_s0 + $0x208] ss:$20 sps:$4 sm:$0xff]  }
   0xc   :  { %v4125_v31 = vld [vmem:[%s6434_s0 + $0x20c] ss:$20 sps:$4 sm:$0xff]   ;;  %v4130_v35 = vld [vmem:[%s6434_s0 + $0x7c] ss:$20 sps:$4 sm:$0xff]   ;;  %v4132_v36 = vld [vmem:[%s6434_s0 + $0x234] ss:$20 sps:$4 sm:$0xff]  }
   0xd   :  { %v4134_v37 = vld [vmem:[%s6433_s1 + $0xa0] sm:$0xff]   ;;  %v4228_v38 = vld [vmem:[%s6433_s1 + $0x110] sm:$0xff]   ;;  %v4137_v39 = vld [vmem:[%s6433_s1 + $0xa8] sm:$0xff]  }
   0xe   :  { %1405 = vmatpush1.bf16.msra.mxu0 %v4095_v4  ;;  %3989 = vmatpush1.bf16.msra.mxu1 %v4095_v4  ;;  %v4135_v40 = vld [vmem:[%s6434_s0 + $0x78] ss:$20 sps:$4 sm:$0xff]   ;;  %v4136_v41 = vld [vmem:[%s6434_s0 + $0x230] ss:$20 sps:$4 sm:$0xff]   ;;  %v4142_v46 = vld [vmem:[%s6434_s0 + $0xa0] ss:$20 sps:$4 sm:$0xff]  }
   0xf   :  { %1406 = vmatprep.subr.bf16.mxu0 %v4354_v0  ;;  %3974 = vmatprep.subr.bf16.mxu1 %v4354_v0  ;;  %v4138_v42 = vld [vmem:[%s6434_s0 + $0xa4] ss:$20 sps:$4 sm:$0xff]   ;;  %v4140_v43 = vld [vmem:[%s6434_s0 + $0x25c] ss:$20 sps:$4 sm:$0xff]   ;;  %v4145_v48 = vld [vmem:[%s6434_s0 + $0xcc] ss:$20 sps:$4 sm:$0xff]  }
  0x10   :  { %v4144_v44 = vld [vmem:[%s6433_s1 + $0xb0] sm:$0xff]   ;;  %v4151_v45 = vld [vmem:[%s6433_s1 + $0xb8] sm:$0xff]   ;;  %v4152_v50 = vld [vmem:[%s6433_s1 + $0xc0] sm:$0xff]  }
  0x11   :  { %v4143_v47 = vld [vmem:[%s6434_s0 + $0x258] ss:$20 sps:$4 sm:$0xff]   ;;  %v4149_v53 = vld [vmem:[%s6434_s0 + $0xc8] ss:$20 sps:$4 sm:$0xff]   ;;  %v4150_v54 = vld [vmem:[%s6434_s0 + $0x280] ss:$20 sps:$4 sm:$0xff]  }
  0x12   :  { %1407 = vmatpush1.bf16.msra.mxu0 %v4096_v5  ;;  %3990 = vmatpush1.bf16.msra.mxu1 %v4096_v5  ;;  %v4147_v49 = vld [vmem:[%s6434_s0 + $0x284] ss:$20 sps:$4 sm:$0xff]   ;;  %v4160_v52 = vld [vmem:[%s6433_s1 + $0xc8] sm:$0xff]   ;;  %v4167_v57 = vld [vmem:[%s6433_s1 + $0xd0] sm:$0xff]  }
  0x13   :  { %1408 = vmatprep.subr.bf16.mxu0 %v4354_v0  ;;  %3975 = vmatprep.subr.bf16.mxu1 %v4354_v0  ;;  %v4253_v51 = vld [vmem:[%s6433_s1 + $0x118] sm:$0xff]   ;;  %v4154_v55 = vld [vmem:[%s6434_s0 + $0xf4] ss:$20 sps:$4 sm:$0xff]   ;;  %v4156_v56 = vld [vmem:[%s6434_s0 + $0x2ac] ss:$20 sps:$4 sm:$0xff]  }
  0x14   :  { %v4168_v58 = vld [vmem:[%s6433_s1 + $0xd8] sm:$0xff]   ;;  %v4158_v59 = vld [vmem:[%s6434_s0 + $0xf0] ss:$20 sps:$4 sm:$0xff]   ;;  %v4163_v62 = vld [vmem:[%s6434_s0 + $0x2d4] ss:$20 sps:$4 sm:$0xff]  }
  0x15   :  { %v4159_v60 = vld [vmem:[%s6434_s0 + $0x2a8] ss:$20 sps:$4 sm:$0xff]   ;;  %v4175_v63 = vld [vmem:[%s6433_s1 + $0xe0] sm:$0xff]   ;;  %v4165_v2 = vld [vmem:[%s6434_s0 + $0x118] ss:$20 sps:$4 sm:$0xff]  }
  0x16   :  { %1409 = vmatpush1.bf16.msra.mxu0 %v4097_v7  ;;  %3991 = vmatpush1.bf16.msra.mxu1 %v4097_v7  ;;  %v4161_v61 = vld [vmem:[%s6434_s0 + $0x11c] ss:$20 sps:$4 sm:$0xff]   ;;  %v4182_v1 = vld [vmem:[%s6433_s1 + $0xe8] sm:$0xff]   ;;  %v4169_v4 = vld [vmem:[%s6434_s0 + $0x144] ss:$20 sps:$4 sm:$0xff]  }
  0x17   :  { %1410 = vmatprep.subr.bf16.mxu0 %v4354_v0  ;;  %3976 = vmatprep.subr.bf16.mxu1 %v4354_v0  ;;  %v4166_v3 = vld [vmem:[%s6434_s0 + $0x2d0] ss:$20 sps:$4 sm:$0xff]   ;;  %v4190_v7 = vld [vmem:[%s6433_s1 + $0xf8] sm:$0xff]   ;;  %v4173_v8 = vld [vmem:[%s6434_s0 + $0x140] ss:$20 sps:$4 sm:$0xff]  }
  0x18   :  { %v4171_v5 = vld [vmem:[%s6434_s0 + $0x2fc] ss:$20 sps:$4 sm:$0xff]  }
  0x19   :  { %v4183_v6 = vld [vmem:[%s6433_s1 + $0xf0] sm:$0xff]  }
  0x1a   :  { %1411 = vmatpush1.bf16.msra.mxu0 %v4098_v9  ;;  %3992 = vmatpush1.bf16.msra.mxu1 %v4098_v9  ;;  %v4174_v9 = vld [vmem:[%s6434_s0 + $0x2f8] ss:$20 sps:$4 sm:$0xff]  }
  0x1b   :  { %1412 = vmatprep.subr.bf16.mxu0 %v4354_v0  ;;  %3977 = vmatprep.subr.bf16.mxu1 %v4354_v0 }
  0x1e   :  { %1413 = vmatpush1.bf16.msra.mxu0 %v4099_v10  ;;  %3993 = vmatpush1.bf16.msra.mxu1 %v4099_v10  ;;  %v4176_v10 = vld [vmem:[%s6434_s0 + $0x16c] ss:$20 sps:$4 sm:$0xff]  }
  0x1f   :  { %1414 = vmatprep.subr.bf16.mxu0 %v4354_v0  ;;  %3978 = vmatprep.subr.bf16.mxu1 %v4354_v0 }
  0x22   :  { %1415 = vmatpush1.bf16.msra.mxu0 %v4100_v11  ;;  %3994 = vmatpush1.bf16.msra.mxu1 %v4100_v11  ;;  %v4178_v11 = vld [vmem:[%s6434_s0 + $0x324] ss:$20 sps:$4 sm:$0xff]  }
  0x23   :  { %1416 = vmatprep.subr.bf16.mxu0 %v4354_v0  ;;  %3979 = vmatprep.subr.bf16.mxu1 %v4354_v0 }
  0x26   :  { %1417 = vmatpush1.bf16.msra.mxu0 %v4101_v12  ;;  %3995 = vmatpush1.bf16.msra.mxu1 %v4101_v12  ;;  %v4180_v12 = vld [vmem:[%s6434_s0 + $0x168] ss:$20 sps:$4 sm:$0xff]  }
  0x27   :  { %1418 = vmatprep.subr.bf16.mxu0 %v4354_v0  ;;  %3980 = vmatprep.subr.bf16.mxu1 %v4354_v0 }
  0x2a   :  { %1419 = vmatpush1.bf16.msra.mxu0 %v4102_v13  ;;  %3996 = vmatpush1.bf16.msra.mxu1 %v4102_v13  ;;  %v4181_v13 = vld [vmem:[%s6434_s0 + $0x320] ss:$20 sps:$4 sm:$0xff]  }
  0x2b   :  { %1420 = vmatprep.subr.bf16.mxu0 %v4354_v0  ;;  %3981 = vmatprep.subr.bf16.mxu1 %v4354_v0 }
  0x2e   :  { %1421 = vmatpush1.bf16.msra.mxu0 %v4103_v14  ;;  %3997 = vmatpush1.bf16.msra.mxu1 %v4103_v14  ;;  %v4184_v14 = vld [vmem:[%s6434_s0 + $0x194] ss:$20 sps:$4 sm:$0xff]  }
  0x2f   :  { %1422 = vmatprep.subr.bf16.mxu0 %v4354_v0  ;;  %3982 = vmatprep.subr.bf16.mxu1 %v4354_v0 }
  0x32   :  { %1423 = vmatpush1.bf16.msra.mxu0 %v4104_v15  ;;  %3998 = vmatpush1.bf16.msra.mxu1 %v4104_v15  ;;  %v4188_v15 = vld [vmem:[%s6434_s0 + $0x190] ss:$20 sps:$4 sm:$0xff]  }
  0x33   :  { %1424 = vmatprep.subr.bf16.mxu0 %v4354_v0  ;;  %3983 = vmatprep.subr.bf16.mxu1 %v4354_v0 }
  0x36   :  { %1425 = vmatpush1.bf16.msra.mxu0 %v4105_v16  ;;  %3999 = vmatpush1.bf16.msra.mxu1 %v4105_v16  ;;  %v4189_v16 = vld [vmem:[%s6434_s0 + $0x348] ss:$20 sps:$4 sm:$0xff]  }
  0x37   :  { %1426 = vmatprep.subr.bf16.mxu0 %v4354_v0  ;;  %3984 = vmatprep.subr.bf16.mxu1 %v4354_v0 }
  0x3a   :  { %1427 = vmatpush1.bf16.msra.mxu0 %v4106_v17  ;;  %4000 = vmatpush1.bf16.msra.mxu1 %v4106_v17  ;;  %v4191_v17 = vld [vmem:[%s6434_s0 + $0x374] ss:$20 sps:$4 sm:$0xff]  }
  0x3b   :  { %1428 = vmatprep.subr.bf16.mxu0 %v4354_v0  ;;  %3985 = vmatprep.subr.bf16.mxu1 %v4354_v0 }
  0x3e   :  { %1429 = vmatpush1.bf16.msra.mxu0 %v4107_v18  ;;  %4001 = vmatpush1.bf16.msra.mxu1 %v4107_v18  ;;  %v4195_v18 = vld [vmem:[%s6434_s0 + $0xc] ss:$20 sps:$4 sm:$0xff]  }
  0x3f   :  { %1687 = vmatprep.subr.bf16.mxu0 %v4354_v0  ;;  %3780 = vmatprep.subr.bf16.mxu1 %v4153_v19 }
  0x41   :  { %1431 = vmatmul.mubr.bf16.vlgmr.msra.gmra.mrb[0].mxu0 %v4108_v20  ;;  %1519 = vmatmul.mubr.bf16.vlgmr.msra.gmra.mrb[0].mxu1 %v4111_v21  ;;  %v4197_v20 = vld [vmem:[%s6434_s0 + $0x370] ss:$20 sps:$4 sm:$0xff]  }
  0x42   :  { %1688 = vmatpush1.bf16.msra.mxu0 %v4114_v22  ;;  %1438 = vmatprep.mubr.bf16.mxu0 %v4115_v23  ;;  %v4198_v21 = vld [vmem:[%s6434_s0 + $0x39c] ss:$20 sps:$4 sm:$0xff]   ;;  %v4200_v22 = vld [vmem:[%s6434_s0 + $0x34] ss:$20 sps:$4 sm:$0xff]   ;;  %v4202_v23 = vld [vmem:[%s6434_s0 + $0x398] ss:$20 sps:$4 sm:$0xff]  }
  0x43   :  { %1689 = vmatprep.subr.bf16.mxu0 %v4354_v0  ;;  %1526 = vmatprep.mubr.bf16.mxu1 %v4117_v24  ;;  %v4203_v24 = vld [vmem:[%s6434_s0 + $0x30] ss:$20 sps:$4 sm:$0xff]  }
  0x44   :  { %3781 = vmatpush3.bf16.msra.mxu1 %v4153_v19  ;;  %v4193_v19 = vld [vmem:[%s6434_s0 + $0x8] ss:$20 sps:$4 sm:$0xff]  }
  0x45   :  { %3782 = vmatprep.subr.bf16.mxu1 %v4196_v25 }
  0x46   :  { %1690 = vmatpush1.bf16.msra.mxu0 %v4119_v26  ;;  %v4206_v26 = vld [vmem:[%s6434_s0 + $0x5c] ss:$20 sps:$4 sm:$0xff]  }
  0x47   :  { %1691 = vmatprep.subr.bf16.mxu0 %v4354_v0 }
  0x48   :  { %3783 = vmatpush3.bf16.msra.mxu1 %v4196_v25  ;;  %v4204_v25 = vld [vmem:[%s6434_s0 + $0x3c4] ss:$20 sps:$4 sm:$0xff]  }
  0x49   :  { %1439 = vmatmul.mubr.bf16.gmra.mrb[4].mxu0 %v4120_v27  ;;  %1527 = vmatmul.mubr.bf16.gmra.mrb[4].mxu1 %v4121_v28  ;;  %v4208_v27 = vld [vmem:[%s6434_s0 + $0x3c0] ss:$20 sps:$4 sm:$0xff]   ;;  %v4209_v28 = vld [vmem:[%s6434_s0 + $0x58] ss:$20 sps:$4 sm:$0xff]  }
  0x4a   :  { %1692 = vmatpush1.bf16.msra.mxu0 %v4122_v29  ;;  %1446 = vmatprep.mubr.bf16.mxu0 %v4123_v30  ;;  %v4210_v29 = vld [vmem:[%s6434_s0 + $0x3ec] ss:$20 sps:$4 sm:$0xff]   ;;  %v4212_v30 = vld [vmem:[%s6434_s0 + $0x84] ss:$20 sps:$4 sm:$0xff]  }
  0x4b   :  { %1534 = vmatprep.mubr.bf16.mxu1 %v4125_v31  ;;  %1693 = vmatprep.subr.bf16.mxu0 %v4354_v0  ;;  %v4214_v31 = vld [vmem:[%s6434_s0 + $0x3e8] ss:$20 sps:$4 sm:$0xff]  }
  0x4c   :  { %3784 = vmatprep.subr.bf16.mxu1 %v4228_v38 }
  0x4d   :  { %3785 = vmatpush3.bf16.msra.mxu1 %v4228_v38  ;;  %v4224_v38 = vld [vmem:[%s6434_s0 + $0xd4] ss:$20 sps:$4 sm:$0xff]  }
  0x4e   :  { %1694 = vmatpush1.bf16.msra.mxu0 %v4129_v32  ;;  %3786 = vmatprep.subr.bf16.mxu1 %v4253_v51  ;;  %v4215_v32 = vld [vmem:[%s6434_s0 + $0x80] ss:$20 sps:$4 sm:$0xff]  }
  0x4f   :  { %1695 = vmatprep.subr.bf16.mxu0 %v4354_v0 }
  0x51   :  { %1447 = vmatmul.mubr.bf16.gmra.mrb[8].mxu0 %v4127_v33  ;;  %1535 = vmatmul.mubr.bf16.gmra.mrb[8].mxu1 %v4128_v34  ;;  %v4216_v33 = vld [vmem:[%s6434_s0 + $0x414] ss:$20 sps:$4 sm:$0xff]   ;;  %v4218_v34 = vld [vmem:[%s6434_s0 + $0xac] ss:$20 sps:$4 sm:$0xff]  }
  0x52   :  { %1454 = vmatprep.mubr.bf16.mxu0 %v4130_v35  ;;  %1542 = vmatprep.mubr.bf16.mxu1 %v4132_v36  ;;  %v4220_v35 = vld [vmem:[%s6434_s0 + $0x410] ss:$20 sps:$4 sm:$0xff]   ;;  %v4221_v36 = vld [vmem:[%s6434_s0 + $0xa8] ss:$20 sps:$4 sm:$0xff]  }
  0x53   :  { %1696 = vmatpush1.bf16.msra.mxu0 %v4134_v37  ;;  %3787 = vmatpush3.bf16.msra.mxu1 %v4253_v51  ;;  %v4222_v37 = vld [vmem:[%s6434_s0 + $0x43c] ss:$20 sps:$4 sm:$0xff]  }
  0x54   :  { %1697 = vmatprep.subr.bf16.mxu0 %v4354_v0  ;;  %v4245_v51 = vld [vmem:[%s6434_s0 + $0x4b0] ss:$20 sps:$4 sm:$0xff]  }
  0x57   :  { %1698 = vmatpush1.bf16.msra.mxu0 %v4137_v39  ;;  %v4226_v39 = vld [vmem:[%s6434_s0 + $0x438] ss:$20 sps:$4 sm:$0xff]  }
  0x58   :  { %1699 = vmatprep.subr.bf16.mxu0 %v4354_v0 }
  0x59   :  { %1455 = vmatmul.mubr.bf16.gmra.mrb[12].mxu0 %v4135_v40  ;;  %1543 = vmatmul.mubr.bf16.gmra.mrb[12].mxu1 %v4136_v41  ;;  %v4227_v40 = vld [vmem:[%s6434_s0 + $0xd0] ss:$20 sps:$4 sm:$0xff]  }
  0x5a   :  { %1462 = vmatprep.mubr.bf16.mxu0 %v4138_v42  ;;  %1550 = vmatprep.mubr.bf16.mxu1 %v4140_v43  ;;  %v4229_v41 = vld [vmem:[%s6434_s0 + $0x464] ss:$20 sps:$4 sm:$0xff]   ;;  %v4231_v42 = vld [vmem:[%s6434_s0 + $0xfc] ss:$20 sps:$4 sm:$0xff]   ;;  %v4233_v43 = vld [vmem:[%s6434_s0 + $0x460] ss:$20 sps:$4 sm:$0xff]  }
  0x5b   :  { %1700 = vmatpush1.bf16.msra.mxu0 %v4144_v44  ;;  %v4234_v44 = vld [vmem:[%s6434_s0 + $0xf8] ss:$20 sps:$4 sm:$0xff]  }
  0x5c   :  { %1701 = vmatprep.subr.bf16.mxu0 %v4354_v0 }
  0x5f   :  { %1702 = vmatpush1.bf16.msra.mxu0 %v4151_v45  ;;  %v4235_v45 = vld [vmem:[%s6434_s0 + $0x48c] ss:$20 sps:$4 sm:$0xff]  }
  0x60   :  { %1703 = vmatprep.subr.bf16.mxu0 %v4354_v0 }
  0x61   :  { %1463 = vmatmul.mubr.bf16.gmra.mrb[16].mxu0 %v4142_v46  ;;  %1551 = vmatmul.mubr.bf16.gmra.mrb[16].mxu1 %v4143_v47  ;;  %v4237_v46 = vld [vmem:[%s6434_s0 + $0x124] ss:$20 sps:$4 sm:$0xff]   ;;  %v4239_v47 = vld [vmem:[%s6434_s0 + $0x488] ss:$20 sps:$4 sm:$0xff]  }
  0x62   :  { %1470 = vmatprep.mubr.bf16.mxu0 %v4145_v48  ;;  %1558 = vmatprep.mubr.bf16.mxu1 %v4147_v49  ;;  %v4240_v48 = vld [vmem:[%s6434_s0 + $0x120] ss:$20 sps:$4 sm:$0xff]  }
  0x63   :  { %1704 = vmatpush1.bf16.msra.mxu0 %v4152_v50  ;;  %v4241_v49 = vld [vmem:[%s6434_s0 + $0x4b4] ss:$20 sps:$4 sm:$0xff]   ;;  %v4243_v50 = vld [vmem:[%s6434_s0 + $0x14c] ss:$20 sps:$4 sm:$0xff]  }
  0x64   :  { %1705 = vmatprep.subr.bf16.mxu0 %v4354_v0 }
  0x67   :  { %1706 = vmatpush1.bf16.msra.mxu0 %v4160_v52  ;;  %v4246_v52 = vld [vmem:[%s6434_s0 + $0x148] ss:$20 sps:$4 sm:$0xff]  }
  0x68   :  { %1707 = vmatprep.subr.bf16.mxu0 %v4354_v0 }
  0x69   :  { %1471 = vmatmul.mubr.bf16.gmra.mrb[20].mxu0 %v4149_v53  ;;  %1559 = vmatmul.mubr.bf16.gmra.mrb[20].mxu1 %v4150_v54  ;;  %v4247_v53 = vld [vmem:[%s6434_s0 + $0x4dc] ss:$20 sps:$4 sm:$0xff]   ;;  %v4249_v54 = vld [vmem:[%s6434_s0 + $0x174] ss:$20 sps:$4 sm:$0xff]  }
  0x6a   :  { %1478 = vmatprep.mubr.bf16.mxu0 %v4154_v55  ;;  %1566 = vmatprep.mubr.bf16.mxu1 %v4156_v56  ;;  %v4251_v55 = vld [vmem:[%s6434_s0 + $0x4d8] ss:$20 sps:$4 sm:$0xff]   ;;  %v4252_v56 = vld [vmem:[%s6434_s0 + $0x170] ss:$20 sps:$4 sm:$0xff]  }
  0x6b   :  { %1708 = vmatpush1.bf16.msra.mxu0 %v4167_v57  ;;  %v4254_v57 = vld [vmem:[%s6434_s0 + $0x19c] ss:$20 sps:$4 sm:$0xff]  }
  0x6c   :  { %1709 = vmatprep.subr.bf16.mxu0 %v4354_v0 }
  0x6f   :  { %1710 = vmatpush1.bf16.msra.mxu0 %v4168_v58  ;;  %v4256_v58 = vld [vmem:[%s6434_s0 + $0x10] ss:$20 sps:$4 sm:$0xff]  }
  0x70   :  { %1711 = vmatprep.subr.bf16.mxu0 %v4354_v0 }
  0x71   :  { %1479 = vmatmul.mubr.bf16.gmra.mrb[24].mxu0 %v4158_v59  ;;  %1567 = vmatmul.mubr.bf16.gmra.mrb[24].mxu1 %v4159_v60  ;;  %v4257_v59 = vld [vmem:[%s6434_s0 + $0x198] ss:$20 sps:$4 sm:$0xff]  }
  0x72   :  { %1486 = vmatprep.mubr.bf16.mxu0 %v4161_v61  ;;  %1574 = vmatprep.mubr.bf16.mxu1 %v4163_v62  ;;  %v4258_v60 = vld [vmem:[%s6434_s0 + $0x38] ss:$20 sps:$4 sm:$0xff]   ;;  %v4261_v62 = vld [vmem:[%s6434_s0 + $0x60] ss:$20 sps:$4 sm:$0xff]  }
  0x73   :  { %1712 = vmatpush1.bf16.msra.mxu0 %v4175_v63  ;;  %v4259_v61 = vld [vmem:[%s6434_s0 + $0x1c4] ss:$20 sps:$4 sm:$0xff]   ;;  %v4262_v63 = vld [vmem:[%s6434_s0 + $0x1c0] ss:$20 sps:$4 sm:$0xff]  }
  0x74   :  { %1713 = vmatprep.subr.bf16.mxu0 %v4354_v0 }
  0x77   :  { %1714 = vmatpush1.bf16.msra.mxu0 %v4182_v1  ;;  %v4263_v1 = vld [vmem:[%s6434_s0 + $0x88] ss:$20 sps:$4 sm:$0xff]  }
  0x78   :  { %1715 = vmatprep.subr.bf16.mxu0 %v4354_v0 }
  0x79   :  { %1487 = vmatmul.mubr.bf16.gmra.mrb[28].mxu0 %v4165_v2  ;;  %1575 = vmatmul.mubr.bf16.gmra.mrb[28].mxu1 %v4166_v3  ;;  %v4264_v2 = vld [vmem:[%s6434_s0 + $0x1ec] ss:$20 sps:$4 sm:$0xff]   ;;  %v4266_v3 = vld [vmem:[%s6434_s0 + $0xb0] ss:$20 sps:$4 sm:$0xff]  }
  0x7a   :  { %1494 = vmatprep.mubr.bf16.mxu0 %v4169_v4  ;;  %1582 = vmatprep.mubr.bf16.mxu1 %v4171_v5  ;;  %v4267_v4 = vld [vmem:[%s6434_s0 + $0x1e8] ss:$20 sps:$4 sm:$0xff]   ;;  %v4268_v5 = vld [vmem:[%s6434_s0 + $0xd8] ss:$20 sps:$4 sm:$0xff]  }
  0x7b   :  { %1716 = vmatpush1.bf16.msra.mxu0 %v4183_v6  ;;  %v4269_v6 = vld [vmem:[%s6434_s0 + $0x214] ss:$20 sps:$4 sm:$0xff]  }
  0x7c   :  { %1717 = vmatprep.subr.bf16.mxu0 %v4354_v0  ;;  %v4186_v0 = vld [vmem:[%s6434_s0 + $0x34c] ss:$20 sps:$4 sm:$0xff]  }
  0x7f   :  { %1718 = vmatpush1.bf16.msra.mxu0 %v4190_v7  ;;  %v4271_v7 = vld [vmem:[%s6434_s0 + $0x100] ss:$20 sps:$4 sm:$0xff]  }
  0x81   :  { %1495 = vmatmul.mubr.bf16.gmra.mrb[32].mxu0 %v4173_v8  ;;  %1583 = vmatmul.mubr.bf16.gmra.mrb[32].mxu1 %v4174_v9  ;;  %v4272_v8 = vld [vmem:[%s6434_s0 + $0x210] ss:$20 sps:$4 sm:$0xff]   ;;  %v4273_v9 = vld [vmem:[%s6434_s0 + $0x128] ss:$20 sps:$4 sm:$0xff]  }
  0x82   :  { %1502 = vmatprep.mubr.bf16.mxu0 %v4176_v10  ;;  %1590 = vmatprep.mubr.bf16.mxu1 %v4178_v11  ;;  %v4274_v10 = vld [vmem:[%s6434_s0 + $0x23c] ss:$20 sps:$4 sm:$0xff]  }
  0x83   :  { %v4276_v11 = vld [vmem:[%s6434_s0 + $0x150] ss:$20 sps:$4 sm:$0xff]  }
  0x89   :  { %1503 = vmatmul.mubr.bf16.gmra.mrb[36].mxu0 %v4180_v12  ;;  %1591 = vmatmul.mubr.bf16.gmra.mrb[36].mxu1 %v4181_v13  ;;  %v4277_v12 = vld [vmem:[%s6434_s0 + $0x238] ss:$20 sps:$4 sm:$0xff]  }
  0x8a   :  { %1510 = vmatprep.mubr.bf16.mxu0 %v4184_v14  ;;  %1598 = vmatprep.mubr.bf16.mxu1 %v4186_v0  ;;  %v4278_v13 = vld [vmem:[%s6434_s0 + $0x178] ss:$20 sps:$4 sm:$0xff]   ;;  %v4281_v0 = vld [vmem:[%s6434_s0 + $0x1a0] ss:$20 sps:$4 sm:$0xff]  }
  0x8b   :  { %v4279_v14 = vld [vmem:[%s6434_s0 + $0x264] ss:$20 sps:$4 sm:$0xff]  }
  0x91   :  { %1511 = vmatmul.mubr.bf16.gmra.mrb[40].mxu0 %v4188_v15  ;;  %1599 = vmatmul.mubr.bf16.gmra.mrb[40].mxu1 %v4189_v16  ;;  %v4282_v15 = vld [vmem:[%s6434_s0 + $0x260] ss:$20 sps:$4 sm:$0xff]   ;;  %v4283_v16 = vld [vmem:[%s6434_s0 + $0x1c8] ss:$20 sps:$4 sm:$0xff]  }
  0x92   :  { %1606 = vmatprep.mubr.bf16.mxu1 %v4191_v17  ;;  %1719 = vmatprep.mubr.bf16.mxu0 %v4195_v18  ;;  %v4284_v17 = vld [vmem:[%s6434_s0 + $0x28c] ss:$20 sps:$4 sm:$0xff]   ;;  %v4286_v18 = vld [vmem:[%s6434_s0 + $0x1f0] ss:$20 sps:$4 sm:$0xff]  }
  0x99   :  { %1607 = vmatmul.mubr.bf16.gmra.mrb[44].mxu1 %v4197_v20  ;;  %1720 = vmatmul.mubr.bf16.vlgmr.msra.gmra.mrb[0].mxu0 %v4193_v19  ;;  %v4287_v20 = vld [vmem:[%s6434_s0 + $0x288] ss:$20 sps:$4 sm:$0xff]  }
  0x9a   :  { %1614 = vmatprep.mubr.bf16.mxu1 %v4198_v21  ;;  %1727 = vmatprep.mubr.bf16.mxu0 %v4200_v22  ;;  %v4288_v21 = vld [vmem:[%s6434_s0 + $0x218] ss:$20 sps:$4 sm:$0xff]  }
  0xa1   :  { %1615 = vmatmul.mubr.bf16.gmra.mrb[48].mxu1 %v4202_v23  ;;  %1728 = vmatmul.mubr.bf16.gmra.mrb[4].mxu0 %v4203_v24  ;;  %v4289_v23 = vld [vmem:[%s6434_s0 + $0x2b4] ss:$20 sps:$4 sm:$0xff]  }
  0xa2   :  { %1622 = vmatprep.mubr.bf16.mxu1 %v4204_v25  ;;  %1735 = vmatprep.mubr.bf16.mxu0 %v4206_v26  ;;  %v4291_v24 = vld [vmem:[%s6434_s0 + $0x240] ss:$20 sps:$4 sm:$0xff]  }
  0xa9   :  { %1623 = vmatmul.mubr.bf16.gmra.mrb[52].mxu1 %v4208_v27  ;;  %1736 = vmatmul.mubr.bf16.gmra.mrb[8].mxu0 %v4209_v28  ;;  %v4292_v28 = vld [vmem:[%s6434_s0 + $0x2b0] ss:$20 sps:$4 sm:$0xff]  }
  0xaa   :  { %1630 = vmatprep.mubr.bf16.mxu1 %v4210_v29  ;;  %1743 = vmatprep.mubr.bf16.mxu0 %v4212_v30  ;;  %v4293_v29 = vld [vmem:[%s6434_s0 + $0x268] ss:$20 sps:$4 sm:$0xff]  }
  0xb1   :  { %1631 = vmatmul.mubr.bf16.gmra.mrb[56].mxu1 %v4214_v31  ;;  %1744 = vmatmul.mubr.bf16.gmra.mrb[12].mxu0 %v4215_v32  ;;  %v4294_v31 = vld [vmem:[%s6434_s0 + $0x2dc] ss:$20 sps:$4 sm:$0xff]  }
  0xb2   :  { %1638 = vmatprep.mubr.bf16.mxu1 %v4216_v33  ;;  %1751 = vmatprep.mubr.bf16.mxu0 %v4218_v34  ;;  %v4296_v32 = vld [vmem:[%s6434_s0 + $0x290] ss:$20 sps:$4 sm:$0xff]  }
  0xb9   :  { %1639 = vmatmul.mubr.bf16.gmra.mrb[60].mxu1 %v4220_v35  ;;  %1752 = vmatmul.mubr.bf16.gmra.mrb[16].mxu0 %v4221_v36  ;;  %v4297_v36 = vld [vmem:[%s6434_s0 + $0x2d8] ss:$20 sps:$4 sm:$0xff]  }
  0xba   :  { %1646 = vmatprep.mubr.bf16.mxu1 %v4222_v37  ;;  %1759 = vmatprep.mubr.bf16.mxu0 %v4224_v38  ;;  %v4298_v37 = vld [vmem:[%s6434_s0 + $0x2b8] ss:$20 sps:$4 sm:$0xff]  }
  0xc1   :  { %1647 = vmatmul.mubr.bf16.gmra.mrb[64].mxu1 %v4226_v39  ;;  %1760 = vmatmul.mubr.bf16.gmra.mrb[20].mxu0 %v4227_v40  ;;  %v4299_v39 = vld [vmem:[%s6434_s0 + $0x304] ss:$20 sps:$4 sm:$0xff]   ;;  %v4301_v40 = vld [vmem:[%s6434_s0 + $0x2e0] ss:$20 sps:$4 sm:$0xff]  }
  0xc2   :  { %1654 = vmatprep.mubr.bf16.mxu1 %v4229_v41  ;;  %1767 = vmatprep.mubr.bf16.mxu0 %v4231_v42 }
  0xc9   :  { %1655 = vmatmul.mubr.bf16.gmra.mrb[68].mxu1 %v4233_v43  ;;  %1768 = vmatmul.mubr.bf16.gmra.mrb[24].mxu0 %v4234_v44  ;;  %v4302_v44 = vld [vmem:[%s6434_s0 + $0x300] ss:$20 sps:$4 sm:$0xff]  }
  0xca   :  { %1662 = vmatprep.mubr.bf16.mxu1 %v4235_v45  ;;  %1775 = vmatprep.mubr.bf16.mxu0 %v4237_v46  ;;  %v4303_v45 = vld [vmem:[%s6434_s0 + $0x308] ss:$20 sps:$4 sm:$0xff]  }
  0xd1   :  { %1663 = vmatmul.mubr.bf16.gmra.mrb[72].mxu1 %v4239_v47  ;;  %1776 = vmatmul.mubr.bf16.gmra.mrb[28].mxu0 %v4240_v48  ;;  %v4304_v47 = vld [vmem:[%s6434_s0 + $0x32c] ss:$20 sps:$4 sm:$0xff]   ;;  %v4307_v48 = vld [vmem:[%s6434_s0 + $0x330] ss:$20 sps:$4 sm:$0xff]  }
  0xd2   :  { %1670 = vmatprep.mubr.bf16.mxu1 %v4241_v49  ;;  %1783 = vmatprep.mubr.bf16.mxu0 %v4243_v50 }
  0xd9   :  { %1671 = vmatmul.mubr.bf16.gmra.mrb[76].mxu1 %v4245_v51  ;;  %1784 = vmatmul.mubr.bf16.gmra.mrb[32].mxu0 %v4246_v52  ;;  %v4306_v52 = vld [vmem:[%s6434_s0 + $0x328] ss:$20 sps:$4 sm:$0xff]  }
  0xda   :  { %1678 = vmatprep.mubr.bf16.mxu1 %v4247_v53  ;;  %1791 = vmatprep.mubr.bf16.mxu0 %v4249_v54  ;;  %v4308_v53 = vld [vmem:[%s6434_s0 + $0x358] ss:$20 sps:$4 sm:$0xff]  }
  0xe1   :  { %1679 = vmatmul.mubr.bf16.gmra.mrb[80].mxu1 %v4251_v55  ;;  %1792 = vmatmul.mubr.bf16.gmra.mrb[36].mxu0 %v4252_v56  ;;  %v4309_v55 = vld [vmem:[%s6434_s0 + $0x354] ss:$20 sps:$4 sm:$0xff]  }
  0xe2   :  { %1799 = vmatprep.mubr.bf16.mxu0 %v4254_v57  ;;  %3788 = vmatprep.mubr.msk.bf16.mxu1 %vm1301_vm0, %v4256_v58  ;;  %v4315_v56 = vld [vmem:[%s6434_s0 + $0x380] ss:$20 sps:$4 sm:$0xff]  }
  0xe9   :  { %1800 = vmatmul.mubr.bf16.gmra.mrb[40].mxu0 %v4257_v59  ;;  %3789 = vmatmul.mubr.msk.bf16.vlgmr.msra.gmra.mrb[84].mxu1 %vm1301_vm0, %v4258_v60  ;;  %v4311_v60 = vld [vmem:[%s6434_s0 + $0x350] ss:$20 sps:$4 sm:$0xff]  }
  0xea   :  { %1807 = vmatprep.mubr.bf16.mxu0 %v4259_v61  ;;  %3792 = vmatprep.mubr.msk.bf16.mxu1 %vm1301_vm0, %v4261_v62  ;;  %v4316_v61 = vld [vmem:[%s6434_s0 + $0x3a8] ss:$20 sps:$4 sm:$0xff]  }
  0xf1   :  { %1808 = vmatmul.mubr.bf16.gmra.mrb[44].mxu0 %v4262_v63  ;;  %3793 = vmatmul.mubr.msk.bf16.gmra.mrb[88].mxu1 %vm1301_vm0, %v4263_v1  ;;  %v4312_v63 = vld [vmem:[%s6434_s0 + $0x37c] ss:$20 sps:$4 sm:$0xff]  }
  0xf2   :  { %1815 = vmatprep.mubr.bf16.mxu0 %v4264_v2  ;;  %3796 = vmatprep.mubr.msk.bf16.mxu1 %vm1301_vm0, %v4266_v3  ;;  %v4323_v1 = vld [vmem:[%s6434_s0 + $0x3d0] ss:$20 sps:$4 sm:$0xff]  }
  0xf9   :  { %1816 = vmatmul.mubr.bf16.gmra.mrb[48].mxu0 %v4267_v4  ;;  %3797 = vmatmul.mubr.msk.bf16.gmra.mrb[92].mxu1 %vm1301_vm0, %v4268_v5  ;;  %v4314_v5 = vld [vmem:[%s6434_s0 + $0x378] ss:$20 sps:$4 sm:$0xff]  }
  0xfa   :  { %1823 = vmatprep.mubr.bf16.mxu0 %v4269_v6  ;;  %3800 = vmatprep.mubr.msk.bf16.mxu1 %vm1301_vm0, %v4271_v7  ;;  %v4324_v6 = vld [vmem:[%s6434_s0 + $0x3f8] ss:$20 sps:$4 sm:$0xff]  }
 0x101   :  { %1824 = vmatmul.mubr.bf16.gmra.mrb[52].mxu0 %v4272_v8  ;;  %3801 = vmatmul.mubr.msk.bf16.gmra.mrb[96].mxu1 %vm1301_vm0, %v4273_v9  ;;  %v4317_v8 = vld [vmem:[%s6434_s0 + $0x3a4] ss:$20 sps:$4 sm:$0xff]   ;;  %v4331_v9 = vld [vmem:[%s6434_s0 + $0x420] ss:$20 sps:$4 sm:$0xff]  }
 0x102   :  { %1831 = vmatprep.mubr.bf16.mxu0 %v4274_v10  ;;  %3804 = vmatprep.mubr.msk.bf16.mxu1 %vm1301_vm0, %v4276_v11 }
 0x109   :  { %1832 = vmatmul.mubr.bf16.gmra.mrb[56].mxu0 %v4277_v12  ;;  %3805 = vmatmul.mubr.msk.bf16.gmra.mrb[100].mxu1 %vm1301_vm0, %v4278_v13  ;;  %v4319_v13 = vld [vmem:[%s6434_s0 + $0x3a0] ss:$20 sps:$4 sm:$0xff]  }
 0x10a   :  { %1839 = vmatprep.mubr.bf16.mxu0 %v4279_v14  ;;  %3808 = vmatprep.mubr.msk.bf16.mxu1 %vm1301_vm0, %v4281_v0  ;;  %v4332_v14 = vld [vmem:[%s6434_s0 + $0x448] ss:$20 sps:$4 sm:$0xff]  }
 0x111   :  { %1840 = vmatmul.mubr.bf16.gmra.mrb[60].mxu0 %v4282_v15  ;;  %3809 = vmatmul.mubr.msk.bf16.gmra.mrb[104].mxu1 %vm1301_vm0, %v4283_v16  ;;  %v4320_v15 = vld [vmem:[%s6434_s0 + $0x3cc] ss:$20 sps:$4 sm:$0xff]  }
 0x112   :  { %1847 = vmatprep.mubr.bf16.mxu0 %v4284_v17  ;;  %3812 = vmatprep.mubr.msk.bf16.mxu1 %vm1301_vm0, %v4286_v18  ;;  %v4339_v17 = vld [vmem:[%s6434_s0 + $0x470] ss:$20 sps:$4 sm:$0xff]  }
 0x114   :  { %v4887_v19 = vpop.f32.mrb[0].mxu1 }
 0x115   :  { %v1522_v22 = vpop.f32.mrb[1].mxu1 }
 0x116   :  { %v4901_v25 = vpop.f32.mrb[2].mxu1  ;;  %v4340_v22 = vld [vmem:[%s6434_s0 + $0x498] ss:$20 sps:$4 sm:$0xff]  }
 0x117   :  { %v1525_v26 = vpop.f32.mrb[3].mxu1 }
 0x119   :  { %1848 = vmatmul.mubr.bf16.gmra.mrb[64].mxu0 %v4287_v20  ;;  %3813 = vmatmul.mubr.msk.bf16.gmra.mrb[108].mxu1 %vm1301_vm0, %v4288_v21  ;;  %v4322_v21 = vld [vmem:[%s6434_s0 + $0x3c8] ss:$20 sps:$4 sm:$0xff]  }
 0x11a   :  { %1855 = vmatprep.mubr.bf16.mxu0 %v4289_v23  ;;  %3816 = vmatprep.mubr.msk.bf16.mxu1 %vm1301_vm0, %v4291_v24  ;;  %v4325_v24 = vld [vmem:[%s6434_s0 + $0x3f4] ss:$20 sps:$4 sm:$0xff]  }
 0x11c   :  { %v4905_v27 = vpop.f32.mrb[4].mxu1 }
 0x11d   :  { %v1530_v30 = vpop.f32.mrb[5].mxu1 }
 0x11e   :  { %v4919_v33 = vpop.f32.mrb[6].mxu1 }
 0x11f   :  { %v1533_v34 = vpop.f32.mrb[7].mxu1 }
 0x120   :  { %v4348_v34 = vld [vmem:[%s6434_s0 + $0x4e8] ss:$20 sps:$4 sm:$0xff]  }
 0x121   :  { %1856 = vmatmul.mubr.bf16.gmra.mrb[68].mxu0 %v4292_v28  ;;  %3817 = vmatmul.mubr.msk.bf16.gmra.mrb[112].mxu1 %vm1301_vm0, %v4293_v29  ;;  %v4347_v28 = vld [vmem:[%s6434_s0 + $0x4c0] ss:$20 sps:$4 sm:$0xff]  }
 0x122   :  { %1863 = vmatprep.mubr.bf16.mxu0 %v4294_v31  ;;  %3820 = vmatprep.mubr.msk.bf16.mxu1 %vm1301_vm0, %v4296_v32  ;;  %v4327_v31 = vld [vmem:[%s6434_s0 + $0x3f0] ss:$20 sps:$4 sm:$0xff]  }
 0x124   :  { %v4923_v35 = vpop.f32.mrb[8].mxu1 }
 0x125   :  { %v1538_v38 = vpop.f32.mrb[9].mxu1 }
 0x126   :  { %v4937_v41 = vpop.f32.mrb[10].mxu1 }
 0x127   :  { %v1541_v42 = vpop.f32.mrb[11].mxu1 }
 0x129   :  { %1864 = vmatmul.mubr.bf16.gmra.mrb[72].mxu0 %v4297_v36  ;;  %3821 = vmatmul.mubr.msk.bf16.gmra.mrb[116].mxu1 %vm1301_vm0, %v4298_v37  ;;  %v4328_v36 = vld [vmem:[%s6434_s0 + $0x41c] ss:$20 sps:$4 sm:$0xff]  }
 0x12a   :  { %1871 = vmatprep.mubr.bf16.mxu0 %v4299_v39  ;;  %3824 = vmatprep.mubr.msk.bf16.mxu1 %vm1301_vm0, %v4301_v40  ;;  %v4330_v40 = vld [vmem:[%s6434_s0 + $0x418] ss:$20 sps:$4 sm:$0xff]  }
 0x12c   :  { %v4941_v43 = vpop.f32.mrb[12].mxu1 }
 0x12d   :  { %v1546_v46 = vpop.f32.mrb[13].mxu1 }
 0x12e   :  { %v4955_v49 = vpop.f32.mrb[14].mxu1 }
 0x12f   :  { %v1549_v50 = vpop.f32.mrb[15].mxu1 }
 0x131   :  { %1872 = vmatmul.mubr.bf16.gmra.mrb[76].mxu0 %v4302_v44  ;;  %3825 = vmatmul.mubr.msk.bf16.gmra.mrb[120].mxu1 %vm1301_vm0, %v4303_v45  ;;  %v4333_v44 = vld [vmem:[%s6434_s0 + $0x444] ss:$20 sps:$4 sm:$0xff]  }
 0x132   :  { %1879 = vmatprep.mubr.bf16.mxu0 %v4304_v47  ;;  %3828 = vmatprep.mubr.msk.bf16.mxu1 %vm1301_vm0, %v4307_v48 }
 0x134   :  { %v4959_v51 = vpop.f32.mrb[16].mxu1 }
 0x135   :  { %v1554_v54 = vpop.f32.mrb[17].mxu1 }
 0x136   :  { %v4973_v57 = vpop.f32.mrb[18].mxu1 }
 0x137   :  { %v1557_v58 = vpop.f32.mrb[19].mxu1 }
 0x139   :  { %1880 = vmatmul.mubr.bf16.gmra.mrb[80].mxu0 %v4306_v52  ;;  %3829 = vmatmul.mubr.msk.bf16.gmra.mrb[124].mxu1 %vm1301_vm0, %v4308_v53  ;;  %v4335_v52 = vld [vmem:[%s6434_s0 + $0x440] ss:$20 sps:$4 sm:$0xff]  }
 0x13a   :  { %1887 = vmatprep.mubr.bf16.mxu0 %v4309_v55  ;;  %3832 = vmatprep.mubr.msk.bf16.mxu1 %vm1301_vm0, %v4315_v56  ;;  %v4336_v55 = vld [vmem:[%s6434_s0 + $0x46c] ss:$20 sps:$4 sm:$0xff]  }
 0x13c   :  { %v4977_v59 = vpop.f32.mrb[20].mxu1 }
 0x13d   :  { %v1562_v62 = vpop.f32.mrb[21].mxu1 }
 0x13e   :  { %v4991_v2 = vpop.f32.mrb[22].mxu1 }
 0x13f   :  { %v1565_v3 = vpop.f32.mrb[23].mxu1 }
 0x141   :  { %1888 = vmatmul.mubr.bf16.gmra.mrb[84].mxu0 %v4311_v60  ;;  %3833 = vmatmul.mubr.msk.bf16.gmra.mrb[128].mxu1 %vm1301_vm0, %v4316_v61 }
 0x142   :  { %1895 = vmatprep.mubr.bf16.mxu0 %v4312_v63  ;;  %3836 = vmatprep.mubr.msk.bf16.mxu1 %vm1301_vm0, %v4323_v1  ;;  %v4338_v1 = vld [vmem:[%s6434_s0 + $0x468] ss:$20 sps:$4 sm:$0xff]  }
 0x144   :  { %v4995_v4 = vpop.f32.mrb[24].mxu1 }
 0x145   :  { %v1570_v7 = vpop.f32.mrb[25].mxu1 }
 0x146   :  { %v5009_v10 = vpop.f32.mrb[26].mxu1 }
 0x147   :  { %v1573_v11 = vpop.f32.mrb[27].mxu1 }
 0x149   :  { %1896 = vmatmul.mubr.bf16.gmra.mrb[88].mxu0 %v4314_v5  ;;  %3837 = vmatmul.mubr.msk.bf16.gmra.mrb[132].mxu1 %vm1301_vm0, %v4324_v6  ;;  %v4341_v6 = vld [vmem:[%s6434_s0 + $0x494] ss:$20 sps:$4 sm:$0xff]  }
 0x14a   :  { %1903 = vmatprep.mubr.bf16.mxu0 %v4317_v8  ;;  %3840 = vmatprep.mubr.msk.bf16.mxu1 %vm1301_vm0, %v4331_v9 }
 0x14c   :  { %v5013_v12 = vpop.f32.mrb[28].mxu1 }
 0x14d   :  { %v1578_v0 = vpop.f32.mrb[29].mxu1 }
 0x14e   :  { %v5024_v16 = vpop.f32.mrb[30].mxu1  ;;  %v4343_v0 = vld [vmem:[%s6434_s0 + $0x490] ss:$20 sps:$4 sm:$0xff]  }
 0x14f   :  { %v1581_v18 = vpop.f32.mrb[31].mxu1 }
 0x150   :  { %v4344_v18 = vld [vmem:[%s6434_s0 + $0x4bc] ss:$20 sps:$4 sm:$0xff]  }
 0x151   :  { %1904 = vmatmul.mubr.bf16.gmra.mrb[92].mxu0 %v4319_v13  ;;  %3841 = vmatmul.mubr.msk.bf16.gmra.mrb[136].mxu1 %vm1301_vm0, %v4332_v14 }
 0x152   :  { %1911 = vmatprep.mubr.bf16.mxu0 %v4320_v15  ;;  %3844 = vmatprep.mubr.msk.bf16.mxu1 %vm1301_vm0, %v4339_v17 }
 0x154   :  { %v5031_v20 = vpop.f32.mrb[32].mxu1 }
 0x155   :  { %v1586_v23 = vpop.f32.mrb[33].mxu1 }
 0x156   :  { %v5042_v26 = vpop.f32.mrb[34].mxu1 }
 0x157   :  { %v1589_v29 = vpop.f32.mrb[35].mxu1 }
 0x158   :  { %v2468_v29 = vld [vmem:[%s6435_s2 + $0x8] sm:$0xff] }
 0x159   :  { %1912 = vmatmul.mubr.bf16.gmra.mrb[96].mxu0 %v4322_v21  ;;  %3845 = vmatmul.mubr.msk.bf16.gmra.mrb[140].mxu1 %vm1301_vm0, %v4340_v22 }
 0x15a   :  { %1919 = vmatprep.mubr.bf16.mxu0 %v4325_v24  ;;  %3848 = vmatprep.mubr.msk.bf16.mxu1 %vm1301_vm0, %v4347_v28  ;;  %v6440_v24 = vmov 0.0|0.0   ;;  %v2467_v28 = vld [vmem:[%s6435_s2] sm:$0xff] }
 0x15b   :  { %3922 = vmatprep.subr.bf16.mxu1 %v6440_v24 }
 0x15c   :  { %v5049_v30 = vpop.f32.mrb[36].mxu1 }
 0x15d   :  { %v1594_v32 = vpop.f32.mrb[37].mxu1 }
 0x15e   :  { %v5060_v37 = vpop.f32.mrb[38].mxu1 }
 0x15f   :  { %v1597_v38 = vpop.f32.mrb[39].mxu1 }
 0x160   :  { %v4346_v38 = vld [vmem:[%s6434_s0 + $0x4b8] ss:$20 sps:$4 sm:$0xff]  }
 0x161   :  { %1920 = vmatmul.mubr.bf16.gmra.mrb[100].mxu0 %v4327_v31  ;;  %3849 = vmatmul.mubr.msk.bf16.gmra.mrb[144].mxu1 %vm1301_vm0, %v4348_v34  ;;  %v5122_v31 = vpack.c.bf16 %v2468_v29, %v2467_v28 }
 0x162   :  { %1927 = vmatprep.mubr.bf16.mxu0 %v4328_v36 }
 0x163   :  { %6476 = vst [vmem:[#allocation2_spill] sm:$0xff] %v5122_v31  ;;  %3924 = vmatpush3.bf16.msra.mxu1 %v5122_v31 }
 0x164   :  { %v5063_v39 = vpop.f32.mrb[40].mxu1  ;;  %3925 = vmatprep.subr.bf16.mxu1 %v6440_v24 }
 0x165   :  { %v1602_v42 = vpop.f32.mrb[41].mxu1 }
 0x166   :  { %v5071_v45 = vpop.f32.mrb[42].mxu1 }
 0x167   :  { %v1605_v46 = vpop.f32.mrb[43].mxu1 }
 0x169   :  { %1928 = vmatmul.mubr.bf16.gmra.mrb[104].mxu0 %v4330_v40 }
 0x16a   :  { %1935 = vmatprep.mubr.bf16.mxu0 %v4333_v44  ;;  %v4349_v44 = vld [vmem:[%s6434_s0 + $0x4e4] ss:$20 sps:$4 sm:$0xff]  }
 0x16c   :  { %v5073_v47 = vpop.f32.mrb[0].mxu0  ;;  %v5075_v48 = vpop.f32.mrb[44].mxu1 }
 0x16d   :  { %v1723_v50 = vpop.f32.mrb[1].mxu0  ;;  %v1610_v53 = vpop.f32.mrb[45].mxu1 }
 0x16e   :  { %v5080_v54 = vpop.f32.mrb[2].mxu0  ;;  %v5085_v56 = vpop.f32.mrb[46].mxu1 }
 0x16f   :  { %v1726_v58 = vpop.f32.mrb[3].mxu0  ;;  %v1613_v60 = vpop.f32.mrb[47].mxu1 }
 0x170   :  { %v4351_v60 = vld [vmem:[%s6434_s0 + $0x4e0] ss:$20 sps:$4 sm:$0xff]  }
 0x171   :  { %1936 = vmatmul.mubr.bf16.gmra.mrb[108].mxu0 %v4335_v52 }
 0x172   :  { %1943 = vmatprep.mubr.bf16.mxu0 %v4336_v55 }
 0x174   :  { %v5087_v61 = vpop.f32.mrb[4].mxu0  ;;  %v5089_v62 = vpop.f32.mrb[48].mxu1 }
 0x175   :  { %v1731_v63 = vpop.f32.mrb[5].mxu0  ;;  %v1618_v3 = vpop.f32.mrb[49].mxu1 }
 0x176   :  { %v5094_v5 = vpop.f32.mrb[6].mxu0  ;;  %v5099_v7 = vpop.f32.mrb[50].mxu1 }
 0x177   :  { %v1734_v8 = vpop.f32.mrb[7].mxu0  ;;  %v1621_v9 = vpop.f32.mrb[51].mxu1 }
 0x178   :  { %v2470_v8 = vld [vmem:[%s6435_s2 + $0x18] sm:$0xff] }
 0x179   :  { %1944 = vmatmul.mubr.bf16.gmra.mrb[112].mxu0 %v4338_v1 }
 0x17a   :  { %1951 = vmatprep.mubr.bf16.mxu0 %v4341_v6  ;;  %v2469_v6 = vld [vmem:[%s6435_s2 + $0x10] sm:$0xff] }
 0x17c   :  { %v5101_v11 = vpop.f32.mrb[8].mxu0  ;;  %v5103_v13 = vpop.f32.mrb[52].mxu1 }
 0x17d   :  { %v1739_v14 = vpop.f32.mrb[9].mxu0  ;;  %v1626_v15 = vpop.f32.mrb[53].mxu1 }
 0x17e   :  { %v5108_v17 = vpop.f32.mrb[10].mxu0  ;;  %v5113_v21 = vpop.f32.mrb[54].mxu1 }
 0x17f   :  { %v1742_v22 = vpop.f32.mrb[11].mxu0  ;;  %v1629_v23 = vpop.f32.mrb[55].mxu1 }
 0x181   :  { %1952 = vmatmul.mubr.bf16.gmra.mrb[116].mxu0 %v4343_v0  ;;  %v5157_v0 = vpack.c.bf16 %v2470_v8, %v2469_v6 }
 0x182   :  { %1959 = vmatprep.mubr.bf16.mxu0 %v4344_v18 }
 0x183   :  { %6481 = vst [vmem:[#allocation7_spill] sm:$0xff] %v5157_v0  ;;  %3927 = vmatpush3.bf16.msra.mxu1 %v5157_v0 }
 0x184   :  { %v5126_v32 = vpop.f32.mrb[12].mxu0  ;;  %v5128_v34 = vpop.f32.mrb[56].mxu1  ;;  %3928 = vmatprep.subr.bf16.mxu1 %v6440_v24 }
 0x185   :  { %6477 = vst [vmem:[#allocation3_spill] sm:$0xff] %v5128_v34  ;;  %v1747_v36 = vpop.f32.mrb[13].mxu0  ;;  %v1634_v40 = vpop.f32.mrb[57].mxu1 }
 0x186   :  { %v5133_v42 = vpop.f32.mrb[14].mxu0  ;;  %v5138_v46 = vpop.f32.mrb[58].mxu1  ;;  %v2471_v40 = vld [vmem:[%s6435_s2 + $0x20] sm:$0xff] }
 0x187   :  { %6478 = vst [vmem:[#allocation4_spill] sm:$0xff] %v5138_v46  ;;  %v1750_v50 = vpop.f32.mrb[15].mxu0  ;;  %v1637_v52 = vpop.f32.mrb[59].mxu1 }
 0x189   :  { %1960 = vmatmul.mubr.bf16.gmra.mrb[120].mxu0 %v4346_v38 }
 0x18a   :  { %1967 = vmatprep.mubr.bf16.mxu0 %v4349_v44  ;;  %v2472_v44 = vld [vmem:[%s6435_s2 + $0x28] sm:$0xff] }
 0x18c   :  { %v5140_v53 = vpop.f32.mrb[16].mxu0  ;;  %v5142_v55 = vpop.f32.mrb[60].mxu1 }
 0x18d   :  { %6479 = vst [vmem:[#allocation5_spill] sm:$0xff] %v5142_v55  ;;  %v1755_v58 = vpop.f32.mrb[17].mxu0  ;;  %v1642_v63 = vpop.f32.mrb[61].mxu1 }
 0x18e   :  { %v5147_v1 = vpop.f32.mrb[18].mxu0  ;;  %v5149_v3 = vpop.f32.mrb[62].mxu1  ;;  %v5179_v58 = vpack.c.bf16 %v2472_v44, %v2471_v40 }
 0x18f   :  { %6480 = vst [vmem:[#allocation6_spill] sm:$0xff] %v5149_v3  ;;  %v1758_v9 = vpop.f32.mrb[19].mxu0  ;;  %v1645_v14 = vpop.f32.mrb[63].mxu1 }
 0x190   :  { %6485 = vst [vmem:[#allocation11_spill] sm:$0xff] %v5179_v58  ;;  %3930 = vmatpush3.bf16.msra.mxu1 %v5179_v58  ;;  %v2473_v58 = vld [vmem:[%s6435_s2 + $0x30] sm:$0xff] }
 0x191   :  { %1968 = vmatmul.mubr.bf16.gmra.mrb[124].mxu0 %v4351_v60  ;;  %3931 = vmatprep.subr.bf16.mxu1 %v6440_v24 }
 0x194   :  { %v5161_v15 = vpop.f32.mrb[20].mxu0  ;;  %v5163_v18 = vpop.f32.mrb[64].mxu1 }
 0x195   :  { %6482 = vst [vmem:[#allocation8_spill] sm:$0xff] %v5163_v18  ;;  %v1763_v22 = vpop.f32.mrb[21].mxu0  ;;  %v1650_v23 = vpop.f32.mrb[65].mxu1 }
 0x196   :  { %v5165_v28 = vpop.f32.mrb[22].mxu0  ;;  %v5167_v29 = vpop.f32.mrb[66].mxu1 }
 0x197   :  { %6483 = vst [vmem:[#allocation9_spill] sm:$0xff] %v5167_v29  ;;  %v1766_v36 = vpop.f32.mrb[23].mxu0  ;;  %v1653_v38 = vpop.f32.mrb[67].mxu1 }
 0x19c   :  { %v5175_v50 = vpop.f32.mrb[24].mxu0  ;;  %v5177_v52 = vpop.f32.mrb[68].mxu1 }
 0x19d   :  { %6484 = vst [vmem:[#allocation10_spill] sm:$0xff] %v5177_v52  ;;  %v1771_v60 = vpop.f32.mrb[25].mxu0  ;;  %v1658_v63 = vpop.f32.mrb[69].mxu1 }
 0x19e   :  { %v5181_v6 = vpop.f32.mrb[26].mxu0  ;;  %v5183_v8 = vpop.f32.mrb[70].mxu1 }
 0x19f   :  { %6486 = vst [vmem:[#allocation12_spill] sm:$0xff] %v5183_v8  ;;  %v1774_v9 = vpop.f32.mrb[27].mxu0  ;;  %v1661_v14 = vpop.f32.mrb[71].mxu1 }
 0x1a0   :  { %v2474_v9 = vld [vmem:[%s6435_s2 + $0x38] sm:$0xff] }
 0x1a4   :  { %v5187_v22 = vpop.f32.mrb[28].mxu0  ;;  %v5189_v23 = vpop.f32.mrb[72].mxu1 }
 0x1a5   :  { %6487 = vst [vmem:[#allocation13_spill] sm:$0xff] %v5189_v23  ;;  %v1779_v36 = vpop.f32.mrb[29].mxu0  ;;  %v1666_v38 = vpop.f32.mrb[73].mxu1  ;;  %v6492_v23 = vmov 0.0|0.0  }
 0x1a6   :  { %v5191_v40 = vpop.f32.mrb[30].mxu0  ;;  %v5193_v44 = vpop.f32.mrb[74].mxu1  ;;  %v5205_v36 = vpack.c.bf16 %v2474_v9, %v2473_v58 }
 0x1a7   :  { %6488 = vst [vmem:[#allocation14_spill] sm:$0xff] %v5193_v44  ;;  %v1782_v60 = vpop.f32.mrb[31].mxu0  ;;  %v1669_v63 = vpop.f32.mrb[75].mxu1 }
 0x1a8   :  { %6490 = vst [vmem:[#allocation16_spill] sm:$0xff] %v5205_v36  ;;  %3933 = vmatpush3.bf16.msra.mxu1 %v5205_v36  ;;  %v2475_v36 = vld [vmem:[%s6435_s2 + $0x40] sm:$0xff] }
 0x1a9   :  { %3934 = vmatprep.subr.bf16.mxu1 %v6492_v23 }
 0x1ac   :  { %v5201_v14 = vpop.f32.mrb[32].mxu0  ;;  %v5203_v24 = vpop.f32.mrb[76].mxu1 }
 0x1ad   :  { %6489 = vst [vmem:[#allocation15_spill] sm:$0xff] %v5203_v24  ;;  %v1787_v38 = vpop.f32.mrb[33].mxu0  ;;  %v1674_v0 = vpop.f32.mrb[77].mxu1 }
 0x1ae   :  { %v5207_v31 = vpop.f32.mrb[34].mxu0  ;;  %v5209_v60 = vpop.f32.mrb[78].mxu1 }
 0x1af   :  { %6491 = vst [vmem:[#allocation17_spill] sm:$0xff] %v5209_v60  ;;  %v1790_v63 = vpop.f32.mrb[35].mxu0  ;;  %v1677_v44 = vpop.f32.mrb[79].mxu1 }
 0x1b0   :  { %v2476_v44 = vld [vmem:[%s6435_s2 + $0x48] sm:$0xff] }
 0x1b4   :  { %v5213_v8 = vpop.f32.mrb[36].mxu0  ;;  %v5215_v52 = vpop.f32.mrb[80].mxu1 }
 0x1b5   :  { %6493 = vst [vmem:[#allocation18_spill] sm:$0xff] %v5215_v52  ;;  %v1795_v29 = vpop.f32.mrb[37].mxu0  ;;  %v1682_v24 = vpop.f32.mrb[81].mxu1  ;;  %v5229_v52 = vpack.c.bf16 %v2476_v44, %v2475_v36 }
 0x1b6   :  { %v5217_v58 = vpop.f32.mrb[38].mxu0  ;;  %v5219_v9 = vpop.f32.mrb[82].mxu1 }
 0x1b7   :  { %6494 = vst [vmem:[#allocation19_spill] sm:$0xff] %v5219_v9  ;;  %v1798_v0 = vpop.f32.mrb[39].mxu0  ;;  %v1685_v38 = vpop.f32.mrb[83].mxu1  ;;  %6495 = vst [vmem:[#allocation20_spill] sm:$0xff] %v5229_v52  ;;  %3936 = vmatpush3.bf16.msra.mxu1 %v5229_v52 }
 0x1b8   :  { %3937 = vmatprep.subr.bf16.mxu1 %v6492_v23 }
 0x1bc   :  { %v5227_v63 = vpop.f32.mrb[40].mxu0  ;;  %v3790_v60 = vpop.f32.mrb[84].mxu1 }
 0x1bd   :  { %v5232_v24 = vadd.f32 %v3790_v60, %v5087_v61  ;;  %v1803_v29 = vpop.f32.mrb[41].mxu0  ;;  %v2010_v9 = vpop.f32.mrb[85].mxu1 }
 0x1be   :  { %v5235_v0 = vadd.f32 %v2010_v9, %v5073_v47  ;;  %v5237_v38 = vpop.f32.mrb[42].mxu0  ;;  %v3791_v18 = vpop.f32.mrb[86].mxu1 }
 0x1bf   :  { %6496 = vst [vmem:[#allocation21_spill] sm:$0xff] %v5232_v24  ;;  %v5241_v3 = vadd.f32 %v3791_v18, %v5094_v5  ;;  %v1806_v55 = vpop.f32.mrb[43].mxu0  ;;  %v2013_v46 = vpop.f32.mrb[87].mxu1  ;;  %v2336_v5 = vmul.f32 %v5232_v24, %v5232_v24 }
 0x1c0   :  { %6497 = vst [vmem:[#allocation22_spill] sm:$0xff] %v5235_v0  ;;  %v5245_v61 = vadd.f32 %v2013_v46, %v5080_v54  ;;  %v2334_v36 = vmul.f32 %v5235_v0, %v5235_v0 }
 0x1c2   :  { %6498 = vst [vmem:[#allocation23_spill] sm:$0xff] %v5245_v61  ;;  %v2265_v47 = vadd.f32 %v5245_v61, %v5235_v0  ;;  %v2335_v60 = vmul.f32 %v5245_v61, %v5245_v61  ;;  %v2337_v0 = vmul.f32 %v5241_v3, %v5241_v3 }
 0x1c4   :  { %v2266_v55 = vadd.f32 %v2265_v47, %v5232_v24  ;;  %v2398_v18 = vadd.f32 %v2335_v60, %v2334_v36  ;;  %v1809_v9 = vpop.f32.mrb[44].mxu0  ;;  %v3794_v44 = vpop.f32.mrb[88].mxu1 }
 0x1c5   :  { %v5257_v54 = vadd.f32 %v1809_v9, %v4887_v19  ;;  %v5260_v46 = vadd.f32 %v3794_v44, %v5126_v32  ;;  %v1811_v29 = vpop.f32.mrb[45].mxu0  ;;  %v2026_v52 = vpop.f32.mrb[89].mxu1 }
 0x1c6   :  { %v2399_v61 = vadd.f32 %v2398_v18, %v2336_v5  ;;  %v5265_v34 = vadd.f32 %v2026_v52, %v5101_v11  ;;  %v2267_v47 = vadd.f32 %v2266_v55, %v5241_v3  ;;  %v1812_v36 = vpop.f32.mrb[46].mxu0  ;;  %v3795_v60 = vpop.f32.mrb[90].mxu1  ;;  %v2478_v29 = vld [vmem:[%s6435_s2 + $0x58] sm:$0xff] }
 0x1c7   :  { %v5269_v24 = vadd.f32 %v1812_v36, %v4901_v25  ;;  %v5272_v19 = vadd.f32 %v3795_v60, %v5133_v42  ;;  %v1814_v32 = vpop.f32.mrb[47].mxu0  ;;  %v2029_v9 = vpop.f32.mrb[91].mxu1  ;;  %v2477_v42 = vld [vmem:[%s6435_s2 + $0x50] sm:$0xff] }
 0x1c8   :  { %6499 = vst [vmem:[#allocation24_spill] sm:$0xff] %v5265_v34  ;;  %v2268_v44 = vadd.f32 %v2267_v47, %v5265_v34  ;;  %v2338_v5 = vmul.f32 %v5265_v34, %v5265_v34  ;;  %v2400_v18 = vadd.f32 %v2399_v61, %v2337_v0  ;;  %v5278_v11 = vadd.f32 %v2029_v9, %v5108_v17 }
 0x1c9   :  { %v2340_v0 = vmul.f32 %v5260_v46, %v5260_v46  ;;  %v5292_v60 = vpack.c.bf16 %v2478_v29, %v2477_v42 }
 0x1ca   :  { %6500 = vst [vmem:[#allocation25_spill] sm:$0xff] %v5278_v11  ;;  %v2401_v52 = vadd.f32 %v2400_v18, %v2338_v5  ;;  %v2269_v55 = vadd.f32 %v2268_v44, %v5278_v11  ;;  %v2339_v25 = vmul.f32 %v5278_v11, %v5278_v11  ;;  %v2341_v18 = vmul.f32 %v5272_v19, %v5272_v19 }
 0x1cb   :  { %3939 = vmatpush3.bf16.msra.mxu1 %v5292_v60 }
 0x1cc   :  { %v2270_v17 = vadd.f32 %v2269_v55, %v5260_v46  ;;  %v2402_v61 = vadd.f32 %v2401_v52, %v2339_v25  ;;  %v1817_v47 = vpop.f32.mrb[48].mxu0  ;;  %v3798_v36 = vpop.f32.mrb[92].mxu1  ;;  %3940 = vmatprep.subr.bf16.mxu1 %v6492_v23 }
 0x1cd   :  { %v5295_v32 = vadd.f32 %v1817_v47, %v4905_v27  ;;  %v5298_v9 = vadd.f32 %v3798_v36, %v5161_v15  ;;  %v1819_v44 = vpop.f32.mrb[49].mxu0  ;;  %v2042_v5 = vpop.f32.mrb[93].mxu1 }
 0x1ce   :  { %v2403_v11 = vadd.f32 %v2402_v61, %v2340_v0  ;;  %v5303_v34 = vadd.f32 %v2042_v5, %v5140_v53  ;;  %v2271_v52 = vadd.f32 %v2270_v17, %v5272_v19  ;;  %v1820_v55 = vpop.f32.mrb[50].mxu0  ;;  %v3799_v25 = vpop.f32.mrb[94].mxu1 }
 0x1cf   :  { %v5308_v27 = vadd.f32 %v1820_v55, %v4919_v33  ;;  %v5311_v15 = vadd.f32 %v3799_v25, %v5165_v28  ;;  %v1822_v42 = vpop.f32.mrb[51].mxu0  ;;  %v2045_v29 = vpop.f32.mrb[95].mxu1  ;;  %v2344_v36 = vmul.f32 %v5298_v9, %v5298_v9 }
 0x1d0   :  { %v2272_v0 = vadd.f32 %v2271_v52, %v5303_v34  ;;  %v2342_v53 = vmul.f32 %v5303_v34, %v5303_v34  ;;  %v2404_v17 = vadd.f32 %v2403_v11, %v2341_v18  ;;  %v5318_v61 = vadd.f32 %v2045_v29, %v5147_v1 }
 0x1d1   :  { %v2345_v42 = vmul.f32 %v5311_v15, %v5311_v15 }
 0x1d2   :  { %v2405_v47 = vadd.f32 %v2404_v17, %v2342_v53  ;;  %v2273_v33 = vadd.f32 %v2272_v0, %v5318_v61  ;;  %v2343_v28 = vmul.f32 %v5318_v61, %v5318_v61 }
 0x1d4   :  { %v2274_v44 = vadd.f32 %v2273_v33, %v5298_v9  ;;  %v2406_v5 = vadd.f32 %v2405_v47, %v2343_v28  ;;  %v1825_v52 = vpop.f32.mrb[52].mxu0  ;;  %v3802_v55 = vpop.f32.mrb[96].mxu1 }
 0x1d5   :  { %v5327_v25 = vadd.f32 %v1825_v52, %v4923_v35  ;;  %v5330_v1 = vadd.f32 %v3802_v55, %v5187_v22  ;;  %v1827_v11 = vpop.f32.mrb[53].mxu0  ;;  %v2058_v18 = vpop.f32.mrb[97].mxu1 }
 0x1d6   :  { %v2407_v29 = vadd.f32 %v2406_v5, %v2344_v36  ;;  %v5335_v0 = vadd.f32 %v2058_v18, %v5175_v50  ;;  %v2275_v53 = vadd.f32 %v2274_v44, %v5311_v15  ;;  %v1828_v17 = vpop.f32.mrb[54].mxu0  ;;  %v3803_v47 = vpop.f32.mrb[98].mxu1  ;;  %v2480_v11 = vld [vmem:[%s6435_s2 + $0x68] sm:$0xff] }
 0x1d7   :  { %v5339_v33 = vadd.f32 %v1828_v17, %v4937_v41  ;;  %v5342_v35 = vadd.f32 %v3803_v47, %v5191_v40  ;;  %v1830_v22 = vpop.f32.mrb[55].mxu0  ;;  %v2061_v28 = vpop.f32.mrb[99].mxu1  ;;  %v2479_v40 = vld [vmem:[%s6435_s2 + $0x60] sm:$0xff]  ;;  %v2348_v18 = vmul.f32 %v5330_v1, %v5330_v1 }
 0x1d8   :  { %v2276_v52 = vadd.f32 %v2275_v53, %v5335_v0  ;;  %v2346_v36 = vmul.f32 %v5335_v0, %v5335_v0  ;;  %v2408_v5 = vadd.f32 %v2407_v29, %v2345_v42  ;;  %v5348_v50 = vadd.f32 %v2061_v28, %v5181_v6 }
 0x1d9   :  { %v5362_v17 = vpack.c.bf16 %v2480_v11, %v2479_v40 }
 0x1da   :  { %6501 = vst [vmem:[#allocation26_spill] sm:$0xff] %v5348_v50  ;;  %v2409_v44 = vadd.f32 %v2408_v5, %v2346_v36  ;;  %v2277_v55 = vadd.f32 %v2276_v52, %v5348_v50  ;;  %v2347_v41 = vmul.f32 %v5348_v50, %v5348_v50  ;;  %v2349_v36 = vmul.f32 %v5342_v35, %v5342_v35 }
 0x1db   :  { %3942 = vmatpush3.bf16.msra.mxu1 %v5362_v17 }
 0x1dc   :  { %v2278_v6 = vadd.f32 %v2277_v55, %v5330_v1  ;;  %v2410_v42 = vadd.f32 %v2409_v44, %v2347_v41  ;;  %v1833_v29 = vpop.f32.mrb[56].mxu0  ;;  %v3806_v53 = vpop.f32.mrb[100].mxu1  ;;  %3943 = vmatprep.subr.bf16.mxu1 %v6492_v23 }
 0x1dd   :  { %v5365_v47 = vadd.f32 %v1833_v29, %v4941_v43  ;;  %v5368_v22 = vadd.f32 %v3806_v53, %v5213_v8  ;;  %v1835_v28 = vpop.f32.mrb[57].mxu0  ;;  %v2074_v52 = vpop.f32.mrb[101].mxu1 }
 0x1de   :  { %v2411_v5 = vadd.f32 %v2410_v42, %v2348_v18  ;;  %v5373_v50 = vadd.f32 %v2074_v52, %v5201_v14  ;;  %v2279_v44 = vadd.f32 %v2278_v6, %v5342_v35  ;;  %v1836_v55 = vpop.f32.mrb[58].mxu0  ;;  %v3807_v41 = vpop.f32.mrb[102].mxu1 }
 0x1df   :  { %v5378_v43 = vadd.f32 %v1836_v55, %v4955_v49  ;;  %v5381_v8 = vadd.f32 %v3807_v41, %v5217_v58  ;;  %v1838_v40 = vpop.f32.mrb[59].mxu0  ;;  %v2077_v11 = vpop.f32.mrb[103].mxu1  ;;  %v2352_v53 = vmul.f32 %v5368_v22, %v5368_v22 }
 0x1e0   :  { %v2280_v18 = vadd.f32 %v2279_v44, %v5373_v50  ;;  %v2350_v14 = vmul.f32 %v5373_v50, %v5373_v50  ;;  %v2412_v6 = vadd.f32 %v2411_v5, %v2349_v36  ;;  %v5388_v42 = vadd.f32 %v2077_v11, %v5207_v31 }
 0x1e1   :  { %v2353_v40 = vmul.f32 %v5381_v8, %v5381_v8 }
 0x1e2   :  { %v2413_v29 = vadd.f32 %v2412_v6, %v2350_v14  ;;  %v2281_v49 = vadd.f32 %v2280_v18, %v5388_v42  ;;  %v2351_v58 = vmul.f32 %v5388_v42, %v5388_v42 }
 0x1e4   :  { %v2282_v28 = vadd.f32 %v2281_v49, %v5368_v22  ;;  %v2414_v52 = vadd.f32 %v2413_v29, %v2351_v58  ;;  %v1841_v44 = vpop.f32.mrb[60].mxu0  ;;  %v3810_v55 = vpop.f32.mrb[104].mxu1 }
 0x1e5   :  { %v1842_v41 = vadd.f32 %v1841_v44, %v4959_v51  ;;  %v5398_v36 = vadd.f32 %v3810_v55, %v5257_v54  ;;  %v1843_v31 = vpop.f32.mrb[61].mxu0  ;;  %v2090_v5 = vpop.f32.mrb[105].mxu1 }
 0x1e6   :  { %v2415_v11 = vadd.f32 %v2414_v52, %v2352_v53  ;;  %v5403_v18 = vadd.f32 %v2090_v5, %v5227_v63  ;;  %v2283_v14 = vadd.f32 %v2282_v28, %v5381_v8  ;;  %v1844_v6 = vpop.f32.mrb[62].mxu0  ;;  %v3811_v29 = vpop.f32.mrb[106].mxu1 }
 0x1e7   :  { %v1845_v49 = vadd.f32 %v1844_v6, %v4973_v57  ;;  %v5408_v51 = vadd.f32 %v3811_v29, %v5269_v24  ;;  %v1846_v54 = vpop.f32.mrb[63].mxu0  ;;  %v2093_v58 = vpop.f32.mrb[107].mxu1 }
 0x1e8   :  { %v2284_v44 = vadd.f32 %v2283_v14, %v5403_v18  ;;  %v2354_v55 = vmul.f32 %v5403_v18, %v5403_v18  ;;  %v2416_v53 = vadd.f32 %v2415_v11, %v2353_v40  ;;  %v5414_v63 = vadd.f32 %v2093_v58, %v5237_v38 }
 0x1e9   :  { %v2356_v38 = vmul.f32 %v5398_v36, %v5398_v36 }
 0x1ea   :  { %v2417_v52 = vadd.f32 %v2416_v53, %v2354_v55  ;;  %v2285_v28 = vadd.f32 %v2284_v44, %v5414_v63  ;;  %v2355_v57 = vmul.f32 %v5414_v63, %v5414_v63 }
 0x1ec   :  { %v2286_v24 = vadd.f32 %v2285_v28, %v5398_v36  ;;  %v2418_v31 = vadd.f32 %v2417_v52, %v2355_v57  ;;  %v1849_v5 = vpop.f32.mrb[64].mxu0  ;;  %v3814_v6 = vpop.f32.mrb[108].mxu1 }
 0x1ed   :  { %v1850_v14 = vadd.f32 %v1849_v5, %v4977_v59  ;;  %v5422_v29 = vadd.f32 %v3814_v6, %v5327_v25  ;;  %v1851_v40 = vpop.f32.mrb[65].mxu0  ;;  %v2106_v11 = vpop.f32.mrb[109].mxu1 }
 0x1ee   :  { %v5427_v54 = vadd.f32 %v2106_v11, %v5295_v32  ;;  %v2287_v58 = vadd.f32 %v2286_v24, %v5408_v51  ;;  %v1852_v44 = vpop.f32.mrb[66].mxu0  ;;  %v3815_v55 = vpop.f32.mrb[110].mxu1  ;;  %v2419_v28 = vadd.f32 %v2418_v31, %v2356_v38  ;;  %v2357_v32 = vmul.f32 %v5408_v51, %v5408_v51 }
 0x1ef   :  { %v1853_v53 = vadd.f32 %v1852_v44, %v4991_v2  ;;  %v5432_v52 = vadd.f32 %v3815_v55, %v5339_v33  ;;  %v1854_v59 = vpop.f32.mrb[67].mxu0  ;;  %v2109_v25 = vpop.f32.mrb[111].mxu1  ;;  %v2481_v2 = vld [vmem:[%s6435_s2 + $0x70] sm:$0xff]  ;;  %v2482_v33 = vld [vmem:[%s6435_s2 + $0x78] sm:$0xff] }
 0x1f0   :  { %6502 = vst [vmem:[#allocation27_spill] sm:$0xff] %v5427_v54  ;;  %v2288_v57 = vadd.f32 %v2287_v58, %v5427_v54  ;;  %v5436_v5 = vadd.f32 %v2109_v25, %v5308_v27  ;;  %v5447_v6 = vpack.c.bf16 %v2482_v33, %v2481_v2  ;;  %v2358_v31 = vmul.f32 %v5427_v54, %v5427_v54 }
 0x1f1   :  { %6503 = vst [vmem:[#allocation28_spill] sm:$0xff] %v5432_v52  ;;  %v2420_v27 = vadd.f32 %v2419_v28, %v2357_v32  ;;  %v6452_v28 = vmov 0.0  }
 0x1f2   :  { %v2289_v24 = vadd.f32 %v2288_v57, %v5436_v5  ;;  %3945 = vmatpush3.bf16.msra.mxu1 %v5447_v6  ;;  %3884 = vmatprep.mubr.msk.f32.mxu1 %vm4356_vm1, %v6452_v28 }
 0x1f3   :  { %3946 = vmatprep.subr.bf16.mxu1 %v6492_v23 }
 0x1f4   :  { %v2290_v40 = vadd.f32 %v2289_v24, %v5422_v29  ;;  %v1857_v11 = vpop.f32.mrb[68].mxu0  ;;  %v3818_v38 = vpop.f32.mrb[112].mxu1 }
 0x1f5   :  { %v1858_v58 = vadd.f32 %v1857_v11, %v4995_v4  ;;  %v5453_v44 = vadd.f32 %v3818_v38, %v1842_v41  ;;  %v1859_v55 = vpop.f32.mrb[69].mxu0  ;;  %v2122_v59 = vpop.f32.mrb[113].mxu1  ;;  %v2421_v11 = vadd.f32 %v2420_v27, %v2358_v31  ;;  %v2360_v31 = vmul.f32 %v5422_v29, %v5422_v29 }
 0x1f6   :  { %v5457_v25 = vadd.f32 %v2122_v59, %v5365_v47  ;;  %v2291_v57 = vadd.f32 %v2290_v40, %v5432_v52  ;;  %v1860_v2 = vpop.f32.mrb[70].mxu0  ;;  %v3819_v33 = vpop.f32.mrb[114].mxu1  ;;  %v2359_v47 = vmul.f32 %v5436_v5, %v5436_v5 }
 0x1f7   :  { %6504 = vst [vmem:[#allocation29_spill] sm:$0xff] %v5453_v44  ;;  %v1861_v4 = vadd.f32 %v1860_v2, %v5009_v10  ;;  %v5464_v41 = vadd.f32 %v3819_v33, %v1845_v49  ;;  %v1862_v32 = vpop.f32.mrb[71].mxu0  ;;  %v2125_v24 = vpop.f32.mrb[115].mxu1 }
 0x1f8   :  { %6505 = vst [vmem:[#allocation30_spill] sm:$0xff] %v5457_v25  ;;  %v2292_v40 = vadd.f32 %v2291_v57, %v5457_v25  ;;  %v5470_v38 = vadd.f32 %v2125_v24, %v5378_v43  ;;  %v2422_v59 = vadd.f32 %v2421_v11, %v2359_v47 }
 0x1f9   :  { %6506 = vst [vmem:[#allocation31_spill] sm:$0xff] %v5464_v41 }
 0x1fa   :  { %6507 = vst [vmem:[#allocation32_spill] sm:$0xff] %v5470_v38  ;;  %v2293_v55 = vadd.f32 %v2292_v40, %v5470_v38 }
 0x1fc   :  { %v1865_v28 = vpop.f32.mrb[72].mxu0  ;;  %v3822_v54 = vpop.f32.mrb[116].mxu1  ;;  %v2294_v43 = vadd.f32 %v2293_v55, %v5453_v44 }
 0x1fd   :  { %v1866_v10 = vadd.f32 %v1865_v28, %v5013_v12  ;;  %v5474_v49 = vadd.f32 %v3822_v54, %v1858_v58  ;;  %v1867_v2 = vpop.f32.mrb[73].mxu0  ;;  %v2138_v33 = vpop.f32.mrb[117].mxu1  ;;  %v2423_v12 = vadd.f32 %v2422_v59, %v2360_v31  ;;  %v2361_v58 = vmul.f32 %v5432_v52, %v5432_v52 }
 0x1fe   :  { %v5478_v27 = vadd.f32 %v2138_v33, %v1850_v14  ;;  %v1868_v57 = vpop.f32.mrb[74].mxu0  ;;  %v3823_v32 = vpop.f32.mrb[118].mxu1  ;;  %v2295_v28 = vadd.f32 %v2294_v43, %v5464_v41  ;;  %v2362_v14 = vmul.f32 %v5457_v25, %v5457_v25 }
 0x1ff   :  { %6508 = vst [vmem:[#allocation33_spill] sm:$0xff] %v5474_v49  ;;  %v1869_v24 = vadd.f32 %v1868_v57, %v5024_v16  ;;  %v5482_v11 = vadd.f32 %v3823_v32, %v1861_v4  ;;  %v1870_v47 = vpop.f32.mrb[75].mxu0  ;;  %v2141_v40 = vpop.f32.mrb[119].mxu1  ;;  %v2424_v2 = vadd.f32 %v2423_v12, %v2361_v58  ;;  %v2363_v12 = vmul.f32 %v5470_v38, %v5470_v38 }
 0x200   :  { %6509 = vst [vmem:[#allocation34_spill] sm:$0xff] %v5478_v27  ;;  %v5484_v54 = vadd.f32 %v2141_v40, %v1853_v53  ;;  %v2296_v31 = vadd.f32 %v2295_v28, %v5478_v27 }
 0x201   :  { %6510 = vst [vmem:[#allocation35_spill] sm:$0xff] %v5482_v11  ;;  %v2425_v25 = vadd.f32 %v2424_v2, %v2362_v14 }
 0x202   :  { %6511 = vst [vmem:[#allocation36_spill] sm:$0xff] %v5484_v54 }
 0x204   :  { %v1873_v33 = vpop.f32.mrb[76].mxu0  ;;  %v3826_v55 = vpop.f32.mrb[120].mxu1 }
 0x205   :  { %v1874_v16 = vadd.f32 %v1873_v33, %v5031_v20  ;;  %v1875_v4 = vpop.f32.mrb[77].mxu0  ;;  %v2154_v57 = vpop.f32.mrb[121].mxu1  ;;  %v2426_v33 = vadd.f32 %v2425_v25, %v2363_v12  ;;  %v2366_v12 = vmul.f32 %v5478_v27, %v5478_v27 }
 0x206   :  { %v5492_v32 = vadd.f32 %v2154_v57, %v1866_v10  ;;  %v1876_v59 = vpop.f32.mrb[78].mxu0  ;;  %v3827_v53 = vpop.f32.mrb[122].mxu1  ;;  %v2297_v10 = vadd.f32 %v2296_v31, %v5484_v54 }
 0x207   :  { %v5495_v47 = vadd.f32 %v3826_v55, %v1874_v16  ;;  %v1877_v43 = vadd.f32 %v1876_v59, %v5042_v26  ;;  %v1878_v40 = vpop.f32.mrb[79].mxu0  ;;  %v2157_v52 = vpop.f32.mrb[123].mxu1  ;;  %v2364_v26 = vmul.f32 %v5453_v44, %v5453_v44 }
 0x208   :  { %6512 = vst [vmem:[#allocation37_spill] sm:$0xff] %v5492_v32  ;;  %v5500_v58 = vadd.f32 %v2157_v52, %v1869_v24  ;;  %v2298_v59 = vadd.f32 %v2297_v10, %v5474_v49 }
 0x209   :  { %6513 = vst [vmem:[#allocation38_spill] sm:$0xff] %v5495_v47  ;;  %v5502_v20 = vadd.f32 %v3827_v53, %v1877_v43  ;;  %v2427_v25 = vadd.f32 %v2426_v33, %v2364_v26 }
 0x20a   :  { %6514 = vst [vmem:[#allocation39_spill] sm:$0xff] %v5500_v58  ;;  %v2299_v40 = vadd.f32 %v2298_v59, %v5482_v11 }
 0x20b   :  { %6515 = vst [vmem:[#allocation40_spill] sm:$0xff] %v5502_v20 }
 0x20c   :  { %v1881_v4 = vpop.f32.mrb[80].mxu0  ;;  %v3830_v57 = vpop.f32.mrb[124].mxu1  ;;  %v2300_v33 = vadd.f32 %v2299_v40, %v5492_v32 }
 0x20d   :  { %v1882_v28 = vadd.f32 %v1881_v4, %v5049_v30  ;;  %v1883_v55 = vpop.f32.mrb[81].mxu0  ;;  %v2170_v16 = vpop.f32.mrb[125].mxu1  ;;  %v2365_v30 = vmul.f32 %v5464_v41, %v5464_v41 }
 0x20e   :  { %v1884_v14 = vpop.f32.mrb[82].mxu0  ;;  %v3831_v2 = vpop.f32.mrb[126].mxu1 }
 0x20f   :  { %v1885_v52 = vadd.f32 %v1884_v14, %v5060_v37  ;;  %v5510_v24 = vadd.f32 %v2170_v16, %v1882_v28  ;;  %v1886_v53 = vpop.f32.mrb[83].mxu0  ;;  %v2173_v31 = vpop.f32.mrb[127].mxu1  ;;  %v2428_v4 = vadd.f32 %v2427_v25, %v2365_v30  ;;  %v2367_v25 = vmul.f32 %v5484_v54, %v5484_v54 }
 0x211   :  { %6516 = vst [vmem:[#allocation41_spill] sm:$0xff] %v5510_v24  ;;  %v5512_v43 = vadd.f32 %v2173_v31, %v1885_v52  ;;  %v2429_v41 = vadd.f32 %v2428_v4, %v2366_v12 }
 0x213   :  { %6517 = vst [vmem:[#allocation42_spill] sm:$0xff] %v5512_v43 }
 0x214   :  { %v1889_v55 = vpop.f32.mrb[84].mxu0  ;;  %v3834_v10 = vpop.f32.mrb[128].mxu1 }
 0x215   :  { %v1890_v37 = vadd.f32 %v1889_v55, %v5063_v39  ;;  %v1891_v28 = vpop.f32.mrb[85].mxu0  ;;  %v2186_v16 = vpop.f32.mrb[129].mxu1  ;;  %v2301_v39 = vadd.f32 %v2300_v33, %v5500_v58  ;;  %v2430_v55 = vadd.f32 %v2429_v41, %v2367_v25 }
 0x216   :  { %v1892_v14 = vpop.f32.mrb[86].mxu0  ;;  %v3835_v53 = vpop.f32.mrb[130].mxu1 }
 0x217   :  { %v5521_v26 = vadd.f32 %v3830_v57, %v1890_v37  ;;  %v1893_v52 = vadd.f32 %v1892_v14, %v5071_v45  ;;  %v1894_v31 = vpop.f32.mrb[87].mxu0  ;;  %v2189_v59 = vpop.f32.mrb[131].mxu1  ;;  %v2368_v45 = vmul.f32 %v5474_v49, %v5474_v49  ;;  %v2302_v4 = vadd.f32 %v2301_v39, %v5495_v47 }
 0x219   :  { %v5526_v30 = vadd.f32 %v3831_v2, %v1893_v52  ;;  %v2431_v31 = vadd.f32 %v2430_v55, %v2368_v45 }
 0x21c   :  { %v1897_v28 = vpop.f32.mrb[88].mxu0  ;;  %v5529_v27 = vpop.f32.mrb[132].mxu1 }
 0x21d   :  { %v1898_v40 = vadd.f32 %v1897_v28, %v5075_v48  ;;  %v1899_v57 = vpop.f32.mrb[89].mxu0  ;;  %v2202_v37 = vpop.f32.mrb[133].mxu1  ;;  %v2369_v48 = vmul.f32 %v5482_v11, %v5482_v11  ;;  %v2303_v28 = vadd.f32 %v2302_v4, %v5502_v20 }
 0x21e   :  { %v1900_v14 = vpop.f32.mrb[90].mxu0  ;;  %v5534_v12 = vpop.f32.mrb[134].mxu1  ;;  %v2370_v57 = vmul.f32 %v5492_v32, %v5492_v32 }
 0x21f   :  { %v1901_v2 = vadd.f32 %v1900_v14, %v5085_v56  ;;  %v5538_v52 = vadd.f32 %v2186_v16, %v1898_v40  ;;  %v1902_v41 = vpop.f32.mrb[91].mxu0  ;;  %v2205_v33 = vpop.f32.mrb[135].mxu1  ;;  %v2432_v49 = vadd.f32 %v2431_v31, %v2369_v48  ;;  %v2371_v31 = vmul.f32 %v5500_v58, %v5500_v58 }
 0x221   :  { %v5540_v25 = vadd.f32 %v2189_v59, %v1901_v2  ;;  %v2304_v59 = vadd.f32 %v2303_v28, %v5510_v24  ;;  %v2433_v32 = vadd.f32 %v2432_v49, %v2370_v57  ;;  %v2372_v49 = vmul.f32 %v5495_v47, %v5495_v47 }
 0x224   :  { %v1905_v54 = vpop.f32.mrb[92].mxu0  ;;  %v5547_v39 = vpop.f32.mrb[136].mxu1 }
 0x225   :  { %v1906_v56 = vadd.f32 %v1905_v54, %v5089_v62  ;;  %v1907_v16 = vpop.f32.mrb[93].mxu0  ;;  %v2218_v40 = vpop.f32.mrb[137].mxu1  ;;  %v2305_v62 = vadd.f32 %v2304_v59, %v5512_v43  ;;  %v2434_v54 = vadd.f32 %v2433_v32, %v2371_v31 }
 0x226   :  { %v1908_v14 = vpop.f32.mrb[94].mxu0  ;;  %v5550_v55 = vpop.f32.mrb[138].mxu1 }
 0x227   :  { %v5553_v45 = vadd.f32 %v3834_v10, %v1906_v56  ;;  %v1909_v4 = vadd.f32 %v1908_v14, %v5099_v7  ;;  %v1910_v2 = vpop.f32.mrb[95].mxu0  ;;  %v2221_v41 = vpop.f32.mrb[139].mxu1  ;;  %v2306_v28 = vadd.f32 %v2305_v62, %v5521_v26  ;;  %v2373_v62 = vmul.f32 %v5502_v20, %v5502_v20 }
 0x228   :  { %v2435_v2 = vadd.f32 %v2434_v54, %v2372_v49 }
 0x229   :  { %v5558_v48 = vadd.f32 %v3835_v53, %v1909_v4  ;;  %v2307_v31 = vadd.f32 %v2306_v28, %v5526_v30 }
 0x22a   :  { %v2436_v47 = vadd.f32 %v2435_v2, %v2373_v62 }
 0x22c   :  { %v1913_v16 = vpop.f32.mrb[96].mxu0  ;;  %v5561_v11 = vpop.f32.mrb[140].mxu1 }
 0x22d   :  { %v1914_v10 = vadd.f32 %v1913_v16, %v5103_v13  ;;  %v1915_v56 = vpop.f32.mrb[97].mxu0  ;;  %v5565_v7 = vpop.f32.mrb[141].mxu1  ;;  %v2308_v16 = vadd.f32 %v2307_v31, %v5538_v52  ;;  %v6520_v31 = vld [vmem:[#allocation4_spill] sm:$0xff] }
 0x22e   :  { %v1916_v57 = vpop.f32.mrb[98].mxu0  ;;  %v5569_v14 = vpop.f32.mrb[142].mxu1  ;;  %v2374_v56 = vmul.f32 %v5510_v24, %v5510_v24 }
 0x22f   :  { %v1917_v53 = vadd.f32 %v1916_v57, %v5113_v21  ;;  %v5572_v59 = vadd.f32 %v2202_v37, %v1914_v10  ;;  %v1918_v32 = vpop.f32.mrb[99].mxu0  ;;  %v5574_v4 = vpop.f32.mrb[143].mxu1  ;;  %v6519_v10 = vld [vmem:[#allocation3_spill] sm:$0xff]  ;;  %v2309_v49 = vadd.f32 %v2308_v16, %v5540_v25  ;;  %v2376_v16 = vmul.f32 %v5521_v26, %v5521_v26 }
 0x230   :  { %v2437_v62 = vadd.f32 %v2436_v47, %v2374_v56  ;;  %v2377_v47 = vmul.f32 %v5526_v30, %v5526_v30 }
 0x231   :  { %6518 = vst [vmem:[#allocation43_spill] sm:$0xff] %v5572_v59  ;;  %v5577_v13 = vadd.f32 %v2205_v33, %v1917_v53 }
 0x234   :  { %v1921_v21 = vpop.f32.mrb[100].mxu0  ;;  %v5584_v37 = vpop.f32.mrb[144].mxu1 }
 0x235   :  { %v1922_v57 = vadd.f32 %v1921_v21, %v6519_v10  ;;  %v1923_v32 = vpop.f32.mrb[101].mxu0  ;;  %v5587_v54 = vpop.f32.mrb[145].mxu1  ;;  %v2375_v21 = vmul.f32 %v5512_v43, %v5512_v43  ;;  %v2310_v10 = vadd.f32 %v2309_v49, %v5553_v45  ;;  %v6522_v43 = vld [vmem:[#allocation6_spill] sm:$0xff] }
 0x236   :  { %v1924_v28 = vpop.f32.mrb[102].mxu0  ;;  %v5589_v33 = vpop.f32.mrb[146].mxu1 }
 0x237   :  { %v5593_v53 = vadd.f32 %v5529_v27, %v1922_v57  ;;  %v1925_v20 = vadd.f32 %v1924_v28, %v6520_v31  ;;  %v1926_v24 = vpop.f32.mrb[103].mxu0  ;;  %v5596_v2 = vpop.f32.mrb[147].mxu1  ;;  %v2438_v58 = vadd.f32 %v2437_v62, %v2375_v21  ;;  %v2311_v57 = vadd.f32 %v2310_v10, %v5558_v48  ;;  %v6521_v28 = vld [vmem:[#allocation5_spill] sm:$0xff] }
 0x238   :  { %v2378_v62 = vmul.f32 %v5538_v52, %v5538_v52 }
 0x239   :  { %v5602_v32 = vadd.f32 %v5534_v12, %v1925_v20  ;;  %v2439_v44 = vadd.f32 %v2438_v58, %v2376_v16  ;;  %v2312_v49 = vadd.f32 %v2311_v57, %v5572_v59  ;;  %v2379_v16 = vmul.f32 %v5540_v25, %v5540_v25 }
 0x23b   :  { %v2440_v10 = vadd.f32 %v2439_v44, %v2377_v47  ;;  %v6524_v44 = vld [vmem:[#allocation9_spill] sm:$0xff] }
 0x23c   :  { %v1929_v27 = vpop.f32.mrb[104].mxu0 }
 0x23d   :  { %v1930_v24 = vadd.f32 %v1929_v27, %v6521_v28  ;;  %v1931_v31 = vpop.f32.mrb[105].mxu0  ;;  %v2313_v27 = vadd.f32 %v2312_v49, %v5577_v13  ;;  %v2441_v58 = vadd.f32 %v2440_v10, %v2378_v62 }
 0x23e   :  { %v1932_v56 = vpop.f32.mrb[106].mxu0  ;;  %v6523_v31 = vld [vmem:[#allocation8_spill] sm:$0xff] }
 0x23f   :  { %v1933_v20 = vadd.f32 %v1932_v56, %v6522_v43  ;;  %v5612_v12 = vadd.f32 %v2218_v40, %v1930_v24  ;;  %v1934_v38 = vpop.f32.mrb[107].mxu0  ;;  %v2314_v57 = vadd.f32 %v2313_v27, %v5593_v53  ;;  %v2442_v49 = vadd.f32 %v2441_v58, %v2379_v16 }
 0x240   :  { %v2380_v38 = vmul.f32 %v5553_v45, %v5553_v45  ;;  %v2381_v27 = vmul.f32 %v5558_v48, %v5558_v48 }
 0x241   :  { %v5616_v21 = vadd.f32 %v2221_v41, %v1933_v20  ;;  %v2315_v20 = vadd.f32 %v2314_v57, %v5602_v32  ;;  %v6526_v57 = vld [vmem:[#allocation12_spill] sm:$0xff] }
 0x242   :  { %v2443_v10 = vadd.f32 %v2442_v49, %v2380_v38  ;;  %v2383_v49 = vmul.f32 %v5577_v13, %v5577_v13 }
 0x244   :  { %v1937_v28 = vpop.f32.mrb[108].mxu0 }
 0x245   :  { %v1938_v43 = vadd.f32 %v1937_v28, %v6523_v31  ;;  %v1939_v40 = vpop.f32.mrb[109].mxu0  ;;  %v2316_v28 = vadd.f32 %v2315_v20, %v5612_v12  ;;  %v2382_v31 = vmul.f32 %v5572_v59, %v5572_v59 }
 0x246   :  { %v1940_v24 = vpop.f32.mrb[110].mxu0 }
 0x247   :  { %v5626_v41 = vadd.f32 %v5547_v39, %v1938_v43  ;;  %v1941_v47 = vadd.f32 %v1940_v24, %v6524_v44  ;;  %v1942_v56 = vpop.f32.mrb[111].mxu0  ;;  %v6525_v43 = vld [vmem:[#allocation10_spill] sm:$0xff]  ;;  %v2444_v44 = vadd.f32 %v2443_v10, %v2381_v27  ;;  %v2317_v16 = vadd.f32 %v2316_v28, %v5616_v21 }
 0x248   :  { %v2384_v10 = vmul.f32 %v5593_v53, %v5593_v53 }
 0x249   :  { %v5631_v62 = vadd.f32 %v5550_v55, %v1941_v47  ;;  %v2445_v56 = vadd.f32 %v2444_v44, %v2382_v31  ;;  %v2318_v20 = vadd.f32 %v2317_v16, %v5626_v41  ;;  %v2385_v44 = vmul.f32 %v5602_v32, %v5602_v32  ;;  %v6528_v16 = vld [vmem:[#allocation14_spill] sm:$0xff] }
 0x24b   :  { %v2446_v27 = vadd.f32 %v2445_v56, %v2383_v49 }
 0x24c   :  { %v1945_v39 = vpop.f32.mrb[112].mxu0 }
 0x24d   :  { %v1946_v40 = vadd.f32 %v1945_v39, %v6525_v43  ;;  %v1947_v24 = vpop.f32.mrb[113].mxu0  ;;  %v2319_v39 = vadd.f32 %v2318_v20, %v5631_v62  ;;  %v6527_v43 = vld [vmem:[#allocation13_spill] sm:$0xff] }
 0x24e   :  { %v1948_v58 = vpop.f32.mrb[114].mxu0  ;;  %v2447_v24 = vadd.f32 %v2446_v27, %v2384_v10 }
 0x24f   :  { %v1949_v55 = vadd.f32 %v1948_v58, %v6526_v57  ;;  %v5642_v38 = vadd.f32 %v5565_v7, %v1946_v40  ;;  %v1950_v47 = vpop.f32.mrb[115].mxu0 }
 0x250   :  { %v2386_v47 = vmul.f32 %v5612_v12, %v5612_v12  ;;  %v2448_v49 = vadd.f32 %v2447_v24, %v2385_v44 }
 0x251   :  { %v5648_v59 = vadd.f32 %v5574_v4, %v1949_v55  ;;  %v2320_v58 = vadd.f32 %v2319_v39, %v5642_v38  ;;  %v6529_v39 = vld [vmem:[#allocation15_spill] sm:$0xff] }
 0x252   :  { %v2449_v27 = vadd.f32 %v2448_v49, %v2386_v47  ;;  %v2389_v49 = vmul.f32 %v5631_v62, %v5631_v62 }
 0x253   :  { %v2321_v20 = vadd.f32 %v2320_v58, %v5648_v59 }
 0x254   :  { %v1953_v28 = vpop.f32.mrb[116].mxu0 }
 0x255   :  { %v1954_v7 = vadd.f32 %v1953_v28, %v6527_v43  ;;  %v1955_v40 = vpop.f32.mrb[117].mxu0  ;;  %v2387_v28 = vmul.f32 %v5616_v21, %v5616_v21 }
 0x256   :  { %v1956_v31 = vpop.f32.mrb[118].mxu0 }
 0x257   :  { %v5658_v4 = vadd.f32 %v5561_v11, %v1954_v7  ;;  %v1957_v57 = vadd.f32 %v1956_v31, %v6528_v16  ;;  %v1958_v55 = vpop.f32.mrb[119].mxu0  ;;  %v2388_v31 = vmul.f32 %v5626_v41, %v5626_v41  ;;  %v6530_v16 = vld [vmem:[#allocation17_spill] sm:$0xff]  ;;  %v2450_v58 = vadd.f32 %v2449_v27, %v2387_v28 }
 0x259   :  { %v5664_v56 = vadd.f32 %v5569_v14, %v1957_v57  ;;  %v2322_v11 = vadd.f32 %v2321_v20, %v5658_v4  ;;  %v2451_v47 = vadd.f32 %v2450_v58, %v2388_v31 }
 0x25b   :  { %v2323_v57 = vadd.f32 %v2322_v11, %v5664_v56  ;;  %v2452_v27 = vadd.f32 %v2451_v47, %v2389_v49  ;;  %v6532_v11 = vld [vmem:[#allocation19_spill] sm:$0xff]  ;;  %v2392_v47 = vmul.f32 %v5658_v4, %v5658_v4 }
 0x25c   :  { %v1961_v10 = vpop.f32.mrb[120].mxu0 }
 0x25d   :  { %v1962_v43 = vadd.f32 %v1961_v10, %v6529_v39  ;;  %v1963_v7 = vpop.f32.mrb[121].mxu0  ;;  %v2390_v39 = vmul.f32 %v5642_v38, %v5642_v38 }
 0x25e   :  { %v1964_v40 = vpop.f32.mrb[122].mxu0  ;;  %v6531_v7 = vld [vmem:[#allocation18_spill] sm:$0xff] }
 0x25f   :  { %v1965_v14 = vadd.f32 %v1964_v40, %v6530_v16  ;;  %v5675_v24 = vadd.f32 %v5587_v54, %v1962_v43  ;;  %v1966_v44 = vpop.f32.mrb[123].mxu0 }
 0x260   :  { %v2391_v44 = vmul.f32 %v5648_v59, %v5648_v59 }
 0x261   :  { %v5679_v55 = vadd.f32 %v5596_v2, %v1965_v14  ;;  %v2324_v20 = vadd.f32 %v2323_v57, %v5675_v24  ;;  %v2453_v14 = vadd.f32 %v2452_v27, %v2390_v39 }
 0x263   :  { %v2325_v28 = vadd.f32 %v2324_v20, %v5679_v55  ;;  %v2454_v20 = vadd.f32 %v2453_v14, %v2391_v44  ;;  %v6533_v44 = vld [vmem:[#allocation2_spill] sm:$0xff] }
 0x264   :  { %v1969_v10 = vpop.f32.mrb[124].mxu0 }
 0x265   :  { %v1970_v54 = vadd.f32 %v1969_v10, %v6531_v7  ;;  %v1971_v43 = vpop.f32.mrb[125].mxu0  ;;  %v2455_v10 = vadd.f32 %v2454_v20, %v2392_v47  ;;  %v2393_v7 = vmul.f32 %v5664_v56, %v5664_v56  ;;  %v6535_v20 = vld [vmem:[#allocation7_spill] sm:$0xff] }
 0x266   :  { %v1972_v40 = vpop.f32.mrb[126].mxu0 }
 0x267   :  { %v5689_v2 = vadd.f32 %v5584_v37, %v1970_v54  ;;  %v1973_v31 = vadd.f32 %v1972_v40, %v6532_v11  ;;  %v1974_v16 = vpop.f32.mrb[127].mxu0  ;;  %v2394_v54 = vmul.f32 %v5675_v24, %v5675_v24  ;;  %v2456_v40 = vadd.f32 %v2455_v10, %v2393_v7  ;;  %v6536_v10 = vld [vmem:[#allocation11_spill] sm:$0xff] }
 0x269   :  { %v2326_v58 = vadd.f32 %v2325_v28, %v5689_v2  ;;  %v5696_v57 = vadd.f32 %v5589_v33, %v1973_v31  ;;  %v2457_v33 = vadd.f32 %v2456_v40, %v2394_v54  ;;  %v2395_v28 = vmul.f32 %v5679_v55, %v5679_v55 }
 0x26a   :  { %v2396_v31 = vmul.f32 %v5689_v2, %v5689_v2 }
 0x26b   :  { %v2327_v49 = vadd.f32 %v2326_v58, %v5696_v57  ;;  %v2458_v14 = vadd.f32 %v2457_v33, %v2395_v28  ;;  %v6534_v58 = vmov 0.0  }
 0x26d   :  { %v2328_v37 = vrot.slane %v2327_v49, 4  ;;  %v2459_v47 = vadd.f32 %v2458_v14, %v2396_v31 }
 0x26f   :  { %v2329_v39 = vadd.f32 %v2328_v37, %v2327_v49  ;;  %v2397_v49 = vmul.f32 %v5696_v57, %v5696_v57 }
 0x271   :  { %v2330_v43 = vrot.slane %v2329_v39, 2  ;;  %v2460_v37 = vadd.f32 %v2459_v47, %v2397_v49 }
 0x273   :  { %v2331_v27 = vadd.f32 %v2330_v43, %v2329_v39  ;;  %v2461_v7 = vrot.slane %v2460_v37, 4  ;;  %v6537_v39 = vld [vmem:[#allocation16_spill] sm:$0xff] }
 0x274   :  { %v6538_v43 = vld [vmem:[#allocation20_spill] sm:$0xff] }
 0x275   :  { %v2332_v11 = vrot.slane %v2331_v27, 1  ;;  %v2462_v54 = vadd.f32 %v2461_v7, %v2460_v37  ;;  %v2636_v37 = vlaneseq }
 0x277   :  { %v2333_v16 = vadd.f32 %v2332_v11, %v2331_v27  ;;  %v2463_v40 = vrot.slane %v2462_v54, 2 }
 0x279   :  { %3885 = vmatmul.mubr.f32.vlgmr.msra.gmra.mrb[148].mxu1 %v2333_v16  ;;  %v2464_v27 = vadd.f32 %v2463_v40, %v2462_v54 }
 0x27a   :  { %3948 = vmatpush3.bf16.msra.mxu1 %v6533_v44  ;;  %3919 = vmatprep.mubr.msk.f32.mxu1 %vm4356_vm1, %v6534_v58 }
 0x27b   :  { %3949 = vmatprep.subr.bf16.mxu1 %v6492_v23  ;;  %v2465_v33 = vrot.slane %v2464_v27, 1 }
 0x27d   :  { %v2466_v28 = vadd.f32 %v2465_v33, %v2464_v27  ;;  %v6539_v27 = vld [vmem:[#allocation22_spill] sm:$0xff] }
 0x27e   :  { %3951 = vmatpush3.bf16.msra.mxu1 %v6535_v20 }
 0x27f   :  { %3952 = vmatprep.subr.bf16.mxu1 %v6492_v23 }
 0x282   :  { %3954 = vmatpush3.bf16.msra.mxu1 %v6536_v10 }
 0x283   :  { %3955 = vmatprep.subr.bf16.mxu1 %v6492_v23 }
 0x286   :  { %3957 = vmatpush3.bf16.msra.mxu1 %v6537_v39  ;;  %v5737_v39 = vld [vmem:[%s6437_s4] sm:$0x1] }
 0x287   :  { %3958 = vmatprep.subr.bf16.mxu1 %v6492_v23 }
 0x28a   :  { %3960 = vmatpush3.bf16.msra.mxu1 %v6538_v43 }
 0x28b   :  { %3961 = vmatprep.subr.bf16.mxu1 %v6492_v23 }
 0x28e   :  { %3963 = vmatpush3.bf16.msra.mxu1 %v5292_v60 }
 0x28f   :  { %3964 = vmatprep.subr.bf16.mxu1 %v6492_v23 }
 0x292   :  { %3966 = vmatpush3.bf16.msra.mxu1 %v5362_v17  ;;  %v5728_v17 = vshrl.u32 %v2636_v37, 7 }
 0x293   :  { %3967 = vmatprep.subr.bf16.mxu1 %v6492_v23  ;;  %v2628_v23 = vld [vmem:[%s6436_s3] sm:$0x1] }
 0x296   :  { %3969 = vmatpush3.bf16.msra.mxu1 %v5447_v6  ;;  %v6470_v6 = vsub.s32 0, %v5728_v17 }
 0x299   :  { %3920 = vmatmul.mubr.f32.vlgmr.msra.gmra.mrb[150].mxu1 %v2466_v28  ;;  %v6540_v28 = vld [vmem:[#allocation23_spill] sm:$0xff] }
 0x34c   :  { %v2549_v11 = vpop.f32.mrb[148].mxu1 }
 0x34d   :  { %v3886_v31 = vpop.f32.mrb[149].mxu1  ;;  %v2623_v16 = vmul.f32 0.00048828125, %v2549_v11 }
 0x34e   :  { %v6541_v31 = vld [vmem:[#allocation21_spill] sm:$0xff] }
 0x34f   :  { %v2625_v44 = vmul.f32 %v2623_v16, %v2623_v16 }
 0x36c   :  { %v2619_v14 = vpop.f32.mrb[150].mxu1 }
 0x36d   :  { %v2624_v58 = vmul.f32 0.00048828125, %v2619_v14  ;;  %v3921_v47 = vpop.f32.mrb[151].mxu1 }
 0x36e   :  { %v6543_v47 = vld [vmem:[#allocation25_spill] sm:$0xff] }
 0x36f   :  { %v2626_v60 = vsub.f32 %v2624_v58, %v2625_v44  ;;  %v6542_v44 = vld [vmem:[#allocation24_spill] sm:$0xff] }
 0x371   :  { %v2627_v49 = vmax.f32 %v2626_v60, 0.0 }
 0x373   :  { %v2629_v20 = vadd.f32 1e-05, %v2627_v49 }
 0x375   :  { %4352 = vrsqrt.f32 %v2629_v20 }
 0x37f   :  { %v4353_v10 = vpop.eup %4352 }
 0x380   :  { %v2631_v7 = vmul.f32 %v4353_v10, %v2628_v23  ;;  %v6544_v10 = vld [vmem:[#allocation26_spill] sm:$0xff] }
 0x382   :  { %v5739_v54 = vmul.f32 %v2631_v7, %v2623_v16  ;;  %v5743_v43 = vrot.slane %v2631_v7, %v6470_v6  ;;  %v6558_v6 = vld [vmem:[#allocation33_spill] sm:$0xff] }
 0x384   :  { %v2634_v40 = vsub.f32 %v5737_v39, %v5739_v54  ;;  %v5749_v33 = vmul.f32 %v5743_v43, %v6539_v27  ;;  %v5753_v11 = vmul.f32 %v5743_v43, %v6540_v28  ;;  %v5757_v14 = vmul.f32 %v5743_v43, %v6541_v31  ;;  %v6545_v39 = vld [vmem:[#allocation27_spill] sm:$0xff]  ;;  %v6546_v54 = vld [vmem:[#allocation28_spill] sm:$0xff]  ;;  %v6547_v27 = vld [vmem:[#allocation30_spill] sm:$0xff] }
 0x385   :  { %v5761_v16 = vmul.f32 %v5743_v43, %v5241_v3  ;;  %v5765_v58 = vmul.f32 %v5743_v43, %v6542_v44  ;;  %v5769_v60 = vmul.f32 %v5743_v43, %v6543_v47  ;;  %v5773_v49 = vmul.f32 %v5743_v43, %v5260_v46  ;;  %v6548_v28 = vld [vmem:[#allocation32_spill] sm:$0xff]  ;;  %v6550_v44 = vld [vmem:[#allocation29_spill] sm:$0xff]  ;;  %v6552_v47 = vld [vmem:[#allocation31_spill] sm:$0xff] }
 0x386   :  { %v5777_v20 = vmul.f32 %v5743_v43, %v5272_v19  ;;  %v5781_v3 = vmul.f32 %v5743_v43, %v5303_v34  ;;  %v5785_v37 = vmul.f32 %v5743_v43, %v5318_v61  ;;  %v5789_v23 = vmul.f32 %v5743_v43, %v5298_v9 }
 0x387   :  { %v5793_v46 = vmul.f32 %v5743_v43, %v5311_v15  ;;  %v5797_v19 = vmul.f32 %v5743_v43, %v5335_v0  ;;  %v5801_v34 = vmul.f32 %v5743_v43, %v6544_v10  ;;  %v5805_v61 = vmul.f32 %v5743_v43, %v5330_v1  ;;  %v6554_v10 = vld [vmem:[#allocation34_spill] sm:$0xff] }
 0x388   :  { %v5809_v9 = vmul.f32 %v5743_v43, %v5342_v35  ;;  %v5813_v15 = vmul.f32 %v5743_v43, %v5373_v50  ;;  %v5817_v0 = vmul.f32 %v5743_v43, %v5388_v42  ;;  %v5821_v7 = vmul.f32 %v5743_v43, %v5368_v22 }
 0x389   :  { %v5825_v1 = vmul.f32 %v5743_v43, %v5381_v8  ;;  %v5829_v35 = vmul.f32 %v5743_v43, %v5403_v18  ;;  %v5833_v50 = vmul.f32 %v5743_v43, %v5414_v63  ;;  %v5837_v42 = vmul.f32 %v5743_v43, %v5398_v36 }
 0x38a   :  { %v5841_v22 = vmul.f32 %v5743_v43, %v5408_v51  ;;  %v5845_v8 = vmul.f32 %v5743_v43, %v6545_v39  ;;  %v5849_v18 = vmul.f32 %v5743_v43, %v5436_v5  ;;  %v5853_v63 = vmul.f32 %v5743_v43, %v5422_v29 }
 0x38b   :  { %v5857_v36 = vmul.f32 %v5743_v43, %v6546_v54  ;;  %v5861_v51 = vmul.f32 %v5743_v43, %v6547_v27  ;;  %v5865_v31 = vmul.f32 %v5743_v43, %v6548_v28  ;;  %v5869_v5 = vmul.f32 %v5743_v43, %v6550_v44  ;;  %v6556_v54 = vld [vmem:[#allocation36_spill] sm:$0xff] }
 0x38c   :  { %v5873_v29 = vmul.f32 %v5743_v43, %v6552_v47  ;;  %v5877_v39 = vmul.f32 %v5743_v43, %v6554_v10  ;;  %v5881_v27 = vmul.f32 %v5743_v43, %v6556_v54  ;;  %v5885_v28 = vmul.f32 %v5743_v43, %v6558_v6 }
 0x38d   :  { %6549 = vst [vmem:[#allocation3_spill] sm:$0xff] %v5865_v31  ;;  %6551 = vst [vmem:[#allocation4_spill] sm:$0xff] %v5869_v5  ;;  %v6560_v31 = vld [vmem:[#allocation35_spill] sm:$0xff]  ;;  %v6562_v5 = vld [vmem:[#allocation37_spill] sm:$0xff] }
 0x38e   :  { %6553 = vst [vmem:[#allocation5_spill] sm:$0xff] %v5873_v29  ;;  %6555 = vst [vmem:[#allocation6_spill] sm:$0xff] %v5877_v39  ;;  %v5889_v44 = vmul.f32 %v5743_v43, %v6560_v31  ;;  %v5893_v47 = vmul.f32 %v5743_v43, %v6562_v5  ;;  %v6563_v29 = vld [vmem:[#allocation39_spill] sm:$0xff]  ;;  %v6564_v39 = vld [vmem:[#allocation38_spill] sm:$0xff] }
 0x38f   :  { %6557 = vst [vmem:[#allocation8_spill] sm:$0xff] %v5881_v27  ;;  %6559 = vst [vmem:[#allocation9_spill] sm:$0xff] %v5885_v28  ;;  %v5897_v10 = vmul.f32 %v5743_v43, %v6563_v29  ;;  %v5901_v54 = vmul.f32 %v5743_v43, %v6564_v39  ;;  %v6565_v27 = vld [vmem:[#allocation40_spill] sm:$0xff]  ;;  %v6566_v28 = vld [vmem:[#allocation41_spill] sm:$0xff]  ;;  %v5917_v29 = vmul.f32 %v5743_v43, %v5521_v26 }
 0x390   :  { %6561 = vst [vmem:[#allocation10_spill] sm:$0xff] %v5889_v44  ;;  %v5905_v6 = vmul.f32 %v5743_v43, %v6565_v27  ;;  %v5909_v31 = vmul.f32 %v5743_v43, %v6566_v28  ;;  %v6567_v44 = vld [vmem:[#allocation42_spill] sm:$0xff]  ;;  %v5921_v39 = vmul.f32 %v5743_v43, %v5526_v30  ;;  %v5925_v27 = vmul.f32 %v5743_v43, %v5538_v52 }
 0x391   :  { %v5913_v5 = vmul.f32 %v5743_v43, %v6567_v44  ;;  %6568 = vst [vmem:[#allocation12_spill] sm:$0xff] %v5917_v29  ;;  %v5929_v28 = vmul.f32 %v5743_v43, %v5540_v25  ;;  %v5933_v44 = vmul.f32 %v5743_v43, %v5553_v45  ;;  %v5937_v26 = vmul.f32 %v5743_v43, %v5558_v48  ;;  %v6569_v29 = vld [vmem:[#allocation43_spill] sm:$0xff] }
 0x392   :  { %v5941_v30 = vmul.f32 %v5743_v43, %v6569_v29  ;;  %v5945_v52 = vmul.f32 %v5743_v43, %v5577_v13  ;;  %v5949_v25 = vmul.f32 %v5743_v43, %v5593_v53  ;;  %v5953_v45 = vmul.f32 %v5743_v43, %v5602_v32 }
 0x393   :  { %v5957_v48 = vmul.f32 %v5743_v43, %v5612_v12  ;;  %v5961_v29 = vmul.f32 %v5743_v43, %v5616_v21  ;;  %v5965_v13 = vmul.f32 %v5743_v43, %v5626_v41  ;;  %v5969_v53 = vmul.f32 %v5743_v43, %v5631_v62 }
 0x394   :  { %v5973_v32 = vmul.f32 %v5743_v43, %v5642_v38  ;;  %v5977_v12 = vmul.f32 %v5743_v43, %v5648_v59  ;;  %v5981_v21 = vmul.f32 %v5743_v43, %v5658_v4  ;;  %v5985_v41 = vmul.f32 %v5743_v43, %v5664_v56 }
 0x395   :  { %6570 = vst [vmem:[#allocation13_spill] sm:$0xff] %v5965_v13  ;;  %v6571_v13 = vsub.s32 0, %v5728_v17  ;;  %v5993_v38 = vmul.f32 %v5743_v43, %v5675_v24  ;;  %v5997_v59 = vmul.f32 %v5743_v43, %v5679_v55  ;;  %v6001_v4 = vmul.f32 %v5743_v43, %v5689_v2 }
 0x396   :  { %v6005_v56 = vmul.f32 %v5743_v43, %v5696_v57 }
 0x397   :  { %v5989_v62 = vrot.slane %v2634_v40, %v6571_v13  ;;  %v6583_v13 = vld [vmem:[#allocation5_spill] sm:$0xff] }
 0x399   :  { %v6009_v17 = vadd.f32 %v5989_v62, %v5749_v33  ;;  %v6013_v24 = vadd.f32 %v5989_v62, %v5753_v11  ;;  %v6017_v55 = vadd.f32 %v5989_v62, %v5757_v14  ;;  %v6021_v2 = vadd.f32 %v5989_v62, %v5761_v16 }
 0x39a   :  { %v6025_v57 = vadd.f32 %v5989_v62, %v5765_v58  ;;  %v6029_v43 = vadd.f32 %v5989_v62, %v5769_v60  ;;  %v6033_v40 = vadd.f32 %v5989_v62, %v5773_v49  ;;  %v6037_v33 = vadd.f32 %v5989_v62, %v5777_v20 }
 0x39b   :  { %6572 = vst [vmem:[#allocation14_spill] sm:$0xff] %v6009_v17  ;;  %6573 = vst [vmem:[#allocation15_spill] sm:$0xff] %v6013_v24  ;;  %v6041_v11 = vadd.f32 %v5989_v62, %v5781_v3  ;;  %v6045_v14 = vadd.f32 %v5989_v62, %v5785_v37  ;;  %v6049_v16 = vadd.f32 %v5989_v62, %v5789_v23 }
 0x39c   :  { %6574 = vst [vmem:[#allocation17_spill] sm:$0xff] %v6017_v55  ;;  %6575 = vst [vmem:[#allocation18_spill] sm:$0xff] %v6021_v2  ;;  %v6053_v58 = vadd.f32 %v5989_v62, %v5793_v46  ;;  %v6057_v60 = vadd.f32 %v5989_v62, %v5797_v19  ;;  %v6061_v49 = vadd.f32 %v5989_v62, %v5801_v34 }
 0x39d   :  { %6576 = vst [vmem:[#allocation19_spill] sm:$0xff] %v6025_v57  ;;  %v6065_v20 = vadd.f32 %v5989_v62, %v5805_v61  ;;  %v6069_v3 = vadd.f32 %v5989_v62, %v5809_v9  ;;  %v6073_v37 = vadd.f32 %v5989_v62, %v5813_v15  ;;  %v6077_v23 = vadd.f32 %v5989_v62, %v5817_v0 }
 0x39e   :  { %v6081_v46 = vadd.f32 %v5989_v62, %v5821_v7  ;;  %v6085_v19 = vadd.f32 %v5989_v62, %v5825_v1  ;;  %v6089_v34 = vadd.f32 %v5989_v62, %v5829_v35  ;;  %v6093_v61 = vadd.f32 %v5989_v62, %v5833_v50 }
 0x39f   :  { %v6097_v9 = vadd.f32 %v5989_v62, %v5837_v42  ;;  %v6101_v15 = vadd.f32 %v5989_v62, %v5841_v22  ;;  %v6105_v0 = vadd.f32 %v5989_v62, %v5845_v8  ;;  %v6109_v7 = vadd.f32 %v5989_v62, %v5849_v18  ;;  %v6580_v42 = vld [vmem:[#allocation3_spill] sm:$0xff]  ;;  %v6582_v8 = vld [vmem:[#allocation4_spill] sm:$0xff] }
 0x3a0   :  { %v6113_v1 = vadd.f32 %v5989_v62, %v5853_v63  ;;  %v6117_v35 = vadd.f32 %v5989_v62, %v5857_v36  ;;  %v6121_v50 = vadd.f32 %v5989_v62, %v5861_v51  ;;  %v6125_v22 = vadd.f32 %v5989_v62, %v6580_v42 }
 0x3a1   :  { %v6129_v18 = vadd.f32 %v5989_v62, %v6582_v8  ;;  %v6133_v63 = vadd.f32 %v5989_v62, %v6583_v13  ;;  %v6153_v13 = vadd.f32 %v5989_v62, %v5893_v47  ;;  %v6173_v47 = vadd.f32 %v5989_v62, %v5913_v5 }
 0x3a2   :  { %6577 = vst [vmem:[#allocation2_spill] sm:$0xff] %v6113_v1  ;;  %6578 = vst [vmem:[#allocation7_spill] sm:$0xff] %v6117_v35  ;;  %v6584_v1 = vld [vmem:[#allocation6_spill] sm:$0xff]  ;;  %v6585_v35 = vld [vmem:[#allocation8_spill] sm:$0xff]  ;;  %v6193_v5 = vadd.f32 %v5989_v62, %v5933_v44  ;;  %v6213_v44 = vadd.f32 %v5989_v62, %v5953_v45  ;;  %v6233_v45 = vadd.f32 %v5989_v62, %v5973_v32 }
 0x3a3   :  { %6579 = vst [vmem:[#allocation11_spill] sm:$0xff] %v6121_v50  ;;  %6581 = vst [vmem:[#allocation16_spill] sm:$0xff] %v6125_v22  ;;  %v6137_v36 = vadd.f32 %v5989_v62, %v6584_v1  ;;  %v6141_v51 = vadd.f32 %v5989_v62, %v6585_v35  ;;  %v6586_v50 = vld [vmem:[#allocation9_spill] sm:$0xff]  ;;  %v6587_v22 = vld [vmem:[#allocation10_spill] sm:$0xff]  ;;  %v6157_v1 = vadd.f32 %v5989_v62, %v5897_v10 }
 0x3a4   :  { %v6145_v42 = vadd.f32 %v5989_v62, %v6586_v50  ;;  %v6149_v8 = vadd.f32 %v5989_v62, %v6587_v22  ;;  %6588 = vst [vmem:[#allocation20_spill] sm:$0xff] %v6153_v13  ;;  %v6161_v35 = vadd.f32 %v5989_v62, %v5901_v54  ;;  %v6165_v50 = vadd.f32 %v5989_v62, %v5905_v6  ;;  %v6589_v13 = vld [vmem:[#allocation12_spill] sm:$0xff] }
 0x3a5   :  { %v6169_v22 = vadd.f32 %v5989_v62, %v5909_v31  ;;  %v6177_v10 = vadd.f32 %v5989_v62, %v6589_v13  ;;  %v6181_v54 = vadd.f32 %v5989_v62, %v5921_v39  ;;  %v6185_v6 = vadd.f32 %v5989_v62, %v5925_v27 }
 0x3a6   :  { %v6189_v31 = vadd.f32 %v5989_v62, %v5929_v28  ;;  %v6197_v13 = vadd.f32 %v5989_v62, %v5937_v26  ;;  %v6201_v39 = vadd.f32 %v5989_v62, %v5941_v30  ;;  %v6205_v27 = vadd.f32 %v5989_v62, %v5945_v52 }
 0x3a7   :  { %v6209_v28 = vadd.f32 %v5989_v62, %v5949_v25  ;;  %v6217_v26 = vadd.f32 %v5989_v62, %v5957_v48  ;;  %v6221_v30 = vadd.f32 %v5989_v62, %v5961_v29  ;;  %v6229_v25 = vadd.f32 %v5989_v62, %v5969_v53 }
 0x3a8   :  { %6590 = vst [vmem:[#allocation22_spill] sm:$0xff] %v6201_v39  ;;  %v6591_v39 = vld [vmem:[#allocation13_spill] sm:$0xff]  ;;  %v6237_v48 = vadd.f32 %v5989_v62, %v5977_v12  ;;  %v6241_v29 = vadd.f32 %v5989_v62, %v5981_v21  ;;  %v6249_v53 = vadd.f32 %v5989_v62, %v5993_v38  ;;  %v6253_v32 = vadd.f32 %v5989_v62, %v5997_v59 }
 0x3a9   :  { %v6225_v52 = vadd.f32 %v5989_v62, %v6591_v39  ;;  %v6245_v39 = vadd.f32 %v5989_v62, %v5985_v41  ;;  %v6257_v12 = vadd.f32 %v5989_v62, %v6001_v4  ;;  %v6261_v21 = vadd.f32 %v5989_v62, %v6005_v56  ;;  %v6599_v57 = vld [vmem:[#allocation7_spill] sm:$0xff] }
 0x3aa   :  { %6592 = vst [vmem:[#allocation23_spill] sm:$0xff] %v6241_v29  ;;  %6594 = vst [vmem:[#allocation24_spill] sm:$0xff] %v6249_v53  ;;  %v2780_v59 = vmax.f32 %v6029_v43, 0.0  ;;  %v2782_v4 = vmax.f32 %v6037_v33, 0.0  ;;  %v2784_v62 = vmax.f32 %v6045_v14, 0.0  ;;  %v2785_v56 = vmax.f32 %v6049_v16, 0.0 }
 0x3ab   :  { %6593 = vst [vmem:[#allocation21_spill] sm:$0xff] %v6245_v39  ;;  %6595 = vst [vmem:[#allocation25_spill] sm:$0xff] %v6253_v32  ;;  %v2781_v32 = vmax.f32 %v6033_v40, 0.0  ;;  %v2786_v41 = vmax.f32 %v6053_v58, 0.0  ;;  %v2787_v39 = vmax.f32 %v6057_v60, 0.0  ;;  %v2788_v38 = vmax.f32 %v6061_v49, 0.0 }
 0x3ac   :  { %6596 = vst [vmem:[#allocation26_spill] sm:$0xff] %v6257_v12  ;;  %6597 = vst [vmem:[#allocation27_spill] sm:$0xff] %v6261_v21  ;;  %v2783_v12 = vmax.f32 %v6041_v11, 0.0  ;;  %v2789_v53 = vmax.f32 %v6065_v20, 0.0  ;;  %v2790_v43 = vmax.f32 %v6069_v3, 0.0  ;;  %v2791_v40 = vmax.f32 %v6073_v37, 0.0 }
 0x3ad   :  { %v2792_v33 = vmax.f32 %v6077_v23, 0.0  ;;  %v2793_v11 = vmax.f32 %v6081_v46, 0.0  ;;  %v2794_v14 = vmax.f32 %v6085_v19, 0.0  ;;  %v2795_v16 = vmax.f32 %v6089_v34, 0.0  ;;  %v6598_v29 = vld [vmem:[#allocation2_spill] sm:$0xff]  ;;  %v6600_v2 = vld [vmem:[#allocation11_spill] sm:$0xff] }
 0x3ae   :  { %v2796_v58 = vmax.f32 %v6093_v61, 0.0  ;;  %v2797_v60 = vmax.f32 %v6097_v9, 0.0  ;;  %v2798_v49 = vmax.f32 %v6101_v15, 0.0  ;;  %v2799_v20 = vmax.f32 %v6105_v0, 0.0  ;;  %v6601_v55 = vld [vmem:[#allocation16_spill] sm:$0xff] }
 0x3af   :  { %v2800_v3 = vmax.f32 %v6109_v7, 0.0  ;;  %v2801_v37 = vmax.f32 %v6598_v29, 0.0  ;;  %v2802_v23 = vmax.f32 %v6599_v57, 0.0  ;;  %v2803_v46 = vmax.f32 %v6600_v2, 0.0  ;;  %v6602_v24 = vld [vmem:[#allocation20_spill] sm:$0xff]  ;;  %v6603_v17 = vld [vmem:[#allocation22_spill] sm:$0xff] }
 0x3b0   :  { %v2804_v19 = vmax.f32 %v6601_v55, 0.0  ;;  %v2805_v34 = vmax.f32 %v6129_v18, 0.0  ;;  %v2806_v61 = vmax.f32 %v6133_v63, 0.0  ;;  %v2807_v9 = vmax.f32 %v6137_v36, 0.0 }
 0x3b1   :  { %v2808_v15 = vmax.f32 %v6141_v51, 0.0  ;;  %v2809_v0 = vmax.f32 %v6145_v42, 0.0  ;;  %v2810_v7 = vmax.f32 %v6149_v8, 0.0  ;;  %v2811_v29 = vmax.f32 %v6602_v24, 0.0  ;;  %v6604_v21 = vld [vmem:[#allocation23_spill] sm:$0xff] }
 0x3b2   :  { %v2812_v57 = vmax.f32 %v6157_v1, 0.0  ;;  %v2813_v2 = vmax.f32 %v6161_v35, 0.0  ;;  %v2814_v55 = vmax.f32 %v6165_v50, 0.0  ;;  %v2815_v18 = vmax.f32 %v6169_v22, 0.0 }
 0x3b3   :  { %v2816_v63 = vmax.f32 %v6173_v47, 0.0  ;;  %v2817_v36 = vmax.f32 %v6177_v10, 0.0  ;;  %v2818_v51 = vmax.f32 %v6181_v54, 0.0  ;;  %v2819_v42 = vmax.f32 %v6185_v6, 0.0 }
 0x3b4   :  { %v2820_v8 = vmax.f32 %v6189_v31, 0.0  ;;  %v2821_v24 = vmax.f32 %v6193_v5, 0.0  ;;  %v2822_v1 = vmax.f32 %v6197_v13, 0.0  ;;  %v2823_v35 = vmax.f32 %v6603_v17, 0.0 }
 0x3b5   :  { %v2824_v50 = vmax.f32 %v6205_v27, 0.0  ;;  %v2825_v22 = vmax.f32 %v6209_v28, 0.0  ;;  %v2826_v47 = vmax.f32 %v6213_v44, 0.0  ;;  %v2827_v10 = vmax.f32 %v6217_v26, 0.0  ;;  %v6605_v27 = vld [vmem:[#allocation21_spill] sm:$0xff]  ;;  %v6606_v44 = vld [vmem:[#allocation24_spill] sm:$0xff] }
 0x3b6   :  { %v2828_v54 = vmax.f32 %v6221_v30, 0.0  ;;  %v2829_v6 = vmax.f32 %v6225_v52, 0.0  ;;  %v2830_v31 = vmax.f32 %v6229_v25, 0.0  ;;  %v2831_v5 = vmax.f32 %v6233_v45, 0.0  ;;  %v6607_v30 = vld [vmem:[#allocation25_spill] sm:$0xff]  ;;  %v6608_v25 = vld [vmem:[#allocation26_spill] sm:$0xff] }
 0x3b7   :  { %v2832_v13 = vmax.f32 %v6237_v48, 0.0  ;;  %v2833_v17 = vmax.f32 %v6604_v21, 0.0  ;;  %v2834_v28 = vmax.f32 %v6605_v27, 0.0  ;;  %v2835_v26 = vmax.f32 %v6606_v44, 0.0  ;;  %v6609_v48 = vld [vmem:[#allocation27_spill] sm:$0xff]  ;;  %v6610_v27 = vld [vmem:[#allocation14_spill] sm:$0xff] }
 0x3b8   :  { %v2836_v52 = vmax.f32 %v6607_v30, 0.0  ;;  %v2837_v45 = vmax.f32 %v6608_v25, 0.0  ;;  %v2838_v21 = vmax.f32 %v6609_v48, 0.0  ;;  %v6611_v44 = vmax.f32 %v6610_v27, 0.0  ;;  %v6612_v30 = vld [vmem:[#allocation15_spill] sm:$0xff]  ;;  %v6614_v27 = vld [vmem:[#allocation17_spill] sm:$0xff] }
 0x3b9   :  { %v6613_v25 = vmax.f32 %v6612_v30, 0.0  ;;  %v6615_v30 = vmax.f32 %v6614_v27, 0.0 }
 0x3bb   :  { %v3522_v48 = vpack.c.bf16 %v6613_v25, %v6611_v44  ;;  %v6616_v25 = vld [vmem:[#allocation18_spill] sm:$0xff] }
 0x3bc   :  { %v6617_v44 = vmax.f32 %v6616_v25, 0.0  ;;  %v6618_v25 = vld [vmem:[#allocation19_spill] sm:$0xff] }
 0x3bd   :  { %3523 = vst [vmem:[%s6438_s5] sm:$0xff] %v3522_v48  }
 0x3be   :  { %v3527_v27 = vpack.c.bf16 %v6617_v44, %v6615_v30  ;;  %v6619_v30 = vmax.f32 %v6618_v25, 0.0  ;;  %v3537_v25 = vpack.c.bf16 %v2782_v4, %v2781_v32  ;;  %v3552_v4 = vpack.c.bf16 %v2788_v38, %v2787_v39 }
 0x3bf   :  { %v3557_v32 = vpack.c.bf16 %v2790_v43, %v2789_v53  ;;  %v3572_v39 = vpack.c.bf16 %v2796_v58, %v2795_v16  ;;  %v3577_v53 = vpack.c.bf16 %v2798_v49, %v2797_v60  ;;  %v3582_v38 = vpack.c.bf16 %v2800_v3, %v2799_v20 }
 0x3c0   :  { %v3532_v44 = vpack.c.bf16 %v2780_v59, %v6619_v30  ;;  %v3542_v30 = vpack.c.bf16 %v2784_v62, %v2783_v12  ;;  %v3547_v59 = vpack.c.bf16 %v2786_v41, %v2785_v56  ;;  %3679 = vst [vmem:[%s6438_s5 + $0x8] sm:$0xff] %v3527_v27   ;;  %3681 = vst [vmem:[%s6438_s5 + $0x18] sm:$0xff] %v3537_v25  }
 0x3c1   :  { %v3562_v12 = vpack.c.bf16 %v2792_v33, %v2791_v40  ;;  %v3567_v41 = vpack.c.bf16 %v2794_v14, %v2793_v11  ;;  %3684 = vst [vmem:[%s6438_s5 + $0x30] sm:$0xff] %v3552_v4   ;;  %3685 = vst [vmem:[%s6438_s5 + $0x38] sm:$0xff] %v3557_v32   ;;  %v3587_v62 = vpack.c.bf16 %v2802_v23, %v2801_v37 }
 0x3c2   :  { %3680 = vst [vmem:[%s6438_s5 + $0x10] sm:$0xff] %v3532_v44   ;;  %3682 = vst [vmem:[%s6438_s5 + $0x20] sm:$0xff] %v3542_v30   ;;  %v3592_v56 = vpack.c.bf16 %v2804_v19, %v2803_v46  ;;  %v3597_v43 = vpack.c.bf16 %v2806_v61, %v2805_v34  ;;  %v3602_v40 = vpack.c.bf16 %v2808_v15, %v2807_v9 }
 0x3c3   :  { %3683 = vst [vmem:[%s6438_s5 + $0x28] sm:$0xff] %v3547_v59   ;;  %3686 = vst [vmem:[%s6438_s5 + $0x40] sm:$0xff] %v3562_v12   ;;  %v3607_v33 = vpack.c.bf16 %v2810_v7, %v2809_v0  ;;  %v3612_v11 = vpack.c.bf16 %v2812_v57, %v2811_v29  ;;  %v3617_v14 = vpack.c.bf16 %v2814_v55, %v2813_v2 }
 0x3c4   :  { %3687 = vst [vmem:[%s6438_s5 + $0x48] sm:$0xff] %v3567_v41   ;;  %3688 = vst [vmem:[%s6438_s5 + $0x50] sm:$0xff] %v3572_v39   ;;  %v3622_v16 = vpack.c.bf16 %v2816_v63, %v2815_v18  ;;  %v3627_v58 = vpack.c.bf16 %v2818_v51, %v2817_v36  ;;  %v3632_v60 = vpack.c.bf16 %v2820_v8, %v2819_v42 }
 0x3c5   :  { %3689 = vst [vmem:[%s6438_s5 + $0x58] sm:$0xff] %v3577_v53   ;;  %3690 = vst [vmem:[%s6438_s5 + $0x60] sm:$0xff] %v3582_v38   ;;  %v3637_v49 = vpack.c.bf16 %v2822_v1, %v2821_v24  ;;  %v3642_v20 = vpack.c.bf16 %v2824_v50, %v2823_v35  ;;  %v3647_v3 = vpack.c.bf16 %v2826_v47, %v2825_v22 }
 0x3c6   :  { %3691 = vst [vmem:[%s6438_s5 + $0x68] sm:$0xff] %v3587_v62   ;;  %3692 = vst [vmem:[%s6438_s5 + $0x70] sm:$0xff] %v3592_v56   ;;  %v3652_v37 = vpack.c.bf16 %v2828_v54, %v2827_v10  ;;  %v3657_v23 = vpack.c.bf16 %v2830_v31, %v2829_v6  ;;  %v3662_v46 = vpack.c.bf16 %v2832_v13, %v2831_v5 }
 0x3c7   :  { %3693 = vst [vmem:[%s6438_s5 + $0x78] sm:$0xff] %v3597_v43   ;;  %3694 = vst [vmem:[%s6438_s5 + $0x80] sm:$0xff] %v3602_v40   ;;  %v3667_v19 = vpack.c.bf16 %v2834_v28, %v2833_v17  ;;  %v3672_v34 = vpack.c.bf16 %v2836_v52, %v2835_v26  ;;  %v3677_v61 = vpack.c.bf16 %v2838_v21, %v2837_v45 }
 0x3c8   :  { %3695 = vst [vmem:[%s6438_s5 + $0x88] sm:$0xff] %v3607_v33   ;;  %3696 = vst [vmem:[%s6438_s5 + $0x90] sm:$0xff] %v3612_v11  }
 0x3c9   :  { %3697 = vst [vmem:[%s6438_s5 + $0x98] sm:$0xff] %v3617_v14   ;;  %3698 = vst [vmem:[%s6438_s5 + $0xa0] sm:$0xff] %v3622_v16  }
 0x3ca   :  { %3699 = vst [vmem:[%s6438_s5 + $0xa8] sm:$0xff] %v3627_v58   ;;  %3700 = vst [vmem:[%s6438_s5 + $0xb0] sm:$0xff] %v3632_v60  }
 0x3cb   :  { %3701 = vst [vmem:[%s6438_s5 + $0xb8] sm:$0xff] %v3637_v49   ;;  %3702 = vst [vmem:[%s6438_s5 + $0xc0] sm:$0xff] %v3642_v20  }
 0x3cc   :  { %3703 = vst [vmem:[%s6438_s5 + $0xc8] sm:$0xff] %v3647_v3   ;;  %3704 = vst [vmem:[%s6438_s5 + $0xd0] sm:$0xff] %v3652_v37  }
 0x3cd   :  { %3705 = vst [vmem:[%s6438_s5 + $0xd8] sm:$0xff] %v3657_v23   ;;  %3706 = vst [vmem:[%s6438_s5 + $0xe0] sm:$0xff] %v3662_v46  }
 0x3ce   :  { %3707 = vst [vmem:[%s6438_s5 + $0xe8] sm:$0xff] %v3667_v19   ;;  %3708 = vst [vmem:[%s6438_s5 + $0xf0] sm:$0xff] %v3672_v34  }
 0x3cf   :  { %3709 = vst [vmem:[%s6438_s5 + $0xf8] sm:$0xff] %v3677_v61  }

// kernel: adaptive_cnn_forward.14
= control target key start
LH: loop header
LB: loop body
LE: loop exit
PB: predicated region body
PF: predicated region fallthrough
CT: control target
= control target key end

     0   :  { %s3842_s12 = smov 0   ;;  %s4769_s0 = inlined_call_operand.vmem [shape: bf16[2048,288], index: 0, kind: input, shape index: {}]   ;;  %s4770_s1 = inlined_call_operand.vmem [shape: bf16[288,128], index: 1, kind: input, shape index: {}]   ;;  %s4771_s2 = inlined_call_operand.vmem [shape: f32[1,128], index: 2, kind: input, shape index: {}]   ;;  %s4772_s3 = inlined_call_operand.vmem [shape: f32[2048,128], index: 3, kind: output, shape index: {}]  }
   0x1 LB: > { %s3012_s13 = sadd.s32 4294967295, %s3819_s12   ;;  %p3016_p0 = scmp.ge.s32.totalorder %s3819_s12, 1  ;;  %s3819_s12 = sphi %s3842_s12, %s13_s12  }
   0x2   : > { %p139_p1 = scmp.lt.s32.totalorder %s3819_s12, 3 }
   0x4   : > { %p140_p2 = pnand %p3016_p0, %p139_p1 }
   0x6   : > { %143 = sbr.rel (%p140_p2) target bundleno = 673 (0x2a1), region = 32 }
   0xd   : > { %v3538_v0 = vld [vmem:[%s4770_s1] sm:$0xff]   ;;  %v3821_v1 = vmov 0   ;;  %s3017_s16 = sshll.u32 %s3012_s13, 7  ;;  %v3539_v2 = vld [vmem:[%s4770_s1 + $0x8] sm:$0xff]   ;;  %v3540_v3 = vld [vmem:[%s4770_s1 + $0x10] sm:$0xff]   ;;  %vm1545_vm0 = vcmask 261120  }
   0xe   : > { %1738 = vmatprep.subr.bf16.mxu0 %v3821_v1  ;;  %3496 = vmatprep.subr.bf16.mxu1 %v3821_v1  ;;  %p165_p3 = scmp.lt.s32.totalorder %s3017_s16, 255  ;;  %v3541_v4 = vld [vmem:[%s4770_s1 + $0x18] sm:$0xff]   ;;  %v3542_v5 = vld [vmem:[%s4770_s1 + $0x20] sm:$0xff]   ;;  %v3543_v7 = vld [vmem:[%s4770_s1 + $0x28] sm:$0xff]  }
   0xf   : > { %1739 = vmatpush1.bf16.msra.mxu0 %v3538_v0  ;;  %3512 = vmatpush1.bf16.msra.mxu1 %v3538_v0  ;;  %v3544_v9 = vld [vmem:[%s4770_s1 + $0x30] sm:$0xff]   ;;  %v3545_v10 = vld [vmem:[%s4770_s1 + $0x38] sm:$0xff]   ;;  %v3546_v11 = vld [vmem:[%s4770_s1 + $0x40] sm:$0xff]  }
  0x10   : > { %1740 = vmatprep.subr.bf16.mxu0 %v3821_v1  ;;  %3497 = vmatprep.subr.bf16.mxu1 %v3821_v1  ;;  %s4808_s16 = smov (!%p165_p3, %s3017_s16), 255  ;;  %v3547_v12 = vld [vmem:[%s4770_s1 + $0x48] sm:$0xff]   ;;  %v3548_v13 = vld [vmem:[%s4770_s1 + $0x50] sm:$0xff]   ;;  %v3549_v14 = vld [vmem:[%s4770_s1 + $0x58] sm:$0xff]  }
  0x11   : > { %s3528_s23 = smul.u32 12, %s4808_s16  ;;  %v3550_v15 = vld [vmem:[%s4770_s1 + $0x60] sm:$0xff]   ;;  %v3551_v16 = vld [vmem:[%s4770_s1 + $0x68] sm:$0xff]   ;;  %v3552_v17 = vld [vmem:[%s4770_s1 + $0x70] sm:$0xff]   ;;  %s3020_s6 = sshll.u32 %s4808_s16, 3 }
  0x12   : > { %v3553_v18 = vld [vmem:[%s4770_s1 + $0x78] sm:$0xff]   ;;  %v3560_v19 = vld [vmem:[%s4770_s1 + $0x80] sm:$0xff]   ;;  %v3609_v24 = vld [vmem:[%s4770_s1 + $0x88] sm:$0xff]   ;;  %s4316_s9 = scalar_lea.vmem %s4772_s3, %s3020_s6 }
  0x13   : > { %1741 = vmatpush1.bf16.msra.mxu0 %v3539_v2  ;;  %3513 = vmatpush1.bf16.msra.mxu1 %v3539_v2  ;;  %s3879_s28 = scalar_lea.vmem %s4769_s0, %s3528_s23 }
  0x14   : > { %1742 = vmatprep.subr.bf16.mxu0 %v3821_v1  ;;  %3498 = vmatprep.subr.bf16.mxu1 %v3821_v1  ;;  %v3556_v6 = vld [vmem:[%s3879_s28 + $0x4] ss:$12 sps:$4 sm:$0xff]   ;;  %v3554_v20 = vld [vmem:[%s3879_s28] ss:$12 sps:$4 sm:$0xff]   ;;  %v3561_v22 = vld [vmem:[%s3879_s28 + $0x1c] ss:$12 sps:$4 sm:$0xff]  }
  0x15   : > { %v3559_v8 = vld [vmem:[%s3879_s28 + $0x484] ss:$12 sps:$4 sm:$0xff]   ;;  %1770 = vmatprep.mubr.bf16.mxu0 %v3556_v6  ;;  %v3557_v21 = vld [vmem:[%s3879_s28 + $0x480] ss:$12 sps:$4 sm:$0xff]   ;;  %v3563_v23 = vld [vmem:[%s3879_s28 + $0x49c] ss:$12 sps:$4 sm:$0xff]  }
  0x16   : > { %2154 = vmatprep.mubr.bf16.mxu1 %v3559_v8  ;;  %v3565_v25 = vld [vmem:[%s3879_s28 + $0x18] ss:$12 sps:$4 sm:$0xff]   ;;  %v3567_v27 = vld [vmem:[%s3879_s28 + $0x34] ss:$12 sps:$4 sm:$0xff]   ;;  %v3571_v29 = vld [vmem:[%s3879_s28 + $0x30] ss:$12 sps:$4 sm:$0xff]  }
  0x17   : > { %1743 = vmatpush1.bf16.msra.mxu0 %v3540_v3  ;;  %3514 = vmatpush1.bf16.msra.mxu1 %v3540_v3  ;;  %v3566_v26 = vld [vmem:[%s3879_s28 + $0x498] ss:$12 sps:$4 sm:$0xff]   ;;  %v3569_v28 = vld [vmem:[%s3879_s28 + $0x4b4] ss:$12 sps:$4 sm:$0xff]   ;;  %v3572_v30 = vld [vmem:[%s3879_s28 + $0x4b0] ss:$12 sps:$4 sm:$0xff]  }
  0x18   : > { %1744 = vmatprep.subr.bf16.mxu0 %v3821_v1  ;;  %3499 = vmatprep.subr.bf16.mxu1 %v3821_v1  ;;  %v3573_v31 = vld [vmem:[%s3879_s28 + $0x4c] ss:$12 sps:$4 sm:$0xff]   ;;  %v3577_v33 = vld [vmem:[%s3879_s28 + $0x48] ss:$12 sps:$4 sm:$0xff]   ;;  %v3579_v35 = vld [vmem:[%s3879_s28 + $0x64] ss:$12 sps:$4 sm:$0xff]  }
  0x19   : > { %v3575_v32 = vld [vmem:[%s3879_s28 + $0x4cc] ss:$12 sps:$4 sm:$0xff]   ;;  %v3578_v34 = vld [vmem:[%s3879_s28 + $0x4c8] ss:$12 sps:$4 sm:$0xff]   ;;  %v3581_v36 = vld [vmem:[%s3879_s28 + $0x4e4] ss:$12 sps:$4 sm:$0xff]  }
  0x1a   : > { %v3583_v37 = vld [vmem:[%s3879_s28 + $0x60] ss:$12 sps:$4 sm:$0xff]   ;;  %v3585_v39 = vld [vmem:[%s3879_s28 + $0x7c] ss:$12 sps:$4 sm:$0xff]   ;;  %v3589_v41 = vld [vmem:[%s3879_s28 + $0x78] ss:$12 sps:$4 sm:$0xff]  }
  0x1b   : > { %1745 = vmatpush1.bf16.msra.mxu0 %v3541_v4  ;;  %3515 = vmatpush1.bf16.msra.mxu1 %v3541_v4  ;;  %v3584_v38 = vld [vmem:[%s3879_s28 + $0x4e0] ss:$12 sps:$4 sm:$0xff]   ;;  %v3587_v40 = vld [vmem:[%s3879_s28 + $0x4fc] ss:$12 sps:$4 sm:$0xff]   ;;  %v3590_v42 = vld [vmem:[%s3879_s28 + $0x4f8] ss:$12 sps:$4 sm:$0xff]  }
  0x1c   : > { %1746 = vmatprep.subr.bf16.mxu0 %v3821_v1  ;;  %3500 = vmatprep.subr.bf16.mxu1 %v3821_v1  ;;  %v3591_v43 = vld [vmem:[%s3879_s28 + $0x94] ss:$12 sps:$4 sm:$0xff]   ;;  %v3595_v45 = vld [vmem:[%s3879_s28 + $0x90] ss:$12 sps:$4 sm:$0xff]   ;;  %v3597_v47 = vld [vmem:[%s3879_s28 + $0xac] ss:$12 sps:$4 sm:$0xff]  }
  0x1d   : > { %v3593_v44 = vld [vmem:[%s3879_s28 + $0x514] ss:$12 sps:$4 sm:$0xff]   ;;  %v3596_v46 = vld [vmem:[%s3879_s28 + $0x510] ss:$12 sps:$4 sm:$0xff]   ;;  %v3599_v48 = vld [vmem:[%s3879_s28 + $0x52c] ss:$12 sps:$4 sm:$0xff]  }
  0x1e   : > { %v3601_v49 = vld [vmem:[%s3879_s28 + $0xa8] ss:$12 sps:$4 sm:$0xff]   ;;  %v3603_v51 = vld [vmem:[%s3879_s28 + $0xc4] ss:$12 sps:$4 sm:$0xff]   ;;  %v3607_v53 = vld [vmem:[%s3879_s28 + $0xc0] ss:$12 sps:$4 sm:$0xff]  }
  0x1f   : > { %1747 = vmatpush1.bf16.msra.mxu0 %v3542_v5  ;;  %3516 = vmatpush1.bf16.msra.mxu1 %v3542_v5  ;;  %v3602_v50 = vld [vmem:[%s3879_s28 + $0x528] ss:$12 sps:$4 sm:$0xff]   ;;  %v3605_v52 = vld [vmem:[%s3879_s28 + $0x544] ss:$12 sps:$4 sm:$0xff]   ;;  %v3608_v54 = vld [vmem:[%s3879_s28 + $0x540] ss:$12 sps:$4 sm:$0xff]  }
  0x20   : > { %1748 = vmatprep.subr.bf16.mxu0 %v3821_v1  ;;  %3501 = vmatprep.subr.bf16.mxu1 %v3821_v1  ;;  %v3610_v55 = vld [vmem:[%s3879_s28 + $0xdc] ss:$12 sps:$4 sm:$0xff]   ;;  %v3614_v57 = vld [vmem:[%s3879_s28 + $0xd8] ss:$12 sps:$4 sm:$0xff]   ;;  %v3616_v59 = vld [vmem:[%s3879_s28 + $0xf4] ss:$12 sps:$4 sm:$0xff]  }
  0x21   : > { %v3612_v56 = vld [vmem:[%s3879_s28 + $0x55c] ss:$12 sps:$4 sm:$0xff]   ;;  %v3615_v58 = vld [vmem:[%s3879_s28 + $0x558] ss:$12 sps:$4 sm:$0xff]   ;;  %v3618_v60 = vld [vmem:[%s3879_s28 + $0x574] ss:$12 sps:$4 sm:$0xff]  }
  0x22   : > { %v3620_v61 = vld [vmem:[%s3879_s28 + $0xf0] ss:$12 sps:$4 sm:$0xff]   ;;  %v3622_v63 = vld [vmem:[%s3879_s28 + $0x10c] ss:$12 sps:$4 sm:$0xff]   ;;  %v3627_v2 = vld [vmem:[%s3879_s28 + $0x588] ss:$12 sps:$4 sm:$0xff]  }
  0x23   : > { %1749 = vmatpush1.bf16.msra.mxu0 %v3543_v7  ;;  %3517 = vmatpush1.bf16.msra.mxu1 %v3543_v7  ;;  %v3621_v62 = vld [vmem:[%s3879_s28 + $0x570] ss:$12 sps:$4 sm:$0xff]   ;;  %v3624_v0 = vld [vmem:[%s3879_s28 + $0x58c] ss:$12 sps:$4 sm:$0xff]  }
  0x24   : > { %1750 = vmatprep.subr.bf16.mxu0 %v3821_v1  ;;  %3502 = vmatprep.subr.bf16.mxu1 %v3821_v1  ;;  %v3628_v3 = vld [vmem:[%s3879_s28 + $0x124] ss:$12 sps:$4 sm:$0xff]   ;;  %v3632_v5 = vld [vmem:[%s3879_s28 + $0x120] ss:$12 sps:$4 sm:$0xff]   ;;  %v3634_v7 = vld [vmem:[%s3879_s28 + $0x13c] ss:$12 sps:$4 sm:$0xff]  }
  0x25   : > { %v3630_v4 = vld [vmem:[%s3879_s28 + $0x5a4] ss:$12 sps:$4 sm:$0xff]   ;;  %v3633_v6 = vld [vmem:[%s3879_s28 + $0x5a0] ss:$12 sps:$4 sm:$0xff]   ;;  %v3636_v8 = vld [vmem:[%s3879_s28 + $0x5bc] ss:$12 sps:$4 sm:$0xff]  }
  0x27   : > { %1751 = vmatpush1.bf16.msra.mxu0 %v3544_v9  ;;  %3518 = vmatpush1.bf16.msra.mxu1 %v3544_v9  ;;  %v3638_v9 = vld [vmem:[%s3879_s28 + $0x138] ss:$12 sps:$4 sm:$0xff]  }
  0x28   : > { %1752 = vmatprep.subr.bf16.mxu0 %v3821_v1  ;;  %3503 = vmatprep.subr.bf16.mxu1 %v3821_v1 }
  0x2b   : > { %1753 = vmatpush1.bf16.msra.mxu0 %v3545_v10  ;;  %3519 = vmatpush1.bf16.msra.mxu1 %v3545_v10  ;;  %v3639_v10 = vld [vmem:[%s3879_s28 + $0x5b8] ss:$12 sps:$4 sm:$0xff]  }
  0x2c   : > { %1754 = vmatprep.subr.bf16.mxu0 %v3821_v1  ;;  %3504 = vmatprep.subr.bf16.mxu1 %v3821_v1 }
  0x2f   : > { %1755 = vmatpush1.bf16.msra.mxu0 %v3546_v11  ;;  %3520 = vmatpush1.bf16.msra.mxu1 %v3546_v11  ;;  %v3640_v11 = vld [vmem:[%s3879_s28 + $0x154] ss:$12 sps:$4 sm:$0xff]  }
  0x30   : > { %1756 = vmatprep.subr.bf16.mxu0 %v3821_v1  ;;  %3505 = vmatprep.subr.bf16.mxu1 %v3821_v1 }
  0x33   : > { %1757 = vmatpush1.bf16.msra.mxu0 %v3547_v12  ;;  %3521 = vmatpush1.bf16.msra.mxu1 %v3547_v12  ;;  %v3642_v12 = vld [vmem:[%s3879_s28 + $0x5d4] ss:$12 sps:$4 sm:$0xff]  }
  0x34   : > { %1758 = vmatprep.subr.bf16.mxu0 %v3821_v1  ;;  %3506 = vmatprep.subr.bf16.mxu1 %v3821_v1 }
  0x37   : > { %1759 = vmatpush1.bf16.msra.mxu0 %v3548_v13  ;;  %3522 = vmatpush1.bf16.msra.mxu1 %v3548_v13  ;;  %v3644_v13 = vld [vmem:[%s3879_s28 + $0x150] ss:$12 sps:$4 sm:$0xff]  }
  0x38   : > { %1760 = vmatprep.subr.bf16.mxu0 %v3821_v1  ;;  %3507 = vmatprep.subr.bf16.mxu1 %v3821_v1 }
  0x3b   : > { %1761 = vmatpush1.bf16.msra.mxu0 %v3549_v14  ;;  %3523 = vmatpush1.bf16.msra.mxu1 %v3549_v14  ;;  %v3645_v14 = vld [vmem:[%s3879_s28 + $0x5d0] ss:$12 sps:$4 sm:$0xff]  }
  0x3c   : > { %1762 = vmatprep.subr.bf16.mxu0 %v3821_v1  ;;  %3508 = vmatprep.subr.bf16.mxu1 %v3821_v1 }
  0x3f   : > { %1763 = vmatpush1.bf16.msra.mxu0 %v3550_v15  ;;  %3524 = vmatpush1.bf16.msra.mxu1 %v3550_v15  ;;  %v3646_v15 = vld [vmem:[%s3879_s28 + $0x16c] ss:$12 sps:$4 sm:$0xff]  }
  0x40   : > { %1764 = vmatprep.subr.bf16.mxu0 %v3821_v1  ;;  %3509 = vmatprep.subr.bf16.mxu1 %v3821_v1 }
  0x43   : > { %1765 = vmatpush1.bf16.msra.mxu0 %v3551_v16  ;;  %3525 = vmatpush1.bf16.msra.mxu1 %v3551_v16  ;;  %v3648_v16 = vld [vmem:[%s3879_s28 + $0x5ec] ss:$12 sps:$4 sm:$0xff]  }
  0x44   : > { %1766 = vmatprep.subr.bf16.mxu0 %v3821_v1  ;;  %3510 = vmatprep.subr.bf16.mxu1 %v3821_v1 }
  0x47   : > { %1767 = vmatpush1.bf16.msra.mxu0 %v3552_v17  ;;  %3526 = vmatpush1.bf16.msra.mxu1 %v3552_v17  ;;  %v3650_v17 = vld [vmem:[%s3879_s28 + $0x168] ss:$12 sps:$4 sm:$0xff]  }
  0x48   : > { %1768 = vmatprep.subr.bf16.mxu0 %v3821_v1  ;;  %3511 = vmatprep.subr.bf16.mxu1 %v3821_v1  ;;  %v3626_v1 = vld [vmem:[%s3879_s28 + $0x108] ss:$12 sps:$4 sm:$0xff]  }
  0x4b   : > { %1769 = vmatpush1.bf16.msra.mxu0 %v3553_v18  ;;  %3527 = vmatpush1.bf16.msra.mxu1 %v3553_v18  ;;  %v3651_v18 = vld [vmem:[%s3879_s28 + $0x5e8] ss:$12 sps:$4 sm:$0xff]  }
  0x4c   : > { %3364 = vmatprep.subr.bf16.mxu1 %v3560_v19 }
  0x4e   : > { %1771 = vmatmul.mubr.bf16.vlgmr.msra.gmra.mrb[0].mxu0 %v3554_v20  ;;  %2155 = vmatmul.mubr.bf16.vlgmr.msra.gmra.mrb[0].mxu1 %v3557_v21  ;;  %v3654_v20 = vld [vmem:[%s3879_s28 + $0x8] ss:$12 sps:$4 sm:$0xff]   ;;  %v3655_v21 = vld [vmem:[%s3879_s28 + $0x180] ss:$12 sps:$4 sm:$0xff]  }
  0x4f   : > { %3365 = vmatpush3.bf16.msra.mxu1 %v3560_v19  ;;  %1778 = vmatprep.mubr.bf16.mxu0 %v3561_v22  ;;  %v3652_v19 = vld [vmem:[%s3879_s28 + $0x184] ss:$12 sps:$4 sm:$0xff]   ;;  %v3656_v22 = vld [vmem:[%s3879_s28 + $0x20] ss:$12 sps:$4 sm:$0xff]  }
  0x50   : > { %2162 = vmatprep.mubr.bf16.mxu1 %v3563_v23  ;;  %3366 = vmatprep.subr.bf16.mxu1 %v3609_v24  ;;  %v3657_v23 = vld [vmem:[%s3879_s28 + $0x19c] ss:$12 sps:$4 sm:$0xff]  }
  0x53   : > { %3367 = vmatpush3.bf16.msra.mxu1 %v3609_v24  ;;  %v3659_v24 = vld [vmem:[%s3879_s28 + $0x38] ss:$12 sps:$4 sm:$0xff]  }
  0x56   : > { %1779 = vmatmul.mubr.bf16.gmra.mrb[4].mxu0 %v3565_v25  ;;  %2163 = vmatmul.mubr.bf16.gmra.mrb[4].mxu1 %v3566_v26  ;;  %v3660_v25 = vld [vmem:[%s3879_s28 + $0x198] ss:$12 sps:$4 sm:$0xff]   ;;  %v3661_v26 = vld [vmem:[%s3879_s28 + $0x50] ss:$12 sps:$4 sm:$0xff]  }
  0x57   : > { %1786 = vmatprep.mubr.bf16.mxu0 %v3567_v27  ;;  %2170 = vmatprep.mubr.bf16.mxu1 %v3569_v28  ;;  %v3662_v27 = vld [vmem:[%s3879_s28 + $0x1b4] ss:$12 sps:$4 sm:$0xff]  }
  0x58   : > { %v3664_v28 = vld [vmem:[%s3879_s28 + $0x68] ss:$12 sps:$4 sm:$0xff]  }
  0x5e   : > { %1787 = vmatmul.mubr.bf16.gmra.mrb[8].mxu0 %v3571_v29  ;;  %2171 = vmatmul.mubr.bf16.gmra.mrb[8].mxu1 %v3572_v30  ;;  %v3665_v29 = vld [vmem:[%s3879_s28 + $0x1b0] ss:$12 sps:$4 sm:$0xff]   ;;  %v3666_v30 = vld [vmem:[%s3879_s28 + $0x80] ss:$12 sps:$4 sm:$0xff]  }
  0x5f   : > { %1794 = vmatprep.mubr.bf16.mxu0 %v3573_v31  ;;  %2178 = vmatprep.mubr.bf16.mxu1 %v3575_v32  ;;  %v3667_v31 = vld [vmem:[%s3879_s28 + $0x1cc] ss:$12 sps:$4 sm:$0xff]  }
  0x60   : > { %v3669_v32 = vld [vmem:[%s3879_s28 + $0x98] ss:$12 sps:$4 sm:$0xff]  }
  0x66   : > { %1795 = vmatmul.mubr.bf16.gmra.mrb[12].mxu0 %v3577_v33  ;;  %2179 = vmatmul.mubr.bf16.gmra.mrb[12].mxu1 %v3578_v34  ;;  %v3670_v33 = vld [vmem:[%s3879_s28 + $0x1c8] ss:$12 sps:$4 sm:$0xff]   ;;  %v3671_v34 = vld [vmem:[%s3879_s28 + $0xb0] ss:$12 sps:$4 sm:$0xff]  }
  0x67   : > { %1802 = vmatprep.mubr.bf16.mxu0 %v3579_v35  ;;  %2186 = vmatprep.mubr.bf16.mxu1 %v3581_v36  ;;  %v3672_v35 = vld [vmem:[%s3879_s28 + $0x1e4] ss:$12 sps:$4 sm:$0xff]   ;;  %v3674_v36 = vld [vmem:[%s3879_s28 + $0xc8] ss:$12 sps:$4 sm:$0xff]  }
  0x6e   : > { %1803 = vmatmul.mubr.bf16.gmra.mrb[16].mxu0 %v3583_v37  ;;  %2187 = vmatmul.mubr.bf16.gmra.mrb[16].mxu1 %v3584_v38  ;;  %v3675_v37 = vld [vmem:[%s3879_s28 + $0x1e0] ss:$12 sps:$4 sm:$0xff]  }
  0x6f   : > { %1810 = vmatprep.mubr.bf16.mxu0 %v3585_v39  ;;  %2194 = vmatprep.mubr.bf16.mxu1 %v3587_v40  ;;  %v3676_v38 = vld [vmem:[%s3879_s28 + $0xe0] ss:$12 sps:$4 sm:$0xff]   ;;  %v3677_v39 = vld [vmem:[%s3879_s28 + $0x1fc] ss:$12 sps:$4 sm:$0xff]   ;;  %v3679_v40 = vld [vmem:[%s3879_s28 + $0xf8] ss:$12 sps:$4 sm:$0xff]  }
  0x76   : > { %1811 = vmatmul.mubr.bf16.gmra.mrb[20].mxu0 %v3589_v41  ;;  %2195 = vmatmul.mubr.bf16.gmra.mrb[20].mxu1 %v3590_v42  ;;  %v3680_v41 = vld [vmem:[%s3879_s28 + $0x1f8] ss:$12 sps:$4 sm:$0xff]   ;;  %v3681_v42 = vld [vmem:[%s3879_s28 + $0x110] ss:$12 sps:$4 sm:$0xff]  }
  0x77   : > { %1818 = vmatprep.mubr.bf16.mxu0 %v3591_v43  ;;  %2202 = vmatprep.mubr.bf16.mxu1 %v3593_v44  ;;  %v3682_v43 = vld [vmem:[%s3879_s28 + $0x214] ss:$12 sps:$4 sm:$0xff]  }
  0x78   : > { %v3684_v44 = vld [vmem:[%s3879_s28 + $0x128] ss:$12 sps:$4 sm:$0xff]  }
  0x7e   : > { %1819 = vmatmul.mubr.bf16.gmra.mrb[24].mxu0 %v3595_v45  ;;  %2203 = vmatmul.mubr.bf16.gmra.mrb[24].mxu1 %v3596_v46  ;;  %v3685_v45 = vld [vmem:[%s3879_s28 + $0x210] ss:$12 sps:$4 sm:$0xff]   ;;  %v3686_v46 = vld [vmem:[%s3879_s28 + $0x140] ss:$12 sps:$4 sm:$0xff]  }
  0x7f   : > { %1826 = vmatprep.mubr.bf16.mxu0 %v3597_v47  ;;  %2210 = vmatprep.mubr.bf16.mxu1 %v3599_v48  ;;  %v3687_v47 = vld [vmem:[%s3879_s28 + $0x22c] ss:$12 sps:$4 sm:$0xff]  }
  0x80   : > { %v3689_v48 = vld [vmem:[%s3879_s28 + $0x158] ss:$12 sps:$4 sm:$0xff]  }
  0x86   : > { %1827 = vmatmul.mubr.bf16.gmra.mrb[28].mxu0 %v3601_v49  ;;  %2211 = vmatmul.mubr.bf16.gmra.mrb[28].mxu1 %v3602_v50  ;;  %v3690_v49 = vld [vmem:[%s3879_s28 + $0x228] ss:$12 sps:$4 sm:$0xff]   ;;  %v3691_v50 = vld [vmem:[%s3879_s28 + $0x170] ss:$12 sps:$4 sm:$0xff]  }
  0x87   : > { %1834 = vmatprep.mubr.bf16.mxu0 %v3603_v51  ;;  %2218 = vmatprep.mubr.bf16.mxu1 %v3605_v52  ;;  %v3692_v51 = vld [vmem:[%s3879_s28 + $0x244] ss:$12 sps:$4 sm:$0xff]   ;;  %v3694_v52 = vld [vmem:[%s3879_s28 + $0x188] ss:$12 sps:$4 sm:$0xff]  }
  0x8e   : > { %1835 = vmatmul.mubr.bf16.gmra.mrb[32].mxu0 %v3607_v53  ;;  %2219 = vmatmul.mubr.bf16.gmra.mrb[32].mxu1 %v3608_v54  ;;  %v3695_v53 = vld [vmem:[%s3879_s28 + $0x240] ss:$12 sps:$4 sm:$0xff]  }
  0x8f   : > { %1842 = vmatprep.mubr.bf16.mxu0 %v3610_v55  ;;  %2226 = vmatprep.mubr.bf16.mxu1 %v3612_v56  ;;  %v3696_v54 = vld [vmem:[%s3879_s28 + $0x1a0] ss:$12 sps:$4 sm:$0xff]   ;;  %v3697_v55 = vld [vmem:[%s3879_s28 + $0x25c] ss:$12 sps:$4 sm:$0xff]   ;;  %v3699_v56 = vld [vmem:[%s3879_s28 + $0x1b8] ss:$12 sps:$4 sm:$0xff]  }
  0x96   : > { %1843 = vmatmul.mubr.bf16.gmra.mrb[36].mxu0 %v3614_v57  ;;  %2227 = vmatmul.mubr.bf16.gmra.mrb[36].mxu1 %v3615_v58  ;;  %v3700_v57 = vld [vmem:[%s3879_s28 + $0x258] ss:$12 sps:$4 sm:$0xff]   ;;  %v3701_v58 = vld [vmem:[%s3879_s28 + $0x1d0] ss:$12 sps:$4 sm:$0xff]  }
  0x97   : > { %1850 = vmatprep.mubr.bf16.mxu0 %v3616_v59  ;;  %2234 = vmatprep.mubr.bf16.mxu1 %v3618_v60  ;;  %v3702_v59 = vld [vmem:[%s3879_s28 + $0x274] ss:$12 sps:$4 sm:$0xff]  }
  0x98   : > { %v3704_v60 = vld [vmem:[%s3879_s28 + $0x1e8] ss:$12 sps:$4 sm:$0xff]  }
  0x9e   : > { %1851 = vmatmul.mubr.bf16.gmra.mrb[40].mxu0 %v3620_v61  ;;  %2235 = vmatmul.mubr.bf16.gmra.mrb[40].mxu1 %v3621_v62  ;;  %v3705_v61 = vld [vmem:[%s3879_s28 + $0x270] ss:$12 sps:$4 sm:$0xff]   ;;  %v3706_v62 = vld [vmem:[%s3879_s28 + $0x200] ss:$12 sps:$4 sm:$0xff]  }
  0x9f   : > { %1858 = vmatprep.mubr.bf16.mxu0 %v3622_v63  ;;  %2242 = vmatprep.mubr.bf16.mxu1 %v3624_v0  ;;  %v3707_v63 = vld [vmem:[%s3879_s28 + $0x28c] ss:$12 sps:$4 sm:$0xff]  }
  0xa0   : > { %v3709_v0 = vld [vmem:[%s3879_s28 + $0x218] ss:$12 sps:$4 sm:$0xff]  }
  0xa6   : > { %1859 = vmatmul.mubr.bf16.gmra.mrb[44].mxu0 %v3626_v1  ;;  %2243 = vmatmul.mubr.bf16.gmra.mrb[44].mxu1 %v3627_v2 }
  0xa7   : > { %1866 = vmatprep.mubr.bf16.mxu0 %v3628_v3  ;;  %2250 = vmatprep.mubr.bf16.mxu1 %v3630_v4 }
  0xae   : > { %1867 = vmatmul.mubr.bf16.gmra.mrb[48].mxu0 %v3632_v5  ;;  %2251 = vmatmul.mubr.bf16.gmra.mrb[48].mxu1 %v3633_v6  ;;  %v3710_v5 = vld [vmem:[%s3879_s28 + $0x288] ss:$12 sps:$4 sm:$0xff]   ;;  %v3711_v6 = vld [vmem:[%s3879_s28 + $0x230] ss:$12 sps:$4 sm:$0xff]  }
  0xaf   : > { %1874 = vmatprep.mubr.bf16.mxu0 %v3634_v7  ;;  %2258 = vmatprep.mubr.bf16.mxu1 %v3636_v8 }
  0xb6   : > { %1875 = vmatmul.mubr.bf16.gmra.mrb[52].mxu0 %v3638_v9  ;;  %2259 = vmatmul.mubr.bf16.gmra.mrb[52].mxu1 %v3639_v10  ;;  %v3712_v9 = vld [vmem:[%s3879_s28 + $0x2a4] ss:$12 sps:$4 sm:$0xff]   ;;  %v3714_v10 = vld [vmem:[%s3879_s28 + $0x248] ss:$12 sps:$4 sm:$0xff]  }
  0xb7   : > { %1882 = vmatprep.mubr.bf16.mxu0 %v3640_v11  ;;  %2266 = vmatprep.mubr.bf16.mxu1 %v3642_v12 }
  0xbe   : > { %1883 = vmatmul.mubr.bf16.gmra.mrb[56].mxu0 %v3644_v13  ;;  %2267 = vmatmul.mubr.bf16.gmra.mrb[56].mxu1 %v3645_v14 }
  0xbf   : > { %1890 = vmatprep.mubr.bf16.mxu0 %v3646_v15  ;;  %2274 = vmatprep.mubr.bf16.mxu1 %v3648_v16 }
  0xc6   : > { %1891 = vmatmul.mubr.bf16.gmra.mrb[60].mxu0 %v3650_v17  ;;  %2275 = vmatmul.mubr.bf16.gmra.mrb[60].mxu1 %v3651_v18  ;;  %v3715_v17 = vld [vmem:[%s3879_s28 + $0x2a0] ss:$12 sps:$4 sm:$0xff]  }
  0xc7   : > { %1898 = vmatprep.mubr.bf16.mxu0 %v3652_v19  ;;  %3368 = vmatprep.mubr.msk.bf16.mxu1 %vm1545_vm0, %v3654_v20  ;;  %v3716_v18 = vld [vmem:[%s3879_s28 + $0x260] ss:$12 sps:$4 sm:$0xff]  }
  0xce   : > { %1899 = vmatmul.mubr.bf16.gmra.mrb[64].mxu0 %v3655_v21  ;;  %3369 = vmatmul.mubr.msk.bf16.vlgmr.msra.gmra.mrb[64].mxu1 %vm1545_vm0, %v3656_v22  ;;  %v3717_v21 = vld [vmem:[%s3879_s28 + $0x2bc] ss:$12 sps:$4 sm:$0xff]   ;;  %v3719_v22 = vld [vmem:[%s3879_s28 + $0x278] ss:$12 sps:$4 sm:$0xff]  }
  0xcf   : > { %1906 = vmatprep.mubr.bf16.mxu0 %v3657_v23  ;;  %3372 = vmatprep.mubr.msk.bf16.mxu1 %vm1545_vm0, %v3659_v24 }
  0xd6   : > { %1907 = vmatmul.mubr.bf16.gmra.mrb[68].mxu0 %v3660_v25  ;;  %3373 = vmatmul.mubr.msk.bf16.gmra.mrb[68].mxu1 %vm1545_vm0, %v3661_v26 }
  0xd7   : > { %1914 = vmatprep.mubr.bf16.mxu0 %v3662_v27  ;;  %3376 = vmatprep.mubr.msk.bf16.mxu1 %vm1545_vm0, %v3664_v28 }
  0xde   : > { %1915 = vmatmul.mubr.bf16.gmra.mrb[72].mxu0 %v3665_v29  ;;  %3377 = vmatmul.mubr.msk.bf16.gmra.mrb[72].mxu1 %vm1545_vm0, %v3666_v30  ;;  %v3720_v29 = vld [vmem:[%s3879_s28 + $0x2b8] ss:$12 sps:$4 sm:$0xff]   ;;  %v3721_v30 = vld [vmem:[%s3879_s28 + $0x290] ss:$12 sps:$4 sm:$0xff]  }
  0xdf   : > { %1922 = vmatprep.mubr.bf16.mxu0 %v3667_v31  ;;  %3380 = vmatprep.mubr.msk.bf16.mxu1 %vm1545_vm0, %v3669_v32 }
  0xe6   : > { %1923 = vmatmul.mubr.bf16.gmra.mrb[76].mxu0 %v3670_v33  ;;  %3381 = vmatmul.mubr.msk.bf16.gmra.mrb[76].mxu1 %vm1545_vm0, %v3671_v34  ;;  %v3722_v33 = vld [vmem:[%s3879_s28 + $0x2d4] ss:$12 sps:$4 sm:$0xff]  }
  0xe7   : > { %1930 = vmatprep.mubr.bf16.mxu0 %v3672_v35  ;;  %3384 = vmatprep.mubr.msk.bf16.mxu1 %vm1545_vm0, %v3674_v36  ;;  %v3724_v34 = vld [vmem:[%s3879_s28 + $0x2a8] ss:$12 sps:$4 sm:$0xff]  }
  0xee   : > { %1931 = vmatmul.mubr.bf16.gmra.mrb[80].mxu0 %v3675_v37  ;;  %3385 = vmatmul.mubr.msk.bf16.gmra.mrb[80].mxu1 %vm1545_vm0, %v3676_v38 }
  0xef   : > { %1938 = vmatprep.mubr.bf16.mxu0 %v3677_v39  ;;  %3388 = vmatprep.mubr.msk.bf16.mxu1 %vm1545_vm0, %v3679_v40 }
  0xf6   : > { %1939 = vmatmul.mubr.bf16.gmra.mrb[84].mxu0 %v3680_v41  ;;  %3389 = vmatmul.mubr.msk.bf16.gmra.mrb[84].mxu1 %vm1545_vm0, %v3681_v42  ;;  %v3725_v41 = vld [vmem:[%s3879_s28 + $0x2d0] ss:$12 sps:$4 sm:$0xff]   ;;  %v3726_v42 = vld [vmem:[%s3879_s28 + $0x2c0] ss:$12 sps:$4 sm:$0xff]  }
  0xf7   : > { %1946 = vmatprep.mubr.bf16.mxu0 %v3682_v43  ;;  %3392 = vmatprep.mubr.msk.bf16.mxu1 %vm1545_vm0, %v3684_v44 }
  0xfe   : > { %1947 = vmatmul.mubr.bf16.gmra.mrb[88].mxu0 %v3685_v45  ;;  %3393 = vmatmul.mubr.msk.bf16.gmra.mrb[88].mxu1 %vm1545_vm0, %v3686_v46  ;;  %v3727_v45 = vld [vmem:[%s3879_s28 + $0x2ec] ss:$12 sps:$4 sm:$0xff]  }
  0xff   : > { %1954 = vmatprep.mubr.bf16.mxu0 %v3687_v47  ;;  %3396 = vmatprep.mubr.msk.bf16.mxu1 %vm1545_vm0, %v3689_v48  ;;  %v3729_v46 = vld [vmem:[%s3879_s28 + $0x2d8] ss:$12 sps:$4 sm:$0xff]  }
 0x106   : > { %1955 = vmatmul.mubr.bf16.gmra.mrb[92].mxu0 %v3690_v49  ;;  %3397 = vmatmul.mubr.msk.bf16.gmra.mrb[92].mxu1 %vm1545_vm0, %v3691_v50 }
 0x107   : > { %1962 = vmatprep.mubr.bf16.mxu0 %v3692_v51  ;;  %3400 = vmatprep.mubr.msk.bf16.mxu1 %vm1545_vm0, %v3694_v52 }
 0x10e   : > { %1963 = vmatmul.mubr.bf16.gmra.mrb[96].mxu0 %v3695_v53  ;;  %3401 = vmatmul.mubr.msk.bf16.gmra.mrb[96].mxu1 %vm1545_vm0, %v3696_v54  ;;  %v3730_v53 = vld [vmem:[%s3879_s28 + $0x2e8] ss:$12 sps:$4 sm:$0xff]   ;;  %v3731_v54 = vld [vmem:[%s3879_s28 + $0x2f0] ss:$12 sps:$4 sm:$0xff]  }
 0x10f   : > { %1970 = vmatprep.mubr.bf16.mxu0 %v3697_v55  ;;  %3404 = vmatprep.mubr.msk.bf16.mxu1 %vm1545_vm0, %v3699_v56 }
 0x116   : > { %1971 = vmatmul.mubr.bf16.gmra.mrb[100].mxu0 %v3700_v57  ;;  %3405 = vmatmul.mubr.msk.bf16.gmra.mrb[100].mxu1 %vm1545_vm0, %v3701_v58  ;;  %v3732_v57 = vld [vmem:[%s3879_s28 + $0x304] ss:$12 sps:$4 sm:$0xff]   ;;  %v3734_v58 = vld [vmem:[%s3879_s28 + $0x308] ss:$12 sps:$4 sm:$0xff]  }
 0x117   : > { %1978 = vmatprep.mubr.bf16.mxu0 %v3702_v59  ;;  %3408 = vmatprep.mubr.msk.bf16.mxu1 %vm1545_vm0, %v3704_v60 }
 0x11e   : > { %1979 = vmatmul.mubr.bf16.gmra.mrb[104].mxu0 %v3705_v61  ;;  %3409 = vmatmul.mubr.msk.bf16.gmra.mrb[104].mxu1 %vm1545_vm0, %v3706_v62 }
 0x11f   : > { %1986 = vmatprep.mubr.bf16.mxu0 %v3707_v63  ;;  %3412 = vmatprep.mubr.msk.bf16.mxu1 %vm1545_vm0, %v3709_v0 }
 0x121   : > { %v4077_v1 = vpop.f32.mrb[0].mxu0  ;;  %v4079_v2 = vpop.f32.mrb[0].mxu1 }
 0x122   : > { %v1774_v3 = vpop.f32.mrb[1].mxu0  ;;  %v2158_v4 = vpop.f32.mrb[1].mxu1 }
 0x123   : > { %v4083_v7 = vpop.f32.mrb[2].mxu0  ;;  %v4085_v8 = vpop.f32.mrb[2].mxu1  ;;  %v3735_v3 = vld [vmem:[%s3879_s28 + $0x300] ss:$12 sps:$4 sm:$0xff]  }
 0x124   : > { %v1777_v11 = vpop.f32.mrb[3].mxu0  ;;  %v2161_v12 = vpop.f32.mrb[3].mxu1  ;;  %v3736_v4 = vld [vmem:[%s3879_s28 + $0x320] ss:$12 sps:$4 sm:$0xff]  }
 0x126   : > { %1987 = vmatmul.mubr.bf16.gmra.mrb[108].mxu0 %v3710_v5  ;;  %3413 = vmatmul.mubr.msk.bf16.gmra.mrb[108].mxu1 %vm1545_vm0, %v3711_v6 }
 0x127   : > { %1994 = vmatprep.mubr.bf16.mxu0 %v3712_v9  ;;  %3416 = vmatprep.mubr.msk.bf16.mxu1 %vm1545_vm0, %v3714_v10  ;;  %v3737_v9 = vld [vmem:[%s3879_s28 + $0x31c] ss:$12 sps:$4 sm:$0xff]   ;;  %v3739_v10 = vld [vmem:[%s3879_s28 + $0x338] ss:$12 sps:$4 sm:$0xff]  }
 0x129   : > { %v4091_v13 = vpop.f32.mrb[4].mxu0  ;;  %v4093_v14 = vpop.f32.mrb[4].mxu1 }
 0x12a   : > { %v1782_v15 = vpop.f32.mrb[5].mxu0  ;;  %v2166_v16 = vpop.f32.mrb[5].mxu1 }
 0x12b   : > { %v4097_v19 = vpop.f32.mrb[6].mxu0  ;;  %v4099_v20 = vpop.f32.mrb[6].mxu1 }
 0x12c   : > { %v1785_v23 = vpop.f32.mrb[7].mxu0  ;;  %v2169_v24 = vpop.f32.mrb[7].mxu1 }
 0x12e   : > { %1995 = vmatmul.mubr.bf16.gmra.mrb[112].mxu0 %v3715_v17  ;;  %3417 = vmatmul.mubr.msk.bf16.gmra.mrb[112].mxu1 %vm1545_vm0, %v3716_v18 }
 0x12f   : > { %2002 = vmatprep.mubr.bf16.mxu0 %v3717_v21  ;;  %3420 = vmatprep.mubr.msk.bf16.mxu1 %vm1545_vm0, %v3719_v22  ;;  %v3740_v21 = vld [vmem:[%s3879_s28 + $0x318] ss:$12 sps:$4 sm:$0xff]   ;;  %v3741_v22 = vld [vmem:[%s3879_s28 + $0x350] ss:$12 sps:$4 sm:$0xff]  }
 0x131   : > { %v4105_v25 = vpop.f32.mrb[8].mxu0  ;;  %v4107_v26 = vpop.f32.mrb[8].mxu1 }
 0x132   : > { %v1790_v27 = vpop.f32.mrb[9].mxu0  ;;  %v2174_v28 = vpop.f32.mrb[9].mxu1 }
 0x133   : > { %v4111_v31 = vpop.f32.mrb[10].mxu0  ;;  %v4113_v32 = vpop.f32.mrb[10].mxu1  ;;  %v3742_v27 = vld [vmem:[%s3879_s28 + $0x334] ss:$12 sps:$4 sm:$0xff]  }
 0x134   : > { %v1793_v35 = vpop.f32.mrb[11].mxu0  ;;  %v2177_v36 = vpop.f32.mrb[11].mxu1  ;;  %v3744_v28 = vld [vmem:[%s3879_s28 + $0x368] ss:$12 sps:$4 sm:$0xff]  }
 0x136   : > { %2003 = vmatmul.mubr.bf16.gmra.mrb[116].mxu0 %v3720_v29  ;;  %3421 = vmatmul.mubr.msk.bf16.gmra.mrb[116].mxu1 %vm1545_vm0, %v3721_v30 }
 0x137   : > { %2010 = vmatprep.mubr.bf16.mxu0 %v3722_v33  ;;  %3424 = vmatprep.mubr.msk.bf16.mxu1 %vm1545_vm0, %v3724_v34 }
 0x139   : > { %v4119_v37 = vpop.f32.mrb[12].mxu0  ;;  %v4121_v38 = vpop.f32.mrb[12].mxu1 }
 0x13a   : > { %v1798_v39 = vpop.f32.mrb[13].mxu0  ;;  %v2182_v40 = vpop.f32.mrb[13].mxu1 }
 0x13b   : > { %v4125_v43 = vpop.f32.mrb[14].mxu0  ;;  %v4127_v44 = vpop.f32.mrb[14].mxu1  ;;  %v3745_v39 = vld [vmem:[%s3879_s28 + $0x330] ss:$12 sps:$4 sm:$0xff]   ;;  %v3746_v40 = vld [vmem:[%s3879_s28 + $0x380] ss:$12 sps:$4 sm:$0xff]  }
 0x13c   : > { %v1801_v47 = vpop.f32.mrb[15].mxu0  ;;  %v2185_v48 = vpop.f32.mrb[15].mxu1 }
 0x13e   : > { %2011 = vmatmul.mubr.bf16.gmra.mrb[120].mxu0 %v3725_v41  ;;  %3425 = vmatmul.mubr.msk.bf16.gmra.mrb[120].mxu1 %vm1545_vm0, %v3726_v42 }
 0x13f   : > { %2018 = vmatprep.mubr.bf16.mxu0 %v3727_v45  ;;  %3428 = vmatprep.mubr.msk.bf16.mxu1 %vm1545_vm0, %v3729_v46  ;;  %v3747_v45 = vld [vmem:[%s3879_s28 + $0x34c] ss:$12 sps:$4 sm:$0xff]  }
 0x140   : > { %v3749_v46 = vld [vmem:[%s3879_s28 + $0x398] ss:$12 sps:$4 sm:$0xff]  }
 0x141   : > { %v4133_v49 = vpop.f32.mrb[16].mxu0  ;;  %v4135_v50 = vpop.f32.mrb[16].mxu1 }
 0x142   : > { %v1806_v51 = vpop.f32.mrb[17].mxu0  ;;  %v2190_v52 = vpop.f32.mrb[17].mxu1 }
 0x143   : > { %v4139_v55 = vpop.f32.mrb[18].mxu0  ;;  %v4141_v56 = vpop.f32.mrb[18].mxu1 }
 0x144   : > { %v1809_v59 = vpop.f32.mrb[19].mxu0  ;;  %v2193_v60 = vpop.f32.mrb[19].mxu1 }
 0x146   : > { %2019 = vmatmul.mubr.bf16.gmra.mrb[124].mxu0 %v3730_v53  ;;  %3429 = vmatmul.mubr.msk.bf16.gmra.mrb[124].mxu1 %vm1545_vm0, %v3731_v54 }
 0x147   : > { %2026 = vmatprep.mubr.bf16.mxu0 %v3732_v57  ;;  %3432 = vmatprep.mubr.msk.bf16.mxu1 %vm1545_vm0, %v3734_v58  ;;  %v3750_v57 = vld [vmem:[%s3879_s28 + $0x348] ss:$12 sps:$4 sm:$0xff]   ;;  %v3751_v58 = vld [vmem:[%s3879_s28 + $0x3b0] ss:$12 sps:$4 sm:$0xff]  }
 0x149   : > { %v4147_v61 = vpop.f32.mrb[20].mxu0  ;;  %v4149_v62 = vpop.f32.mrb[20].mxu1 }
 0x14a   : > { %v1814_v63 = vpop.f32.mrb[21].mxu0  ;;  %v2198_v0 = vpop.f32.mrb[21].mxu1 }
 0x14b   : > { %v4153_v5 = vpop.f32.mrb[22].mxu0  ;;  %v4155_v6 = vpop.f32.mrb[22].mxu1  ;;  %v3752_v63 = vld [vmem:[%s3879_s28 + $0x364] ss:$12 sps:$4 sm:$0xff]   ;;  %v3754_v0 = vld [vmem:[%s3879_s28 + $0x3c8] ss:$12 sps:$4 sm:$0xff]  }
 0x14c   : > { %v1817_v11 = vpop.f32.mrb[23].mxu0  ;;  %v2201_v12 = vpop.f32.mrb[23].mxu1 }
 0x14e   : > { %2027 = vmatmul.mubr.bf16.gmra.mrb[128].mxu0 %v3735_v3  ;;  %3433 = vmatmul.mubr.msk.bf16.gmra.mrb[128].mxu1 %vm1545_vm0, %v3736_v4 }
 0x14f   : > { %2034 = vmatprep.mubr.bf16.mxu0 %v3737_v9  ;;  %3436 = vmatprep.mubr.msk.bf16.mxu1 %vm1545_vm0, %v3739_v10 }
 0x151   : > { %v4161_v15 = vpop.f32.mrb[24].mxu0  ;;  %v4163_v16 = vpop.f32.mrb[24].mxu1 }
 0x152   : > { %v1822_v17 = vpop.f32.mrb[25].mxu0  ;;  %v2206_v18 = vpop.f32.mrb[25].mxu1 }
 0x153   : > { %v4167_v23 = vpop.f32.mrb[26].mxu0  ;;  %v4169_v24 = vpop.f32.mrb[26].mxu1  ;;  %v3755_v17 = vld [vmem:[%s3879_s28 + $0x360] ss:$12 sps:$4 sm:$0xff]  }
 0x154   : > { %4773 = vst [vmem:[#allocation2_spill] sm:$0xff] %v4169_v24  ;;  %v1825_v29 = vpop.f32.mrb[27].mxu0  ;;  %v2209_v30 = vpop.f32.mrb[27].mxu1  ;;  %v3756_v18 = vld [vmem:[%s3879_s28 + $0x3e0] ss:$12 sps:$4 sm:$0xff]  }
 0x156   : > { %2035 = vmatmul.mubr.bf16.gmra.mrb[132].mxu0 %v3740_v21  ;;  %3437 = vmatmul.mubr.msk.bf16.gmra.mrb[132].mxu1 %vm1545_vm0, %v3741_v22 }
 0x157   : > { %2042 = vmatprep.mubr.bf16.mxu0 %v3742_v27  ;;  %3440 = vmatprep.mubr.msk.bf16.mxu1 %vm1545_vm0, %v3744_v28  ;;  %v3757_v27 = vld [vmem:[%s3879_s28 + $0x37c] ss:$12 sps:$4 sm:$0xff]   ;;  %v3759_v28 = vld [vmem:[%s3879_s28 + $0x3f8] ss:$12 sps:$4 sm:$0xff]  }
 0x159   : > { %v4175_v33 = vpop.f32.mrb[28].mxu0  ;;  %v4177_v34 = vpop.f32.mrb[28].mxu1 }
 0x15a   : > { %v1830_v35 = vpop.f32.mrb[29].mxu0  ;;  %v2214_v36 = vpop.f32.mrb[29].mxu1 }
 0x15b   : > { %v4181_v41 = vpop.f32.mrb[30].mxu0  ;;  %v4183_v42 = vpop.f32.mrb[30].mxu1 }
 0x15c   : > { %v1833_v47 = vpop.f32.mrb[31].mxu0  ;;  %v2217_v48 = vpop.f32.mrb[31].mxu1 }
 0x15e   : > { %2043 = vmatmul.mubr.bf16.gmra.mrb[136].mxu0 %v3745_v39  ;;  %3441 = vmatmul.mubr.msk.bf16.gmra.mrb[136].mxu1 %vm1545_vm0, %v3746_v40 }
 0x15f   : > { %2050 = vmatprep.mubr.bf16.mxu0 %v3747_v45  ;;  %3444 = vmatprep.mubr.msk.bf16.mxu1 %vm1545_vm0, %v3749_v46  ;;  %v3760_v45 = vld [vmem:[%s3879_s28 + $0x378] ss:$12 sps:$4 sm:$0xff]   ;;  %v3761_v46 = vld [vmem:[%s3879_s28 + $0x410] ss:$12 sps:$4 sm:$0xff]  }
 0x161   : > { %v4189_v51 = vpop.f32.mrb[32].mxu0  ;;  %v4191_v52 = vpop.f32.mrb[32].mxu1 }
 0x162   : > { %4774 = vst [vmem:[#allocation3_spill] sm:$0xff] %v4191_v52  ;;  %v1838_v53 = vpop.f32.mrb[33].mxu0  ;;  %v2222_v54 = vpop.f32.mrb[33].mxu1  ;;  %v3794_v52 = vld [vmem:[%s3879_s28 + $0x548] ss:$12 sps:$4 sm:$0xff]  }
 0x163   : > { %v4195_v59 = vpop.f32.mrb[34].mxu0  ;;  %v4197_v60 = vpop.f32.mrb[34].mxu1  ;;  %v3762_v53 = vld [vmem:[%s3879_s28 + $0x394] ss:$12 sps:$4 sm:$0xff]  }
 0x164   : > { %4775 = vst [vmem:[#allocation4_spill] sm:$0xff] %v4197_v60  ;;  %v1841_v3 = vpop.f32.mrb[35].mxu0  ;;  %v2225_v4 = vpop.f32.mrb[35].mxu1  ;;  %v3764_v54 = vld [vmem:[%s3879_s28 + $0x428] ss:$12 sps:$4 sm:$0xff]  }
 0x166   : > { %2051 = vmatmul.mubr.bf16.gmra.mrb[140].mxu0 %v3750_v57  ;;  %3445 = vmatmul.mubr.msk.bf16.gmra.mrb[140].mxu1 %vm1545_vm0, %v3751_v58 }
 0x167   : > { %2058 = vmatprep.mubr.bf16.mxu0 %v3752_v63  ;;  %3448 = vmatprep.mubr.msk.bf16.mxu1 %vm1545_vm0, %v3754_v0 }
 0x169   : > { %v4203_v9 = vpop.f32.mrb[36].mxu0  ;;  %v4205_v10 = vpop.f32.mrb[36].mxu1 }
 0x16a   : > { %4776 = vst [vmem:[#allocation5_spill] sm:$0xff] %v4205_v10  ;;  %v1846_v11 = vpop.f32.mrb[37].mxu0  ;;  %v2230_v12 = vpop.f32.mrb[37].mxu1 }
 0x16b   : > { %v4209_v21 = vpop.f32.mrb[38].mxu0  ;;  %v4211_v22 = vpop.f32.mrb[38].mxu1  ;;  %v3765_v11 = vld [vmem:[%s3879_s28 + $0x390] ss:$12 sps:$4 sm:$0xff]   ;;  %v3766_v12 = vld [vmem:[%s3879_s28 + $0x440] ss:$12 sps:$4 sm:$0xff]  }
 0x16c   : > { %4777 = vst [vmem:[#allocation6_spill] sm:$0xff] %v4211_v22  ;;  %v1849_v29 = vpop.f32.mrb[39].mxu0  ;;  %v2233_v30 = vpop.f32.mrb[39].mxu1  ;;  %v3792_v22 = vld [vmem:[%s3879_s28 + $0x424] ss:$12 sps:$4 sm:$0xff]  }
 0x16e   : > { %2059 = vmatmul.mubr.bf16.gmra.mrb[144].mxu0 %v3755_v17  ;;  %3449 = vmatmul.mubr.msk.bf16.gmra.mrb[144].mxu1 %vm1545_vm0, %v3756_v18 }
 0x16f   : > { %2066 = vmatprep.mubr.bf16.mxu0 %v3757_v27  ;;  %3452 = vmatprep.mubr.msk.bf16.mxu1 %vm1545_vm0, %v3759_v28  ;;  %v3767_v27 = vld [vmem:[%s3879_s28 + $0x3ac] ss:$12 sps:$4 sm:$0xff]  }
 0x170   : > { %v3769_v28 = vld [vmem:[%s3879_s28 + $0x458] ss:$12 sps:$4 sm:$0xff]  }
 0x171   : > { %v4217_v35 = vpop.f32.mrb[40].mxu0  ;;  %v4219_v36 = vpop.f32.mrb[40].mxu1 }
 0x172   : > { %4778 = vst [vmem:[#allocation7_spill] sm:$0xff] %v4219_v36  ;;  %v1854_v39 = vpop.f32.mrb[41].mxu0  ;;  %v2238_v40 = vpop.f32.mrb[41].mxu1 }
 0x173   : > { %v4223_v47 = vpop.f32.mrb[42].mxu0  ;;  %v4225_v48 = vpop.f32.mrb[42].mxu1 }
 0x174   : > { %4779 = vst [vmem:[#allocation8_spill] sm:$0xff] %v4225_v48  ;;  %v1857_v57 = vpop.f32.mrb[43].mxu0  ;;  %v2241_v58 = vpop.f32.mrb[43].mxu1 }
 0x176   : > { %2067 = vmatmul.mubr.bf16.gmra.mrb[148].mxu0 %v3760_v45  ;;  %3453 = vmatmul.mubr.msk.bf16.gmra.mrb[148].mxu1 %vm1545_vm0, %v3761_v46 }
 0x177   : > { %2074 = vmatprep.mubr.bf16.mxu0 %v3762_v53  ;;  %3456 = vmatprep.mubr.msk.bf16.mxu1 %vm1545_vm0, %v3764_v54  ;;  %v3770_v53 = vld [vmem:[%s3879_s28 + $0x3a8] ss:$12 sps:$4 sm:$0xff]   ;;  %v3771_v54 = vld [vmem:[%s3879_s28 + $0x470] ss:$12 sps:$4 sm:$0xff]  }
 0x179   : > { %v4231_v63 = vpop.f32.mrb[44].mxu0  ;;  %v4233_v0 = vpop.f32.mrb[44].mxu1 }
 0x17a   : > { %4780 = vst [vmem:[#allocation9_spill] sm:$0xff] %v4233_v0  ;;  %v1862_v3 = vpop.f32.mrb[45].mxu0  ;;  %v2246_v4 = vpop.f32.mrb[45].mxu1 }
 0x17b   : > { %v4237_v17 = vpop.f32.mrb[46].mxu0  ;;  %v4239_v18 = vpop.f32.mrb[46].mxu1  ;;  %v3772_v3 = vld [vmem:[%s3879_s28 + $0x3c4] ss:$12 sps:$4 sm:$0xff]   ;;  %v3774_v4 = vld [vmem:[%s3879_s28 + $0x488] ss:$12 sps:$4 sm:$0xff]  }
 0x17c   : > { %4781 = vst [vmem:[#allocation10_spill] sm:$0xff] %v4239_v18  ;;  %v1865_v29 = vpop.f32.mrb[47].mxu0  ;;  %v2249_v30 = vpop.f32.mrb[47].mxu1  ;;  %v3786_v18 = vld [vmem:[%s3879_s28 + $0x500] ss:$12 sps:$4 sm:$0xff]  }
 0x17e   : > { %2075 = vmatmul.mubr.bf16.gmra.mrb[152].mxu0 %v3765_v11  ;;  %3457 = vmatmul.mubr.msk.bf16.gmra.mrb[152].mxu1 %vm1545_vm0, %v3766_v12 }
 0x17f   : > { %2082 = vmatprep.mubr.bf16.mxu0 %v3767_v27  ;;  %3460 = vmatprep.mubr.msk.bf16.mxu1 %vm1545_vm0, %v3769_v28 }
 0x181   : > { %v4245_v39 = vpop.f32.mrb[48].mxu0  ;;  %v4247_v40 = vpop.f32.mrb[48].mxu1 }
 0x182   : > { %4782 = vst [vmem:[#allocation11_spill] sm:$0xff] %v4247_v40  ;;  %v1870_v45 = vpop.f32.mrb[49].mxu0  ;;  %v2254_v46 = vpop.f32.mrb[49].mxu1 }
 0x183   : > { %v4251_v57 = vpop.f32.mrb[50].mxu0  ;;  %v4253_v58 = vpop.f32.mrb[50].mxu1  ;;  %v3775_v45 = vld [vmem:[%s3879_s28 + $0x3c0] ss:$12 sps:$4 sm:$0xff]  }
 0x184   : > { %4783 = vst [vmem:[#allocation12_spill] sm:$0xff] %v4253_v58  ;;  %v1873_v11 = vpop.f32.mrb[51].mxu0  ;;  %v2257_v12 = vpop.f32.mrb[51].mxu1  ;;  %v3776_v46 = vld [vmem:[%s3879_s28 + $0x4a0] ss:$12 sps:$4 sm:$0xff]  }
 0x186   : > { %2083 = vmatmul.mubr.bf16.gmra.mrb[156].mxu0 %v3770_v53  ;;  %3461 = vmatmul.mubr.msk.bf16.gmra.mrb[156].mxu1 %vm1545_vm0, %v3771_v54  ;;  %v3777_v53 = vld [vmem:[%s3879_s28 + $0x3dc] ss:$12 sps:$4 sm:$0xff]   ;;  %v3779_v54 = vld [vmem:[%s3879_s28 + $0x4b8] ss:$12 sps:$4 sm:$0xff]  }
 0x187   : > { %2090 = vmatprep.mubr.bf16.mxu0 %v3772_v3  ;;  %3464 = vmatprep.mubr.msk.bf16.mxu1 %vm1545_vm0, %v3774_v4 }
 0x189   : > { %v4259_v27 = vpop.f32.mrb[52].mxu0  ;;  %v4261_v28 = vpop.f32.mrb[52].mxu1 }
 0x18a   : > { %4784 = vst [vmem:[#allocation13_spill] sm:$0xff] %v4261_v28  ;;  %v1878_v29 = vpop.f32.mrb[53].mxu0  ;;  %v2262_v30 = vpop.f32.mrb[53].mxu1  ;;  %v3780_v28 = vld [vmem:[%s3879_s28 + $0x3d8] ss:$12 sps:$4 sm:$0xff]  }
 0x18b   : > { %v4265_v58 = vpop.f32.mrb[54].mxu0  ;;  %v4267_v11 = vpop.f32.mrb[54].mxu1 }
 0x18c   : > { %4785 = vst [vmem:[#allocation14_spill] sm:$0xff] %v4267_v11  ;;  %v1881_v3 = vpop.f32.mrb[55].mxu0  ;;  %v2265_v4 = vpop.f32.mrb[55].mxu1  ;;  %v3781_v11 = vld [vmem:[%s3879_s28 + $0x4d0] ss:$12 sps:$4 sm:$0xff]  }
 0x18e   : > { %2091 = vmatmul.mubr.bf16.gmra.mrb[160].mxu0 %v3775_v45  ;;  %3465 = vmatmul.mubr.msk.bf16.gmra.mrb[160].mxu1 %vm1545_vm0, %v3776_v46  ;;  %v3782_v45 = vld [vmem:[%s3879_s28 + $0x3f4] ss:$12 sps:$4 sm:$0xff]  }
 0x18f   : > { %2098 = vmatprep.mubr.bf16.mxu0 %v3777_v53  ;;  %3468 = vmatprep.mubr.msk.bf16.mxu1 %vm1545_vm0, %v3779_v54  ;;  %v3784_v46 = vld [vmem:[%s3879_s28 + $0x4e8] ss:$12 sps:$4 sm:$0xff]  }
 0x191   : > { %v4273_v12 = vpop.f32.mrb[56].mxu0  ;;  %v4275_v29 = vpop.f32.mrb[56].mxu1 }
 0x192   : > { %4786 = vst [vmem:[#allocation15_spill] sm:$0xff] %v4275_v29  ;;  %v1886_v30 = vpop.f32.mrb[57].mxu0  ;;  %v2270_v40 = vpop.f32.mrb[57].mxu1 }
 0x193   : > { %v4279_v48 = vpop.f32.mrb[58].mxu0  ;;  %v4281_v3 = vpop.f32.mrb[58].mxu1 }
 0x194   : > { %4787 = vst [vmem:[#allocation16_spill] sm:$0xff] %v4281_v3  ;;  %v1889_v53 = vpop.f32.mrb[59].mxu0  ;;  %v2273_v54 = vpop.f32.mrb[59].mxu1  ;;  %v3785_v3 = vld [vmem:[%s3879_s28 + $0x3f0] ss:$12 sps:$4 sm:$0xff]  }
 0x195   : > { %v3787_v53 = vld [vmem:[%s3879_s28 + $0x40c] ss:$12 sps:$4 sm:$0xff]  }
 0x196   : > { %2099 = vmatmul.mubr.bf16.gmra.mrb[164].mxu0 %v3780_v28  ;;  %3469 = vmatmul.mubr.msk.bf16.gmra.mrb[164].mxu1 %vm1545_vm0, %v3781_v11  ;;  %v3789_v28 = vld [vmem:[%s3879_s28 + $0x518] ss:$12 sps:$4 sm:$0xff]  }
 0x197   : > { %2106 = vmatprep.mubr.bf16.mxu0 %v3782_v45  ;;  %3472 = vmatprep.mubr.msk.bf16.mxu1 %vm1545_vm0, %v3784_v46  ;;  %v4302_v45 = vld [vmem:[%s4771_s2] ss:$0 sm:$0xff] }
 0x198   : > { %v1773_v46 = vadd.f32 %v4302_v45, %v4077_v1  ;;  %v1776_v1 = vadd.f32 %v4302_v45, %v4083_v7  ;;  %v1797_v7 = vadd.f32 %v4302_v45, %v4119_v37  ;;  %v1792_v37 = vadd.f32 %v4302_v45, %v4111_v31 }
 0x199   : > { %v4287_v40 = vpop.f32.mrb[60].mxu0  ;;  %v4289_v4 = vpop.f32.mrb[60].mxu1  ;;  %v1813_v31 = vadd.f32 %v4302_v45, %v4147_v61  ;;  %v1808_v61 = vadd.f32 %v4302_v45, %v4139_v55  ;;  %v1829_v55 = vadd.f32 %v4302_v45, %v4175_v33  ;;  %v1824_v33 = vadd.f32 %v4302_v45, %v4167_v23 }
 0x19a   : > { %4788 = vst [vmem:[#allocation17_spill] sm:$0xff] %v4289_v4  ;;  %v1894_v30 = vpop.f32.mrb[61].mxu0  ;;  %v2278_v29 = vpop.f32.mrb[61].mxu1  ;;  %v1845_v23 = vadd.f32 %v4302_v45, %v4203_v9  ;;  %v1840_v9 = vadd.f32 %v4302_v45, %v4195_v59  ;;  %v1853_v59 = vadd.f32 %v4302_v45, %v4217_v35 }
 0x19b   : > { %v4293_v36 = vpop.f32.mrb[62].mxu0  ;;  %v4295_v0 = vpop.f32.mrb[62].mxu1  ;;  %v1781_v29 = vadd.f32 %v4302_v45, %v4091_v13 }
 0x19c   : > { %4789 = vst [vmem:[#allocation18_spill] sm:$0xff] %v4295_v0  ;;  %v1897_v54 = vpop.f32.mrb[63].mxu0  ;;  %v2281_v11 = vpop.f32.mrb[63].mxu1 }
 0x19d   : > { %v3790_v54 = vld [vmem:[%s3879_s28 + $0x408] ss:$12 sps:$4 sm:$0xff]   ;;  %v3791_v11 = vld [vmem:[%s3879_s28 + $0x530] ss:$12 sps:$4 sm:$0xff]  }
 0x19e   : > { %2107 = vmatmul.mubr.bf16.gmra.mrb[168].mxu0 %v3785_v3  ;;  %3473 = vmatmul.mubr.msk.bf16.gmra.mrb[168].mxu1 %vm1545_vm0, %v3786_v18  ;;  %v1784_v3 = vadd.f32 %v4302_v45, %v4097_v19 }
 0x19f   : > { %2114 = vmatprep.mubr.bf16.mxu0 %v3787_v53  ;;  %3476 = vmatprep.mubr.msk.bf16.mxu1 %vm1545_vm0, %v3789_v28 }
 0x1a1   : > { %v4311_v30 = vpop.f32.mrb[64].mxu0  ;;  %v3370_v18 = vpop.f32.mrb[64].mxu1 }
 0x1a2   : > { %v2326_v53 = vadd.f32 %v3370_v18, %v1781_v29  ;;  %v1902_v28 = vpop.f32.mrb[65].mxu0  ;;  %v2317_v13 = vpop.f32.mrb[65].mxu1 }
 0x1a3   : > { %v2318_v0 = vadd.f32 %v2317_v13, %v1773_v46  ;;  %v4324_v4 = vpop.f32.mrb[66].mxu0  ;;  %v3371_v60 = vpop.f32.mrb[66].mxu1  ;;  %v3797_v13 = vld [vmem:[%s3879_s28 + $0x43c] ss:$12 sps:$4 sm:$0xff]  }
 0x1a4   : > { %2830 = vst [vmem:[%s4316_s9 + $0x10] sm:$0xff] %v2326_v53  ;;  %v2329_v10 = vadd.f32 %v3371_v60, %v1784_v3  ;;  %v1905_v19 = vpop.f32.mrb[67].mxu0  ;;  %v2320_v24 = vpop.f32.mrb[67].mxu1  ;;  %v1789_v60 = vadd.f32 %v4302_v45, %v4105_v25  ;;  %v3796_v3 = vld [vmem:[%s3879_s28 + $0x560] ss:$12 sps:$4 sm:$0xff]  }
 0x1a5   : > { %2828 = vst [vmem:[%s4316_s9] sm:$0xff] %v2318_v0  ;;  %v2321_v29 = vadd.f32 %v2320_v24, %v1776_v1 }
 0x1a6   : > { %2831 = vst [vmem:[%s4316_s9 + $0x18] sm:$0xff] %v2329_v10  ;;  %2115 = vmatmul.mubr.bf16.gmra.mrb[172].mxu0 %v3790_v54  ;;  %3477 = vmatmul.mubr.msk.bf16.gmra.mrb[172].mxu1 %vm1545_vm0, %v3791_v11  ;;  %v1800_v10 = vadd.f32 %v4302_v45, %v4125_v43  ;;  %v3799_v54 = vld [vmem:[%s3879_s28 + $0x578] ss:$12 sps:$4 sm:$0xff]  }
 0x1a7   : > { %2829 = vst [vmem:[%s4316_s9 + $0x8] sm:$0xff] %v2321_v29  ;;  %2122 = vmatprep.mubr.bf16.mxu0 %v3792_v22  ;;  %3480 = vmatprep.mubr.msk.bf16.mxu1 %vm1545_vm0, %v3794_v52  ;;  %v3795_v52 = vld [vmem:[%s3879_s28 + $0x420] ss:$12 sps:$4 sm:$0xff]   ;;  %v1805_v29 = vadd.f32 %v4302_v45, %v4133_v49 }
 0x1a9   : > { %v4338_v0 = vpop.f32.mrb[68].mxu0  ;;  %v3374_v24 = vpop.f32.mrb[68].mxu1 }
 0x1aa   : > { %v2342_v46 = vadd.f32 %v3374_v24, %v1797_v7  ;;  %v1910_v22 = vpop.f32.mrb[69].mxu0  ;;  %v2333_v18 = vpop.f32.mrb[69].mxu1  ;;  %v1816_v24 = vadd.f32 %v4302_v45, %v4153_v5 }
 0x1ab   : > { %v2334_v53 = vadd.f32 %v2333_v18, %v1789_v60  ;;  %v4346_v28 = vpop.f32.mrb[70].mxu0  ;;  %v3375_v25 = vpop.f32.mrb[70].mxu1  ;;  %v3800_v18 = vld [vmem:[%s3879_s28 + $0x438] ss:$12 sps:$4 sm:$0xff]  }
 0x1ac   : > { %2834 = vst [vmem:[%s4316_s9 + $0x30] sm:$0xff] %v2342_v46  ;;  %v2345_v11 = vadd.f32 %v3375_v25, %v1800_v10  ;;  %v1913_v43 = vpop.f32.mrb[71].mxu0  ;;  %v2336_v1 = vpop.f32.mrb[71].mxu1  ;;  %v3804_v25 = vld [vmem:[%s3879_s28 + $0x5a8] ss:$12 sps:$4 sm:$0xff]  }
 0x1ad   : > { %2832 = vst [vmem:[%s4316_s9 + $0x20] sm:$0xff] %v2334_v53  ;;  %v2337_v19 = vadd.f32 %v2336_v1, %v1792_v37  ;;  %v3802_v53 = vld [vmem:[%s3879_s28 + $0x454] ss:$12 sps:$4 sm:$0xff]   ;;  %v1821_v43 = vadd.f32 %v4302_v45, %v4161_v15 }
 0x1ae   : > { %2835 = vst [vmem:[%s4316_s9 + $0x38] sm:$0xff] %v2345_v11  ;;  %2123 = vmatmul.mubr.bf16.gmra.mrb[176].mxu0 %v3795_v52  ;;  %3481 = vmatmul.mubr.msk.bf16.gmra.mrb[176].mxu1 %vm1545_vm0, %v3796_v3  ;;  %v3801_v52 = vld [vmem:[%s3879_s28 + $0x590] ss:$12 sps:$4 sm:$0xff]  }
 0x1af   : > { %2833 = vst [vmem:[%s4316_s9 + $0x28] sm:$0xff] %v2337_v19  ;;  %2130 = vmatprep.mubr.bf16.mxu0 %v3797_v13  ;;  %3484 = vmatprep.mubr.msk.bf16.mxu1 %vm1545_vm0, %v3799_v54 }
 0x1b1   : > { %v4360_v7 = vpop.f32.mrb[72].mxu0  ;;  %v3378_v60 = vpop.f32.mrb[72].mxu1 }
 0x1b2   : > { %v2358_v10 = vadd.f32 %v3378_v60, %v1813_v31  ;;  %v1918_v46 = vpop.f32.mrb[73].mxu0  ;;  %v2349_v22 = vpop.f32.mrb[73].mxu1  ;;  %v1832_v31 = vadd.f32 %v4302_v45, %v4181_v41 }
 0x1b3   : > { %v2350_v3 = vadd.f32 %v2349_v22, %v1805_v29  ;;  %v4368_v37 = vpop.f32.mrb[74].mxu0  ;;  %v3379_v49 = vpop.f32.mrb[74].mxu1  ;;  %v3806_v46 = vld [vmem:[%s3879_s28 + $0x5c0] ss:$12 sps:$4 sm:$0xff]  }
 0x1b4   : > { %2838 = vst [vmem:[%s4316_s9 + $0x50] sm:$0xff] %v2358_v10  ;;  %v2361_v13 = vadd.f32 %v3379_v49, %v1816_v24  ;;  %v1921_v5 = vpop.f32.mrb[75].mxu0  ;;  %v2352_v54 = vpop.f32.mrb[75].mxu1  ;;  %v3805_v10 = vld [vmem:[%s3879_s28 + $0x450] ss:$12 sps:$4 sm:$0xff]  }
 0x1b5   : > { %2836 = vst [vmem:[%s4316_s9 + $0x40] sm:$0xff] %v2350_v3  ;;  %v2353_v11 = vadd.f32 %v2352_v54, %v1808_v61  ;;  %v3809_v61 = vld [vmem:[%s3879_s28 + $0x5d8] ss:$12 sps:$4 sm:$0xff]   ;;  %v1848_v54 = vadd.f32 %v4302_v45, %v4209_v21 }
 0x1b6   : > { %2839 = vst [vmem:[%s4316_s9 + $0x58] sm:$0xff] %v2361_v13  ;;  %2131 = vmatmul.mubr.bf16.gmra.mrb[180].mxu0 %v3800_v18  ;;  %3485 = vmatmul.mubr.msk.bf16.gmra.mrb[180].mxu1 %vm1545_vm0, %v3801_v52  ;;  %v3807_v52 = vld [vmem:[%s3879_s28 + $0x46c] ss:$12 sps:$4 sm:$0xff]  }
 0x1b7   : > { %2837 = vst [vmem:[%s4316_s9 + $0x48] sm:$0xff] %v2353_v11  ;;  %2138 = vmatprep.mubr.bf16.mxu0 %v3802_v53  ;;  %3488 = vmatprep.mubr.msk.bf16.mxu1 %vm1545_vm0, %v3804_v25  ;;  %v1837_v25 = vadd.f32 %v4302_v45, %v4189_v51 }
 0x1b9   : > { %v4382_v1 = vpop.f32.mrb[76].mxu0  ;;  %v3382_v19 = vpop.f32.mrb[76].mxu1 }
 0x1ba   : > { %v2374_v29 = vadd.f32 %v3382_v19, %v1829_v55  ;;  %v1926_v60 = vpop.f32.mrb[77].mxu0  ;;  %v2365_v24 = vpop.f32.mrb[77].mxu1  ;;  %v3810_v19 = vld [vmem:[%s3879_s28 + $0x468] ss:$12 sps:$4 sm:$0xff]  }
 0x1bb   : > { %v2366_v22 = vadd.f32 %v2365_v24, %v1821_v43  ;;  %v4390_v18 = vpop.f32.mrb[78].mxu0  ;;  %v3383_v15 = vpop.f32.mrb[78].mxu1 }
 0x1bc   : > { %2842 = vst [vmem:[%s4316_s9 + $0x70] sm:$0xff] %v2374_v29  ;;  %v2377_v3 = vadd.f32 %v3383_v15, %v1832_v31  ;;  %v1929_v41 = vpop.f32.mrb[79].mxu0  ;;  %v2368_v49 = vpop.f32.mrb[79].mxu1  ;;  %v3811_v31 = vld [vmem:[%s3879_s28 + $0x5f0] ss:$12 sps:$4 sm:$0xff]  }
 0x1bd   : > { %2840 = vst [vmem:[%s4316_s9 + $0x60] sm:$0xff] %v2366_v22  ;;  %v2369_v53 = vadd.f32 %v2368_v49, %v1824_v33  ;;  %v1861_v33 = vadd.f32 %v4302_v45, %v4231_v63  ;;  %v1856_v49 = vadd.f32 %v4302_v45, %v4223_v47  ;;  %v1869_v47 = vadd.f32 %v4302_v45, %v4245_v39 }
 0x1be   : > { %2843 = vst [vmem:[%s4316_s9 + $0x78] sm:$0xff] %v2377_v3  ;;  %2139 = vmatmul.mubr.bf16.gmra.mrb[184].mxu0 %v3805_v10  ;;  %3489 = vmatmul.mubr.msk.bf16.gmra.mrb[184].mxu1 %vm1545_vm0, %v3806_v46 }
 0x1bf   : > { %2841 = vst [vmem:[%s4316_s9 + $0x68] sm:$0xff] %v2369_v53  ;;  %2146 = vmatprep.mubr.bf16.mxu0 %v3807_v52  ;;  %3492 = vmatprep.mubr.msk.bf16.mxu1 %vm1545_vm0, %v3809_v61  ;;  %v1864_v52 = vadd.f32 %v4302_v45, %v4237_v17  ;;  %v1877_v17 = vadd.f32 %v4302_v45, %v4259_v27 }
 0x1c1   : > { %v4404_v13 = vpop.f32.mrb[80].mxu0  ;;  %v3386_v5 = vpop.f32.mrb[80].mxu1 }
 0x1c2   : > { %v2390_v11 = vadd.f32 %v3386_v5, %v1845_v23  ;;  %v1934_v55 = vpop.f32.mrb[81].mxu0  ;;  %v2381_v43 = vpop.f32.mrb[81].mxu1 }
 0x1c3   : > { %v2382_v29 = vadd.f32 %v2381_v43, %v1837_v25  ;;  %v4412_v60 = vpop.f32.mrb[82].mxu0  ;;  %v3387_v51 = vpop.f32.mrb[82].mxu1  ;;  %v1880_v43 = vadd.f32 %v4302_v45, %v4265_v58  ;;  %v1893_v58 = vadd.f32 %v4302_v45, %v4287_v40 }
 0x1c4   : > { %2846 = vst [vmem:[%s4316_s9 + $0x90] sm:$0xff] %v2390_v11  ;;  %v2393_v24 = vadd.f32 %v3387_v51, %v1848_v54  ;;  %v1937_v10 = vpop.f32.mrb[83].mxu0  ;;  %v2384_v46 = vpop.f32.mrb[83].mxu1 }
 0x1c5   : > { %2844 = vst [vmem:[%s4316_s9 + $0x80] sm:$0xff] %v2382_v29  ;;  %v2385_v21 = vadd.f32 %v2384_v46, %v1840_v9  ;;  %v1872_v29 = vadd.f32 %v4302_v45, %v4251_v57  ;;  %v1885_v57 = vadd.f32 %v4302_v45, %v4273_v12 }
 0x1c6   : > { %2847 = vst [vmem:[%s4316_s9 + $0x98] sm:$0xff] %v2393_v24  ;;  %2147 = vmatmul.mubr.bf16.gmra.mrb[188].mxu0 %v3810_v19  ;;  %3493 = vmatmul.mubr.msk.bf16.gmra.mrb[188].mxu1 %vm1545_vm0, %v3811_v31 }
 0x1c7   : > { %2845 = vst [vmem:[%s4316_s9 + $0x88] sm:$0xff] %v2385_v21 }
 0x1c9   : > { %v4423_v22 = vpop.f32.mrb[84].mxu0  ;;  %v3390_v15 = vpop.f32.mrb[84].mxu1 }
 0x1ca   : > { %v2406_v61 = vadd.f32 %v3390_v15, %v1861_v33  ;;  %v1942_v3 = vpop.f32.mrb[85].mxu0  ;;  %v2397_v41 = vpop.f32.mrb[85].mxu1  ;;  %v1896_v15 = vadd.f32 %v4302_v45, %v4293_v36  ;;  %v1909_v36 = vadd.f32 %v4302_v45, %v4338_v0 }
 0x1cb   : > { %v2398_v53 = vadd.f32 %v2397_v41, %v1853_v59  ;;  %v4429_v63 = vpop.f32.mrb[86].mxu0  ;;  %v3391_v23 = vpop.f32.mrb[86].mxu1  ;;  %v1888_v41 = vadd.f32 %v4302_v45, %v4279_v48  ;;  %v1901_v48 = vadd.f32 %v4302_v45, %v4311_v30 }
 0x1cc   : > { %2850 = vst [vmem:[%s4316_s9 + $0xb0] sm:$0xff] %v2406_v61  ;;  %v2409_v35 = vadd.f32 %v3391_v23, %v1864_v52  ;;  %v1945_v25 = vpop.f32.mrb[87].mxu0  ;;  %v2400_v5 = vpop.f32.mrb[87].mxu1 }
 0x1cd   : > { %2848 = vst [vmem:[%s4316_s9 + $0xa0] sm:$0xff] %v2398_v53  ;;  %v2401_v54 = vadd.f32 %v2400_v5, %v1856_v49 }
 0x1ce   : > { %2851 = vst [vmem:[%s4316_s9 + $0xb8] sm:$0xff] %v2409_v35 }
 0x1cf   : > { %2849 = vst [vmem:[%s4316_s9 + $0xa8] sm:$0xff] %v2401_v54 }
 0x1d1   : > { %v4439_v11 = vpop.f32.mrb[88].mxu0  ;;  %v3394_v55 = vpop.f32.mrb[88].mxu1 }
 0x1d2   : > { %v2422_v19 = vadd.f32 %v3394_v55, %v1877_v17  ;;  %v1950_v31 = vpop.f32.mrb[89].mxu0  ;;  %v2413_v9 = vpop.f32.mrb[89].mxu1  ;;  %v1912_v17 = vadd.f32 %v4302_v45, %v4346_v28  ;;  %v1925_v28 = vadd.f32 %v4302_v45, %v4382_v1 }
 0x1d3   : > { %v2414_v51 = vadd.f32 %v2413_v9, %v1869_v47  ;;  %v4445_v27 = vpop.f32.mrb[90].mxu0  ;;  %v3395_v24 = vpop.f32.mrb[90].mxu1 }
 0x1d4   : > { %2854 = vst [vmem:[%s4316_s9 + $0xd0] sm:$0xff] %v2422_v19  ;;  %v2425_v39 = vadd.f32 %v3395_v24, %v1880_v43  ;;  %v1953_v10 = vpop.f32.mrb[91].mxu0  ;;  %v2416_v46 = vpop.f32.mrb[91].mxu1  ;;  %v1904_v19 = vadd.f32 %v4302_v45, %v4324_v4  ;;  %v1917_v4 = vadd.f32 %v4302_v45, %v4360_v7 }
 0x1d5   : > { %2852 = vst [vmem:[%s4316_s9 + $0xc0] sm:$0xff] %v2414_v51  ;;  %v2417_v21 = vadd.f32 %v2416_v46, %v1872_v29  ;;  %v1928_v46 = vadd.f32 %v4302_v45, %v4390_v18  ;;  %v1941_v18 = vadd.f32 %v4302_v45, %v4423_v22 }
 0x1d6   : > { %2855 = vst [vmem:[%s4316_s9 + $0xd8] sm:$0xff] %v2425_v39 }
 0x1d7   : > { %2853 = vst [vmem:[%s4316_s9 + $0xc8] sm:$0xff] %v2417_v21 }
 0x1d9   : > { %v4455_v33 = vpop.f32.mrb[92].mxu0  ;;  %v3398_v59 = vpop.f32.mrb[92].mxu1 }
 0x1da   : > { %v2438_v52 = vadd.f32 %v3398_v59, %v1893_v58  ;;  %v1958_v61 = vpop.f32.mrb[93].mxu0  ;;  %v2429_v3 = vpop.f32.mrb[93].mxu1  ;;  %v1920_v59 = vadd.f32 %v4302_v45, %v4368_v37 }
 0x1db   : > { %v2430_v49 = vadd.f32 %v2429_v3, %v1885_v57  ;;  %v4461_v40 = vpop.f32.mrb[94].mxu0  ;;  %v3399_v53 = vpop.f32.mrb[94].mxu1 }
 0x1dc   : > { %2858 = vst [vmem:[%s4316_s9 + $0xf0] sm:$0xff] %v2438_v52  ;;  %v2441_v12 = vadd.f32 %v3399_v53, %v1896_v15  ;;  %v1961_v23 = vpop.f32.mrb[95].mxu0  ;;  %v2432_v35 = vpop.f32.mrb[95].mxu1 }
 0x1dd   : > { %2856 = vst [vmem:[%s4316_s9 + $0xe0] sm:$0xff] %v2430_v49  ;;  %v2433_v25 = vadd.f32 %v2432_v35, %v1888_v41  ;;  %v1933_v49 = vadd.f32 %v4302_v45, %v4404_v13 }
 0x1de   : > { %2859 = vst [vmem:[%s4316_s9 + $0xf8] sm:$0xff] %v2441_v12  ;;  %v1944_v12 = vadd.f32 %v4302_v45, %v4429_v63  ;;  %v1957_v63 = vadd.f32 %v4302_v45, %v4455_v33 }
 0x1df   : > { %2857 = vst [vmem:[%s4316_s9 + $0xe8] sm:$0xff] %v2433_v25 }
 0x1e1   : > { %v4471_v5 = vpop.f32.mrb[96].mxu0  ;;  %v3402_v54 = vpop.f32.mrb[96].mxu1 }
 0x1e2   : > { %v2454_v47 = vadd.f32 %v3402_v54, %v1909_v36  ;;  %v1966_v55 = vpop.f32.mrb[97].mxu0  ;;  %v2445_v43 = vpop.f32.mrb[97].mxu1  ;;  %v1936_v36 = vadd.f32 %v4302_v45, %v4412_v60 }
 0x1e3   : > { %v2446_v31 = vadd.f32 %v2445_v43, %v1901_v48  ;;  %v4477_v0 = vpop.f32.mrb[98].mxu0  ;;  %v3403_v9 = vpop.f32.mrb[98].mxu1  ;;  %v1949_v43 = vadd.f32 %v4302_v45, %v4439_v11 }
 0x1e4   : > { %2862 = vst [vmem:[%s4316_s9 + $0x110] sm:$0xff] %v2454_v47  ;;  %v2457_v30 = vadd.f32 %v3403_v9, %v1912_v17  ;;  %v1969_v29 = vpop.f32.mrb[99].mxu0  ;;  %v2448_v51 = vpop.f32.mrb[99].mxu1 }
 0x1e5   : > { %2860 = vst [vmem:[%s4316_s9 + $0x100] sm:$0xff] %v2446_v31  ;;  %v2449_v24 = vadd.f32 %v2448_v51, %v1904_v19  ;;  %v1960_v31 = vadd.f32 %v4302_v45, %v4461_v40  ;;  %v1952_v51 = vadd.f32 %v4302_v45, %v4445_v27 }
 0x1e6   : > { %2863 = vst [vmem:[%s4316_s9 + $0x118] sm:$0xff] %v2457_v30 }
 0x1e7   : > { %2861 = vst [vmem:[%s4316_s9 + $0x108] sm:$0xff] %v2449_v24 }
 0x1e9   : > { %v1972_v39 = vpop.f32.mrb[100].mxu0  ;;  %v3406_v10 = vpop.f32.mrb[100].mxu1 }
 0x1ea   : > { %v2470_v21 = vadd.f32 %v3406_v10, %v1925_v28  ;;  %v1974_v58 = vpop.f32.mrb[101].mxu0  ;;  %v2461_v57 = vpop.f32.mrb[101].mxu1  ;;  %v1973_v40 = vadd.f32 %v4302_v45, %v1972_v39 }
 0x1eb   : > { %v2462_v15 = vadd.f32 %v2461_v57, %v1917_v4  ;;  %v1975_v52 = vpop.f32.mrb[102].mxu0  ;;  %v3407_v1 = vpop.f32.mrb[102].mxu1 }
 0x1ec   : > { %2866 = vst [vmem:[%s4316_s9 + $0x130] sm:$0xff] %v2470_v21  ;;  %v2473_v61 = vadd.f32 %v3407_v1, %v1928_v46  ;;  %v1977_v3 = vpop.f32.mrb[103].mxu0  ;;  %v2464_v7 = vpop.f32.mrb[103].mxu1  ;;  %v1965_v21 = vadd.f32 %v4302_v45, %v4471_v5  ;;  %v1976_v57 = vadd.f32 %v4302_v45, %v1975_v52 }
 0x1ed   : > { %2864 = vst [vmem:[%s4316_s9 + $0x120] sm:$0xff] %v2462_v15  ;;  %v2465_v41 = vadd.f32 %v2464_v7, %v1920_v59 }
 0x1ee   : > { %2867 = vst [vmem:[%s4316_s9 + $0x138] sm:$0xff] %v2473_v61  ;;  %v1968_v61 = vadd.f32 %v4302_v45, %v4477_v0 }
 0x1ef   : > { %2865 = vst [vmem:[%s4316_s9 + $0x128] sm:$0xff] %v2465_v41 }
 0x1f1   : > { %v1980_v37 = vpop.f32.mrb[104].mxu0  ;;  %v3410_v53 = vpop.f32.mrb[104].mxu1 }
 0x1f2   : > { %v2486_v23 = vadd.f32 %v3410_v53, %v1941_v18  ;;  %v1982_v35 = vpop.f32.mrb[105].mxu0  ;;  %v2477_v25 = vpop.f32.mrb[105].mxu1  ;;  %v1981_v53 = vadd.f32 %v4302_v45, %v1980_v37 }
 0x1f3   : > { %v2478_v48 = vadd.f32 %v2477_v25, %v1933_v49  ;;  %v1983_v54 = vpop.f32.mrb[106].mxu0  ;;  %v3411_v22 = vpop.f32.mrb[106].mxu1 }
 0x1f4   : > { %2870 = vst [vmem:[%s4316_s9 + $0x150] sm:$0xff] %v2486_v23  ;;  %v2489_v17 = vadd.f32 %v3411_v22, %v1944_v12  ;;  %v1985_v47 = vpop.f32.mrb[107].mxu0  ;;  %v2480_v13 = vpop.f32.mrb[107].mxu1 }
 0x1f5   : > { %2868 = vst [vmem:[%s4316_s9 + $0x140] sm:$0xff] %v2478_v48  ;;  %v2481_v55 = vadd.f32 %v2480_v13, %v1936_v36  ;;  %v1984_v48 = vadd.f32 %v4302_v45, %v1983_v54 }
 0x1f6   : > { %2871 = vst [vmem:[%s4316_s9 + $0x158] sm:$0xff] %v2489_v17 }
 0x1f7   : > { %2869 = vst [vmem:[%s4316_s9 + $0x148] sm:$0xff] %v2481_v55 }
 0x1f9   : > { %v1988_v60 = vpop.f32.mrb[108].mxu0  ;;  %v3414_v19 = vpop.f32.mrb[108].mxu1 }
 0x1fa   : > { %v2502_v9 = vadd.f32 %v3414_v19, %v1957_v63  ;;  %v1990_v30 = vpop.f32.mrb[109].mxu0  ;;  %v2493_v29 = vpop.f32.mrb[109].mxu1  ;;  %v1989_v52 = vadd.f32 %v4302_v45, %v1988_v60 }
 0x1fb   : > { %v2494_v24 = vadd.f32 %v2493_v29, %v1949_v43  ;;  %v1991_v28 = vpop.f32.mrb[110].mxu0  ;;  %v3415_v33 = vpop.f32.mrb[110].mxu1 }
 0x1fc   : > { %2874 = vst [vmem:[%s4316_s9 + $0x170] sm:$0xff] %v2502_v9  ;;  %v2505_v4 = vadd.f32 %v3415_v33, %v1960_v31  ;;  %v1993_v10 = vpop.f32.mrb[111].mxu0  ;;  %v2496_v11 = vpop.f32.mrb[111].mxu1  ;;  %v1992_v23 = vadd.f32 %v4302_v45, %v1991_v28 }
 0x1fd   : > { %2872 = vst [vmem:[%s4316_s9 + $0x160] sm:$0xff] %v2494_v24  ;;  %v2497_v46 = vadd.f32 %v2496_v11, %v1952_v51 }
 0x1fe   : > { %2875 = vst [vmem:[%s4316_s9 + $0x178] sm:$0xff] %v2505_v4 }
 0x1ff   : > { %2873 = vst [vmem:[%s4316_s9 + $0x168] sm:$0xff] %v2497_v46 }
 0x201   : > { %v1996_v58 = vpop.f32.mrb[112].mxu0  ;;  %v3418_v27 = vpop.f32.mrb[112].mxu1 }
 0x202   : > { %v2518_v59 = vadd.f32 %v3418_v27, %v1973_v40  ;;  %v1998_v15 = vpop.f32.mrb[113].mxu0  ;;  %v2509_v1 = vpop.f32.mrb[113].mxu1  ;;  %v1997_v60 = vadd.f32 %v4302_v45, %v1996_v58 }
 0x203   : > { %v2510_v3 = vadd.f32 %v2509_v1, %v1965_v21  ;;  %v1999_v7 = vpop.f32.mrb[114].mxu0  ;;  %v3419_v41 = vpop.f32.mrb[114].mxu1 }
 0x204   : > { %2878 = vst [vmem:[%s4316_s9 + $0x190] sm:$0xff] %v2518_v59  ;;  %v2521_v39 = vadd.f32 %v3419_v41, %v1976_v57  ;;  %v2001_v18 = vpop.f32.mrb[115].mxu0  ;;  %v2512_v49 = vpop.f32.mrb[115].mxu1  ;;  %v2000_v51 = vadd.f32 %v4302_v45, %v1999_v7 }
 0x205   : > { %2876 = vst [vmem:[%s4316_s9 + $0x180] sm:$0xff] %v2510_v3  ;;  %v2513_v5 = vadd.f32 %v2512_v49, %v1968_v61 }
 0x206   : > { %2879 = vst [vmem:[%s4316_s9 + $0x198] sm:$0xff] %v2521_v39 }
 0x207   : > { %2877 = vst [vmem:[%s4316_s9 + $0x188] sm:$0xff] %v2513_v5 }
 0x209   : > { %v2004_v12 = vpop.f32.mrb[116].mxu0  ;;  %v3422_v0 = vpop.f32.mrb[116].mxu1 }
 0x20a   : > { %v2534_v35 = vadd.f32 %v3422_v0, %v1989_v52  ;;  %v2006_v25 = vpop.f32.mrb[117].mxu0  ;;  %v2525_v36 = vpop.f32.mrb[117].mxu1  ;;  %v2005_v43 = vadd.f32 %v4302_v45, %v2004_v12 }
 0x20b   : > { %v2526_v22 = vadd.f32 %v2525_v36, %v1981_v53  ;;  %v2007_v17 = vpop.f32.mrb[118].mxu0  ;;  %v3423_v47 = vpop.f32.mrb[118].mxu1 }
 0x20c   : > { %2882 = vst [vmem:[%s4316_s9 + $0x1b0] sm:$0xff] %v2534_v35  ;;  %v2537_v13 = vadd.f32 %v3423_v47, %v1992_v23  ;;  %v2009_v55 = vpop.f32.mrb[119].mxu0  ;;  %v2528_v63 = vpop.f32.mrb[119].mxu1  ;;  %v2008_v31 = vadd.f32 %v4302_v45, %v2007_v17 }
 0x20d   : > { %2880 = vst [vmem:[%s4316_s9 + $0x1a0] sm:$0xff] %v2526_v22  ;;  %v2529_v37 = vadd.f32 %v2528_v63, %v1984_v48 }
 0x20e   : > { %2883 = vst [vmem:[%s4316_s9 + $0x1b8] sm:$0xff] %v2537_v13 }
 0x20f   : > { %2881 = vst [vmem:[%s4316_s9 + $0x1a8] sm:$0xff] %v2529_v37 }
 0x211   : > { %v2012_v19 = vpop.f32.mrb[120].mxu0  ;;  %v3426_v54 = vpop.f32.mrb[120].mxu1 }
 0x212   : > { %v2550_v9 = vadd.f32 %v3426_v54, %v2005_v43  ;;  %v2014_v30 = vpop.f32.mrb[121].mxu0  ;;  %v2541_v29 = vpop.f32.mrb[121].mxu1  ;;  %v2013_v40 = vadd.f32 %v4302_v45, %v2012_v19 }
 0x213   : > { %v2542_v24 = vadd.f32 %v2541_v29, %v1997_v60  ;;  %v2015_v28 = vpop.f32.mrb[122].mxu0  ;;  %v3427_v33 = vpop.f32.mrb[122].mxu1 }
 0x214   : > { %2886 = vst [vmem:[%s4316_s9 + $0x1d0] sm:$0xff] %v2550_v9  ;;  %v2553_v4 = vadd.f32 %v3427_v33, %v2008_v31  ;;  %v2017_v10 = vpop.f32.mrb[123].mxu0  ;;  %v2544_v11 = vpop.f32.mrb[123].mxu1  ;;  %v2016_v15 = vadd.f32 %v4302_v45, %v2015_v28 }
 0x215   : > { %2884 = vst [vmem:[%s4316_s9 + $0x1c0] sm:$0xff] %v2542_v24  ;;  %v2545_v46 = vadd.f32 %v2544_v11, %v2000_v51 }
 0x216   : > { %2887 = vst [vmem:[%s4316_s9 + $0x1d8] sm:$0xff] %v2553_v4 }
 0x217   : > { %2885 = vst [vmem:[%s4316_s9 + $0x1c8] sm:$0xff] %v2545_v46 }
 0x219   : > { %v2020_v21 = vpop.f32.mrb[124].mxu0  ;;  %v3430_v58 = vpop.f32.mrb[124].mxu1 }
 0x21a   : > { %v2021_v27 = vadd.f32 %v4302_v45, %v2020_v21  ;;  %v2022_v57 = vpop.f32.mrb[125].mxu0  ;;  %v2557_v59 = vpop.f32.mrb[125].mxu1 }
 0x21b   : > { %v2558_v1 = vadd.f32 %v2557_v59, %v2013_v40  ;;  %v2023_v61 = vpop.f32.mrb[126].mxu0  ;;  %v3431_v3 = vpop.f32.mrb[126].mxu1 }
 0x21c   : > { %v2566_v7 = vadd.f32 %v3430_v58, %v2021_v27  ;;  %v2024_v41 = vadd.f32 %v4302_v45, %v2023_v61  ;;  %v2025_v39 = vpop.f32.mrb[127].mxu0  ;;  %v2560_v18 = vpop.f32.mrb[127].mxu1 }
 0x21d   : > { %2888 = vst [vmem:[%s4316_s9 + $0x1e0] sm:$0xff] %v2558_v1  ;;  %v2561_v49 = vadd.f32 %v2560_v18, %v2016_v15 }
 0x21e   : > { %2890 = vst [vmem:[%s4316_s9 + $0x1f0] sm:$0xff] %v2566_v7  ;;  %v2569_v5 = vadd.f32 %v3431_v3, %v2024_v41 }
 0x21f   : > { %2889 = vst [vmem:[%s4316_s9 + $0x1e8] sm:$0xff] %v2561_v49 }
 0x220   : > { %2891 = vst [vmem:[%s4316_s9 + $0x1f8] sm:$0xff] %v2569_v5 }
 0x221   : > { %v2028_v52 = vpop.f32.mrb[128].mxu0  ;;  %v3434_v53 = vpop.f32.mrb[128].mxu1 }
 0x222   : > { %v2029_v12 = vadd.f32 %v4302_v45, %v2028_v52  ;;  %v2030_v0 = vpop.f32.mrb[129].mxu0  ;;  %v2573_v23 = vpop.f32.mrb[129].mxu1 }
 0x223   : > { %v2031_v35 = vpop.f32.mrb[130].mxu0  ;;  %v3435_v25 = vpop.f32.mrb[130].mxu1 }
 0x224   : > { %v2574_v36 = vadd.f32 %v2573_v23, %v2029_v12  ;;  %v2032_v48 = vadd.f32 %v4302_v45, %v2031_v35  ;;  %v2033_v22 = vpop.f32.mrb[131].mxu0  ;;  %v2576_v17 = vpop.f32.mrb[131].mxu1 }
 0x226   : > { %2892 = vst [vmem:[%s4316_s9 + $0x200] sm:$0xff] %v2574_v36  ;;  %v2577_v47 = vadd.f32 %v2576_v17, %v2032_v48 }
 0x228   : > { %2893 = vst [vmem:[%s4316_s9 + $0x208] sm:$0xff] %v2577_v47 }
 0x229   : > { %v2036_v13 = vpop.f32.mrb[132].mxu0  ;;  %v3438_v55 = vpop.f32.mrb[132].mxu1 }
 0x22a   : > { %v2037_v63 = vadd.f32 %v4302_v45, %v2036_v13  ;;  %v2038_v37 = vpop.f32.mrb[133].mxu0  ;;  %v2589_v43 = vpop.f32.mrb[133].mxu1 }
 0x22b   : > { %v2039_v60 = vpop.f32.mrb[134].mxu0  ;;  %v3439_v19 = vpop.f32.mrb[134].mxu1 }
 0x22c   : > { %v2582_v54 = vadd.f32 %v3434_v53, %v2037_v63  ;;  %v2040_v31 = vadd.f32 %v4302_v45, %v2039_v60  ;;  %v2041_v9 = vpop.f32.mrb[135].mxu0  ;;  %v2592_v30 = vpop.f32.mrb[135].mxu1 }
 0x22e   : > { %2894 = vst [vmem:[%s4316_s9 + $0x210] sm:$0xff] %v2582_v54  ;;  %v2585_v29 = vadd.f32 %v3435_v25, %v2040_v31 }
 0x230   : > { %2895 = vst [vmem:[%s4316_s9 + $0x218] sm:$0xff] %v2585_v29 }
 0x231   : > { %v2044_v51 = vpop.f32.mrb[136].mxu0  ;;  %v3442_v24 = vpop.f32.mrb[136].mxu1 }
 0x232   : > { %v2045_v28 = vadd.f32 %v4302_v45, %v2044_v51  ;;  %v2046_v33 = vpop.f32.mrb[137].mxu0  ;;  %v2605_v4 = vpop.f32.mrb[137].mxu1 }
 0x233   : > { %v2047_v10 = vpop.f32.mrb[138].mxu0  ;;  %v3443_v11 = vpop.f32.mrb[138].mxu1 }
 0x234   : > { %v2590_v46 = vadd.f32 %v2589_v43, %v2045_v28  ;;  %v2048_v40 = vadd.f32 %v4302_v45, %v2047_v10  ;;  %v2049_v21 = vpop.f32.mrb[139].mxu0  ;;  %v2608_v58 = vpop.f32.mrb[139].mxu1 }
 0x236   : > { %2896 = vst [vmem:[%s4316_s9 + $0x220] sm:$0xff] %v2590_v46  ;;  %v2593_v27 = vadd.f32 %v2592_v30, %v2048_v40 }
 0x238   : > { %2897 = vst [vmem:[%s4316_s9 + $0x228] sm:$0xff] %v2593_v27 }
 0x239   : > { %v2052_v57 = vpop.f32.mrb[140].mxu0  ;;  %v3446_v59 = vpop.f32.mrb[140].mxu1 }
 0x23a   : > { %v2053_v15 = vadd.f32 %v4302_v45, %v2052_v57  ;;  %v2054_v1 = vpop.f32.mrb[141].mxu0  ;;  %v2621_v61 = vpop.f32.mrb[141].mxu1 }
 0x23b   : > { %v2055_v3 = vpop.f32.mrb[142].mxu0  ;;  %v3447_v7 = vpop.f32.mrb[142].mxu1 }
 0x23c   : > { %v2598_v41 = vadd.f32 %v3438_v55, %v2053_v15  ;;  %v2056_v39 = vadd.f32 %v4302_v45, %v2055_v3  ;;  %v2057_v18 = vpop.f32.mrb[143].mxu0  ;;  %v2624_v49 = vpop.f32.mrb[143].mxu1 }
 0x23e   : > { %2898 = vst [vmem:[%s4316_s9 + $0x230] sm:$0xff] %v2598_v41  ;;  %v2601_v5 = vadd.f32 %v3439_v19, %v2056_v39 }
 0x240   : > { %2899 = vst [vmem:[%s4316_s9 + $0x238] sm:$0xff] %v2601_v5 }
 0x241   : > { %v2060_v52 = vpop.f32.mrb[144].mxu0  ;;  %v4569_v53 = vpop.f32.mrb[144].mxu1 }
 0x242   : > { %v2061_v12 = vadd.f32 %v4302_v45, %v2060_v52  ;;  %v2062_v0 = vpop.f32.mrb[145].mxu0  ;;  %v4572_v23 = vpop.f32.mrb[145].mxu1 }
 0x243   : > { %v2063_v35 = vpop.f32.mrb[146].mxu0  ;;  %v4574_v25 = vpop.f32.mrb[146].mxu1  ;;  %v2165_v0 = vadd.f32 %v4302_v45, %v4093_v14  ;;  %v2160_v14 = vadd.f32 %v4302_v45, %v4085_v8  ;;  %v2181_v8 = vadd.f32 %v4302_v45, %v4121_v38  ;;  %v2176_v38 = vadd.f32 %v4302_v45, %v4113_v32 }
 0x244   : > { %v2606_v36 = vadd.f32 %v2605_v4, %v2061_v12  ;;  %v2064_v48 = vadd.f32 %v4302_v45, %v2063_v35  ;;  %v2065_v22 = vpop.f32.mrb[147].mxu0  ;;  %v4577_v17 = vpop.f32.mrb[147].mxu1  ;;  %v2157_v35 = vadd.f32 %v4302_v45, %v4079_v2 }
 0x246   : > { %2900 = vst [vmem:[%s4316_s9 + $0x240] sm:$0xff] %v2606_v36  ;;  %v2609_v47 = vadd.f32 %v2608_v58, %v2064_v48 }
 0x248   : > { %2901 = vst [vmem:[%s4316_s9 + $0x248] sm:$0xff] %v2609_v47 }
 0x249   : > { %v2068_v13 = vpop.f32.mrb[148].mxu0  ;;  %v4581_v55 = vpop.f32.mrb[148].mxu1 }
 0x24a   : > { %v2069_v63 = vadd.f32 %v4302_v45, %v2068_v13  ;;  %v2070_v37 = vpop.f32.mrb[149].mxu0  ;;  %v4584_v43 = vpop.f32.mrb[149].mxu1 }
 0x24b   : > { %v2071_v60 = vpop.f32.mrb[150].mxu0  ;;  %v4586_v19 = vpop.f32.mrb[150].mxu1 }
 0x24c   : > { %v2614_v54 = vadd.f32 %v3442_v24, %v2069_v63  ;;  %v2072_v31 = vadd.f32 %v4302_v45, %v2071_v60  ;;  %v2073_v9 = vpop.f32.mrb[151].mxu0  ;;  %v4589_v30 = vpop.f32.mrb[151].mxu1 }
 0x24e   : > { %2902 = vst [vmem:[%s4316_s9 + $0x250] sm:$0xff] %v2614_v54  ;;  %v2617_v29 = vadd.f32 %v3443_v11, %v2072_v31 }
 0x250   : > { %2903 = vst [vmem:[%s4316_s9 + $0x258] sm:$0xff] %v2617_v29 }
 0x251   : > { %v2076_v51 = vpop.f32.mrb[152].mxu0  ;;  %v4593_v28 = vpop.f32.mrb[152].mxu1 }
 0x252   : > { %v2077_v33 = vadd.f32 %v4302_v45, %v2076_v51  ;;  %v2078_v4 = vpop.f32.mrb[153].mxu0  ;;  %v4596_v10 = vpop.f32.mrb[153].mxu1 }
 0x253   : > { %v2079_v46 = vpop.f32.mrb[154].mxu0  ;;  %v4598_v24 = vpop.f32.mrb[154].mxu1 }
 0x254   : > { %v2622_v40 = vadd.f32 %v2621_v61, %v2077_v33  ;;  %v2080_v21 = vadd.f32 %v4302_v45, %v2079_v46  ;;  %v2081_v58 = vpop.f32.mrb[155].mxu0  ;;  %v4601_v27 = vpop.f32.mrb[155].mxu1  ;;  %v2184_v46 = vadd.f32 %v4302_v45, %v4127_v44  ;;  %v4649_v44 = vld [vmem:[%s4771_s2] ss:$0 sm:$0xff] }
 0x256   : > { %2904 = vst [vmem:[%s4316_s9 + $0x260] sm:$0xff] %v2622_v40  ;;  %v2625_v11 = vadd.f32 %v2624_v49, %v2080_v21 }
 0x258   : > { %2905 = vst [vmem:[%s4316_s9 + $0x268] sm:$0xff] %v2625_v11 }
 0x259   : > { %v2084_v57 = vpop.f32.mrb[156].mxu0  ;;  %v4605_v15 = vpop.f32.mrb[156].mxu1 }
 0x25a   : > { %v2085_v1 = vadd.f32 %v4302_v45, %v2084_v57  ;;  %v2086_v3 = vpop.f32.mrb[157].mxu0  ;;  %v4608_v41 = vpop.f32.mrb[157].mxu1 }
 0x25b   : > { %v2087_v39 = vpop.f32.mrb[158].mxu0  ;;  %v4610_v61 = vpop.f32.mrb[158].mxu1 }
 0x25c   : > { %v2630_v18 = vadd.f32 %v3446_v59, %v2085_v1  ;;  %v2088_v5 = vadd.f32 %v4302_v45, %v2087_v39  ;;  %v2089_v52 = vpop.f32.mrb[159].mxu0  ;;  %v4613_v12 = vpop.f32.mrb[159].mxu1  ;;  %v2168_v59 = vadd.f32 %v4302_v45, %v4099_v20 }
 0x25d   : > { %v2189_v52 = vadd.f32 %v4649_v44, %v4135_v50 }
 0x25e   : > { %2906 = vst [vmem:[%s4316_s9 + $0x270] sm:$0xff] %v2630_v18  ;;  %v2633_v49 = vadd.f32 %v3447_v7, %v2088_v5 }
 0x260   : > { %2907 = vst [vmem:[%s4316_s9 + $0x278] sm:$0xff] %v2633_v49 }
 0x261   : > { %v2092_v36 = vpop.f32.mrb[160].mxu0  ;;  %v3466_v48 = vpop.f32.mrb[160].mxu1 }
 0x262   : > { %v2093_v22 = vadd.f32 %v4302_v45, %v2092_v36  ;;  %v2710_v47 = vadd.f32 %v3466_v48, %v2165_v0  ;;  %v2094_v13 = vpop.f32.mrb[161].mxu0  ;;  %v2701_v7 = vpop.f32.mrb[161].mxu1 }
 0x263   : > { %v2702_v63 = vadd.f32 %v2701_v7, %v2157_v35  ;;  %v2095_v2 = vpop.f32.mrb[162].mxu0  ;;  %v3467_v37 = vpop.f32.mrb[162].mxu1  ;;  %v2200_v35 = vadd.f32 %v4649_v44, %v4155_v6 }
 0x264   : > { %v2638_v60 = vadd.f32 %v4572_v23, %v2093_v22  ;;  %2926 = vst [vmem:[%s4316_s9 + $0x310] sm:$0xff] %v2710_v47  ;;  %v2096_v20 = vadd.f32 %v4302_v45, %v2095_v2  ;;  %v2713_v54 = vadd.f32 %v3467_v37, %v2168_v59  ;;  %v2097_v31 = vpop.f32.mrb[163].mxu0  ;;  %v2704_v9 = vpop.f32.mrb[163].mxu1  ;;  %v2173_v23 = vadd.f32 %v4302_v45, %v4107_v26 }
 0x265   : > { %2924 = vst [vmem:[%s4316_s9 + $0x300] sm:$0xff] %v2702_v63  ;;  %v2705_v29 = vadd.f32 %v2704_v9, %v2160_v14 }
 0x266   : > { %2908 = vst [vmem:[%s4316_s9 + $0x280] sm:$0xff] %v2638_v60  ;;  %v2641_v51 = vadd.f32 %v4577_v17, %v2096_v20  ;;  %2927 = vst [vmem:[%s4316_s9 + $0x318] sm:$0xff] %v2713_v54  ;;  %v2216_v54 = vadd.f32 %v4649_v44, %v4183_v42 }
 0x267   : > { %2925 = vst [vmem:[%s4316_s9 + $0x308] sm:$0xff] %v2705_v29 }
 0x268   : > { %2909 = vst [vmem:[%s4316_s9 + $0x288] sm:$0xff] %v2641_v51  ;;  %v4790_v51 = vld [vmem:[#allocation2_spill] sm:$0xff] }
 0x269   : > { %v2100_v33 = vpop.f32.mrb[164].mxu0  ;;  %v3470_v4 = vpop.f32.mrb[164].mxu1 }
 0x26a   : > { %v2101_v40 = vadd.f32 %v4302_v45, %v2100_v33  ;;  %v2726_v21 = vadd.f32 %v3470_v4, %v2181_v8  ;;  %v2102_v17 = vpop.f32.mrb[165].mxu0  ;;  %v2717_v58 = vpop.f32.mrb[165].mxu1 }
 0x26b   : > { %v2718_v11 = vadd.f32 %v2717_v58, %v2173_v23  ;;  %v2103_v57 = vpop.f32.mrb[166].mxu0  ;;  %v3471_v26 = vpop.f32.mrb[166].mxu1  ;;  %v4791_v58 = vld [vmem:[#allocation5_spill] sm:$0xff] }
 0x26c   : > { %v2646_v1 = vadd.f32 %v4569_v53, %v2101_v40  ;;  %2930 = vst [vmem:[%s4316_s9 + $0x330] sm:$0xff] %v2726_v21  ;;  %v2104_v3 = vadd.f32 %v4649_v44, %v2103_v57  ;;  %v2729_v39 = vadd.f32 %v3471_v26, %v2184_v46  ;;  %v2105_v18 = vpop.f32.mrb[167].mxu0  ;;  %v2720_v5 = vpop.f32.mrb[167].mxu1  ;;  %v2197_v53 = vadd.f32 %v4649_v44, %v4149_v62 }
 0x26d   : > { %2928 = vst [vmem:[%s4316_s9 + $0x320] sm:$0xff] %v2718_v11  ;;  %v2721_v32 = vadd.f32 %v2720_v5, %v2176_v38  ;;  %v2192_v62 = vadd.f32 %v4649_v44, %v4141_v56  ;;  %v2213_v56 = vadd.f32 %v4649_v44, %v4177_v34  ;;  %v2208_v34 = vadd.f32 %v4649_v44, %v4790_v51  ;;  %v4792_v11 = vld [vmem:[#allocation3_spill] sm:$0xff] }
 0x26e   : > { %2910 = vst [vmem:[%s4316_s9 + $0x290] sm:$0xff] %v2646_v1  ;;  %v2649_v45 = vadd.f32 %v4574_v25, %v2104_v3  ;;  %2931 = vst [vmem:[%s4316_s9 + $0x338] sm:$0xff] %v2729_v39  ;;  %v2229_v38 = vadd.f32 %v4649_v44, %v4791_v58  ;;  %v4793_v1 = vld [vmem:[#allocation6_spill] sm:$0xff] }
 0x26f   : > { %2929 = vst [vmem:[%s4316_s9 + $0x328] sm:$0xff] %v2721_v32  ;;  %v2232_v3 = vadd.f32 %v4649_v44, %v4793_v1  ;;  %v4794_v32 = vld [vmem:[#allocation4_spill] sm:$0xff] }
 0x270   : > { %2911 = vst [vmem:[%s4316_s9 + $0x298] sm:$0xff] %v2649_v45  ;;  %v2224_v45 = vadd.f32 %v4649_v44, %v4794_v32 }
 0x271   : > { %v2108_v49 = vpop.f32.mrb[168].mxu0  ;;  %v3474_v0 = vpop.f32.mrb[168].mxu1 }
 0x272   : > { %v2109_v36 = vadd.f32 %v4649_v44, %v2108_v49  ;;  %v2742_v25 = vadd.f32 %v3474_v0, %v2197_v53  ;;  %v2110_v48 = vpop.f32.mrb[169].mxu0  ;;  %v2733_v59 = vpop.f32.mrb[169].mxu1 }
 0x273   : > { %v2734_v22 = vadd.f32 %v2733_v59, %v2189_v52  ;;  %v2111_v50 = vpop.f32.mrb[170].mxu0  ;;  %v3475_v47 = vpop.f32.mrb[170].mxu1 }
 0x274   : > { %v2654_v13 = vadd.f32 %v4584_v43, %v2109_v36  ;;  %2934 = vst [vmem:[%s4316_s9 + $0x350] sm:$0xff] %v2742_v25  ;;  %v2112_v6 = vadd.f32 %v4649_v44, %v2111_v50  ;;  %v2745_v7 = vadd.f32 %v3475_v47, %v2200_v35  ;;  %v2113_v14 = vpop.f32.mrb[171].mxu0  ;;  %v2736_v63 = vpop.f32.mrb[171].mxu1  ;;  %v2205_v43 = vadd.f32 %v4649_v44, %v4163_v16  ;;  %v4796_v47 = vld [vmem:[#allocation7_spill] sm:$0xff] }
 0x275   : > { %2932 = vst [vmem:[%s4316_s9 + $0x340] sm:$0xff] %v2734_v22  ;;  %v2737_v2 = vadd.f32 %v2736_v63, %v2192_v62  ;;  %v4795_v22 = vld [vmem:[#allocation9_spill] sm:$0xff] }
 0x276   : > { %2912 = vst [vmem:[%s4316_s9 + $0x2a0] sm:$0xff] %v2654_v13  ;;  %v2657_v37 = vadd.f32 %v4589_v30, %v2112_v6  ;;  %2935 = vst [vmem:[%s4316_s9 + $0x358] sm:$0xff] %v2745_v7  ;;  %v2245_v50 = vadd.f32 %v4649_v44, %v4795_v22  ;;  %v4797_v7 = vld [vmem:[#allocation10_spill] sm:$0xff] }
 0x277   : > { %2933 = vst [vmem:[%s4316_s9 + $0x348] sm:$0xff] %v2737_v2  ;;  %v2248_v14 = vadd.f32 %v4649_v44, %v4797_v7 }
 0x278   : > { %2913 = vst [vmem:[%s4316_s9 + $0x2a8] sm:$0xff] %v2657_v37 }
 0x279   : > { %v2116_v60 = vpop.f32.mrb[172].mxu0  ;;  %v3478_v20 = vpop.f32.mrb[172].mxu1 }
 0x27a   : > { %v2117_v31 = vadd.f32 %v4649_v44, %v2116_v60  ;;  %v2758_v30 = vadd.f32 %v3478_v20, %v2213_v56  ;;  %v2118_v9 = vpop.f32.mrb[173].mxu0  ;;  %v2749_v29 = vpop.f32.mrb[173].mxu1  ;;  %v4798_v56 = vld [vmem:[#allocation8_spill] sm:$0xff] }
 0x27b   : > { %v2750_v8 = vadd.f32 %v2749_v29, %v2205_v43  ;;  %v2119_v16 = vpop.f32.mrb[174].mxu0  ;;  %v3479_v23 = vpop.f32.mrb[174].mxu1  ;;  %v2240_v43 = vadd.f32 %v4649_v44, %v4798_v56 }
 0x27c   : > { %v2662_v33 = vadd.f32 %v4581_v55, %v2117_v31  ;;  %2938 = vst [vmem:[%s4316_s9 + $0x370] sm:$0xff] %v2758_v30  ;;  %v2120_v42 = vadd.f32 %v4649_v44, %v2119_v16  ;;  %v2761_v4 = vadd.f32 %v3479_v23, %v2216_v54  ;;  %v2121_v46 = vpop.f32.mrb[175].mxu0  ;;  %v2752_v40 = vpop.f32.mrb[175].mxu1  ;;  %v2221_v55 = vadd.f32 %v4649_v44, %v4792_v11  ;;  %v4799_v16 = vld [vmem:[#allocation13_spill] sm:$0xff] }
 0x27d   : > { %2936 = vst [vmem:[%s4316_s9 + $0x360] sm:$0xff] %v2750_v8  ;;  %v2753_v21 = vadd.f32 %v2752_v40, %v2208_v34  ;;  %v2261_v23 = vadd.f32 %v4649_v44, %v4799_v16  ;;  %v4801_v46 = vld [vmem:[#allocation14_spill] sm:$0xff] }
 0x27e   : > { %2914 = vst [vmem:[%s4316_s9 + $0x2b0] sm:$0xff] %v2662_v33  ;;  %v2665_v17 = vadd.f32 %v4586_v19, %v2120_v42  ;;  %2939 = vst [vmem:[%s4316_s9 + $0x378] sm:$0xff] %v2761_v4  ;;  %v4800_v33 = vld [vmem:[#allocation11_spill] sm:$0xff]  ;;  %v2264_v40 = vadd.f32 %v4649_v44, %v4801_v46 }
 0x27f   : > { %2937 = vst [vmem:[%s4316_s9 + $0x368] sm:$0xff] %v2753_v21 }
 0x280   : > { %2915 = vst [vmem:[%s4316_s9 + $0x2b8] sm:$0xff] %v2665_v17 }
 0x281   : > { %v2124_v57 = vpop.f32.mrb[176].mxu0  ;;  %v3482_v26 = vpop.f32.mrb[176].mxu1 }
 0x282   : > { %v2125_v39 = vadd.f32 %v4649_v44, %v2124_v57  ;;  %v2774_v19 = vadd.f32 %v3482_v26, %v2229_v38  ;;  %v2126_v18 = vpop.f32.mrb[177].mxu0  ;;  %v2765_v5 = vpop.f32.mrb[177].mxu1  ;;  %v4802_v38 = vld [vmem:[#allocation12_spill] sm:$0xff] }
 0x283   : > { %v2766_v53 = vadd.f32 %v2765_v5, %v2221_v55  ;;  %v2127_v52 = vpop.f32.mrb[178].mxu0  ;;  %v3483_v49 = vpop.f32.mrb[178].mxu1  ;;  %v2256_v11 = vadd.f32 %v4649_v44, %v4802_v38 }
 0x284   : > { %v2670_v0 = vadd.f32 %v4596_v10, %v2125_v39  ;;  %2942 = vst [vmem:[%s4316_s9 + $0x390] sm:$0xff] %v2774_v19  ;;  %v2128_v35 = vadd.f32 %v4649_v44, %v2127_v52  ;;  %v2777_v36 = vadd.f32 %v3483_v49, %v2232_v3  ;;  %v2129_v25 = vpop.f32.mrb[179].mxu0  ;;  %v2768_v48 = vpop.f32.mrb[179].mxu1  ;;  %v2237_v10 = vadd.f32 %v4649_v44, %v4796_v47  ;;  %v4804_v52 = vld [vmem:[#allocation15_spill] sm:$0xff] }
 0x285   : > { %2940 = vst [vmem:[%s4316_s9 + $0x380] sm:$0xff] %v2766_v53  ;;  %v2769_v59 = vadd.f32 %v2768_v48, %v2224_v45  ;;  %v4803_v45 = vld [vmem:[#allocation17_spill] sm:$0xff] }
 0x286   : > { %2916 = vst [vmem:[%s4316_s9 + $0x2c0] sm:$0xff] %v2670_v0  ;;  %v2673_v62 = vadd.f32 %v4601_v27, %v2128_v35  ;;  %2943 = vst [vmem:[%s4316_s9 + $0x398] sm:$0xff] %v2777_v36  ;;  %v2277_v53 = vadd.f32 %v4649_v44, %v4803_v45  ;;  %v4805_v35 = vld [vmem:[#allocation18_spill] sm:$0xff] }
 0x287   : > { %2941 = vst [vmem:[%s4316_s9 + $0x388] sm:$0xff] %v2769_v59  ;;  %v2280_v36 = vadd.f32 %v4649_v44, %v4805_v35 }
 0x288   : > { %2917 = vst [vmem:[%s4316_s9 + $0x2c8] sm:$0xff] %v2673_v62  ;;  %v4806_v62 = vld [vmem:[#allocation16_spill] sm:$0xff] }
 0x289   : > { %v2132_v13 = vpop.f32.mrb[180].mxu0  ;;  %v3486_v6 = vpop.f32.mrb[180].mxu1  ;;  %v2272_v22 = vadd.f32 %v4649_v44, %v4806_v62 }
 0x28a   : > { %v2133_v63 = vadd.f32 %v4649_v44, %v2132_v13  ;;  %v2790_v27 = vadd.f32 %v3486_v6, %v2245_v50  ;;  %v2134_v2 = vpop.f32.mrb[181].mxu0  ;;  %v2781_v37 = vpop.f32.mrb[181].mxu1 }
 0x28b   : > { %v2782_v60 = vadd.f32 %v2781_v37, %v2237_v10  ;;  %v2135_v20 = vpop.f32.mrb[182].mxu0  ;;  %v3487_v54 = vpop.f32.mrb[182].mxu1 }
 0x28c   : > { %v2678_v31 = vadd.f32 %v4593_v28, %v2133_v63  ;;  %2946 = vst [vmem:[%s4316_s9 + $0x3b0] sm:$0xff] %v2790_v27  ;;  %v2136_v30 = vadd.f32 %v4649_v44, %v2135_v20  ;;  %v2793_v9 = vadd.f32 %v3487_v54, %v2248_v14  ;;  %v2137_v29 = vpop.f32.mrb[183].mxu0  ;;  %v2784_v51 = vpop.f32.mrb[183].mxu1  ;;  %v2253_v28 = vadd.f32 %v4649_v44, %v4800_v33 }
 0x28d   : > { %2944 = vst [vmem:[%s4316_s9 + $0x3a0] sm:$0xff] %v2782_v60  ;;  %v2785_v34 = vadd.f32 %v2784_v51, %v2240_v43 }
 0x28e   : > { %2918 = vst [vmem:[%s4316_s9 + $0x2d0] sm:$0xff] %v2678_v31  ;;  %v2681_v8 = vadd.f32 %v4598_v24, %v2136_v30  ;;  %2947 = vst [vmem:[%s4316_s9 + $0x3b8] sm:$0xff] %v2793_v9 }
 0x28f   : > { %2945 = vst [vmem:[%s4316_s9 + $0x3a8] sm:$0xff] %v2785_v34 }
 0x290   : > { %2919 = vst [vmem:[%s4316_s9 + $0x2d8] sm:$0xff] %v2681_v8 }
 0x291   : > { %v2140_v42 = vpop.f32.mrb[184].mxu0  ;;  %v3490_v4 = vpop.f32.mrb[184].mxu1 }
 0x292   : > { %v2141_v21 = vadd.f32 %v4649_v44, %v2140_v42  ;;  %v2806_v24 = vadd.f32 %v3490_v4, %v2261_v23  ;;  %v2142_v17 = vpop.f32.mrb[185].mxu0  ;;  %v2797_v58 = vpop.f32.mrb[185].mxu1 }
 0x293   : > { %v2798_v55 = vadd.f32 %v2797_v58, %v2253_v28  ;;  %v2143_v57 = vpop.f32.mrb[186].mxu0  ;;  %v3491_v26 = vpop.f32.mrb[186].mxu1 }
 0x294   : > { %v2686_v1 = vadd.f32 %v4608_v41, %v2141_v21  ;;  %2950 = vst [vmem:[%s4316_s9 + $0x3d0] sm:$0xff] %v2806_v24  ;;  %v2144_v3 = vadd.f32 %v4649_v44, %v2143_v57  ;;  %v2809_v39 = vadd.f32 %v3491_v26, %v2264_v40  ;;  %v2145_v19 = vpop.f32.mrb[187].mxu0  ;;  %v2800_v18 = vpop.f32.mrb[187].mxu1  ;;  %v2269_v41 = vadd.f32 %v4649_v44, %v4804_v52 }
 0x295   : > { %2948 = vst [vmem:[%s4316_s9 + $0x3c0] sm:$0xff] %v2798_v55  ;;  %v2801_v5 = vadd.f32 %v2800_v18, %v2256_v11 }
 0x296   : > { %2920 = vst [vmem:[%s4316_s9 + $0x2e0] sm:$0xff] %v2686_v1  ;;  %v2689_v32 = vadd.f32 %v4613_v12, %v2144_v3  ;;  %2951 = vst [vmem:[%s4316_s9 + $0x3d8] sm:$0xff] %v2809_v39 }
 0x297   : > { %2949 = vst [vmem:[%s4316_s9 + $0x3c8] sm:$0xff] %v2801_v5 }
 0x298   : > { %2921 = vst [vmem:[%s4316_s9 + $0x2e8] sm:$0xff] %v2689_v32 }
 0x299   : > { %v2148_v49 = vpop.f32.mrb[188].mxu0  ;;  %v3494_v0 = vpop.f32.mrb[188].mxu1 }
 0x29a   : > { %v2149_v25 = vadd.f32 %v4649_v44, %v2148_v49  ;;  %v2822_v12 = vadd.f32 %v3494_v0, %v2277_v53  ;;  %v2150_v48 = vpop.f32.mrb[189].mxu0  ;;  %v2813_v59 = vpop.f32.mrb[189].mxu1 }
 0x29b   : > { %v2814_v50 = vadd.f32 %v2813_v59, %v2269_v41  ;;  %v2151_v47 = vpop.f32.mrb[190].mxu0  ;;  %v3495_v10 = vpop.f32.mrb[190].mxu1 }
 0x29c   : > { %v2694_v13 = vadd.f32 %v4605_v15, %v2149_v25  ;;  %2954 = vst [vmem:[%s4316_s9 + $0x3f0] sm:$0xff] %v2822_v12  ;;  %v2152_v6 = vadd.f32 %v4649_v44, %v2151_v47  ;;  %v2825_v7 = vadd.f32 %v3495_v10, %v2280_v36  ;;  %v2153_v14 = vpop.f32.mrb[191].mxu0  ;;  %v2816_v63 = vpop.f32.mrb[191].mxu1 }
 0x29d   : > { %2952 = vst [vmem:[%s4316_s9 + $0x3e0] sm:$0xff] %v2814_v50  ;;  %v2817_v27 = vadd.f32 %v2816_v63, %v2272_v22 }
 0x29e   : > { %2922 = vst [vmem:[%s4316_s9 + $0x2f0] sm:$0xff] %v2694_v13  ;;  %v2697_v2 = vadd.f32 %v4610_v61, %v2152_v6  ;;  %2955 = vst [vmem:[%s4316_s9 + $0x3f8] sm:$0xff] %v2825_v7 }
 0x29f   : > { %2953 = vst [vmem:[%s4316_s9 + $0x3e8] sm:$0xff] %v2817_v27 }
 0x2a0   : > { %2923 = vst [vmem:[%s4316_s9 + $0x2f8] sm:$0xff] %v2697_v2 }
 0x2a1 PF: > { %s13_s12 = sadd.s32 1, %s3819_s12  }
 0x2a2   : > { %p10_p4 = scmp.ge.s32.totalorder %s13_s12, 4  }
 0x2a4   :  { %12 = sbr.rel (!%p10_p4) target bundleno = 1 (0x1), region = 62 }

// kernel: adaptive_cnn_forward.15
= control target key start
LH: loop header
LB: loop body
LE: loop exit
PB: predicated region body
PF: predicated region fallthrough
CT: control target
= control target key end

     0   :  { %s483_s1 = inlined_call_operand.vmem [shape: bf16[128,128], index: 1, kind: input, shape index: {}]   ;;  %s484_s0 = inlined_call_operand.vmem [shape: bf16[128,128], index: 0, kind: input, shape index: {}]   ;;  %s485_s2 = inlined_call_operand.vmem [shape: f32[1,128], index: 2, kind: input, shape index: {}]   ;;  %s486_s3 = inlined_call_operand.vmem [shape: f32[128,128], index: 3, kind: output, shape index: {}]  }
   0x1   :  { %v348_v0 = vld [vmem:[%s483_s1] sm:$0xff]   ;;  %v349_v1 = vld [vmem:[%s483_s1 + $0x8] sm:$0xff]   ;;  %v350_v2 = vld [vmem:[%s483_s1 + $0x10] sm:$0xff]  }
   0x2   :  { %300 = vmatprep.subr.bf16.mxu0 %v348_v0  ;;  %332 = vmatprep.subr.bf16.mxu1 %v348_v0  ;;  %v351_v3 = vld [vmem:[%s483_s1 + $0x18] sm:$0xff]   ;;  %v356_v4 = vld [vmem:[%s484_s0] sm:$0xff]   ;;  %v353_v7 = vld [vmem:[%s483_s1 + $0x28] sm:$0xff]  }
   0x3   :  { %301 = vmatpush3.bf16.msra.mxu0 %v348_v0  ;;  %340 = vmatpush3.bf16.msra.mxu1 %v348_v0  ;;  %v357_v5 = vld [vmem:[%s484_s0 + $0x20] sm:$0xff]   ;;  %v354_v8 = vld [vmem:[%s483_s1 + $0x30] sm:$0xff]   ;;  %v355_v9 = vld [vmem:[%s483_s1 + $0x38] sm:$0xff]  }
   0x4   :  { %302 = vmatprep.subr.bf16.mxu0 %v349_v1  ;;  %333 = vmatprep.subr.bf16.mxu1 %v349_v1  ;;  %v352_v6 = vld [vmem:[%s483_s1 + $0x20] sm:$0xff]   ;;  %v358_v10 = vld [vmem:[%s484_s0 + $0x8] sm:$0xff]   ;;  %v360_v12 = vld [vmem:[%s484_s0 + $0x10] sm:$0xff]  }
   0x5   :  { %316 = vmatprep.mubr.bf16.mxu0 %v356_v4  ;;  %324 = vmatprep.mubr.bf16.mxu1 %v357_v5  ;;  %v359_v11 = vld [vmem:[%s484_s0 + $0x28] sm:$0xff]   ;;  %v361_v13 = vld [vmem:[%s484_s0 + $0x30] sm:$0xff]   ;;  %v362_v14 = vld [vmem:[%s484_s0 + $0x18] sm:$0xff]  }
   0x6   :  { %v363_v15 = vld [vmem:[%s484_s0 + $0x38] sm:$0xff]   ;;  %v267_v16 = vld [vmem:[%s485_s2] ss:$0 sm:$0xff] }
   0x7   :  { %303 = vmatpush3.bf16.msra.mxu0 %v349_v1  ;;  %341 = vmatpush3.bf16.msra.mxu1 %v349_v1 }
   0x8   :  { %304 = vmatprep.subr.bf16.mxu0 %v350_v2  ;;  %334 = vmatprep.subr.bf16.mxu1 %v350_v2 }
   0xb   :  { %305 = vmatpush3.bf16.msra.mxu0 %v350_v2  ;;  %342 = vmatpush3.bf16.msra.mxu1 %v350_v2 }
   0xc   :  { %306 = vmatprep.subr.bf16.mxu0 %v351_v3  ;;  %335 = vmatprep.subr.bf16.mxu1 %v351_v3 }
   0xf   :  { %307 = vmatpush3.bf16.msra.mxu0 %v351_v3  ;;  %343 = vmatpush3.bf16.msra.mxu1 %v351_v3 }
  0x10   :  { %308 = vmatprep.subr.bf16.mxu0 %v352_v6  ;;  %336 = vmatprep.subr.bf16.mxu1 %v352_v6 }
  0x13   :  { %309 = vmatpush3.bf16.msra.mxu0 %v352_v6  ;;  %344 = vmatpush3.bf16.msra.mxu1 %v352_v6 }
  0x14   :  { %310 = vmatprep.subr.bf16.mxu0 %v353_v7  ;;  %337 = vmatprep.subr.bf16.mxu1 %v353_v7 }
  0x17   :  { %311 = vmatpush3.bf16.msra.mxu0 %v353_v7  ;;  %345 = vmatpush3.bf16.msra.mxu1 %v353_v7 }
  0x18   :  { %312 = vmatprep.subr.bf16.mxu0 %v354_v8  ;;  %338 = vmatprep.subr.bf16.mxu1 %v354_v8 }
  0x1b   :  { %313 = vmatpush3.bf16.msra.mxu0 %v354_v8  ;;  %346 = vmatpush3.bf16.msra.mxu1 %v354_v8 }
  0x1c   :  { %314 = vmatprep.subr.bf16.mxu0 %v355_v9  ;;  %339 = vmatprep.subr.bf16.mxu1 %v355_v9 }
  0x1f   :  { %315 = vmatpush3.bf16.msra.mxu0 %v355_v9  ;;  %347 = vmatpush3.bf16.msra.mxu1 %v355_v9 }
  0x22   :  { %317 = vmatmul.mubr.bf16.vlgmr.msra.gmra.mrb[0].mxu0 %v358_v10  ;;  %325 = vmatmul.mubr.bf16.vlgmr.msra.gmra.mrb[0].mxu1 %v359_v11 }
  0x23   :  { %320 = vmatprep.mubr.bf16.mxu0 %v360_v12  ;;  %328 = vmatprep.mubr.bf16.mxu1 %v361_v13 }
  0x2a   :  { %321 = vmatmul.mubr.bf16.gmra.mrb[4].mxu0 %v362_v14  ;;  %329 = vmatmul.mubr.bf16.gmra.mrb[4].mxu1 %v363_v15 }
  0xf5   :  { %v318_v17 = vpop.f32.mrb[0].mxu0  ;;  %v326_v18 = vpop.f32.mrb[0].mxu1 }
  0xf6   :  { %v193_v19 = vadd.f32 %v318_v17, %v267_v16  ;;  %v225_v20 = vadd.f32 %v326_v18, %v267_v16  ;;  %v184_v21 = vpop.f32.mrb[1].mxu0  ;;  %v216_v22 = vpop.f32.mrb[1].mxu1 }
  0xf7   :  { %v185_v23 = vadd.f32 %v267_v16, %v184_v21  ;;  %v217_v24 = vadd.f32 %v267_v16, %v216_v22  ;;  %v319_v25 = vpop.f32.mrb[2].mxu0  ;;  %v327_v26 = vpop.f32.mrb[2].mxu1 }
  0xf8   :  { %249 = vst [vmem:[%s486_s3 + $0x10] sm:$0xff] %v193_v19  ;;  %257 = vst [vmem:[%s486_s3 + $0x50] sm:$0xff] %v225_v20  ;;  %v196_v27 = vadd.f32 %v319_v25, %v267_v16  ;;  %v228_v28 = vadd.f32 %v327_v26, %v267_v16  ;;  %v187_v29 = vpop.f32.mrb[3].mxu0  ;;  %v219_v30 = vpop.f32.mrb[3].mxu1 }
  0xf9   :  { %247 = vst [vmem:[%s486_s3] sm:$0xff] %v185_v23  ;;  %255 = vst [vmem:[%s486_s3 + $0x40] sm:$0xff] %v217_v24  ;;  %v188_v31 = vadd.f32 %v267_v16, %v187_v29  ;;  %v220_v32 = vadd.f32 %v267_v16, %v219_v30 }
  0xfa   :  { %250 = vst [vmem:[%s486_s3 + $0x18] sm:$0xff] %v196_v27  ;;  %258 = vst [vmem:[%s486_s3 + $0x58] sm:$0xff] %v228_v28 }
  0xfb   :  { %248 = vst [vmem:[%s486_s3 + $0x8] sm:$0xff] %v188_v31  ;;  %256 = vst [vmem:[%s486_s3 + $0x48] sm:$0xff] %v220_v32 }
  0xfd   :  { %v322_v33 = vpop.f32.mrb[4].mxu0  ;;  %v330_v34 = vpop.f32.mrb[4].mxu1 }
  0xfe   :  { %v209_v35 = vadd.f32 %v322_v33, %v267_v16  ;;  %v241_v36 = vadd.f32 %v330_v34, %v267_v16  ;;  %v200_v37 = vpop.f32.mrb[5].mxu0  ;;  %v232_v38 = vpop.f32.mrb[5].mxu1 }
  0xff   :  { %v201_v39 = vadd.f32 %v267_v16, %v200_v37  ;;  %v233_v40 = vadd.f32 %v267_v16, %v232_v38  ;;  %v323_v41 = vpop.f32.mrb[6].mxu0  ;;  %v331_v42 = vpop.f32.mrb[6].mxu1 }
 0x100   :  { %253 = vst [vmem:[%s486_s3 + $0x30] sm:$0xff] %v209_v35  ;;  %261 = vst [vmem:[%s486_s3 + $0x70] sm:$0xff] %v241_v36  ;;  %v212_v43 = vadd.f32 %v323_v41, %v267_v16  ;;  %v244_v44 = vadd.f32 %v331_v42, %v267_v16  ;;  %v203_v45 = vpop.f32.mrb[7].mxu0  ;;  %v235_v46 = vpop.f32.mrb[7].mxu1 }
 0x101   :  { %251 = vst [vmem:[%s486_s3 + $0x20] sm:$0xff] %v201_v39  ;;  %259 = vst [vmem:[%s486_s3 + $0x60] sm:$0xff] %v233_v40  ;;  %v204_v47 = vadd.f32 %v267_v16, %v203_v45  ;;  %v236_v48 = vadd.f32 %v267_v16, %v235_v46 }
 0x102   :  { %254 = vst [vmem:[%s486_s3 + $0x38] sm:$0xff] %v212_v43  ;;  %262 = vst [vmem:[%s486_s3 + $0x78] sm:$0xff] %v244_v44 }
 0x103   :  { %252 = vst [vmem:[%s486_s3 + $0x28] sm:$0xff] %v204_v47  ;;  %260 = vst [vmem:[%s486_s3 + $0x68] sm:$0xff] %v236_v48 }

</bundles_post_ra>
